<compile_context>
chip_gen: v5e
topology: v5e:2x2
jax: 0.10.0
libtpu: 0.0.40
codegen_flags: <defaults>
</compile_context>

<pallas_src>
import math

import jax
import jax.numpy as jnp
from jax import lax
from jax.experimental import pallas as pl
from jax.experimental.pallas import tpu as pltpu

EPS = 1e-5  # PyTorch GroupNorm default eps


def _make_kernel(num_heads, q_tile, num_q_tiles, compute_dtype, exp_dtype, recip_approx):
    """Kernel closed over static config (heads, query tiling, MXU / exp dtypes)."""

    def kernel(x_ref, gmat_ref, gmat_t_ref, gamma_ref, beta_ref,
               wqkv_ref, bqkv_ref, wproj_ref, bproj_ref, o_ref, qkv_ref):
        # x block: [1, C, T] (native PyTorch NCHW with spatial flattened).
        x_ct = x_ref[0]                               # [C, T] f32
        C, T = x_ct.shape
        ch = C // num_heads
        x_tc = x_ct.T                                 # one on-chip transpose per batch elem
        gmat = gmat_ref[...]                          # [C, G] one-hot group membership
        gmat_t = gmat_t_ref[...]                      # [G, C]
        G = gmat.shape[1]
        n = float(T * (C // G))

        # ---- GroupNorm, two-pass (mean, then variance of x - mean) on the MXU ----
        s_c = jnp.sum(x_tc, axis=0, keepdims=True)                                  # [1, C]
        mean_g = jnp.dot(s_c, gmat, preferred_element_type=jnp.float32) / n          # [1, G]
        mean_c = jnp.dot(mean_g, gmat_t, preferred_element_type=jnp.float32)         # [1, C]
        d = x_tc - mean_c                                                            # [T, C]
        ss_c = jnp.sum(d * d, axis=0, keepdims=True)                                 # [1, C]
        var_g = jnp.dot(ss_c, gmat, preferred_element_type=jnp.float32) / n          # [1, G]
        var_c = jnp.dot(var_g, gmat_t, preferred_element_type=jnp.float32)           # [1, C]
        inv = lax.rsqrt(var_c + EPS)
        xn = d * (inv * gamma_ref[...]) + beta_ref[...]                              # [T, C] f32

        # ---- 1x1 conv -> qkv [T, 3C] (slab layout, scale pre-folded into Q/K) ----
        # Bias add + downcast fused; only the compute-dtype copy is kept (VMEM scratch).
        qkv_ref[...] = (jnp.dot(xn.astype(compute_dtype), wqkv_ref[...],
                                preferred_element_type=jnp.float32)
                        + bqkv_ref[...]).astype(compute_dtype)

        # Residual + projection bias written once; heads accumulate on top of it.
        o_ref[0, :, :] = x_ct + bproj_ref[...]                                       # bproj: [C, 1]

        dn_qk = (((1,), (1,)), ((), ()))    # q [tq,ch] x k [T,ch]     -> [tq, T]
        dn_proj = (((0,), (1,)), ((), ()))  # wproj_h [ch,C] x a [tq,ch] -> [C, tq]

        for h in range(num_heads):
            # Per-head K / V / W_proj slices hoisted out of the q-tile loop.
            kh = qkv_ref[:, C + h * ch: C + (h + 1) * ch]                            # [T, ch]
            vh = qkv_ref[:, 2 * C + h * ch: 2 * C + (h + 1) * ch]                    # [T, ch]
            wproj_h = wproj_ref[h * ch:(h + 1) * ch, :]                              # [ch, C]

            def tile_body(q0, kh=kh, vh=vh, wproj_h=wproj_h, h=h):
                qh = qkv_ref[pl.ds(q0, q_tile), h * ch:(h + 1) * ch]                 # [tq, ch]
                s = lax.dot_general(qh, kh, dn_qk,
                                    preferred_element_type=jnp.float32)              # [tq, T]
                s = s - jnp.max(s, axis=-1, keepdims=True)
                p = jnp.exp(s.astype(exp_dtype))              # bf16 exp on v6e/v7x (optional)
                l = jnp.sum(p, axis=-1, keepdims=True, dtype=jnp.float32)            # [tq, 1]
                p_mm = p if p.dtype == compute_dtype else p.astype(compute_dtype)
                attn = jnp.dot(p_mm, vh, preferred_element_type=jnp.float32)         # [tq, ch]
                # Normalize AFTER the PV matmul: [tq, ch] multiply, not [tq, T].
                attn = attn * pl.reciprocal(l, approx=recip_approx)
                # Per-head partial output projection directly in [C, tq] layout.
                contrib = lax.dot_general(wproj_h, attn.astype(compute_dtype), dn_proj,
                                          preferred_element_type=jnp.float32)        # [C, tq]
                sl = pl.ds(q0, q_tile)
                o_ref[0, :, sl] = o_ref[0, :, sl] + contrib

            if num_q_tiles == 1:
                tile_body(0)
            else:
                def loop_body(t, carry):
                    tile_body(pl.multiple_of(t * q_tile, q_tile))
                    return carry
                lax.fori_loop(0, num_q_tiles, loop_body, 0)

    return kernel


def _choose_q_tile(T, requested):
    """Largest tile <= requested that divides T, preferring multiples of 128."""
    requested = max(1, min(requested, T))
    c = (requested // 128) * 128
    while c >= 128:
        if T % c == 0:
            return c
        c -= 128
    for c in range(requested, 0, -1):
        if T % c == 0:
            return c
    return T


def attention_block(x, params, *, num_heads, num_groups, q_tile=256,
                    matmul_dtype=jnp.float32, exp_in_bf16=False,
                    vmem_limit_bytes=48 * 1024 * 1024):
    """x: [B, C, H, W] float32 (NCHW, like PyTorch). Returns [B, C, H, W].

    matmul_dtype=jnp.bfloat16 (+ exp_in_bf16=True on v6e/v7x) is the production
    setting; the default keeps everything in f32 for tight numerics. On v5e keep
    exp_in_bf16=False (no bf16 EUP/VPU) but bf16 MXU operands are still fine.
    """
    gamma, beta, w_qkv, b_qkv, w_proj, b_proj = params
    B, C, H, W = x.shape
    T = H * W
    G = num_groups
    assert C % G == 0 and C % num_heads == 0
    ch = C // num_heads
    qt = _choose_q_tile(T, q_tile)
    num_q_tiles = T // qt

    # Native layout: NCHW -> [B, C, T] is a free reshape (no HBM transpose pass).
    x_ct = x.reshape(B, C, T).astype(jnp.float32)

    # Group-membership one-hot matrices so GroupNorm stats run on the MXU.
    group_ids = jnp.arange(C) // (C // G)
    gmat = jax.nn.one_hot(group_ids, G, dtype=jnp.float32)      # [C, G]
    gmat_t = gmat.T                                             # [G, C]

    gamma2 = gamma.reshape(1, C).astype(jnp.float32)
    beta2 = beta.reshape(1, C).astype(jnp.float32)

    # Reorder QKV output channels from torch's per-head [q|k|v] interleave to the
    # slab layout [Q_allheads | K_allheads | V_allheads] and fold the attention
    # scale 1/sqrt(sqrt(ch)) into the Q and K slabs (weights *and* biases).
    perm = jnp.asarray(
        [h * 3 * ch + j * ch + c
         for j in range(3) for h in range(num_heads) for c in range(ch)],
        dtype=jnp.int32)
    scale = 1.0 / math.sqrt(math.sqrt(ch))
    col_scale = jnp.concatenate([jnp.full((2 * C,), scale, jnp.float32),
                                 jnp.ones((C,), jnp.float32)])
    wqkv_t = w_qkv.reshape(3 * C, C).T.astype(jnp.float32)                     # [C, 3C]
    wqkv_slab = (wqkv_t[:, perm] * col_scale[None, :]).astype(matmul_dtype)
    bqkv_slab = (b_qkv.reshape(3 * C)[perm] * col_scale).reshape(1, 3 * C).astype(jnp.float32)
    wproj_t = w_proj.reshape(C, C).T.astype(matmul_dtype)                      # [C_in, C_out]
    bproj2 = b_proj.reshape(C, 1).astype(jnp.float32)                          # [C, 1]

    use_bf16 = jnp.dtype(matmul_dtype) == jnp.dtype(jnp.bfloat16)
    exp_dtype = jnp.bfloat16 if (exp_in_bf16 and use_bf16) else jnp.float32
    recip_approx = jnp.dtype(matmul_dtype) != jnp.dtype(jnp.float32)

    kernel = _make_kernel(num_heads, qt, num_q_tiles, matmul_dtype, exp_dtype, recip_approx)

    out = pl.pallas_call(
        kernel,
        out_shape=jax.ShapeDtypeStruct((B, C, T), jnp.float32),
        grid_spec=pltpu.PrefetchScalarGridSpec(
            num_scalar_prefetch=0,
            grid=(B,),
            in_specs=[
                pl.BlockSpec((1, C, T), lambda b: (b, 0, 0)),      # x (native [B, C, T])
                pl.BlockSpec((C, G), lambda b: (0, 0)),            # gmat
                pl.BlockSpec((G, C), lambda b: (0, 0)),            # gmat_t
                pl.BlockSpec((1, C), lambda b: (0, 0)),            # gamma
                pl.BlockSpec((1, C), lambda b: (0, 0)),            # beta
                pl.BlockSpec((C, 3 * C), lambda b: (0, 0)),        # W_qkv^T (slab, scaled)
                pl.BlockSpec((1, 3 * C), lambda b: (0, 0)),        # b_qkv (slab, scaled)
                pl.BlockSpec((C, C), lambda b: (0, 0)),            # W_proj^T
                pl.BlockSpec((C, 1), lambda b: (0, 0)),            # b_proj (column)
            ],
            out_specs=pl.BlockSpec((1, C, T), lambda b: (b, 0, 0)),
            scratch_shapes=[pltpu.VMEM((T, 3 * C), matmul_dtype)],  # qkv slab
        ),
        compiler_params=pltpu.CompilerParams(
            dimension_semantics=("parallel",),      # batch over TCs (v7x megacore)
            vmem_limit_bytes=vmem_limit_bytes,
        ),
    )(x_ct, gmat, gmat_t, gamma2, beta2, wqkv_slab, bqkv_slab, wproj_t, bproj2)

    return out.reshape(B, C, H, W)


# ----------------------------- pure-JAX reference -----------------------------
def reference(x, params, *, num_heads, num_groups):
    gamma, beta, w_qkv, b_qkv, w_proj, b_proj = params
    B, C, H, W = x.shape
    T = H * W
    G = num_groups
    ch = C // num_heads
    xf = x.reshape(B, C, T).astype(jnp.float32)

    xg = xf.reshape(B, G, (C // G) * T)
    mean = xg.mean(-1, keepdims=True)
    var = xg.var(-1, keepdims=True)
    xn = ((xg - mean) / jnp.sqrt(var + EPS)).reshape(B, C, T)
    xn = xn * gamma[None, :, None] + beta[None, :, None]

    qkv = jnp.einsum('oc,bct->bot', w_qkv.reshape(3 * C, C), xn) + b_qkv[None, :, None]
    qkv = qkv.reshape(B * num_heads, 3 * ch, T)
    q, k, v = qkv[:, :ch], qkv[:, ch:2 * ch], qkv[:, 2 * ch:]
    scale = 1.0 / math.sqrt(math.sqrt(ch))
    w = jnp.einsum('bct,bcs->bts', q * scale, k * scale)
    w = jax.nn.softmax(w, axis=-1)
    a = jnp.einsum('bts,bcs->bct', w, v).reshape(B, C, T)
    h = jnp.einsum('oc,bct->bot', w_proj.reshape(C, C), a) + b_proj[None, :, None]
    return (xf + h).reshape(B, C, H, W)


if __name__ == "__main__":
    B, C, H, W = 2, 32, 16, 16          # T = 256
    NUM_HEADS = 2
    NUM_GROUPS = 32                     # normalization(channels) == GroupNorm(32, channels)

    key = jax.random.PRNGKey(0)
    kx, kq, kb, kg, kbt = jax.random.split(key, 5)
    x = jax.random.normal(kx, (B, C, H, W), dtype=jnp.float32)

    # Parameters per AttentionBlock.__init__ (GroupNorm affine randomized to
    # actually exercise gamma/beta; proj is zero-initialized as in the module).
    gamma = 1.0 + 0.1 * jax.random.normal(kg, (C,), jnp.float32)
    beta = 0.05 * jax.random.normal(kbt, (C,), jnp.float32)
    w_qkv = 0.1 * jax.random.normal(kq, (3 * C, C, 1), jnp.float32)   # conv_nd(1, C, 3C, 1)
    b_qkv = 0.1 * jax.random.normal(kb, (3 * C,), jnp.float32)
    w_proj = jnp.zeros((C, C, 1), jnp.float32)                        # zero_module(conv_nd(1, C, C, 1))
    b_proj = jnp.zeros((C,), jnp.float32)
    params = (gamma, beta, w_qkv, b_qkv, w_proj, b_proj)

    # 1) Faithful-to-init check: zero projection => output equals the residual input.
    out = attention_block(x, params, num_heads=NUM_HEADS, num_groups=NUM_GROUPS)
    jax.block_until_ready(out)
    ref = reference(x, params, num_heads=NUM_HEADS, num_groups=NUM_GROUPS)
    assert jnp.allclose(out, ref, atol=1e-4, rtol=1e-4), "zero-proj mismatch"

    # Non-zero projection so the full attention path contributes.
    kp, kpb = jax.random.split(jax.random.PRNGKey(1))
    params_chk = (gamma, beta, w_qkv, b_qkv,
                  0.1 * jax.random.normal(kp, (C, C, 1), jnp.float32),
                  0.1 * jax.random.normal(kpb, (C,), jnp.float32))
    ref2 = reference(x, params_chk, num_heads=NUM_HEADS, num_groups=NUM_GROUPS)

    # 2) f32 path, single query tile.
    out2 = attention_block(x, params_chk, num_heads=NUM_HEADS, num_groups=NUM_GROUPS)
    jax.block_until_ready(out2)
    assert jnp.allclose(out2, ref2, atol=1e-3, rtol=1e-3), "f32 single-tile mismatch"

    # 3) f32 path, two query tiles (exercises the in-kernel fori_loop path).
    out3 = attention_block(x, params_chk, num_heads=NUM_HEADS, num_groups=NUM_GROUPS,
                           q_tile=128)
    jax.block_until_ready(out3)
    assert jnp.allclose(out3, ref2, atol=1e-3, rtol=1e-3), "f32 tiled mismatch"

    # 4) bf16 MXU operands + bf16 exp (v6e/v7x production config), f32 accumulation.
    out4 = attention_block(x, params_chk, num_heads=NUM_HEADS, num_groups=NUM_GROUPS,
                           matmul_dtype=jnp.bfloat16, exp_in_bf16=True)
    jax.block_until_ready(out4)
    assert jnp.allclose(out4, ref2, atol=5e-2, rtol=5e-2), "bf16 mismatch"

    print("KERNEL_OK")
</pallas_src>

<mosaic_0001>
module attributes {stable_mosaic.version = 11 : i64} {
  func.func @kernel(%arg0: i32, %arg1: memref<1x32x256xf32, #tpu.memory_space<vmem>>, %arg2: memref<32x32xf32, #tpu.memory_space<vmem>>, %arg3: memref<32x32xf32, #tpu.memory_space<vmem>>, %arg4: memref<1x32xf32, #tpu.memory_space<vmem>>, %arg5: memref<1x32xf32, #tpu.memory_space<vmem>>, %arg6: memref<32x96xf32, #tpu.memory_space<vmem>>, %arg7: memref<1x96xf32, #tpu.memory_space<vmem>>, %arg8: memref<32x32xf32, #tpu.memory_space<vmem>>, %arg9: memref<32x1xf32, #tpu.memory_space<vmem>>, %arg10: memref<1x32x256xf32, #tpu.memory_space<vmem>>, %arg11: memref<256x96xf32, #tpu.memory_space<vmem>>) attributes {dimension_semantics = [#tpu.dimension_semantics<parallel>], iteration_bounds = array<i64: 2>, scalar_prefetch = 0 : i64, scratch_operands = 1 : i64, tpu.core_type = #tpu.core_type<tc>, window_params = [{transform_indices = @transform_0, window_bounds = array<i64: 1, 32, 256>}, {pipeline_mode = #tpu.pipeline_mode<synchronous>, transform_indices = @transform_1, window_bounds = array<i64: 32, 32>}, {pipeline_mode = #tpu.pipeline_mode<synchronous>, transform_indices = @transform_2, window_bounds = array<i64: 32, 32>}, {pipeline_mode = #tpu.pipeline_mode<synchronous>, transform_indices = @transform_3, window_bounds = array<i64: 1, 32>}, {pipeline_mode = #tpu.pipeline_mode<synchronous>, transform_indices = @transform_4, window_bounds = array<i64: 1, 32>}, {pipeline_mode = #tpu.pipeline_mode<synchronous>, transform_indices = @transform_5, window_bounds = array<i64: 32, 96>}, {pipeline_mode = #tpu.pipeline_mode<synchronous>, transform_indices = @transform_6, window_bounds = array<i64: 1, 96>}, {pipeline_mode = #tpu.pipeline_mode<synchronous>, transform_indices = @transform_7, window_bounds = array<i64: 32, 32>}, {pipeline_mode = #tpu.pipeline_mode<synchronous>, transform_indices = @transform_8, window_bounds = array<i64: 32, 1>}, {transform_indices = @transform_9, window_bounds = array<i64: 1, 32, 256>}]} {
    %c0 = arith.constant 0 : index
    %c0_0 = arith.constant 0 : index
    %c0_1 = arith.constant 0 : index
    %0 = vector.load %arg1[%c0, %c0_0, %c0_1] : memref<1x32x256xf32, #tpu.memory_space<vmem>>, vector<1x32x256xf32>
    %1 = vector.shape_cast %0 : vector<1x32x256xf32> to vector<32x256xf32>
    %2 = tpu.transpose %1, [1, 0] : vector<32x256xf32> -> vector<256x32xf32>
    %c0_2 = arith.constant 0 : index
    %c0_3 = arith.constant 0 : index
    %3 = vector.load %arg2[%c0_2, %c0_3] : memref<32x32xf32, #tpu.memory_space<vmem>>, vector<32x32xf32>
    %c0_4 = arith.constant 0 : index
    %c0_5 = arith.constant 0 : index
    %4 = vector.load %arg3[%c0_4, %c0_5] : memref<32x32xf32, #tpu.memory_space<vmem>>, vector<32x32xf32>
    %cst = arith.constant dense<0.000000e+00> : vector<32xf32>
    %5 = vector.multi_reduction <add>, %2, %cst [0] : vector<256x32xf32> to vector<32xf32>
    %6 = vector.shape_cast %5 : vector<32xf32> to vector<1x32xf32>
    %cst_6 = arith.constant dense<0.000000e+00> : vector<1x32xf32>
    %7 = tpu.matmul %6, %3, %cst_6 {dimension_numbers = #tpu.dot_dimension_numbers<[1], [0], [0], [1], [0, 0, 1, 1], [], []>} : vector<1x32xf32>, vector<32x32xf32>, vector<1x32xf32> -> vector<1x32xf32>
    %cst_7 = arith.constant 2.560000e+02 : f32
    %8 = vector.broadcast %cst_7 : f32 to vector<1x32xf32>
    %9 = arith.divf %7, %8 : vector<1x32xf32>
    %cst_8 = arith.constant dense<0.000000e+00> : vector<1x32xf32>
    %10 = tpu.matmul %9, %4, %cst_8 {dimension_numbers = #tpu.dot_dimension_numbers<[1], [0], [0], [1], [0, 0, 1, 1], [], []>} : vector<1x32xf32>, vector<32x32xf32>, vector<1x32xf32> -> vector<1x32xf32>
    %11 = vector.broadcast %10 : vector<1x32xf32> to vector<256x32xf32>
    %12 = arith.subf %2, %11 : vector<256x32xf32>
    %13 = arith.mulf %12, %12 : vector<256x32xf32>
    %cst_9 = arith.constant dense<0.000000e+00> : vector<32xf32>
    %14 = vector.multi_reduction <add>, %13, %cst_9 [0] : vector<256x32xf32> to vector<32xf32>
    %15 = vector.shape_cast %14 : vector<32xf32> to vector<1x32xf32>
    %cst_10 = arith.constant dense<0.000000e+00> : vector<1x32xf32>
    %16 = tpu.matmul %15, %3, %cst_10 {dimension_numbers = #tpu.dot_dimension_numbers<[1], [0], [0], [1], [0, 0, 1, 1], [], []>} : vector<1x32xf32>, vector<32x32xf32>, vector<1x32xf32> -> vector<1x32xf32>
    %cst_11 = arith.constant 2.560000e+02 : f32
    %17 = vector.broadcast %cst_11 : f32 to vector<1x32xf32>
    %18 = arith.divf %16, %17 : vector<1x32xf32>
    %cst_12 = arith.constant dense<0.000000e+00> : vector<1x32xf32>
    %19 = tpu.matmul %18, %4, %cst_12 {dimension_numbers = #tpu.dot_dimension_numbers<[1], [0], [0], [1], [0, 0, 1, 1], [], []>} : vector<1x32xf32>, vector<32x32xf32>, vector<1x32xf32> -> vector<1x32xf32>
    %cst_13 = arith.constant 9.99999974E-6 : f32
    %20 = vector.broadcast %cst_13 : f32 to vector<1x32xf32>
    %21 = arith.addf %19, %20 : vector<1x32xf32>
    %22 = math.rsqrt %21 : vector<1x32xf32>
    %c0_14 = arith.constant 0 : index
    %c0_15 = arith.constant 0 : index
    %23 = vector.load %arg4[%c0_14, %c0_15] : memref<1x32xf32, #tpu.memory_space<vmem>>, vector<1x32xf32>
    %24 = arith.mulf %22, %23 : vector<1x32xf32>
    %25 = vector.broadcast %24 : vector<1x32xf32> to vector<256x32xf32>
    %26 = arith.mulf %12, %25 : vector<256x32xf32>
    %c0_16 = arith.constant 0 : index
    %c0_17 = arith.constant 0 : index
    %27 = vector.load %arg5[%c0_16, %c0_17] : memref<1x32xf32, #tpu.memory_space<vmem>>, vector<1x32xf32>
    %28 = vector.broadcast %27 : vector<1x32xf32> to vector<256x32xf32>
    %29 = arith.addf %26, %28 : vector<256x32xf32>
    %c0_18 = arith.constant 0 : index
    %c0_19 = arith.constant 0 : index
    %30 = vector.load %arg6[%c0_18, %c0_19] : memref<32x96xf32, #tpu.memory_space<vmem>>, vector<32x96xf32>
    %cst_20 = arith.constant dense<0.000000e+00> : vector<256x96xf32>
    %31 = tpu.matmul %29, %30, %cst_20 {dimension_numbers = #tpu.dot_dimension_numbers<[1], [0], [0], [1], [0, 0, 1, 1], [], []>} : vector<256x32xf32>, vector<32x96xf32>, vector<256x96xf32> -> vector<256x96xf32>
    %c0_21 = arith.constant 0 : index
    %c0_22 = arith.constant 0 : index
    %32 = vector.load %arg7[%c0_21, %c0_22] : memref<1x96xf32, #tpu.memory_space<vmem>>, vector<1x96xf32>
    %33 = vector.broadcast %32 : vector<1x96xf32> to vector<256x96xf32>
    %34 = arith.addf %31, %33 : vector<256x96xf32>
    %c0_23 = arith.constant 0 : index
    %c0_24 = arith.constant 0 : index
    %35 = vector.load %arg11[%c0_23, %c0_24] : memref<256x96xf32, #tpu.memory_space<vmem>>, vector<256x96xf32>
    tpu.vector_store %arg11[%c0_23, %c0_24], %34 {strides = array<i32>} : memref<256x96xf32, #tpu.memory_space<vmem>>, vector<256x96xf32>,
    %c0_25 = arith.constant 0 : index
    %c0_26 = arith.constant 0 : index
    %36 = vector.load %arg9[%c0_25, %c0_26] : memref<32x1xf32, #tpu.memory_space<vmem>>, vector<32x1xf32>
    %37 = vector.broadcast %36 : vector<32x1xf32> to vector<32x256xf32>
    %38 = arith.addf %1, %37 : vector<32x256xf32>
    %c0_27 = arith.constant 0 : index
    %c0_28 = arith.constant 0 : index
    %c0_29 = arith.constant 0 : index
    %39 = vector.load %arg10[%c0_27, %c0_28, %c0_29] : memref<1x32x256xf32, #tpu.memory_space<vmem>>, vector<1x32x256xf32>
    %40 = vector.shape_cast %39 : vector<1x32x256xf32> to vector<32x256xf32>
    %41 = vector.shape_cast %38 : vector<32x256xf32> to vector<1x32x256xf32>
    tpu.vector_store %arg10[%c0_27, %c0_28, %c0_29], %41 {strides = array<i32>} : memref<1x32x256xf32, #tpu.memory_space<vmem>>, vector<1x32x256xf32>,
    %c0_30 = arith.constant 0 : index
    %c32 = arith.constant 32 : index
    %42 = vector.load %arg11[%c0_30, %c32] : memref<256x96xf32, #tpu.memory_space<vmem>>, vector<256x16xf32>
    %c0_31 = arith.constant 0 : index
    %c64 = arith.constant 64 : index
    %43 = vector.load %arg11[%c0_31, %c64] : memref<256x96xf32, #tpu.memory_space<vmem>>, vector<256x16xf32>
    %c0_32 = arith.constant 0 : index
    %c0_33 = arith.constant 0 : index
    %44 = vector.load %arg8[%c0_32, %c0_33] : memref<32x32xf32, #tpu.memory_space<vmem>>, vector<16x32xf32>
    %c0_34 = arith.constant 0 : index
    %c0_35 = arith.constant 0 : index
    %45 = vector.load %arg11[%c0_34, %c0_35] : memref<256x96xf32, #tpu.memory_space<vmem>>, vector<256x16xf32>
    %cst_36 = arith.constant dense<0.000000e+00> : vector<256x256xf32>
    %46 = tpu.matmul %45, %42, %cst_36 {dimension_numbers = #tpu.dot_dimension_numbers<[1], [1], [0], [0], [0, 0, 1, 0], [], []>} : vector<256x16xf32>, vector<256x16xf32>, vector<256x256xf32> -> vector<256x256xf32>
    %cst_37 = arith.constant dense<0xFF800000> : vector<256xf32>
    %47 = vector.multi_reduction <maximumf>, %46, %cst_37 [1] : vector<256x256xf32> to vector<256xf32>
    %48 = vector.shape_cast %47 : vector<256xf32> to vector<256x1xf32>
    %49 = vector.broadcast %48 : vector<256x1xf32> to vector<256x256xf32>
    %50 = arith.subf %46, %49 : vector<256x256xf32>
    %51 = math.exp %50 : vector<256x256xf32>
    %cst_38 = arith.constant dense<0.000000e+00> : vector<256xf32>
    %52 = vector.multi_reduction <add>, %51, %cst_38 [1] : vector<256x256xf32> to vector<256xf32>
    %53 = vector.shape_cast %52 : vector<256xf32> to vector<256x1xf32>
    %cst_39 = arith.constant dense<0.000000e+00> : vector<256x16xf32>
    %54 = tpu.matmul %51, %43, %cst_39 {dimension_numbers = #tpu.dot_dimension_numbers<[1], [0], [0], [1], [0, 0, 1, 1], [], []>} : vector<256x256xf32>, vector<256x16xf32>, vector<256x16xf32> -> vector<256x16xf32>
    %55 = tpu.reciprocal %53 : vector<256x1xf32> -> vector<256x1xf32>
    %56 = vector.broadcast %55 : vector<256x1xf32> to vector<256x16xf32>
    %57 = arith.mulf %54, %56 : vector<256x16xf32>
    %cst_40 = arith.constant dense<0.000000e+00> : vector<32x256xf32>
    %58 = tpu.matmul %44, %57, %cst_40 {dimension_numbers = #tpu.dot_dimension_numbers<[0], [1], [1], [0], [0, 1, 1, 0], [], []>} : vector<16x32xf32>, vector<256x16xf32>, vector<32x256xf32> -> vector<32x256xf32>
    %c0_41 = arith.constant 0 : index
    %c0_42 = arith.constant 0 : index
    %c0_43 = arith.constant 0 : index
    %59 = vector.load %arg10[%c0_41, %c0_42, %c0_43] : memref<1x32x256xf32, #tpu.memory_space<vmem>>, vector<1x32x256xf32>
    %60 = vector.shape_cast %59 : vector<1x32x256xf32> to vector<32x256xf32>
    %61 = arith.addf %60, %58 : vector<32x256xf32>
    %c0_44 = arith.constant 0 : index
    %c0_45 = arith.constant 0 : index
    %c0_46 = arith.constant 0 : index
    %62 = vector.load %arg10[%c0_44, %c0_45, %c0_46] : memref<1x32x256xf32, #tpu.memory_space<vmem>>, vector<1x32x256xf32>
    %63 = vector.shape_cast %62 : vector<1x32x256xf32> to vector<32x256xf32>
    %64 = vector.shape_cast %61 : vector<32x256xf32> to vector<1x32x256xf32>
    tpu.vector_store %arg10[%c0_44, %c0_45, %c0_46], %64 {strides = array<i32>} : memref<1x32x256xf32, #tpu.memory_space<vmem>>, vector<1x32x256xf32>,
    %c0_47 = arith.constant 0 : index
    %c48 = arith.constant 48 : index
    %65 = vector.load %arg11[%c0_47, %c48] : memref<256x96xf32, #tpu.memory_space<vmem>>, vector<256x16xf32>
    %c0_48 = arith.constant 0 : index
    %c80 = arith.constant 80 : index
    %66 = vector.load %arg11[%c0_48, %c80] : memref<256x96xf32, #tpu.memory_space<vmem>>, vector<256x16xf32>
    %c16 = arith.constant 16 : index
    %c0_49 = arith.constant 0 : index
    %67 = vector.load %arg8[%c16, %c0_49] : memref<32x32xf32, #tpu.memory_space<vmem>>, vector<16x32xf32>
    %c0_50 = arith.constant 0 : index
    %c16_51 = arith.constant 16 : index
    %68 = vector.load %arg11[%c0_50, %c16_51] : memref<256x96xf32, #tpu.memory_space<vmem>>, vector<256x16xf32>
    %cst_52 = arith.constant dense<0.000000e+00> : vector<256x256xf32>
    %69 = tpu.matmul %68, %65, %cst_52 {dimension_numbers = #tpu.dot_dimension_numbers<[1], [1], [0], [0], [0, 0, 1, 0], [], []>} : vector<256x16xf32>, vector<256x16xf32>, vector<256x256xf32> -> vector<256x256xf32>
    %cst_53 = arith.constant dense<0xFF800000> : vector<256xf32>
    %70 = vector.multi_reduction <maximumf>, %69, %cst_53 [1] : vector<256x256xf32> to vector<256xf32>
    %71 = vector.shape_cast %70 : vector<256xf32> to vector<256x1xf32>
    %72 = vector.broadcast %71 : vector<256x1xf32> to vector<256x256xf32>
    %73 = arith.subf %69, %72 : vector<256x256xf32>
    %74 = math.exp %73 : vector<256x256xf32>
    %cst_54 = arith.constant dense<0.000000e+00> : vector<256xf32>
    %75 = vector.multi_reduction <add>, %74, %cst_54 [1] : vector<256x256xf32> to vector<256xf32>
    %76 = vector.shape_cast %75 : vector<256xf32> to vector<256x1xf32>
    %cst_55 = arith.constant dense<0.000000e+00> : vector<256x16xf32>
    %77 = tpu.matmul %74, %66, %cst_55 {dimension_numbers = #tpu.dot_dimension_numbers<[1], [0], [0], [1], [0, 0, 1, 1], [], []>} : vector<256x256xf32>, vector<256x16xf32>, vector<256x16xf32> -> vector<256x16xf32>
    %78 = tpu.reciprocal %76 : vector<256x1xf32> -> vector<256x1xf32>
    %79 = vector.broadcast %78 : vector<256x1xf32> to vector<256x16xf32>
    %80 = arith.mulf %77, %79 : vector<256x16xf32>
    %cst_56 = arith.constant dense<0.000000e+00> : vector<32x256xf32>
    %81 = tpu.matmul %67, %80, %cst_56 {dimension_numbers = #tpu.dot_dimension_numbers<[0], [1], [1], [0], [0, 1, 1, 0], [], []>} : vector<16x32xf32>, vector<256x16xf32>, vector<32x256xf32> -> vector<32x256xf32>
    %c0_57 = arith.constant 0 : index
    %c0_58 = arith.constant 0 : index
    %c0_59 = arith.constant 0 : index
    %82 = vector.load %arg10[%c0_57, %c0_58, %c0_59] : memref<1x32x256xf32, #tpu.memory_space<vmem>>, vector<1x32x256xf32>
    %83 = vector.shape_cast %82 : vector<1x32x256xf32> to vector<32x256xf32>
    %84 = arith.addf %83, %81 : vector<32x256xf32>
    %c0_60 = arith.constant 0 : index
    %c0_61 = arith.constant 0 : index
    %c0_62 = arith.constant 0 : index
    %85 = vector.load %arg10[%c0_60, %c0_61, %c0_62] : memref<1x32x256xf32, #tpu.memory_space<vmem>>, vector<1x32x256xf32>
    %86 = vector.shape_cast %85 : vector<1x32x256xf32> to vector<32x256xf32>
    %87 = vector.shape_cast %84 : vector<32x256xf32> to vector<1x32x256xf32>
    tpu.vector_store %arg10[%c0_60, %c0_61, %c0_62], %87 {strides = array<i32>} : memref<1x32x256xf32, #tpu.memory_space<vmem>>, vector<1x32x256xf32>,
    return
  }
  func.func @transform_0(%arg0: i32) -> (i32, i32, i32) {
    %c0_i32 = arith.constant 0 : i32
    %c0_i32_0 = arith.constant 0 : i32
    %c0_i32_1 = arith.constant 0 : i32
    return %arg0, %c0_i32, %c0_i32_0 : i32, i32, i32
  }
  func.func @transform_1(%arg0: i32) -> (i32, i32) {
    %c0_i32 = arith.constant 0 : i32
    %c0_i32_0 = arith.constant 0 : i32
    %c0_i32_1 = arith.constant 0 : i32
    return %c0_i32, %c0_i32_0 : i32, i32
  }
  func.func @transform_2(%arg0: i32) -> (i32, i32) {
    %c0_i32 = arith.constant 0 : i32
    %c0_i32_0 = arith.constant 0 : i32
    %c0_i32_1 = arith.constant 0 : i32
    return %c0_i32, %c0_i32_0 : i32, i32
  }
  func.func @transform_3(%arg0: i32) -> (i32, i32) {
    %c0_i32 = arith.constant 0 : i32
    %c0_i32_0 = arith.constant 0 : i32
    %c0_i32_1 = arith.constant 0 : i32
    return %c0_i32, %c0_i32_0 : i32, i32
  }
  func.func @transform_4(%arg0: i32) -> (i32, i32) {
    %c0_i32 = arith.constant 0 : i32
    %c0_i32_0 = arith.constant 0 : i32
    %c0_i32_1 = arith.constant 0 : i32
    return %c0_i32, %c0_i32_0 : i32, i32
  }
  func.func @transform_5(%arg0: i32) -> (i32, i32) {
    %c0_i32 = arith.constant 0 : i32
    %c0_i32_0 = arith.constant 0 : i32
    %c0_i32_1 = arith.constant 0 : i32
    return %c0_i32, %c0_i32_0 : i32, i32
  }
  func.func @transform_6(%arg0: i32) -> (i32, i32) {
    %c0_i32 = arith.constant 0 : i32
    %c0_i32_0 = arith.constant 0 : i32
    %c0_i32_1 = arith.constant 0 : i32
    return %c0_i32, %c0_i32_0 : i32, i32
  }
  func.func @transform_7(%arg0: i32) -> (i32, i32) {
    %c0_i32 = arith.constant 0 : i32
    %c0_i32_0 = arith.constant 0 : i32
    %c0_i32_1 = arith.constant 0 : i32
    return %c0_i32, %c0_i32_0 : i32, i32
  }
  func.func @transform_8(%arg0: i32) -> (i32, i32) {
    %c0_i32 = arith.constant 0 : i32
    %c0_i32_0 = arith.constant 0 : i32
    %c0_i32_1 = arith.constant 0 : i32
    return %c0_i32, %c0_i32_0 : i32, i32
  }
  func.func @transform_9(%arg0: i32) -> (i32, i32, i32) {
    %c0_i32 = arith.constant 0 : i32
    %c0_i32_0 = arith.constant 0 : i32
    %c0_i32_1 = arith.constant 0 : i32
    return %arg0, %c0_i32, %c0_i32_0 : i32, i32, i32
  }
}

</mosaic_0001>

<bundles_post_ra>
// kernel: tpu_custom_call.1
= control target key start
LH: loop header
LB: loop body
LE: loop exit
PB: predicated region body
PF: predicated region fallthrough
CT: control target
= control target key end

     0   :  { %s10934_s0 = inlined_call_operand.hbm [shape: f32[2,32,256], index: 0, kind: input, shape index: {}]   ;;  %s10935_s1 = inlined_call_operand.vmem [shape: f32[32,32], index: 1, kind: input, shape index: {}]   ;;  %s10936_s2 = inlined_call_operand.hbm [shape: f32[32,32], index: 2, kind: input, shape index: {}]   ;;  %s10937_s3 = inlined_call_operand.vmem [shape: f32[1,32], index: 3, kind: input, shape index: {}]   ;;  %s10938_s4 = inlined_call_operand.vmem [shape: f32[1,32], index: 4, kind: input, shape index: {}]   ;;  %s10939_s5 = inlined_call_operand.hbm [shape: f32[32,96], index: 5, kind: input, shape index: {}]   ;;  %s10940_s6 = inlined_call_operand.vmem [shape: f32[1,96], index: 6, kind: input, shape index: {}]   ;;  %s10941_s7 = inlined_call_operand.hbm [shape: f32[32,32], index: 7, kind: input, shape index: {}]   ;;  %s10942_s8 = inlined_call_operand.vmem [shape: f32[32,1], index: 8, kind: input, shape index: {}]   ;;  %s10943_s9 = inlined_call_operand.hbm [shape: f32[2,32,256], index: 9, kind: output, shape index: {}]  }
   0x1   :  { %10987 = sst [smem:[#allocation74_spill]] %s10936_s2 }
   0x2   :  { %10988 = sst [smem:[#allocation75_spill]] %s10939_s5 }
   0x3   :  { %10989 = sst [smem:[#allocation76_spill]] %s10941_s7 }
   0x4   :  { %14 = vsyncpa [#allocation4], 0 }
   0x5   :  { %16 = vsyncpa [#allocation4 + $0x1], 0 }
   0x6   :  { %17 = vsyncpa [#allocation7], 0 }
   0x7   :  { %18 = vsyncpa [#allocation10], 0 }
   0x8   :  { %19 = vsyncpa [#allocation5], 0 }
   0x9   :  { %21 = vsyncpa [#allocation5 + $0x1], 0  ;;  %s6407_s30 = smov 0   ;;  %s6409_s10 = smov 0  }
   0xa   :  { %s6411_s11 = smov 0   ;;  %s6413_s12 = smov 0  }
   0xb LB: > { %s6428_s13 = sadd.s32 4294967295, %s6339_s12   ;;  %s5126_s14 = sadd.s32 4294967294, %s6339_s12   ;;  %s6339_s12 = sphi %s6413_s12, %s11427_s12   ;;  %s6335_s11 = sphi %s6411_s11, %s11426_s11   ;;  %s6331_s10 = sphi %s6409_s10, %s11425_s10   ;;  %s6327_s30 = sphi %s6407_s30, %s11424_s30  }
   0xc   : > { %p47_p0 = scmp.ne.s32.totalorder %s6331_s10, %s6327_s30  ;;  %p48_p1 = scmp.eq.s32.totalorder %s6428_s13, 0 }
   0xd   : > { %p239_p2 = scmp.eq.s32.totalorder %s6428_s13, 1  ;;  %p245_p3 = scmp.eq.s32.totalorder %s5126_s14, 1 }
   0xe   : > { %p6437_p4 = por %p48_p1, %p47_p0  ;;  %p5127_p5 = scmp.ge.s32.totalorder %s6339_s12, 1 }
   0xf   : > { %p6442_p6 = por %p245_p3, %p47_p0  ;;  %p252_p7 = scmp.lt.s32.totalorder %s6339_s12, 3 }
  0x10   : > { %s10992_s2 = sld [smem:[#allocation74_spill]]  ;;  %s6341_s21 = smov [#allocation6]  }
  0x11   : > { %p6450_p8 = pnand %p5127_p5, %p252_p7  ;;  %s268_s22 = sshll.u32 %s6341_s21, 4  ;;  %s269_s22 = int_to_ptr.vmem [resolvable:$true] %s268_s22 }
  0x12   : > { %s10995_s5 = sld [smem:[#allocation75_spill]]  ;;  %s6342_s27 = smov 128  }
  0x13   : > { %p5480_p9 = pneg %p6450_p8  ;;  %s6343_s28 = smov 8  }
  0x14   : > { %s6344_s29 = smov [#allocation8]   ;;  %s10996_s7 = sld [smem:[#allocation76_spill]] }
  0x15   : > { %p6458_p10 = pnand %p5480_p9, %p48_p1  ;;  %s288_s14 = sshll.u32 %s6344_s29, 4  ;;  %s289_s14 = int_to_ptr.vmem [resolvable:$true] %s288_s14 }
  0x16   : > { %s266_s19 = sshll.u32 %s10992_s2, 4  ;;  %s6345_s24 = smov [#allocation9]   ;;  %s267_s19 = int_to_ptr.hbm [resolvable:$true] %s266_s19 }
  0x17   : > { %5483 = dma.hbm_to_vmem [thread:$0]  (!%p6458_p10), %s267_s19, 512, %s269_s22, [#allocation7], %s6342_s27, %s6342_s27, %s6343_s28  }
  0x18   : > { %s286_s26 = sshll.u32 %s10995_s5, 4  ;;  %s305_s25 = sshll.u32 %s6345_s24, 4  ;;  %s287_s26 = int_to_ptr.hbm [resolvable:$true] %s286_s26  ;;  %s306_s25 = int_to_ptr.vmem [resolvable:$true] %s305_s25 }
  0x19   : > { %5486 = dma.hbm_to_vmem [thread:$0]  (!%p6458_p10), %s287_s26, 512, %s289_s14, [#allocation7], %s6342_s27, %s6342_s27, %s6343_s28  }
  0x1a   : > { %s303_s21 = sshll.u32 %s10996_s7, 4  ;;  %s6474_s19 = sadd.s32 1, %s6339_s12   ;;  %s304_s21 = int_to_ptr.hbm [resolvable:$true] %s303_s21 }
  0x1b   : > { %5489 = dma.hbm_to_vmem [thread:$0]  (!%p6458_p10), %s304_s21, 512, %s306_s25, [#allocation10], %s6342_s27, %s6342_s27, %s6343_s28  }
  0x1c   : > { %s31_s22 = ssub.s32 %s6339_s12, %s6474_s19  ;;  %s34_s29 = sadd.s32 1, %s6335_s11 }
  0x1d   : > { %p32_p12 = scmp.eq.s32.totalorder %s31_s22, 0  ;;  %p41_p13 = scmp.ne.s32.totalorder %s6335_s11, %s6331_s10 }
  0x1e   : > { %p42_p0 = scmp.eq.s32.totalorder %s6339_s12, 0  ;;  %p5501_p3 = scmp.lt.s32.totalorder %s6339_s12, 2 }
  0x1f   : > { %s6486_s17 = scalar_select %p32_p12, %s6335_s11, %s34_s29  }
  0x20   : > { %p43_p5 = por %p42_p0, %p41_p13  ;;  %p6490_p7 = por %p239_p2, %p41_p13 }
  0x21   : > { %s322_s14 = sand.u32 1, %s6335_s11   ;;  %s5454_s18 = sshll.u32 %s6339_s12, 6 }
  0x22   : > { %s5132_s23 = sshll.u32 %s322_s14, 6  ;;  %s331_s28 = scalar_lea.hbm %s10934_s0, %s5454_s18 }
  0x23   : > { %s332_s21 = sshll.u32 %s331_s28, 4  ;;  %s326_s25 = scalar_lea.vmem [#allocation3], %s5132_s23  ;;  %s333_s21 = int_to_ptr.hbm [resolvable:$true] %s332_s21 }
  0x24   : > { %s334_s22 = sshll.u32 %s326_s25, 4  ;;  %p6501_p9 = pnand %p5501_p3, %p43_p5  ;;  %s335_s22 = int_to_ptr.vmem [resolvable:$true] %s334_s22 }
  0x25   : > { %s323_s2 = scalar_lea.sflag [#allocation4], %s322_s14  ;;  %s6235_s5 = sshra.s32 %s333_s21, 4  ;;  %s6236_s5 = int_to_ptr.hbm [resolvable:$true] %s6235_s5 }
  0x26   : > { %s6237_s7 = scalar_lea.hbm %s6236_s5, 64  ;;  %p6239_p10 = pneg %p6501_p9 }
  0x27   : > { %p6238_p2 = scmp.ne.s32.totalorder %s6236_s5, %s6237_s7  ;;  %s6242_s24 = scalar_lea.hbm %s10934_s0, 128 }
  0x28   : > { %p6243_p0 = scmp.lt.s32.totalorder %s6236_s5, %s10934_s0  ;;  %p6244_p3 = scmp.lt.s32.totalorder %s6242_s24, %s6237_s7 }
  0x29   : > { %p6240_p12 = pnand %p6239_p10, %p6238_p2 }
  0x2a   : > { %p6245_p5 = por %p6244_p3, %p6243_p0 }
  0x2b   : > { %p6241_p13 = pneg %p6240_p12 }
  0x2d   : > { %p6246_p11 = pnand %p6245_p5, %p6241_p13 }
  0x2f   : > { %6249 = shalt.err (!%p6246_p11)
}
  0x30   : > { %s6346_s14 = smov 256   ;;  %s6347_s25 = smov 16  }
  0x31   : > { %5493 = dma.hbm_to_vmem [thread:$0]  (!%p6501_p9), %s333_s21, 1024, %s335_s22, %s323_s2, %s6346_s14, %s6346_s14, %s6347_s25  }
  0x32   : > { %346 = sbr.rel (%p6450_p8) target bundleno = 3506 (0xdb2), region = 56 }
  0x37   : > { %s6518_s18 = sand.u32 1, %s6331_s10  }
  0x38   : > { %s5136_s5 = sshll.u32 %s6518_s18, 6  ;;  %s349_s7 = scalar_lea.sflag [#allocation4], %s6518_s18 }
  0x39   : > { %s6524_s23 = scalar_lea.vmem [#allocation3], %s5136_s5 }
  0x3a   : > { %6310 = dma.done.wait (%p6437_p4), %s349_s7, 1024  }
  0x3b   : > { %6312 = vsyncadd (%p6437_p4), %s349_s7, 4294966272 }
  0x3c   : > { %6314 = dma.done.wait (%p48_p1), [#allocation7], 1024  }
  0x3d   : > { %6316 = vsyncadd (%p48_p1), [#allocation7], 4294966272 }
  0x3e   : > { %6318 = dma.done.wait (%p48_p1), [#allocation10], 512  }
  0x3f   : > { %6320 = vsyncadd (%p48_p1), [#allocation10], 4294966784  ;;  %v403_v0 = vld [vmem:[%s6524_s23] sm:$0xff]  ;;  %v404_v1 = vld [vmem:[%s6524_s23 + $0x8] sm:$0xff]  ;;  %vm483_vm0 = vcmask 261120   ;;  %vm1086_vm5 = vcmask 785408  }
  0x40   : > { %411 = vxpose.xlu0.b32.start [1/4] (short) %v403_v0, 128  ;;  %443 = vxpose.xlu1.b32.start [1/4] (short) %v404_v1, 128  ;;  %v405_v2 = vld [vmem:[%s6524_s23 + $0x10] sm:$0xff]  ;;  %v406_v3 = vld [vmem:[%s6524_s23 + $0x18] sm:$0xff]  ;;  %v407_v4 = vld [vmem:[%s6524_s23 + $0x20] sm:$0xff]  ;;  %s6349_s20 = smov 96   ;;  %s6350_s21 = smov 64   ;;  %vm1289_vm6 = vcmask 130048  }
  0x41   : > { %v408_v5 = vld [vmem:[%s6524_s23 + $0x28] sm:$0xff]  ;;  %v409_v6 = vld [vmem:[%s6524_s23 + $0x30] sm:$0xff]  ;;  %v410_v7 = vld [vmem:[%s6524_s23 + $0x38] sm:$0xff]  ;;  %s6351_s22 = smov 80   ;;  %s6352_s29 = smov 112  }
  0x42   : > { %s6353_s24 = smov 48   ;;  %s6285_s2 = scalar_lea.hbm %s10943_s9, 128 }
  0x48   : > { %412 = vxpose.xlu0.b32.cont [2/4] (short) %v405_v2, 128  ;;  %444 = vxpose.xlu1.b32.cont [2/4] (short) %v406_v3, 128 }
  0x50   : > { %413 = vxpose.xlu0.b32.cont [3/4] (short) %v407_v4, 128  ;;  %445 = vxpose.xlu1.b32.cont [3/4] (short) %v408_v5, 128 }
  0x58   : > { %414 = vxpose.xlu0.b32.end [4/4] (short) %v409_v6, 128  ;;  %446 = vxpose.xlu1.b32.end [4/4] (short) %v410_v7, 128 }
  0xe4   : > { %v6546_v8 = vpop.trf.xlu0  ;;  %v6548_v9 = vpop.trf.xlu1 }
  0xe5   : > { %v484_v31 = vsel %vm483_vm0, %v6546_v8, 0.0  ;;  %v515_v4 = vsel %vm483_vm0, %v6548_v9, 0.0 }
  0xec   : > { %v6550_v10 = vpop.trf.xlu0  ;;  %v6552_v11 = vpop.trf.xlu1 }
  0xed   : > { %v485_v30 = vsel %vm483_vm0, %v6550_v10, 0.0  ;;  %v517_v6 = vsel %vm483_vm0, %v6552_v11, 0.0 }
  0xee   : > { %v486_v33 = vadd.f32 %v485_v30, %v484_v31  ;;  %v478_v30 = vld [vmem:[%s10935_s1 + $0x18] sm:$0xff]  ;;  %v477_v31 = vld [vmem:[%s10935_s1 + $0x10] sm:$0xff] }
  0xef   : > { %568 = vmatpush.msra.mxu3 %v478_v30  ;;  %756 = vmatpush.msra.mxu2 %v478_v30 }
  0xf1   : > { %569 = vmatpush.msra.mxu3 %v477_v31  ;;  %757 = vmatpush.msra.mxu2 %v477_v31 }
  0xf4   : > { %v6554_v12 = vpop.trf.xlu0  ;;  %v6556_v13 = vpop.trf.xlu1 }
  0xf5   : > { %v487_v32 = vsel %vm483_vm0, %v6554_v12, 0.0 }
  0xf6   : > { %v488_v35 = vadd.f32 %v487_v32, %v486_v33  ;;  %v519_v32 = vsel %vm483_vm0, %v6556_v13, 0.0 }
  0xfc   : > { %v6558_v14 = vpop.trf.xlu0  ;;  %v6560_v15 = vpop.trf.xlu1 }
  0xfd   : > { %v489_v34 = vsel %vm483_vm0, %v6558_v14, 0.0 }
  0xfe   : > { %v490_v38 = vadd.f32 %v489_v34, %v488_v35  ;;  %v476_v35 = vld [vmem:[%s10935_s1 + $0x8] sm:$0xff] }
  0xff   : > { %570 = vmatpush.msra.mxu3 %v476_v35  ;;  %758 = vmatpush.msra.mxu2 %v476_v35 }
 0x104   : > { %v6562_v16 = vpop.trf.xlu0  ;;  %v6564_v17 = vpop.trf.xlu1 }
 0x105   : > { %v491_v37 = vsel %vm483_vm0, %v6562_v16, 0.0 }
 0x106   : > { %v492_v41 = vadd.f32 %v491_v37, %v490_v38  ;;  %v521_v37 = vsel %vm483_vm0, %v6560_v15, 0.0 }
 0x10c   : > { %v6566_v18 = vpop.trf.xlu0  ;;  %v6570_v20 = vpop.trf.xlu1 }
 0x10d   : > { %v493_v40 = vsel %vm483_vm0, %v6566_v18, 0.0 }
 0x10e   : > { %v494_v43 = vadd.f32 %v493_v40, %v492_v41  ;;  %v475_v40 = vld [vmem:[%s10935_s1] sm:$0xff]  ;;  %v523_v41 = vsel %vm483_vm0, %v6564_v17, 0.0 }
 0x10f   : > { %571 = vmatpush.msra.mxu3 %v475_v40  ;;  %759 = vmatpush.msra.mxu2 %v475_v40 }
 0x114   : > { %v6568_v19 = vpop.trf.xlu0  ;;  %v6574_v22 = vpop.trf.xlu1 }
 0x115   : > { %v495_v42 = vsel %vm483_vm0, %v6568_v19, 0.0 }
 0x116   : > { %v496_v45 = vadd.f32 %v495_v42, %v494_v43  ;;  %v525_v43 = vsel %vm483_vm0, %v6570_v20, 0.0 }
 0x11c   : > { %v6572_v21 = vpop.trf.xlu0  ;;  %v6578_v24 = vpop.trf.xlu1 }
 0x11d   : > { %v497_v44 = vsel %vm483_vm0, %v6572_v21, 0.0 }
 0x11e   : > { %v498_v48 = vadd.f32 %v497_v44, %v496_v45  ;;  %v527_v45 = vsel %vm483_vm0, %v6574_v22, 0.0 }
 0x124   : > { %v6576_v23 = vpop.trf.xlu0  ;;  %v6582_v26 = vpop.trf.xlu1 }
 0x125   : > { %v499_v47 = vsel %vm483_vm0, %v6576_v23, 0.0 }
 0x126   : > { %v500_v50 = vadd.f32 %v499_v47, %v498_v48  ;;  %v482_v48 = vld [vmem:[#allocation6 + $0x18] sm:$0xff] }
 0x127   : > { %599 = vmatpush.msra.mxu1 %v482_v48  ;;  %780 = vmatpush.msrb.mxu3 %v482_v48 }
 0x12c   : > { %v6580_v25 = vpop.trf.xlu0  ;;  %v6588_v29 = vpop.trf.xlu1 }
 0x12d   : > { %v501_v49 = vsel %vm483_vm0, %v6580_v25, 0.0 }
 0x12e   : > { %v502_v53 = vadd.f32 %v501_v49, %v500_v50  ;;  %v481_v49 = vld [vmem:[#allocation6 + $0x10] sm:$0xff]  ;;  %v529_v50 = vsel %vm483_vm0, %v6578_v24, 0.0 }
 0x12f   : > { %600 = vmatpush.msra.mxu1 %v481_v49  ;;  %781 = vmatpush.msrb.mxu3 %v481_v49 }
 0x134   : > { %v6584_v27 = vpop.trf.xlu0  ;;  %v6602_v39 = vpop.trf.xlu1 }
 0x135   : > { %v503_v52 = vsel %vm483_vm0, %v6584_v27, 0.0 }
 0x136   : > { %v504_v55 = vadd.f32 %v503_v52, %v502_v53 }
 0x13c   : > { %v6586_v28 = vpop.trf.xlu0  ;;  %v6616_v51 = vpop.trf.xlu1 }
 0x13d   : > { %v505_v54 = vsel %vm483_vm0, %v6586_v28, 0.0 }
 0x13e   : > { %v506_v58 = vadd.f32 %v505_v54, %v504_v55  ;;  %v531_v54 = vsel %vm483_vm0, %v6582_v26, 0.0 }
 0x144   : > { %v6598_v36 = vpop.trf.xlu0  ;;  %v6630_v63 = vpop.trf.xlu1 }
 0x145   : > { %v507_v57 = vsel %vm483_vm0, %v6598_v36, 0.0 }
 0x146   : > { %v508_v60 = vadd.f32 %v507_v57, %v506_v58  ;;  %v533_v57 = vsel %vm483_vm0, %v6588_v29, 0.0 }
 0x14c   : > { %v6610_v46 = vpop.trf.xlu0  ;;  %v6648_v34 = vpop.trf.xlu1 }
 0x14d   : > { %v509_v59 = vsel %vm483_vm0, %v6610_v46, 0.0 }
 0x14e   : > { %v510_v62 = vadd.f32 %v509_v59, %v508_v60  ;;  %v535_v59 = vsel %vm483_vm0, %v6602_v39, 0.0 }
 0x154   : > { %v6622_v56 = vpop.trf.xlu0  ;;  %v6666_v53 = vpop.trf.xlu1 }
 0x155   : > { %v511_v61 = vsel %vm483_vm0, %v6622_v56, 0.0 }
 0x156   : > { %v512_v0 = vadd.f32 %v511_v61, %v510_v62  ;;  %v537_v61 = vsel %vm483_vm0, %v6616_v51, 0.0 }
 0x15c   : > { %v6632_v1 = vpop.trf.xlu0 }
 0x15d   : > { %v513_v2 = vsel %vm483_vm0, %v6632_v1, 0.0 }
 0x15e   : > { %v514_v3 = vadd.f32 %v513_v2, %v512_v0  ;;  %v539_v0 = vsel %vm483_vm0, %v6630_v63, 0.0 }
 0x160   : > { %v516_v5 = vadd.f32 %v515_v4, %v514_v3  ;;  %v6678_v3 = vpop.trf.xlu1  ;;  %v541_v4 = vsel %vm483_vm0, %v6648_v34, 0.0 }
 0x162   : > { %v518_v7 = vadd.f32 %v517_v6, %v516_v5  ;;  %v543_v6 = vsel %vm483_vm0, %v6666_v53, 0.0 }
 0x164   : > { %v520_v33 = vadd.f32 %v519_v32, %v518_v7  ;;  %v545_v7 = vsel %vm483_vm0, %v6678_v3, 0.0 }
 0x166   : > { %v522_v38 = vadd.f32 %v521_v37, %v520_v33 }
 0x168   : > { %v524_v42 = vadd.f32 %v523_v41, %v522_v38  ;;  %v480_v41 = vld [vmem:[#allocation6 + $0x8] sm:$0xff] }
 0x169   : > { %601 = vmatpush.msra.mxu1 %v480_v41  ;;  %782 = vmatpush.msrb.mxu3 %v480_v41 }
 0x16a   : > { %v526_v44 = vadd.f32 %v525_v43, %v524_v42  ;;  %v479_v42 = vld [vmem:[#allocation6] sm:$0xff]  ;;  %v6348_v43 = vmov 256.0  }
 0x16b   : > { %602 = vmatpush.msra.mxu1 %v479_v42  ;;  %783 = vmatpush.msrb.mxu3 %v479_v42  ;;  %5719 = vrcp.f32 %v6348_v43 }
 0x16c   : > { %v528_v47 = vadd.f32 %v527_v45, %v526_v44 }
 0x16e   : > { %v530_v52 = vadd.f32 %v529_v50, %v528_v47 }
 0x170   : > { %v532_v55 = vadd.f32 %v531_v54, %v530_v52 }
 0x171   : > { %v5720_v44 = vpop.eup %5719 }
 0x172   : > { %v534_v58 = vadd.f32 %v533_v57, %v532_v55  ;;  %v577_v45 = vmul.f32 256.0, %v5720_v44  ;;  %vm581_vm1 = vweird.f32 %v5720_v44 }
 0x174   : > { %v536_v60 = vadd.f32 %v535_v59, %v534_v58  ;;  %v578_v47 = vsub.f32 1.0, %v577_v45 }
 0x176   : > { %v538_v62 = vadd.f32 %v537_v61, %v536_v60  ;;  %v579_v48 = vmul.f32 %v5720_v44, %v578_v47 }
 0x178   : > { %v540_v2 = vadd.f32 %v539_v0, %v538_v62  ;;  %v580_v49 = vadd.f32 %v5720_v44, %v579_v48 }
 0x17a   : > { %v542_v5 = vadd.f32 %v541_v4, %v540_v2  ;;  %v6687_v50 = vsel %vm581_vm1, %v5720_v44, %v580_v49 }
 0x17c   : > { %v544_v30 = vadd.f32 %v543_v6, %v542_v5 }
 0x17e   : > { %v546_v31 = vadd.f32 %v545_v7, %v544_v30 }
 0x180   : > { %v547_v32 = vrot.slane %v546_v31, 4 }
 0x182   : > { %v548_v33 = vadd.f32 %v547_v32, %v546_v31 }
 0x184   : > { %v549_v35 = vrot.slane %v548_v33, 2 }
 0x186   : > { %v550_v37 = vadd.f32 %v549_v35, %v548_v33 }
 0x188   : > { %v551_v38 = vrot.slane %v550_v37, 1 }
 0x18a   : > { %v552_v40 = vadd.f32 %v551_v38, %v550_v37 }
 0x18c   : > { %5141 = vmatmul.msk.f32.vlgmr.msra.gmra.mxu3 %vm483_vm0, %v552_v40 }
 0x20f   : > { %v573_v52 = vpop.f32.mrf.mxu3 }
 0x210   : > { %v583_v54 = vmul.f32 %v6687_v50, %v573_v52 }
 0x212   : > { %5142 = vmatmul.msk.f32.vlgmr.msra.gmra.mxu1 %vm483_vm0, %v583_v54 }
 0x28f   : > { %v604_v55 = vpop.f32.mrf.mxu1 }
 0x290   : > { %v6691_v57 = vperm.slane %v604_v55, 0 }
 0x292   : > { %v6695_v58 = vsub.f32 %v6546_v8, %v6691_v57  ;;  %v6699_v59 = vsub.f32 %v6550_v10, %v6691_v57  ;;  %v6703_v60 = vsub.f32 %v6554_v12, %v6691_v57  ;;  %v6707_v61 = vsub.f32 %v6558_v14, %v6691_v57 }
 0x293   : > { %v6715_v8 = vsub.f32 %v6562_v16, %v6691_v57  ;;  %v6721_v12 = vsub.f32 %v6566_v18, %v6691_v57  ;;  %v6729_v6 = vsub.f32 %v6568_v19, %v6691_v57  ;;  %v6736_v18 = vsub.f32 %v6572_v21, %v6691_v57 }
 0x294   : > { %v640_v62 = vmul.f32 %v6695_v58, %v6695_v58  ;;  %v641_v0 = vmul.f32 %v6699_v59, %v6699_v59  ;;  %v642_v10 = vmul.f32 %v6703_v60, %v6703_v60  ;;  %v643_v14 = vmul.f32 %v6707_v61, %v6707_v61 }
 0x295   : > { %v644_v16 = vmul.f32 %v6715_v8, %v6715_v8  ;;  %v645_v31 = vmul.f32 %v6721_v12, %v6721_v12  ;;  %v6743_v19 = vsub.f32 %v6576_v23, %v6691_v57  ;;  %v646_v35 = vmul.f32 %v6729_v6, %v6729_v6 }
 0x296   : > { %v672_v2 = vsel %vm483_vm0, %v640_v62, 0.0  ;;  %v673_v4 = vsel %vm483_vm0, %v641_v0, 0.0  ;;  %v675_v7 = vsel %vm483_vm0, %v642_v10, 0.0  ;;  %v677_v32 = vsel %vm483_vm0, %v643_v14, 0.0 }
 0x297   : > { %v674_v5 = vadd.f32 %v673_v4, %v672_v2  ;;  %v679_v37 = vsel %vm483_vm0, %v644_v16, 0.0  ;;  %v6750_v21 = vsub.f32 %v6580_v25, %v6691_v57  ;;  %v647_v40 = vmul.f32 %v6736_v18, %v6736_v18 }
 0x298   : > { %v681_v41 = vsel %vm483_vm0, %v645_v31, 0.0  ;;  %v6757_v23 = vsub.f32 %v6584_v27, %v6691_v57  ;;  %v648_v43 = vmul.f32 %v6743_v19, %v6743_v19  ;;  %v683_v44 = vsel %vm483_vm0, %v646_v35, 0.0 }
 0x299   : > { %v676_v30 = vadd.f32 %v675_v7, %v674_v5  ;;  %v6764_v25 = vsub.f32 %v6586_v28, %v6691_v57  ;;  %v649_v47 = vmul.f32 %v6750_v21, %v6750_v21  ;;  %v685_v48 = vsel %vm483_vm0, %v647_v40, 0.0 }
 0x29a   : > { %v6771_v27 = vsub.f32 %v6598_v36, %v6691_v57  ;;  %v650_v52 = vmul.f32 %v6757_v23, %v6757_v23  ;;  %v687_v54 = vsel %vm483_vm0, %v648_v43, 0.0  ;;  %v6778_v28 = vsub.f32 %v6610_v46, %v6691_v57 }
 0x29b   : > { %v678_v33 = vadd.f32 %v677_v32, %v676_v30  ;;  %v651_v62 = vmul.f32 %v6764_v25, %v6764_v25  ;;  %v689_v0 = vsel %vm483_vm0, %v649_v47, 0.0  ;;  %v6785_v36 = vsub.f32 %v6622_v56, %v6691_v57 }
 0x29c   : > { %v652_v14 = vmul.f32 %v6771_v27, %v6771_v27  ;;  %v691_v2 = vsel %vm483_vm0, %v650_v52, 0.0  ;;  %v6792_v46 = vsub.f32 %v6632_v1, %v6691_v57  ;;  %v653_v5 = vmul.f32 %v6778_v28, %v6778_v28 }
 0x29d   : > { %v680_v38 = vadd.f32 %v679_v37, %v678_v33  ;;  %v693_v16 = vsel %vm483_vm0, %v651_v62, 0.0  ;;  %v6799_v56 = vsub.f32 %v6548_v9, %v6691_v57  ;;  %v654_v30 = vmul.f32 %v6785_v36, %v6785_v36 }
 0x29e   : > { %v695_v31 = vsel %vm483_vm0, %v652_v14, 0.0  ;;  %v6806_v1 = vsub.f32 %v6552_v11, %v6691_v57  ;;  %v655_v33 = vmul.f32 %v6792_v46, %v6792_v46  ;;  %v697_v35 = vsel %vm483_vm0, %v653_v5, 0.0 }
 0x29f   : > { %v682_v42 = vadd.f32 %v681_v41, %v680_v38  ;;  %v6813_v9 = vsub.f32 %v6556_v13, %v6691_v57  ;;  %v656_v38 = vmul.f32 %v6799_v56, %v6799_v56  ;;  %v699_v40 = vsel %vm483_vm0, %v654_v30, 0.0 }
 0x2a0   : > { %v6820_v11 = vsub.f32 %v6560_v15, %v6691_v57  ;;  %v701_v43 = vsel %vm483_vm0, %v655_v33, 0.0  ;;  %v6827_v13 = vsub.f32 %v6564_v17, %v6691_v57  ;;  %v6834_v15 = vsub.f32 %v6570_v20, %v6691_v57 }
 0x2a1   : > { %v684_v45 = vadd.f32 %v683_v44, %v682_v42  ;;  %v657_v42 = vmul.f32 %v6806_v1, %v6806_v1  ;;  %v703_v47 = vsel %vm483_vm0, %v656_v38, 0.0  ;;  %v6841_v17 = vsub.f32 %v6574_v22, %v6691_v57 }
 0x2a2   : > { %v6848_v20 = vsub.f32 %v6578_v24, %v6691_v57  ;;  %v6855_v22 = vsub.f32 %v6582_v26, %v6691_v57  ;;  %v6862_v24 = vsub.f32 %v6588_v29, %v6691_v57  ;;  %v6869_v26 = vsub.f32 %v6602_v39, %v6691_v57 }
 0x2a3   : > { %v686_v49 = vadd.f32 %v685_v48, %v684_v45  ;;  %v658_v45 = vmul.f32 %v6813_v9, %v6813_v9  ;;  %v705_v52 = vsel %vm483_vm0, %v657_v42, 0.0  ;;  %v6876_v29 = vsub.f32 %v6616_v51, %v6691_v57 }
 0x2a4   : > { %v6883_v39 = vsub.f32 %v6630_v63, %v6691_v57  ;;  %v6890_v51 = vsub.f32 %v6648_v34, %v6691_v57  ;;  %v6897_v63 = vsub.f32 %v6666_v53, %v6691_v57  ;;  %v6904_v34 = vsub.f32 %v6678_v3, %v6691_v57 }
 0x2a5   : > { %v688_v55 = vadd.f32 %v687_v54, %v686_v49  ;;  %v659_v49 = vmul.f32 %v6820_v11, %v6820_v11  ;;  %v707_v62 = vsel %vm483_vm0, %v658_v45, 0.0 }
 0x2a6   : > { %v670_v53 = vmul.f32 %v6897_v63, %v6897_v63 }
 0x2a7   : > { %v690_v10 = vadd.f32 %v689_v0, %v688_v55  ;;  %v660_v55 = vmul.f32 %v6827_v13, %v6827_v13  ;;  %v709_v14 = vsel %vm483_vm0, %v659_v49, 0.0 }
 0x2a8   : > { %v731_v3 = vsel %vm483_vm0, %v670_v53, 0.0 }
 0x2a9   : > { %v692_v4 = vadd.f32 %v691_v2, %v690_v10  ;;  %v661_v10 = vmul.f32 %v6834_v15, %v6834_v15  ;;  %v711_v5 = vsel %vm483_vm0, %v660_v55, 0.0 }
 0x2ab   : > { %v694_v7 = vadd.f32 %v693_v16, %v692_v4  ;;  %v662_v4 = vmul.f32 %v6841_v17, %v6841_v17  ;;  %v713_v30 = vsel %vm483_vm0, %v661_v10, 0.0 }
 0x2ad   : > { %v696_v32 = vadd.f32 %v695_v31, %v694_v7  ;;  %v663_v7 = vmul.f32 %v6848_v20, %v6848_v20  ;;  %v715_v33 = vsel %vm483_vm0, %v662_v4, 0.0 }
 0x2af   : > { %v698_v37 = vadd.f32 %v697_v35, %v696_v32  ;;  %v664_v32 = vmul.f32 %v6855_v22, %v6855_v22  ;;  %v717_v38 = vsel %vm483_vm0, %v663_v7, 0.0 }
 0x2b1   : > { %v700_v41 = vadd.f32 %v699_v40, %v698_v37  ;;  %v665_v37 = vmul.f32 %v6862_v24, %v6862_v24  ;;  %v719_v42 = vsel %vm483_vm0, %v664_v32, 0.0 }
 0x2b3   : > { %v702_v44 = vadd.f32 %v701_v43, %v700_v41  ;;  %v666_v41 = vmul.f32 %v6869_v26, %v6869_v26  ;;  %v721_v45 = vsel %vm483_vm0, %v665_v37, 0.0 }
 0x2b5   : > { %v704_v48 = vadd.f32 %v703_v47, %v702_v44  ;;  %v667_v44 = vmul.f32 %v6876_v29, %v6876_v29  ;;  %v723_v49 = vsel %vm483_vm0, %v666_v41, 0.0  ;;  %v871_v41 = vld [vmem:[#allocation8 + $0x10] sm:$0xff] }
 0x2b7   : > { %v706_v54 = vadd.f32 %v705_v52, %v704_v48  ;;  %v668_v48 = vmul.f32 %v6883_v39, %v6883_v39  ;;  %v725_v55 = vsel %vm483_vm0, %v667_v44, 0.0  ;;  %v870_v44 = vld [vmem:[#allocation8 + $0x8] sm:$0xff] }
 0x2b9   : > { %v708_v0 = vadd.f32 %v707_v62, %v706_v54  ;;  %v669_v54 = vmul.f32 %v6890_v51, %v6890_v51 }
 0x2bb   : > { %v710_v2 = vadd.f32 %v709_v14, %v708_v0  ;;  %v727_v0 = vsel %vm483_vm0, %v668_v48, 0.0  ;;  %v671_v14 = vmul.f32 %v6904_v34, %v6904_v34 }
 0x2bd   : > { %v712_v16 = vadd.f32 %v711_v5, %v710_v2  ;;  %v729_v2 = vsel %vm483_vm0, %v669_v54, 0.0  ;;  %v733_v5 = vsel %vm483_vm0, %v671_v14, 0.0 }
 0x2bf   : > { %v714_v31 = vadd.f32 %v713_v30, %v712_v16 }
 0x2c1   : > { %v716_v35 = vadd.f32 %v715_v33, %v714_v31 }
 0x2c3   : > { %v718_v40 = vadd.f32 %v717_v38, %v716_v35 }
 0x2c5   : > { %v720_v43 = vadd.f32 %v719_v42, %v718_v40  ;;  %v872_v40 = vld [vmem:[#allocation8 + $0x18] sm:$0xff] }
 0x2c6   : > { %985 = vmatpush.msra.mxu0 %v872_v40  ;;  %5456 = vmatpush.msrb.mxu2 %v872_v40 }
 0x2c7   : > { %v722_v47 = vadd.f32 %v721_v45, %v720_v43  ;;  %5457 = vmatpush.msra.mxu3 %v872_v40  ;;  %v869_v45 = vld [vmem:[#allocation8] sm:$0xff] }
 0x2c8   : > { %986 = vmatpush.msra.mxu0 %v871_v41  ;;  %5458 = vmatpush.msrb.mxu2 %v871_v41 }
 0x2c9   : > { %v724_v52 = vadd.f32 %v723_v49, %v722_v47  ;;  %5459 = vmatpush.msra.mxu3 %v871_v41 }
 0x2ca   : > { %987 = vmatpush.msra.mxu0 %v870_v44  ;;  %5460 = vmatpush.msrb.mxu2 %v870_v44 }
 0x2cb   : > { %v726_v62 = vadd.f32 %v725_v55, %v724_v52  ;;  %5461 = vmatpush.msra.mxu3 %v870_v44  ;;  %v798_v55 = vld [vmem:[%s10937_s3] sm:$0x1] }
 0x2cc   : > { %988 = vmatpush.msra.mxu0 %v869_v45  ;;  %5462 = vmatpush.msrb.mxu2 %v869_v45 }
 0x2cd   : > { %v728_v10 = vadd.f32 %v727_v0, %v726_v62  ;;  %5463 = vmatpush.msra.mxu3 %v869_v45 }
 0x2cf   : > { %v730_v4 = vadd.f32 %v729_v2, %v728_v10  ;;  %v6928_v10 = vld [vmem:[%s10938_s4] ss:$0 sm:$0xff] }
 0x2d1   : > { %v732_v57 = vadd.f32 %v731_v3, %v730_v4 }
 0x2d3   : > { %v734_v16 = vadd.f32 %v733_v5, %v732_v57 }
 0x2d5   : > { %v735_v7 = vrot.slane %v734_v16, 4 }
 0x2d7   : > { %v736_v30 = vadd.f32 %v735_v7, %v734_v16 }
 0x2d9   : > { %v737_v31 = vrot.slane %v736_v30, 2 }
 0x2db   : > { %v738_v32 = vadd.f32 %v737_v31, %v736_v30 }
 0x2dd   : > { %v739_v33 = vrot.slane %v738_v32, 1 }
 0x2df   : > { %v740_v35 = vadd.f32 %v739_v33, %v738_v32 }
 0x2e1   : > { %5143 = vmatmul.msk.f32.vlgmr.msra.gmra.mxu2 %vm483_vm0, %v740_v35 }
 0x364   : > { %v761_v37 = vpop.f32.mrf.mxu2 }
 0x365   : > { %v764_v38 = vmul.f32 %v761_v37, %v6687_v50 }
 0x367   : > { %5144 = vmatmul.msk.f32.vlgmr.msrb.gmra.mxu3 %vm483_vm0, %v764_v38 }
 0x3ea   : > { %v785_v42 = vpop.f32.mrf.mxu3 }
 0x3eb   : > { %v786_v43 = vadd.f32 1e-05, %v785_v42 }
 0x3ed   : > { %5721 = vrsqrt.f32 %v786_v43  ;;  %vm794_vm3 = vweird.f32 %v786_v43 }
 0x3f3   : > { %v5722_v50 = vpop.eup %5721 }
 0x3f4   : > { %v789_v47 = vmul.f32 %v5722_v50, %v786_v43  ;;  %vm795_vm2 = vweird.f32 %v5722_v50 }
 0x3f5   : > { %vm796_vm4 = vmor %vm794_vm3, %vm795_vm2 }
 0x3f6   : > { %v790_v48 = vmul.f32 %v5722_v50, %v789_v47 }
 0x3f8   : > { %v791_v49 = vmul.f32 0.5, %v790_v48 }
 0x3fa   : > { %v792_v52 = vsub.f32 1.5, %v791_v49 }
 0x3fc   : > { %v793_v54 = vmul.f32 %v5722_v50, %v792_v52 }
 0x3fe   : > { %v797_v62 = vsel %vm796_vm4, %v5722_v50, %v793_v54 }
 0x3ff   : > { %v799_v53 = vmul.f32 %v798_v55, %v797_v62 }
 0x401   : > { %v6923_v0 = vperm.slane %v799_v53, 0 }
 0x403   : > { %v801_v14 = vmul.f32 %v6923_v0, %v6695_v58  ;;  %v817_v2 = vmul.f32 %v6923_v0, %v6799_v56  ;;  %v828_v4 = vmul.f32 %v6923_v0, %v6876_v29  ;;  %v809_v16 = vmul.f32 %v6923_v0, %v6743_v19 }
 0x404   : > { %v810_v7 = vmul.f32 %v6923_v0, %v6750_v21  ;;  %v825_v58 = vmul.f32 %v6923_v0, %v6855_v22  ;;  %v811_v56 = vmul.f32 %v6923_v0, %v6757_v23  ;;  %v826_v29 = vmul.f32 %v6923_v0, %v6862_v24 }
 0x405   : > { %v864_v3 = vadd.f32 %v6928_v10, %v828_v4  ;;  %v837_v57 = vadd.f32 %v6928_v10, %v801_v14  ;;  %v853_v5 = vadd.f32 %v6928_v10, %v817_v2  ;;  %v827_v30 = vmul.f32 %v6923_v0, %v6869_v26 }
 0x406   : > { %v812_v19 = vmul.f32 %v6923_v0, %v6764_v25  ;;  %v813_v21 = vmul.f32 %v6923_v0, %v6771_v27  ;;  %v814_v22 = vmul.f32 %v6923_v0, %v6778_v28  ;;  %v815_v23 = vmul.f32 %v6923_v0, %v6785_v36 }
 0x407   : > { %5145 = vmatmul.msk.f32.vlgmr.msra.gmra.mxu0 %vm483_vm0, %v837_v57  ;;  %5161 = vmatmul.msk.f32.vlgmr.msrb.gmra.mxu2 %vm483_vm0, %v853_v5  ;;  %v802_v24 = vmul.f32 %v6923_v0, %v6699_v59  ;;  %v816_v26 = vmul.f32 %v6923_v0, %v6792_v46  ;;  %v818_v25 = vmul.f32 %v6923_v0, %v6806_v1 }
 0x408   : > { %5172 = vmatmul.msk.f32.vlgmr.msra.gmra.mxu3 %vm483_vm0, %v864_v3  ;;  %v829_v27 = vmul.f32 %v6923_v0, %v6883_v39  ;;  %v845_v31 = vadd.f32 %v6928_v10, %v809_v16  ;;  %v861_v28 = vadd.f32 %v6928_v10, %v825_v58  ;;  %v846_v36 = vadd.f32 %v6928_v10, %v810_v7 }
 0x409   : > { %v862_v32 = vadd.f32 %v6928_v10, %v826_v29  ;;  %v847_v33 = vadd.f32 %v6928_v10, %v811_v56  ;;  %v863_v59 = vadd.f32 %v6928_v10, %v827_v30  ;;  %v848_v46 = vadd.f32 %v6928_v10, %v812_v19 }
 0x40a   : > { %v849_v35 = vadd.f32 %v6928_v10, %v813_v21  ;;  %v850_v1 = vadd.f32 %v6928_v10, %v814_v22  ;;  %v851_v39 = vadd.f32 %v6928_v10, %v815_v23  ;;  %v838_v37 = vadd.f32 %v6928_v10, %v802_v24 }
 0x40b   : > { %v854_v38 = vadd.f32 %v6928_v10, %v818_v25  ;;  %v852_v40 = vadd.f32 %v6928_v10, %v816_v26  ;;  %v865_v41 = vadd.f32 %v6928_v10, %v829_v27  ;;  %v803_v42 = vmul.f32 %v6923_v0, %v6703_v60 }
 0x40c   : > { %v819_v43 = vmul.f32 %v6923_v0, %v6813_v9  ;;  %v830_v44 = vmul.f32 %v6923_v0, %v6890_v51  ;;  %v804_v60 = vmul.f32 %v6923_v0, %v6707_v61  ;;  %v820_v9 = vmul.f32 %v6923_v0, %v6820_v11 }
 0x40d   : > { %v839_v45 = vadd.f32 %v6928_v10, %v803_v42  ;;  %v831_v51 = vmul.f32 %v6923_v0, %v6897_v63  ;;  %v805_v61 = vmul.f32 %v6923_v0, %v6715_v8  ;;  %v821_v11 = vmul.f32 %v6923_v0, %v6827_v13 }
 0x40e   : > { %v855_v50 = vadd.f32 %v6928_v10, %v819_v43  ;;  %v866_v47 = vadd.f32 %v6928_v10, %v830_v44  ;;  %v840_v48 = vadd.f32 %v6928_v10, %v804_v60  ;;  %v856_v49 = vadd.f32 %v6928_v10, %v820_v9 }
 0x40f   : > { %5146 = vmatmul.msk.f32.gmra.mxu0 %vm483_vm0, %v838_v37  ;;  %5162 = vmatmul.msk.f32.gmra.mxu2 %vm483_vm0, %v854_v38  ;;  %v867_v52 = vadd.f32 %v6928_v10, %v831_v51  ;;  %v832_v63 = vmul.f32 %v6923_v0, %v6904_v34  ;;  %v841_v54 = vadd.f32 %v6928_v10, %v805_v61 }
 0x410   : > { %5173 = vmatmul.msk.f32.gmra.mxu3 %vm483_vm0, %v865_v41  ;;  %v857_v55 = vadd.f32 %v6928_v10, %v821_v11  ;;  %v806_v8 = vmul.f32 %v6923_v0, %v6721_v12  ;;  %v822_v13 = vmul.f32 %v6923_v0, %v6834_v15  ;;  %v807_v14 = vmul.f32 %v6923_v0, %v6729_v6 }
 0x411   : > { %v868_v62 = vadd.f32 %v6928_v10, %v832_v63  ;;  %v823_v2 = vmul.f32 %v6923_v0, %v6841_v17  ;;  %v808_v15 = vmul.f32 %v6923_v0, %v6736_v18  ;;  %v824_v3 = vmul.f32 %v6923_v0, %v6848_v20  ;;  %v7061_v18 = vld [vmem:[%s10940_s6] ss:$0 sm:$0xff] }
 0x412   : > { %v842_v34 = vadd.f32 %v6928_v10, %v806_v8  ;;  %v858_v53 = vadd.f32 %v6928_v10, %v822_v13  ;;  %v843_v4 = vadd.f32 %v6928_v10, %v807_v14 }
 0x413   : > { %v859_v12 = vadd.f32 %v6928_v10, %v823_v2  ;;  %v844_v57 = vadd.f32 %v6928_v10, %v808_v15  ;;  %v860_v6 = vadd.f32 %v6928_v10, %v824_v3 }
 0x417   : > { %5147 = vmatmul.msk.f32.gmra.mxu0 %vm483_vm0, %v839_v45  ;;  %5163 = vmatmul.msk.f32.gmra.mxu2 %vm483_vm0, %v855_v50 }
 0x418   : > { %5174 = vmatmul.msk.f32.gmra.mxu3 %vm483_vm0, %v866_v47 }
 0x41f   : > { %5148 = vmatmul.msk.f32.gmra.mxu0 %vm483_vm0, %v840_v48  ;;  %5164 = vmatmul.msk.f32.gmra.mxu2 %vm483_vm0, %v856_v49 }
 0x420   : > { %5175 = vmatmul.msk.f32.gmra.mxu3 %vm483_vm0, %v867_v52 }
 0x427   : > { %5149 = vmatmul.msk.f32.gmra.mxu0 %vm483_vm0, %v841_v54  ;;  %5165 = vmatmul.msk.f32.gmra.mxu2 %vm483_vm0, %v857_v55 }
 0x428   : > { %5176 = vmatmul.msk.f32.gmra.mxu3 %vm483_vm0, %v868_v62 }
 0x42f   : > { %5150 = vmatmul.msk.f32.gmra.mxu0 %vm483_vm0, %v842_v34  ;;  %5166 = vmatmul.msk.f32.gmra.mxu2 %vm483_vm0, %v858_v53 }
 0x437   : > { %5151 = vmatmul.msk.f32.gmra.mxu0 %vm483_vm0, %v843_v4  ;;  %5167 = vmatmul.msk.f32.gmra.mxu2 %vm483_vm0, %v859_v12 }
 0x43f   : > { %5152 = vmatmul.msk.f32.gmra.mxu0 %vm483_vm0, %v844_v57  ;;  %5168 = vmatmul.msk.f32.gmra.mxu2 %vm483_vm0, %v860_v6 }
 0x447   : > { %5153 = vmatmul.msk.f32.gmra.mxu0 %vm483_vm0, %v845_v31  ;;  %5169 = vmatmul.msk.f32.gmra.mxu2 %vm483_vm0, %v861_v28 }
 0x44f   : > { %5154 = vmatmul.msk.f32.gmra.mxu0 %vm483_vm0, %v846_v36  ;;  %5170 = vmatmul.msk.f32.gmra.mxu2 %vm483_vm0, %v862_v32 }
 0x457   : > { %5155 = vmatmul.msk.f32.gmra.mxu0 %vm483_vm0, %v847_v33  ;;  %5171 = vmatmul.msk.f32.gmra.mxu2 %vm483_vm0, %v863_v59 }
 0x45f   : > { %5156 = vmatmul.msk.f32.gmra.mxu0 %vm483_vm0, %v848_v46 }
 0x467   : > { %5157 = vmatmul.msk.f32.gmra.mxu0 %vm483_vm0, %v849_v35 }
 0x46f   : > { %5158 = vmatmul.msk.f32.gmra.mxu0 %vm483_vm0, %v850_v1 }
 0x477   : > { %5159 = vmatmul.msk.f32.gmra.mxu0 %vm483_vm0, %v851_v39 }
 0x47f   : > { %5160 = vmatmul.msk.f32.gmra.mxu0 %vm483_vm0, %v852_v40 }
 0x484   : > { %v990_v17 = vpop.f32.mrf.mxu0 }
 0x485   : > { %v991_v20 = vadd.f32 %v7061_v18, %v990_v17 }
 0x487   : > { %1087 = vst.msk [vmem:[#allocation2] sm:$0xff] %vm1086_vm5, %v991_v20 }
 0x48a   : > { %v1038_v0 = vpop.f32.mrf.mxu2 }
 0x48b   : > { %v1039_v10 = vadd.f32 %v7061_v18, %v1038_v0  ;;  %v1071_v5 = vpop.f32.mrf.mxu3 }
 0x48c   : > { %v1072_v16 = vadd.f32 %v7061_v18, %v1071_v5  ;;  %v993_v7 = vpop.f32.mrf.mxu0 }
 0x48d   : > { %1103 = vst.msk [vmem:[#allocation2 + $0x80] sm:$0xff] %vm1086_vm5, %v1039_v10  ;;  %v994_v58 = vadd.f32 %v7061_v18, %v993_v7 }
 0x48e   : > { %1114 = vst.msk [vmem:[#allocation2 + $0xd8] sm:$0xff] %vm1086_vm5, %v1072_v16 }
 0x48f   : > { %1088 = vst.msk [vmem:[#allocation2 + $0x8] sm:$0xff] %vm1086_vm5, %v994_v58 }
 0x492   : > { %v1041_v56 = vpop.f32.mrf.mxu2 }
 0x493   : > { %v1042_v29 = vadd.f32 %v7061_v18, %v1041_v56  ;;  %v1074_v30 = vpop.f32.mrf.mxu3 }
 0x494   : > { %v1075_v19 = vadd.f32 %v7061_v18, %v1074_v30  ;;  %v996_v21 = vpop.f32.mrf.mxu0 }
 0x495   : > { %1104 = vst.msk [vmem:[#allocation2 + $0x88] sm:$0xff] %vm1086_vm5, %v1042_v29  ;;  %v997_v22 = vadd.f32 %v7061_v18, %v996_v21 }
 0x496   : > { %1115 = vst.msk [vmem:[#allocation2 + $0xe0] sm:$0xff] %vm1086_vm5, %v1075_v19  ;;  %v7093_v39 = vld [vmem:[#allocation2 + $0x8] sm:$0xff] }
 0x497   : > { %1089 = vst.msk [vmem:[#allocation2 + $0x10] sm:$0xff] %vm1086_vm5, %v997_v22 }
 0x49a   : > { %v1044_v23 = vpop.f32.mrf.mxu2 }
 0x49b   : > { %v1045_v24 = vadd.f32 %v7061_v18, %v1044_v23  ;;  %v1077_v26 = vpop.f32.mrf.mxu3 }
 0x49c   : > { %v1078_v25 = vadd.f32 %v7061_v18, %v1077_v26  ;;  %v999_v27 = vpop.f32.mrf.mxu0  ;;  %v7171_v26 = vld [vmem:[#allocation2 + $0xd8] sm:$0xff] }
 0x49d   : > { %1105 = vst.msk [vmem:[#allocation2 + $0x90] sm:$0xff] %vm1086_vm5, %v1045_v24  ;;  %v1000_v31 = vadd.f32 %v7061_v18, %v999_v27  ;;  %v7081_v28 = vld [vmem:[#allocation2 + $0xe0] sm:$0xff] }
 0x49e   : > { %1116 = vst.msk [vmem:[#allocation2 + $0xe8] sm:$0xff] %vm1086_vm5, %v1078_v25  ;;  %1281 = vrot.lane.b32.xlu1 %v7081_v28, %s6349_s20 }
 0x49f   : > { %1090 = vst.msk [vmem:[#allocation2 + $0x18] sm:$0xff] %vm1086_vm5, %v1000_v31 }
 0x4a2   : > { %v1047_v36 = vpop.f32.mrf.mxu2 }
 0x4a3   : > { %v1048_v32 = vadd.f32 %v7061_v18, %v1047_v36  ;;  %v1080_v33 = vpop.f32.mrf.mxu3 }
 0x4a4   : > { %v1081_v59 = vadd.f32 %v7061_v18, %v1080_v33  ;;  %v1002_v46 = vpop.f32.mrf.mxu0 }
 0x4a5   : > { %1106 = vst.msk [vmem:[#allocation2 + $0x98] sm:$0xff] %vm1086_vm5, %v1048_v32  ;;  %v1003_v35 = vadd.f32 %v7061_v18, %v1002_v46  ;;  %v7091_v1 = vld [vmem:[#allocation2 + $0xe8] sm:$0xff] }
 0x4a6   : > { %1117 = vst.msk [vmem:[#allocation2 + $0xf0] sm:$0xff] %vm1086_vm5, %v1081_v59  ;;  %1283 = vrot.lane.b32.xlu2 %v7091_v1, %s6349_s20  ;;  %1227 = vrot.lane.b32.xlu1 %v7093_v39, %s6349_s20  ;;  %v7173_v25 = vld [vmem:[#allocation2 + $0x18] sm:$0xff] }
 0x4a7   : > { %1091 = vst.msk [vmem:[#allocation2 + $0x20] sm:$0xff] %vm1086_vm5, %v1003_v35 }
 0x4aa   : > { %v1050_v37 = vpop.f32.mrf.mxu2 }
 0x4ab   : > { %v1051_v38 = vadd.f32 %v7061_v18, %v1050_v37  ;;  %v1083_v40 = vpop.f32.mrf.mxu3 }
 0x4ac   : > { %v1084_v41 = vadd.f32 %v7061_v18, %v1083_v40  ;;  %v1005_v42 = vpop.f32.mrf.mxu0 }
 0x4ad   : > { %1107 = vst.msk [vmem:[#allocation2 + $0xa0] sm:$0xff] %vm1086_vm5, %v1051_v38  ;;  %v1006_v43 = vadd.f32 %v7061_v18, %v1005_v42  ;;  %v7105_v44 = vld [vmem:[#allocation2 + $0xf0] sm:$0xff] }
 0x4ae   : > { %1118 = vst.msk [vmem:[#allocation2 + $0xf8] sm:$0xff] %vm1086_vm5, %v1084_v41  ;;  %1285 = vrot.lane.b32.xlu2 %v7105_v44, %s6349_s20  ;;  %v7205_v41 = vld [vmem:[#allocation2] sm:$0xff] }
 0x4af   : > { %1092 = vst.msk [vmem:[#allocation2 + $0x28] sm:$0xff] %vm1086_vm5, %v1006_v43 }
 0x4b2   : > { %v1053_v45 = vpop.f32.mrf.mxu2 }
 0x4b3   : > { %v1054_v50 = vadd.f32 %v7061_v18, %v1053_v45  ;;  %v7214_v45 = vld [vmem:[#allocation2 + $0x98] sm:$0xff] }
 0x4b4   : > { %v1008_v47 = vpop.f32.mrf.mxu0  ;;  %v7199_v37 = vld [vmem:[#allocation2 + $0xa0] sm:$0xff] }
 0x4b5   : > { %1108 = vst.msk [vmem:[#allocation2 + $0xa8] sm:$0xff] %vm1086_vm5, %v1054_v50  ;;  %v1009_v60 = vadd.f32 %v7061_v18, %v1008_v47  ;;  %v7114_v9 = vld [vmem:[#allocation2 + $0xf8] sm:$0xff]  ;;  %v5615_v42 = vpack.i.bf16 %v7205_v41, %v7199_v37  ;;  %v7217_v50 = vld [vmem:[#allocation2 + $0x90] sm:$0xff] }
 0x4b6   : > { %1287 = vrot.lane.b32.xlu2 %v7114_v9, %s6349_s20  ;;  %v7158_v30 = vld [vmem:[#allocation2 + $0x28] sm:$0xff]  ;;  %v5620_v47 = vpack.i.bf16 %v7217_v50, %v7214_v45 }
 0x4b7   : > { %1093 = vst.msk [vmem:[#allocation2 + $0x30] sm:$0xff] %vm1086_vm5, %v1009_v60 }
 0x4ba   : > { %v1056_v51 = vpop.f32.mrf.mxu2 }
 0x4bb   : > { %v1057_v48 = vadd.f32 %v7061_v18, %v1056_v51  ;;  %v7225_v51 = vld [vmem:[#allocation2 + $0x88] sm:$0xff] }
 0x4bc   : > { %v1011_v49 = vpop.f32.mrf.mxu0  ;;  %v7185_v36 = vld [vmem:[#allocation2 + $0xa8] sm:$0xff] }
 0x4bd   : > { %1109 = vst.msk [vmem:[#allocation2 + $0xb0] sm:$0xff] %vm1086_vm5, %v1057_v48  ;;  %v1012_v52 = vadd.f32 %v7061_v18, %v1011_v49  ;;  %v5610_v59 = vpack.i.bf16 %v7093_v39, %v7185_v36  ;;  %v7228_v48 = vld [vmem:[#allocation2 + $0x80] sm:$0xff] }
 0x4be   : > { %v5625_v49 = vpack.i.bf16 %v7228_v48, %v7225_v51 }
 0x4bf   : > { %1094 = vst.msk [vmem:[#allocation2 + $0x38] sm:$0xff] %vm1086_vm5, %v1012_v52 }
 0x4c2   : > { %v1059_v61 = vpop.f32.mrf.mxu2 }
 0x4c3   : > { %v1060_v11 = vadd.f32 %v7061_v18, %v1059_v61 }
 0x4c4   : > { %v1014_v63 = vpop.f32.mrf.mxu0 }
 0x4c5   : > { %1110 = vst.msk [vmem:[#allocation2 + $0xb8] sm:$0xff] %vm1086_vm5, %v1060_v11  ;;  %v1015_v54 = vadd.f32 %v7061_v18, %v1014_v63  ;;  %v7259_v11 = vld [vmem:[#allocation2 + $0xb0] sm:$0xff] }
 0x4c6   : > { %v7197_v35 = vld [vmem:[#allocation2 + $0x38] sm:$0xff] }
 0x4c7   : > { %1095 = vst.msk [vmem:[#allocation2 + $0x40] sm:$0xff] %vm1086_vm5, %v1015_v54  ;;  %v5580_v38 = vpack.i.bf16 %v7197_v35, %v7171_v26 }
 0x4ca   : > { %v1062_v55 = vpop.f32.mrf.mxu2 }
 0x4cb   : > { %v1063_v62 = vadd.f32 %v7061_v18, %v1062_v55 }
 0x4cc   : > { %v1017_v8 = vpop.f32.mrf.mxu0  ;;  %v7166_v22 = vld [vmem:[#allocation2 + $0xb8] sm:$0xff] }
 0x4cd   : > { %1111 = vst.msk [vmem:[#allocation2 + $0xc0] sm:$0xff] %vm1086_vm5, %v1063_v62  ;;  %v1018_v13 = vadd.f32 %v7061_v18, %v1017_v8  ;;  %v5600_v27 = vpack.i.bf16 %v7173_v25, %v7166_v22 }
 0x4ce   : > { %v7146_v10 = vld [vmem:[#allocation2 + $0x40] sm:$0xff] }
 0x4cf   : > { %1096 = vst.msk [vmem:[#allocation2 + $0x48] sm:$0xff] %vm1086_vm5, %v1018_v13  ;;  %v5575_v16 = vpack.i.bf16 %v7146_v10, %v7081_v28 }
 0x4d2   : > { %v1065_v34 = vpop.f32.mrf.mxu2 }
 0x4d3   : > { %v1066_v53 = vadd.f32 %v7061_v18, %v1065_v34 }
 0x4d4   : > { %v1020_v14 = vpop.f32.mrf.mxu0  ;;  %v7239_v52 = vld [vmem:[#allocation2 + $0xc0] sm:$0xff] }
 0x4d5   : > { %1112 = vst.msk [vmem:[#allocation2 + $0xc8] sm:$0xff] %vm1086_vm5, %v1066_v53  ;;  %v1021_v2 = vadd.f32 %v7061_v18, %v1020_v14 }
 0x4d6   : > { %v7245_v61 = vld [vmem:[#allocation2 + $0x48] sm:$0xff] }
 0x4d7   : > { %1097 = vst.msk [vmem:[#allocation2 + $0x50] sm:$0xff] %vm1086_vm5, %v1021_v2  ;;  %v7286_v2 = vld [vmem:[#allocation2 + $0x30] sm:$0xff] }
 0x4da   : > { %v1068_v4 = vpop.f32.mrf.mxu2 }
 0x4db   : > { %v1069_v12 = vadd.f32 %v7061_v18, %v1068_v4 }
 0x4dc   : > { %v1023_v15 = vpop.f32.mrf.mxu0  ;;  %v7153_v58 = vld [vmem:[#allocation2 + $0xc8] sm:$0xff] }
 0x4dd   : > { %1113 = vst.msk [vmem:[#allocation2 + $0xd0] sm:$0xff] %vm1086_vm5, %v1069_v12  ;;  %v1024_v3 = vadd.f32 %v7061_v18, %v1023_v15  ;;  %v5590_v19 = vpack.i.bf16 %v7158_v30, %v7153_v58 }
 0x4df   : > { %1098 = vst.msk [vmem:[#allocation2 + $0x58] sm:$0xff] %vm1086_vm5, %v1024_v3 }
 0x4e4   : > { %v1026_v57 = vpop.f32.mrf.mxu0  ;;  %v7203_v40 = vld [vmem:[#allocation2 + $0xd0] sm:$0xff] }
 0x4e5   : > { %v1027_v6 = vadd.f32 %v7061_v18, %v1026_v57 }
 0x4e6   : > { %v7140_v17 = vld [vmem:[#allocation2 + $0x58] sm:$0xff] }
 0x4e7   : > { %1099 = vst.msk [vmem:[#allocation2 + $0x60] sm:$0xff] %vm1086_vm5, %v1027_v6  ;;  %v5560_v20 = vpack.i.bf16 %v7140_v17, %v7114_v9 }
 0x4e9   : > { %5561 = vrot.lane.b32.xlu1 %v5560_v20, %s6350_s21 }
 0x4ec   : > { %v1029_v0 = vpop.f32.mrf.mxu0 }
 0x4ed   : > { %v1030_v5 = vadd.f32 %v7061_v18, %v1029_v0 }
 0x4ee   : > { %v7189_v33 = vld [vmem:[#allocation2 + $0x60] sm:$0xff] }
 0x4ef   : > { %1100 = vst.msk [vmem:[#allocation2 + $0x68] sm:$0xff] %vm1086_vm5, %v1030_v5 }
 0x4f1   : > { %5576 = vrot.lane.b32.xlu1 %v5575_v16, %s6350_s21 }
 0x4f4   : > { %v1032_v7 = vpop.f32.mrf.mxu0 }
 0x4f5   : > { %v1033_v56 = vadd.f32 %v7061_v18, %v1032_v7 }
 0x4f6   : > { %v7156_v29 = vld [vmem:[#allocation2 + $0x68] sm:$0xff] }
 0x4f7   : > { %1101 = vst.msk [vmem:[#allocation2 + $0x70] sm:$0xff] %vm1086_vm5, %v1033_v56  ;;  %1251 = vrot.lane.b32.xlu2 %v7156_v29, %s6349_s20 }
 0x4f9   : > { %5591 = vrot.lane.b32.xlu1 %v5590_v19, %s6350_s21 }
 0x4fc   : > { %v1035_v21 = vpop.f32.mrf.mxu0 }
 0x4fd   : > { %v1036_v23 = vadd.f32 %v7061_v18, %v1035_v21  ;;  %v7183_v18 = vld [vmem:[#allocation2 + $0x50] sm:$0xff]  ;;  %v7316_v21 = vld [vmem:[#allocation2 + $0x20] sm:$0xff] }
 0x4fe   : > { %v7169_v24 = vld [vmem:[#allocation2 + $0x70] sm:$0xff]  ;;  %v5565_v32 = vpack.i.bf16 %v7183_v18, %v7105_v44 }
 0x4ff   : > { %1102 = vst.msk [vmem:[#allocation2 + $0x78] sm:$0xff] %vm1086_vm5, %v1036_v23  ;;  %1253 = vrot.lane.b32.xlu0 %v7169_v24, %s6349_s20  ;;  %1279 = vrot.lane.b32.xlu2 %v7171_v26, %s6349_s20 }
 0x500   : > { %v1284_v31 = vpop.permute.xlu2 %1283 }
 0x501   : > { %5601 = vrot.lane.b32.xlu1 %v5600_v27, %s6350_s21 }
 0x506   : > { %v7269_v55 = vld [vmem:[#allocation2 + $0x78] sm:$0xff] }
 0x507   : > { %1249 = vrot.lane.b32.xlu2 %v7189_v33, %s6349_s20  ;;  %5566 = vrot.lane.b32.xlu0 %v5565_v32, %s6350_s21  ;;  %v5630_v62 = vpack.i.bf16 %v7169_v24, %v7269_v55 }
 0x508   : > { %v1286_v46 = vpop.permute.xlu2 %1285 }
 0x509   : > { %5611 = vrot.lane.b32.xlu1 %v5610_v59, %s6350_s21 }
 0x50f   : > { %1277 = vrot.lane.b32.xlu2 %v7203_v40, %s6349_s20  ;;  %5581 = vrot.lane.b32.xlu0 %v5580_v38, %s6350_s21 }
 0x510   : > { %v1288_v43 = vpop.permute.xlu2 %1287  ;;  %v1282_v60 = vpop.permute.xlu1 %1281 }
 0x511   : > { %5225 = vmatpush.xpose.msk.msra.mxu2 %vm1289_vm6, %v1288_v43  ;;  %5616 = vrot.lane.b32.xlu1 %v5615_v42, %s6350_s21  ;;  %v7336_v43 = vld [vmem:[#allocation2 + $0x10] sm:$0xff] }
 0x515   : > { %5226 = vmatpush.xpose.msk.msra.mxu2 %vm1289_vm6, %v1286_v46 }
 0x517   : > { %1247 = vrot.lane.b32.xlu2 %v7140_v17, %s6349_s20 }
 0x518   : > { %v7267_v54 = vpop.permute.xlu1 %1227 }
 0x519   : > { %5227 = vmatpush.xpose.msk.msra.mxu2 %vm1289_vm6, %v1284_v31  ;;  %5621 = vrot.lane.b32.xlu1 %v5620_v47, %s6350_s21 }
 0x51d   : > { %5228 = vmatpush.xpose.msk.msra.mxu2 %vm1289_vm6, %v1282_v60 }
 0x51f   : > { %1275 = vrot.lane.b32.xlu2 %v7153_v58, %s6349_s20 }
 0x521   : > { %5626 = vrot.lane.b32.xlu1 %v5625_v49, %s6350_s21 }
 0x527   : > { %1245 = vrot.lane.b32.xlu2 %v7183_v18, %s6349_s20 }
 0x529   : > { %3244 = vrot.lane.b32.xlu1 %v7114_v9, %s6351_s22 }
 0x52f   : > { %1273 = vrot.lane.b32.xlu2 %v7239_v52, %s6349_s20 }
 0x531   : > { %3236 = vrot.lane.b32.xlu1 %v7171_v26, %s6351_s22 }
 0x537   : > { %1243 = vrot.lane.b32.xlu2 %v7245_v61, %s6349_s20 }
 0x539   : > { %3198 = vrot.lane.b32.xlu1 %v7146_v10, %s6351_s22 }
 0x53f   : > { %1271 = vrot.lane.b32.xlu2 %v7166_v22, %s6349_s20 }
 0x541   : > { %3228 = vrot.lane.b32.xlu1 %v7166_v22, %s6351_s22 }
 0x547   : > { %1241 = vrot.lane.b32.xlu2 %v7146_v10, %s6349_s20 }
 0x549   : > { %3192 = vrot.lane.b32.xlu1 %v7158_v30, %s6351_s22 }
 0x54f   : > { %1269 = vrot.lane.b32.xlu2 %v7259_v11, %s6349_s20 }
 0x551   : > { %v7263_v63 = vpop.permute.xlu2 %1251  ;;  %3222 = vrot.lane.b32.xlu1 %v7199_v37, %s6351_s22 }
 0x557   : > { %1239 = vrot.lane.b32.xlu2 %v7197_v35, %s6349_s20 }
 0x559   : > { %v1280_v8 = vpop.permute.xlu2 %1279  ;;  %5631 = vrot.lane.b32.xlu1 %v5630_v62, %s6350_s21 }
 0x55a   : > { %5229 = vmatpush.xpose.msk.msra.mxu2 %vm1289_vm6, %v1280_v8 }
 0x55b   : > { %v7277_v13 = vpop.permute.xlu1 %5561 }
 0x55c   : > { %v5563_v34 = vunpack.i.l.bf16 %v7277_v13 }
 0x55e   : > { %2237 = vmatpush.msrb.mxu0 %v5563_v34 }
 0x55f   : > { %1267 = vrot.lane.b32.xlu2 %v7185_v36, %s6349_s20 }
 0x561   : > { %v7282_v53 = vpop.permute.xlu2 %1249 }
 0x563   : > { %v7284_v14 = vpop.permute.xlu1 %5576 }
 0x567   : > { %1237 = vrot.lane.b32.xlu2 %v7286_v2, %s6349_s20 }
 0x569   : > { %v1278_v4 = vpop.permute.xlu2 %1277 }
 0x56a   : > { %5230 = vmatpush.xpose.msk.msra.mxu2 %vm1289_vm6, %v1278_v4  ;;  %v5555_v4 = vpack.i.bf16 %v7189_v33, %v7156_v29 }
 0x56b   : > { %v7291_v12 = vpop.permute.xlu1 %5591 }
 0x56f   : > { %1265 = vrot.lane.b32.xlu2 %v7199_v37, %s6349_s20 }
 0x571   : > { %v1254_v15 = vpop.permute.xlu0 %1253  ;;  %v7295_v3 = vpop.permute.xlu2 %1247 }
 0x573   : > { %v7297_v57 = vpop.permute.xlu1 %5601 }
 0x577   : > { %1235 = vrot.lane.b32.xlu2 %v7158_v30, %s6349_s20 }
 0x579   : > { %v1276_v6 = vpop.permute.xlu2 %1275  ;;  %v7301_v20 = vpop.permute.xlu0 %5566 }
 0x57a   : > { %5231 = vmatpush.xpose.msk.msra.mxu2 %vm1289_vm6, %v1276_v6  ;;  %v5568_v0 = vunpack.i.l.bf16 %v7301_v20 }
 0x57b   : > { %v7305_v5 = vpop.permute.xlu1 %5611 }
 0x57c   : > { %2238 = vmatpush.msrb.mxu0 %v5568_v0 }
 0x57f   : > { %1255 = vrot.lane.b32.xlu2 %v7269_v55, %s6349_s20 }
 0x581   : > { %v1246_v16 = vpop.permute.xlu2 %1245 }
 0x583   : > { %v7309_v7 = vpop.permute.xlu1 %5616 }
 0x587   : > { %1263 = vrot.lane.b32.xlu2 %v7214_v45, %s6349_s20 }
 0x589   : > { %v1274_v56 = vpop.permute.xlu2 %1273 }
 0x58a   : > { %5232 = vmatpush.xpose.msk.msra.mxu2 %vm1289_vm6, %v1274_v56 }
 0x58b   : > { %v7314_v19 = vpop.permute.xlu1 %5621 }
 0x58f   : > { %1233 = vrot.lane.b32.xlu2 %v7316_v21, %s6349_s20 }
 0x591   : > { %v1244_v23 = vpop.permute.xlu2 %1243 }
 0x593   : > { %v7320_v27 = vpop.permute.xlu1 %5626 }
 0x597   : > { %1261 = vrot.lane.b32.xlu2 %v7217_v50, %s6349_s20 }
 0x599   : > { %v1272_v31 = vpop.permute.xlu2 %1271 }
 0x59a   : > { %5233 = vmatpush.xpose.msk.msra.mxu2 %vm1289_vm6, %v1272_v31  ;;  %v5570_v31 = vpack.i.bf16 %v7245_v61, %v7091_v1 }
 0x59b   : > { %v7325_v32 = vpop.permute.xlu1 %3244 }
 0x59c   : > { %10999 = vst [vmem:[#allocation16_spill] sm:$0xff] %v7325_v32  ;;  %v6108_v32 = vld [vmem:[#allocation2 + $0x28] sm:$0xff] }
 0x59f   : > { %1231 = vrot.lane.b32.xlu2 %v7173_v25, %s6349_s20 }
 0x5a1   : > { %v1242_v59 = vpop.permute.xlu2 %1241 }
 0x5a3   : > { %v7329_v46 = vpop.permute.xlu1 %3236 }
 0x5a4   : > { %11000 = vst [vmem:[#allocation17_spill] sm:$0xff] %v7329_v46  ;;  %v3080_v46 = vld [vmem:[#allocation2 + $0xe0] sm:$0xff] }
 0x5a7   : > { %1259 = vrot.lane.b32.xlu2 %v7225_v51, %s6349_s20 }
 0x5a9   : > { %v1270_v38 = vpop.permute.xlu2 %1269 }
 0x5aa   : > { %5234 = vmatpush.xpose.msk.msra.mxu2 %vm1289_vm6, %v1270_v38 }
 0x5ab   : > { %v7334_v42 = vpop.permute.xlu1 %3198 }
 0x5af   : > { %1229 = vrot.lane.b32.xlu2 %v7336_v43, %s6349_s20 }
 0x5b1   : > { %v1240_v47 = vpop.permute.xlu2 %1239 }
 0x5b3   : > { %v7340_v60 = vpop.permute.xlu1 %3228 }
 0x5b4   : > { %11001 = vst [vmem:[#allocation18_spill] sm:$0xff] %v7340_v60 }
 0x5b7   : > { %1257 = vrot.lane.b32.xlu2 %v7228_v48, %s6349_s20 }
 0x5b9   : > { %v1268_v49 = vpop.permute.xlu2 %1267 }
 0x5ba   : > { %5235 = vmatpush.xpose.msk.msra.mxu2 %vm1289_vm6, %v1268_v49 }
 0x5bb   : > { %v7345_v62 = vpop.permute.xlu1 %3192 }
 0x5bc   : > { %11002 = vst [vmem:[#allocation19_spill] sm:$0xff] %v7345_v62 }
 0x5bf   : > { %1225 = vrot.lane.b32.xlu2 %v7205_v41, %s6349_s20 }
 0x5c1   : > { %v1238_v8 = vpop.permute.xlu2 %1237 }
 0x5c3   : > { %v7349_v34 = vpop.permute.xlu1 %3222 }
 0x5c4   : > { %11003 = vst [vmem:[#allocation20_spill] sm:$0xff] %v7349_v34  ;;  %v5585_v34 = vpack.i.bf16 %v7286_v2, %v7203_v40 }
 0x5c7   : > { %5556 = vrot.lane.b32.xlu2 %v5555_v4, %s6350_s21 }
 0x5c9   : > { %v1266_v6 = vpop.permute.xlu2 %1265 }
 0x5ca   : > { %5236 = vmatpush.xpose.msk.msra.mxu2 %vm1289_vm6, %v1266_v6  ;;  %v5595_v6 = vpack.i.bf16 %v7316_v21, %v7239_v52 }
 0x5cb   : > { %v5632_v0 = vpop.permute.xlu1 %5631 }
 0x5cc   : > { %v5633_v56 = vunpack.i.l.bf16 %v5632_v0  ;;  %v5634_v38 = vunpack.i.h.bf16 %v5632_v0 }
 0x5ce   : > { %2124 = vmatpush.msrb.mxu3 %v5633_v56  ;;  %v5605_v56 = vpack.i.bf16 %v7336_v43, %v7259_v11 }
 0x5cf   : > { %5571 = vrot.lane.b32.xlu2 %v5570_v31, %s6350_s21  ;;  %v5569_v31 = vunpack.i.h.bf16 %v7301_v20 }
 0x5d0   : > { %2125 = vmatpush.msrb.mxu3 %v5634_v38 }
 0x5d1   : > { %v1236_v49 = vpop.permute.xlu2 %1235 }
 0x5d7   : > { %5586 = vrot.lane.b32.xlu2 %v5585_v34, %s6350_s21 }
 0x5d9   : > { %v1256_v4 = vpop.permute.xlu2 %1255 }
 0x5da   : > { %5177 = vmatpush.xpose.msk.msrb.mxu1 %vm1289_vm6, %v1256_v4  ;;  %v5582_v4 = vpop.permute.xlu0 %5581 }
 0x5db   : > { %v5583_v20 = vunpack.i.l.bf16 %v5582_v4 }
 0x5de   : > { %5178 = vmatpush.xpose.msk.msrb.mxu1 %vm1289_vm6, %v1254_v15 }
 0x5df   : > { %5596 = vrot.lane.b32.xlu2 %v5595_v6, %s6350_s21  ;;  %v5579_v6 = vunpack.i.h.bf16 %v7284_v14 }
 0x5e1   : > { %v1264_v0 = vpop.permute.xlu2 %1263 }
 0x5e2   : > { %5179 = vmatpush.xpose.msk.msrb.mxu1 %vm1289_vm6, %v7263_v63  ;;  %5237 = vmatpush.xpose.msk.msra.mxu2 %vm1289_vm6, %v1264_v0 }
 0x5e6   : > { %5180 = vmatpush.xpose.msk.msrb.mxu1 %vm1289_vm6, %v7282_v53 }
 0x5e7   : > { %5606 = vrot.lane.b32.xlu2 %v5605_v56, %s6350_s21  ;;  %s10878_s21 = scalar_lea.vmem [#allocation11], %s5136_s5  ;;  %s5455_s5 = sshll.u32 %s6428_s13, 6 }
 0x5e8   : > { %s5021_s27 = sshll.u32 %s10878_s21, 4  ;;  %s5009_s13 = scalar_lea.sflag [#allocation5], %s6518_s18  ;;  %s5022_s27 = int_to_ptr.vmem [resolvable:$true] %s5021_s27 }
 0x5e9   : > { %v1234_v34 = vpop.permute.xlu2 %1233 }
 0x5ea   : > { %5181 = vmatpush.xpose.msk.msrb.mxu1 %vm1289_vm6, %v7295_v3 }
 0x5ee   : > { %5182 = vmatpush.xpose.msk.msrb.mxu1 %vm1289_vm6, %v1246_v16 }
 0x5ef   : > { %3242 = vrot.lane.b32.xlu2 %v7105_v44, %s6351_s22 }
 0x5f1   : > { %v1262_v63 = vpop.permute.xlu2 %1261 }
 0x5f2   : > { %5183 = vmatpush.xpose.msk.msrb.mxu1 %vm1289_vm6, %v1244_v23  ;;  %5238 = vmatpush.xpose.msk.msra.mxu2 %vm1289_vm6, %v1262_v63  ;;  %v5594_v63 = vunpack.i.h.bf16 %v7291_v12 }
 0x5f6   : > { %5184 = vmatpush.xpose.msk.msrb.mxu1 %vm1289_vm6, %v1242_v59 }
 0x5f7   : > { %3202 = vrot.lane.b32.xlu2 %v7183_v18, %s6351_s22 }
 0x5f9   : > { %v1232_v53 = vpop.permute.xlu2 %1231 }
 0x5fa   : > { %5185 = vmatpush.xpose.msk.msrb.mxu1 %vm1289_vm6, %v1240_v47 }
 0x5fe   : > { %5186 = vmatpush.xpose.msk.msrb.mxu1 %vm1289_vm6, %v1238_v8  ;;  %v5564_v8 = vunpack.i.h.bf16 %v7277_v13  ;;  %v5584_v13 = vunpack.i.h.bf16 %v5582_v4 }
 0x5ff   : > { %3230 = vrot.lane.b32.xlu2 %v7239_v52, %s6351_s22 }
 0x601   : > { %v1260_v15 = vpop.permute.xlu2 %1259 }
 0x602   : > { %5187 = vmatpush.xpose.msk.msrb.mxu1 %vm1289_vm6, %v1236_v49  ;;  %5239 = vmatpush.xpose.msk.msra.mxu2 %vm1289_vm6, %v1260_v15 }
 0x606   : > { %5188 = vmatpush.xpose.msk.msrb.mxu1 %vm1289_vm6, %v1234_v34 }
 0x607   : > { %3194 = vrot.lane.b32.xlu2 %v7286_v2, %s6351_s22 }
 0x609   : > { %v1230_v3 = vpop.permute.xlu2 %1229 }
 0x60a   : > { %5189 = vmatpush.xpose.msk.msrb.mxu1 %vm1289_vm6, %v1232_v53 }
 0x60e   : > { %5190 = vmatpush.xpose.msk.msrb.mxu1 %vm1289_vm6, %v1230_v3 }
 0x60f   : > { %3224 = vrot.lane.b32.xlu2 %v7185_v36, %s6351_s22 }
 0x611   : > { %v1258_v16 = vpop.permute.xlu2 %1257 }
 0x612   : > { %5191 = vmatpush.xpose.msk.msrb.mxu1 %vm1289_vm6, %v7267_v54  ;;  %5240 = vmatpush.xpose.msk.msra.mxu2 %vm1289_vm6, %v1258_v16  ;;  %v5604_v16 = vunpack.i.h.bf16 %v7297_v57 }
 0x615   : > { %5241 = vmatmul.msk.f32.vlgmr.msra.gmra.mxu2 %vm1289_vm6, %v7205_v41 }
 0x617   : > { %3212 = vrot.lane.b32.xlu2 %v7269_v55, %s6351_s22 }
 0x619   : > { %v1226_v23 = vpop.permute.xlu2 %1225 }
 0x61a   : > { %5192 = vmatpush.xpose.msk.msrb.mxu1 %vm1289_vm6, %v1226_v23  ;;  %v5603_v23 = vunpack.i.l.bf16 %v7297_v57  ;;  %v5619_v57 = vunpack.i.h.bf16 %v7309_v7 }
 0x61d   : > { %5193 = vmatmul.msk.f32.vlgmr.msrb.gmra.mxu1 %vm1289_vm6, %v7205_v41  ;;  %5242 = vmatmul.msk.f32.gmra.mxu2 %vm1289_vm6, %v7093_v39 }
 0x621   : > { %v5557_v59 = vpop.permute.xlu2 %5556 }
 0x622   : > { %v5558_v47 = vunpack.i.l.bf16 %v5557_v59  ;;  %v5559_v54 = vunpack.i.h.bf16 %v5557_v59 }
 0x624   : > { %2126 = vmatpush.msrb.mxu3 %v5558_v47 }
 0x625   : > { %5194 = vmatmul.msk.f32.gmra.mxu1 %vm1289_vm6, %v7093_v39  ;;  %5243 = vmatmul.msk.f32.gmra.mxu2 %vm1289_vm6, %v7336_v43  ;;  %v5578_v39 = vunpack.i.l.bf16 %v7284_v14  ;;  %v5593_v14 = vunpack.i.l.bf16 %v7291_v12 }
 0x626   : > { %2127 = vmatpush.msrb.mxu3 %v5559_v54  ;;  %v5614_v54 = vunpack.i.h.bf16 %v7305_v5 }
 0x628   : > { %2128 = vmatpush.msrb.mxu3 %v5564_v8  ;;  %v5613_v8 = vunpack.i.l.bf16 %v7305_v5  ;;  %v5624_v5 = vunpack.i.h.bf16 %v7314_v19 }
 0x629   : > { %v5572_v41 = vpop.permute.xlu2 %5571 }
 0x62a   : > { %v5574_v38 = vunpack.i.h.bf16 %v5572_v41  ;;  %2129 = vmatpush.msrb.mxu3 %v5569_v31  ;;  %v5573_v49 = vunpack.i.l.bf16 %v5572_v41  ;;  %v5623_v31 = vunpack.i.l.bf16 %v7314_v19 }
 0x62c   : > { %2130 = vmatpush.msrb.mxu3 %v5574_v38  ;;  %2239 = vmatpush.msrb.mxu0 %v5573_v49 }
 0x62d   : > { %5195 = vmatmul.msk.f32.gmra.mxu1 %vm1289_vm6, %v7336_v43  ;;  %5244 = vmatmul.msk.f32.gmra.mxu2 %vm1289_vm6, %v7173_v25 }
 0x62e   : > { %2131 = vmatpush.msrb.mxu3 %v5579_v6  ;;  %2240 = vmatpush.msrb.mxu0 %v5578_v39 }
 0x630   : > { %2132 = vmatpush.msrb.mxu3 %v5584_v13  ;;  %2241 = vmatpush.msrb.mxu0 %v5583_v20 }
 0x631   : > { %v5587_v0 = vpop.permute.xlu2 %5586 }
 0x632   : > { %v5589_v56 = vunpack.i.h.bf16 %v5587_v0  ;;  %v5588_v34 = vunpack.i.l.bf16 %v5587_v0 }
 0x634   : > { %2133 = vmatpush.msrb.mxu3 %v5589_v56  ;;  %2242 = vmatpush.msrb.mxu0 %v5588_v34 }
 0x635   : > { %5196 = vmatmul.msk.f32.gmra.mxu1 %vm1289_vm6, %v7173_v25  ;;  %5245 = vmatmul.msk.f32.gmra.mxu2 %vm1289_vm6, %v7316_v21 }
 0x636   : > { %2134 = vmatpush.msrb.mxu3 %v5594_v63  ;;  %2243 = vmatpush.msrb.mxu0 %v5593_v14 }
 0x639   : > { %v5597_v53 = vpop.permute.xlu2 %5596 }
 0x63a   : > { %v5599_v15 = vunpack.i.h.bf16 %v5597_v53  ;;  %v5598_v3 = vunpack.i.l.bf16 %v5597_v53 }
 0x63c   : > { %2135 = vmatpush.msrb.mxu3 %v5599_v15  ;;  %2244 = vmatpush.msrb.mxu0 %v5598_v3 }
 0x63d   : > { %5197 = vmatmul.msk.f32.gmra.mxu1 %vm1289_vm6, %v7316_v21  ;;  %5246 = vmatmul.msk.f32.gmra.mxu2 %vm1289_vm6, %v7158_v30  ;;  %v5618_v21 = vunpack.i.l.bf16 %v7309_v7  ;;  %v5629_v7 = vunpack.i.h.bf16 %v7320_v27 }
 0x63e   : > { %2136 = vmatpush.msrb.mxu3 %v5604_v16  ;;  %2245 = vmatpush.msrb.mxu0 %v5603_v23 }
 0x641   : > { %v5607_v12 = vpop.permute.xlu2 %5606 }
 0x642   : > { %v5609_v59 = vunpack.i.h.bf16 %v5607_v12  ;;  %v5608_v47 = vunpack.i.l.bf16 %v5607_v12 }
 0x644   : > { %2137 = vmatpush.msrb.mxu3 %v5609_v59  ;;  %2246 = vmatpush.msrb.mxu0 %v5608_v47 }
 0x645   : > { %5198 = vmatmul.msk.f32.gmra.mxu1 %vm1289_vm6, %v7158_v30  ;;  %5247 = vmatmul.msk.f32.gmra.mxu2 %vm1289_vm6, %v7286_v2  ;;  %v5628_v30 = vunpack.i.l.bf16 %v7320_v27 }
 0x646   : > { %2138 = vmatpush.msrb.mxu3 %v5614_v54  ;;  %2247 = vmatpush.msrb.mxu0 %v5613_v8 }
 0x648   : > { %2139 = vmatpush.msrb.mxu3 %v5619_v57  ;;  %2248 = vmatpush.msrb.mxu0 %v5618_v21 }
 0x649   : > { %v7442_v41 = vpop.permute.xlu2 %3242 }
 0x64a   : > { %11004 = vst [vmem:[#allocation21_spill] sm:$0xff] %v7442_v41  ;;  %2249 = vmatpush.msrb.mxu0 %v5623_v31  ;;  %v7847_v41 = vld [vmem:[#allocation2 + $0x18] sm:$0xff] }
 0x64b   : > { %11013 = vst [vmem:[#allocation30_spill] sm:$0xff] %v7847_v41 }
 0x64c   : > { %2250 = vmatpush.msrb.mxu0 %v5624_v5 }
 0x64d   : > { %5199 = vmatmul.msk.f32.gmra.mxu1 %vm1289_vm6, %v7286_v2  ;;  %5248 = vmatmul.msk.f32.gmra.mxu2 %vm1289_vm6, %v7197_v35 }
 0x64e   : > { %2251 = vmatpush.msrb.mxu0 %v5628_v30 }
 0x650   : > { %2252 = vmatpush.msrb.mxu0 %v5629_v7 }
 0x651   : > { %v7451_v38 = vpop.permute.xlu2 %3202 }
 0x655   : > { %5200 = vmatmul.msk.f32.gmra.mxu1 %vm1289_vm6, %v7197_v35  ;;  %5249 = vmatmul.msk.f32.gmra.mxu2 %vm1289_vm6, %v7146_v10 }
 0x659   : > { %v7457_v19 = vpop.permute.xlu2 %3230 }
 0x65a   : > { %11005 = vst [vmem:[#allocation22_spill] sm:$0xff] %v7457_v19 }
 0x65d   : > { %5201 = vmatmul.msk.f32.gmra.mxu1 %vm1289_vm6, %v7146_v10  ;;  %5250 = vmatmul.msk.f32.gmra.mxu2 %vm1289_vm6, %v7245_v61 }
 0x661   : > { %v7463_v2 = vpop.permute.xlu2 %3194 }
 0x662   : > { %11006 = vst [vmem:[#allocation23_spill] sm:$0xff] %v7463_v2  ;;  %v6113_v2 = vld [vmem:[#allocation2 + $0xf0] sm:$0xff] }
 0x665   : > { %5202 = vmatmul.msk.f32.gmra.mxu1 %vm1289_vm6, %v7245_v61  ;;  %5251 = vmatmul.msk.f32.gmra.mxu2 %vm1289_vm6, %v7183_v18 }
 0x669   : > { %v7469_v35 = vpop.permute.xlu2 %3224 }
 0x66a   : > { %11007 = vst [vmem:[#allocation24_spill] sm:$0xff] %v7469_v35 }
 0x66d   : > { %5203 = vmatmul.msk.f32.gmra.mxu1 %vm1289_vm6, %v7183_v18  ;;  %5252 = vmatmul.msk.f32.gmra.mxu2 %vm1289_vm6, %v7140_v17 }
 0x671   : > { %v3213_v10 = vpop.permute.xlu2 %3212 }
 0x672   : > { %5313 = vmatpush.xpose.msk.msrb.mxu2 %vm1289_vm6, %v3213_v10 }
 0x675   : > { %5204 = vmatmul.msk.f32.gmra.mxu1 %vm1289_vm6, %v7140_v17  ;;  %5253 = vmatmul.msk.f32.gmra.mxu2 %vm1289_vm6, %v7189_v33 }
 0x67d   : > { %5205 = vmatmul.msk.f32.gmra.mxu1 %vm1289_vm6, %v7189_v33  ;;  %5254 = vmatmul.msk.f32.gmra.mxu2 %vm1289_vm6, %v7156_v29 }
 0x685   : > { %5206 = vmatmul.msk.f32.gmra.mxu1 %vm1289_vm6, %v7156_v29  ;;  %5255 = vmatmul.msk.f32.gmra.mxu2 %vm1289_vm6, %v7169_v24 }
 0x68d   : > { %5207 = vmatmul.msk.f32.gmra.mxu1 %vm1289_vm6, %v7169_v24  ;;  %5256 = vmatmul.msk.f32.gmra.mxu2 %vm1289_vm6, %v7269_v55 }
 0x695   : > { %5208 = vmatmul.msk.f32.gmra.mxu1 %vm1289_vm6, %v7269_v55  ;;  %5257 = vmatmul.msk.f32.gmra.mxu2 %vm1289_vm6, %v7228_v48 }
 0x698   : > { %v7496_v17 = vpop.f32.mrf.mxu2 }
 0x69a   : > { %v7498_v18 = vpop.f32.mrf.mxu1 }
 0x69b   : > { %v1644_v29 = vmax.f32 %v7498_v18, %v7496_v17 }
 0x69d   : > { %5209 = vmatmul.msk.f32.gmra.mxu1 %vm1289_vm6, %v7228_v48  ;;  %5258 = vmatmul.msk.f32.gmra.mxu2 %vm1289_vm6, %v7225_v51 }
 0x69e   : > { %1645 = vmax.xlane.f32.xlu0 %v1644_v29 }
 0x6a0   : > { %v7506_v24 = vpop.f32.mrf.mxu2 }
 0x6a2   : > { %v7508_v33 = vpop.f32.mrf.mxu1 }
 0x6a3   : > { %v1647_v61 = vmax.f32 %v7508_v33, %v7506_v24 }
 0x6a5   : > { %5210 = vmatmul.msk.f32.gmra.mxu1 %vm1289_vm6, %v7225_v51  ;;  %5259 = vmatmul.msk.f32.gmra.mxu2 %vm1289_vm6, %v7217_v50 }
 0x6a6   : > { %1648 = vmax.xlane.f32.xlu2 %v1647_v61 }
 0x6a8   : > { %v7516_v55 = vpop.f32.mrf.mxu2 }
 0x6aa   : > { %v7518_v48 = vpop.f32.mrf.mxu1 }
 0x6ab   : > { %v1650_v27 = vmax.f32 %v7518_v48, %v7516_v55 }
 0x6ad   : > { %5211 = vmatmul.msk.f32.gmra.mxu1 %vm1289_vm6, %v7217_v50  ;;  %5260 = vmatmul.msk.f32.gmra.mxu2 %vm1289_vm6, %v7214_v45 }
 0x6ae   : > { %1651 = vmax.xlane.f32.xlu0 %v1650_v27 }
 0x6b0   : > { %v7526_v49 = vpop.f32.mrf.mxu2 }
 0x6b2   : > { %v7528_v51 = vpop.f32.mrf.mxu1 }
 0x6b3   : > { %v1653_v4 = vmax.f32 %v7528_v51, %v7526_v49 }
 0x6b5   : > { %5212 = vmatmul.msk.f32.gmra.mxu1 %vm1289_vm6, %v7214_v45  ;;  %5261 = vmatmul.msk.f32.gmra.mxu2 %vm1289_vm6, %v7199_v37 }
 0x6b6   : > { %1654 = vmax.xlane.f32.xlu1 %v1653_v4 }
 0x6b8   : > { %v7536_v6 = vpop.f32.mrf.mxu2 }
 0x6ba   : > { %v7538_v39 = vpop.f32.mrf.mxu1 }
 0x6bb   : > { %v1656_v13 = vmax.f32 %v7538_v39, %v7536_v6 }
 0x6bd   : > { %5213 = vmatmul.msk.f32.gmra.mxu1 %vm1289_vm6, %v7199_v37  ;;  %5262 = vmatmul.msk.f32.gmra.mxu2 %vm1289_vm6, %v7185_v36 }
 0x6be   : > { %3188 = vrot.lane.b32.xlu2 %v7173_v25, %s6351_s22  ;;  %1657 = vmax.xlane.f32.xlu0 %v1656_v13 }
 0x6c0   : > { %v7548_v45 = vpop.f32.mrf.mxu2 }
 0x6c2   : > { %v7550_v20 = vpop.f32.mrf.mxu1 }
 0x6c3   : > { %v1659_v0 = vmax.f32 %v7550_v20, %v7548_v45 }
 0x6c5   : > { %5214 = vmatmul.msk.f32.gmra.mxu1 %vm1289_vm6, %v7185_v36  ;;  %5263 = vmatmul.msk.f32.gmra.mxu2 %vm1289_vm6, %v7259_v11 }
 0x6c6   : > { %1660 = vmax.xlane.f32.xlu0 %v1659_v0  ;;  %v1191_v0 = vld [vmem:[#allocation9] sm:$0xff] }
 0x6c8   : > { %v7558_v37 = vpop.f32.mrf.mxu2 }
 0x6ca   : > { %v7560_v56 = vpop.f32.mrf.mxu1 }
 0x6cb   : > { %v1662_v53 = vmax.f32 %v7560_v56, %v7558_v37 }
 0x6cd   : > { %5215 = vmatmul.msk.f32.gmra.mxu1 %vm1289_vm6, %v7259_v11  ;;  %5264 = vmatmul.msk.f32.gmra.mxu2 %vm1289_vm6, %v7166_v22 }
 0x6cf   : > { %3186 = vrot.lane.b32.xlu1 %v7336_v43, %s6351_s22 }
 0x6d0   : > { %v7568_v25 = vpop.f32.mrf.mxu2 }
 0x6d2   : > { %v7570_v36 = vpop.f32.mrf.mxu1 }
 0x6d3   : > { %v1665_v34 = vmax.f32 %v7570_v36, %v7568_v25 }
 0x6d5   : > { %5216 = vmatmul.msk.f32.gmra.mxu1 %vm1289_vm6, %v7166_v22  ;;  %5265 = vmatmul.msk.f32.gmra.mxu2 %vm1289_vm6, %v7239_v52 }
 0x6d6   : > { %1666 = vmax.xlane.f32.xlu0 %v1665_v34 }
 0x6d8   : > { %v7578_v11 = vpop.f32.mrf.mxu2 }
 0x6da   : > { %v7580_v63 = vpop.f32.mrf.mxu1 }
 0x6dd   : > { %5217 = vmatmul.msk.f32.gmra.mxu1 %vm1289_vm6, %v7239_v52  ;;  %5266 = vmatmul.msk.f32.gmra.mxu2 %vm1289_vm6, %v7153_v58 }
 0x6e0   : > { %v7586_v43 = vpop.f32.mrf.mxu2 }
 0x6e2   : > { %v7588_v14 = vpop.f32.mrf.mxu1 }
 0x6e3   : > { %v1671_v22 = vmax.f32 %v7588_v14, %v7586_v43 }
 0x6e5   : > { %5218 = vmatmul.msk.f32.gmra.mxu1 %vm1289_vm6, %v7153_v58  ;;  %5267 = vmatmul.msk.f32.gmra.mxu2 %vm1289_vm6, %v7203_v40  ;;  %v1668_v58 = vmax.f32 %v7580_v63, %v7578_v11 }
 0x6e6   : > { %1672 = vmax.xlane.f32.xlu0 %v1671_v22 }
 0x6e7   : > { %1663 = vmax.xlane.f32.xlu2 %v1662_v53 }
 0x6e8   : > { %v7598_v52 = vpop.f32.mrf.mxu2 }
 0x6ea   : > { %v7600_v15 = vpop.f32.mrf.mxu1 }
 0x6ed   : > { %5219 = vmatmul.msk.f32.gmra.mxu1 %vm1289_vm6, %v7203_v40  ;;  %5268 = vmatmul.msk.f32.gmra.mxu2 %vm1289_vm6, %v7171_v26  ;;  %v1674_v40 = vmax.f32 %v7600_v15, %v7598_v52 }
 0x6ef   : > { %1669 = vmax.xlane.f32.xlu2 %v1668_v58 }
 0x6f0   : > { %v7608_v3 = vpop.f32.mrf.mxu2 }
 0x6f2   : > { %v7610_v16 = vpop.f32.mrf.mxu1 }
 0x6f3   : > { %v1677_v23 = vmax.f32 %v7610_v16, %v7608_v3 }
 0x6f5   : > { %5220 = vmatmul.msk.f32.gmra.mxu1 %vm1289_vm6, %v7171_v26  ;;  %5269 = vmatmul.msk.f32.gmra.mxu2 %vm1289_vm6, %v7081_v28 }
 0x6f6   : > { %1678 = vmax.xlane.f32.xlu0 %v1677_v23 }
 0x6f7   : > { %1675 = vmax.xlane.f32.xlu2 %v1674_v40 }
 0x6f8   : > { %v7620_v12 = vpop.f32.mrf.mxu2 }
 0x6fa   : > { %v7622_v59 = vpop.f32.mrf.mxu1 }
 0x6fb   : > { %v1680_v47 = vmax.f32 %v7622_v59, %v7620_v12 }
 0x6fd   : > { %5221 = vmatmul.msk.f32.gmra.mxu1 %vm1289_vm6, %v7081_v28  ;;  %5270 = vmatmul.msk.f32.gmra.mxu2 %vm1289_vm6, %v7091_v1 }
 0x6ff   : > { %1681 = vmax.xlane.f32.xlu2 %v1680_v47  ;;  %v1192_v47 = vld [vmem:[#allocation9 + $0x8] sm:$0xff] }
 0x700   : > { %v7630_v26 = vpop.f32.mrf.mxu2 }
 0x702   : > { %v7632_v54 = vpop.f32.mrf.mxu1 }
 0x703   : > { %v1683_v8 = vmax.f32 %v7632_v54, %v7630_v26 }
 0x705   : > { %5222 = vmatmul.msk.f32.gmra.mxu1 %vm1289_vm6, %v7091_v1  ;;  %5271 = vmatmul.msk.f32.gmra.mxu2 %vm1289_vm6, %v7105_v44 }
 0x706   : > { %1684 = vmax.xlane.f32.xlu1 %v1683_v8 }
 0x708   : > { %v7640_v57 = vpop.f32.mrf.mxu2 }
 0x70a   : > { %v7642_v28 = vpop.f32.mrf.mxu1 }
 0x70d   : > { %5223 = vmatmul.msk.f32.gmra.mxu1 %vm1289_vm6, %v7105_v44  ;;  %5272 = vmatmul.msk.f32.gmra.mxu2 %vm1289_vm6, %v7114_v9 }
 0x710   : > { %v7648_v21 = vpop.f32.mrf.mxu2 }
 0x711   : > { %v1646_v31 = vpop.xlane.xlu0 %1645 }
 0x712   : > { %v1740_v5 = vsub.f32 %v7498_v18, %v1646_v31  ;;  %v1741_v1 = vsub.f32 %v7496_v17, %v1646_v31  ;;  %v7652_v30 = vpop.f32.mrf.mxu1 }
 0x714   : > { %v1804_v7 = vmul.f32 1.442695, %v1740_v5  ;;  %v1806_v10 = vmul.f32 1.442695, %v1741_v1 }
 0x715   : > { %5224 = vmatmul.msk.f32.gmra.mxu1 %vm1289_vm6, %v7114_v9 }
 0x716   : > { %5723 = vpow2.f32 %v1804_v7 }
 0x717   : > { %5725 = vpow2.f32 %v1806_v10  ;;  %3218 = vrot.lane.b32.xlu2 %v7217_v50, %s6351_s22 }
 0x718   : > { %v7658_v44 = vpop.f32.mrf.mxu2 }
 0x719   : > { %v1649_v29 = vpop.xlane.xlu2 %1648 }
 0x71a   : > { %v1742_v61 = vsub.f32 %v7508_v33, %v1649_v29  ;;  %v1743_v18 = vsub.f32 %v7506_v24, %v1649_v29  ;;  %v7662_v17 = vpop.f32.mrf.mxu1 }
 0x71b   : > { %v1692_v27 = vmax.f32 %v7662_v17, %v7658_v44 }
 0x71c   : > { %v7666_v4 = vpop.eup %5723  ;;  %v1808_v9 = vmul.f32 1.442695, %v1742_v61  ;;  %v1810_v13 = vmul.f32 1.442695, %v1743_v18 }
 0x71d   : > { %v7668_v34 = vpop.eup %5725  ;;  %2140 = vmatmul.f32.vlgmr.msrb.gmra.mxu3 %v7666_v4  ;;  %1693 = vmax.xlane.f32.xlu1 %v1692_v27 }
 0x71e   : > { %5727 = vpow2.f32 %v1808_v9  ;;  %2253 = vmatmul.f32.vlgmr.msrb.gmra.mxu0 %v7668_v34 }
 0x71f   : > { %5729 = vpow2.f32 %v1810_v13  ;;  %2830 = vxpose.xlu0.b32.start [1/2] (short) (narrow) %v1191_v0, 32 }
 0x720   : > { %v7672_v50 = vpop.f32.mrf.mxu2 }
 0x721   : > { %v1652_v24 = vpop.xlane.xlu0 %1651 }
 0x722   : > { %v1744_v33 = vsub.f32 %v7518_v48, %v1652_v24  ;;  %v1745_v22 = vsub.f32 %v7516_v55, %v1652_v24  ;;  %v7676_v53 = vpop.f32.mrf.mxu1 }
 0x724   : > { %v5728_v58 = vpop.eup %5727  ;;  %v1812_v23 = vmul.f32 1.442695, %v1744_v33  ;;  %v1814_v40 = vmul.f32 1.442695, %v1745_v22 }
 0x725   : > { %v5730_v8 = vpop.eup %5729  ;;  %2143 = vmatmul.f32.gmra.mxu3 %v5728_v58 }
 0x726   : > { %5731 = vpow2.f32 %v1812_v23  ;;  %2256 = vmatmul.f32.gmra.mxu0 %v5730_v8  ;;  %v7678_v31 = vadd.f32 %v5730_v8, %v5728_v58 }
 0x727   : > { %5733 = vpow2.f32 %v1814_v40  ;;  %2831 = vxpose.xlu0.b32.end [2/2] (short) (narrow) %v1192_v47, 32 }
 0x728   : > { %v7680_v5 = vpop.f32.mrf.mxu2 }
 0x729   : > { %v1655_v1 = vpop.xlane.xlu1 %1654 }
 0x72a   : > { %v1746_v48 = vsub.f32 %v7528_v51, %v1655_v1  ;;  %v1747_v55 = vsub.f32 %v7526_v49, %v1655_v1  ;;  %v7684_v7 = vpop.f32.mrf.mxu1 }
 0x72c   : > { %v5732_v10 = vpop.eup %5731  ;;  %v1816_v29 = vmul.f32 1.442695, %v1746_v48  ;;  %v1818_v61 = vmul.f32 1.442695, %v1747_v55 }
 0x72d   : > { %v5734_v18 = vpop.eup %5733  ;;  %2146 = vmatmul.f32.gmra.mxu3 %v5732_v10 }
 0x72e   : > { %5735 = vpow2.f32 %v1816_v29  ;;  %2259 = vmatmul.f32.gmra.mxu0 %v5734_v18  ;;  %v7686_v27 = vadd.f32 %v5734_v18, %v5732_v10  ;;  %v1689_v29 = vmax.f32 %v7652_v30, %v7648_v21 }
 0x72f   : > { %5737 = vpow2.f32 %v1818_v61 }
 0x730   : > { %v7688_v9 = vpop.f32.mrf.mxu2 }
 0x731   : > { %v1658_v13 = vpop.xlane.xlu0 %1657 }
 0x732   : > { %v1748_v0 = vsub.f32 %v7538_v39, %v1658_v13  ;;  %v1749_v51 = vsub.f32 %v7536_v6, %v1658_v13  ;;  %v7692_v49 = vpop.f32.mrf.mxu1 }
 0x733   : > { %v1701_v24 = vmax.f32 %v7692_v49, %v7688_v9 }
 0x734   : > { %v5736_v33 = vpop.eup %5735  ;;  %v1820_v22 = vmul.f32 1.442695, %v1748_v0  ;;  %v1822_v58 = vmul.f32 1.442695, %v1749_v51  ;;  %v1932_v0 = vadd.f32 %v7668_v34, %v7666_v4 }
 0x735   : > { %v5738_v23 = vpop.eup %5737  ;;  %2149 = vmatmul.f32.gmra.mxu3 %v5736_v33  ;;  %1702 = vmax.xlane.f32.xlu1 %v1701_v24 }
 0x736   : > { %5739 = vpow2.f32 %v1820_v22  ;;  %2262 = vmatmul.f32.gmra.mxu0 %v5738_v23  ;;  %v1941_v4 = vadd.f32 %v5738_v23, %v5736_v33 }
 0x737   : > { %5741 = vpow2.f32 %v1822_v58  ;;  %v1698_v58 = vmax.f32 %v7684_v7, %v7680_v5 }
 0x738   : > { %v7696_v40 = vpop.f32.mrf.mxu2 }
 0x739   : > { %v1661_v47 = vpop.xlane.xlu0 %1660 }
 0x73a   : > { %v1750_v39 = vsub.f32 %v7550_v20, %v1661_v47  ;;  %v1751_v6 = vsub.f32 %v7548_v45, %v1661_v47  ;;  %v7700_v8 = vpop.f32.mrf.mxu1 }
 0x73c   : > { %v5740_v1 = vpop.eup %5739  ;;  %v1824_v48 = vmul.f32 1.442695, %v1750_v39  ;;  %v1826_v55 = vmul.f32 1.442695, %v1751_v6  ;;  %v7722_v39 = vpop.permute.xlu2 %3188 }
 0x73d   : > { %v5742_v10 = vpop.eup %5741  ;;  %2152 = vmatmul.f32.gmra.mxu3 %v5740_v1  ;;  %11008 = vst [vmem:[#allocation25_spill] sm:$0xff] %v7722_v39  ;;  %v7860_v39 = vld [vmem:[#allocation2 + $0x40] sm:$0xff] }
 0x73e   : > { %5743 = vpow2.f32 %v1824_v48  ;;  %2265 = vmatmul.f32.gmra.mxu0 %v5742_v10  ;;  %v7704_v61 = vadd.f32 %v5742_v10, %v5740_v1  ;;  %11015 = vst [vmem:[#allocation32_spill] sm:$0xff] %v7860_v39 }
 0x73f   : > { %5745 = vpow2.f32 %v1826_v55 }
 0x740   : > { %1690 = vmax.xlane.f32.xlu2 %v1689_v29  ;;  %v7706_v18 = vpop.f32.mrf.mxu2 }
 0x742   : > { %v7708_v20 = vpop.f32.mrf.mxu1 }
 0x743   : > { %v1707_v23 = vmax.f32 %v7708_v20, %v7706_v18 }
 0x744   : > { %v5744_v45 = vpop.eup %5743 }
 0x745   : > { %v5746_v13 = vpop.eup %5745  ;;  %2155 = vmatmul.f32.gmra.mxu3 %v5744_v45 }
 0x746   : > { %2268 = vmatmul.f32.gmra.mxu0 %v5746_v13 }
 0x748   : > { %1933 = vadd.xlane.f32.xlu2 %v1932_v0  ;;  %v7712_v51 = vpop.f32.mrf.mxu2 }
 0x749   : > { %v1667_v1 = vpop.xlane.xlu0 %1666 }
 0x74a   : > { %v7714_v24 = vpop.f32.mrf.mxu1 }
 0x74b   : > { %v1710_v22 = vmax.f32 %v7714_v24, %v7712_v51 }
 0x74d   : > { %1711 = vmax.xlane.f32.xlu1 %v1710_v22  ;;  %v1754_v22 = vsub.f32 %v7570_v36, %v1667_v1 }
 0x750   : > { %1699 = vmax.xlane.f32.xlu2 %v1698_v58  ;;  %v7720_v47 = vpop.f32.mrf.mxu2  ;;  %v1755_v58 = vsub.f32 %v7568_v25, %v1667_v1 }
 0x752   : > { %v7724_v6 = vpop.f32.mrf.mxu1 }
 0x758   : > { %1942 = vadd.xlane.f32.xlu2 %v1941_v4  ;;  %v7726_v34 = vpop.f32.mrf.mxu2  ;;  %v1832_v4 = vmul.f32 1.442695, %v1754_v22 }
 0x75a   : > { %v1664_v48 = vpop.xlane.xlu2 %1663  ;;  %v7728_v55 = vpop.f32.mrf.mxu1 }
 0x75b   : > { %v1752_v10 = vsub.f32 %v7560_v56, %v1664_v48  ;;  %v1753_v29 = vsub.f32 %v7558_v37, %v1664_v48  ;;  %v1716_v0 = vmax.f32 %v7728_v55, %v7726_v34  ;;  %v1834_v56 = vmul.f32 1.442695, %v1755_v58  ;;  %v1673_v37 = vpop.xlane.xlu0 %1672 }
 0x75c   : > { %v1947_v58 = vadd.f32 %v5746_v13, %v5744_v45 }
 0x75d   : > { %v1828_v35 = vmul.f32 1.442695, %v1752_v10  ;;  %v1830_v33 = vmul.f32 1.442695, %v1753_v29  ;;  %1717 = vmax.xlane.f32.xlu1 %v1716_v0  ;;  %v1758_v10 = vsub.f32 %v7588_v14, %v1673_v37 }
 0x75f   : > { %5747 = vpow2.f32 %v1828_v35  ;;  %v1759_v35 = vsub.f32 %v7586_v43, %v1673_v37 }
 0x760   : > { %1708 = vmax.xlane.f32.xlu2 %v1707_v23  ;;  %v7738_v60 = vpop.f32.mrf.mxu2  ;;  %5749 = vpow2.f32 %v1830_v33 }
 0x761   : > { %5751 = vpow2.f32 %v1832_v4  ;;  %v1842_v14 = vmul.f32 1.442695, %v1759_v35 }
 0x762   : > { %v1670_v48 = vpop.xlane.xlu2 %1669  ;;  %v7740_v19 = vpop.f32.mrf.mxu1  ;;  %5753 = vpow2.f32 %v1834_v56 }
 0x763   : > { %v1756_v36 = vsub.f32 %v7580_v63, %v1670_v48  ;;  %v1757_v25 = vsub.f32 %v7578_v11, %v1670_v48  ;;  %v1719_v1 = vmax.f32 %v7740_v19, %v7738_v60  ;;  %v1840_v63 = vmul.f32 1.442695, %v1758_v10 }
 0x765   : > { %v1836_v29 = vmul.f32 1.442695, %v1756_v36  ;;  %v1838_v0 = vmul.f32 1.442695, %v1757_v25  ;;  %1720 = vmax.xlane.f32.xlu1 %v1719_v1  ;;  %v5748_v22 = vpop.eup %5747 }
 0x766   : > { %v5750_v33 = vpop.eup %5749  ;;  %2158 = vmatmul.f32.gmra.mxu3 %v5748_v22 }
 0x767   : > { %5755 = vpow2.f32 %v1836_v29  ;;  %2271 = vmatmul.f32.gmra.mxu0 %v5750_v33  ;;  %v7750_v23 = vadd.f32 %v5750_v33, %v5748_v22  ;;  %v5752_v56 = vpop.eup %5751  ;;  %v7764_v33 = vpop.permute.xlu1 %3186 }
 0x768   : > { %5757 = vpow2.f32 %v1838_v0  ;;  %1948 = vadd.xlane.f32.xlu2 %v1947_v58  ;;  %v7748_v11 = vpop.f32.mrf.mxu2  ;;  %v5754_v48 = vpop.eup %5753  ;;  %11009 = vst [vmem:[#allocation26_spill] sm:$0xff] %v7764_v33 }
 0x769   : > { %v1679_v4 = vpop.xlane.xlu0 %1678  ;;  %5759 = vpow2.f32 %v1840_v63  ;;  %v1953_v22 = vadd.f32 %v5754_v48, %v5752_v56 }
 0x76a   : > { %v1676_v43 = vpop.xlane.xlu2 %1675  ;;  %v7752_v37 = vpop.f32.mrf.mxu1  ;;  %v1762_v25 = vsub.f32 %v7610_v16, %v1679_v4  ;;  %5761 = vpow2.f32 %v1842_v14  ;;  %v1763_v10 = vsub.f32 %v7608_v3, %v1679_v4 }
 0x76b   : > { %v1760_v45 = vsub.f32 %v7600_v15, %v1676_v43  ;;  %v1761_v13 = vsub.f32 %v7598_v52, %v1676_v43  ;;  %v1722_v36 = vmax.f32 %v7752_v37, %v7748_v11 }
 0x76c   : > { %v1848_v15 = vmul.f32 1.442695, %v1762_v25  ;;  %v1850_v16 = vmul.f32 1.442695, %v1763_v10 }
 0x76d   : > { %v5756_v1 = vpop.eup %5755  ;;  %v1844_v35 = vmul.f32 1.442695, %v1760_v45  ;;  %v1846_v29 = vmul.f32 1.442695, %v1761_v13  ;;  %1723 = vmax.xlane.f32.xlu1 %v1722_v36 }
 0x76e   : > { %v5758_v0 = vpop.eup %5757  ;;  %2161 = vmatmul.f32.gmra.mxu3 %v5752_v56 }
 0x76f   : > { %v7760_v58 = vadd.f32 %v5758_v0, %v5756_v1  ;;  %5763 = vpow2.f32 %v1844_v35  ;;  %2274 = vmatmul.f32.gmra.mxu0 %v5754_v48  ;;  %v5760_v63 = vpop.eup %5759 }
 0x770   : > { %1954 = vadd.xlane.f32.xlu2 %v1953_v22  ;;  %v7762_v52 = vpop.f32.mrf.mxu2  ;;  %5765 = vpow2.f32 %v1846_v29  ;;  %v5762_v4 = vpop.eup %5761 }
 0x771   : > { %5767 = vpow2.f32 %v1848_v15  ;;  %v1959_v25 = vadd.f32 %v5762_v4, %v5760_v63 }
 0x772   : > { %v1682_v3 = vpop.xlane.xlu2 %1681  ;;  %v7766_v14 = vpop.f32.mrf.mxu1  ;;  %5769 = vpow2.f32 %v1850_v16 }
 0x773   : > { %v1764_v43 = vsub.f32 %v7622_v59, %v1682_v3  ;;  %v1765_v56 = vsub.f32 %v7620_v12, %v1682_v3  ;;  %v1725_v45 = vmax.f32 %v7766_v14, %v7762_v52 }
 0x775   : > { %v1852_v48 = vmul.f32 1.442695, %v1764_v43  ;;  %v1854_v13 = vmul.f32 1.442695, %v1765_v56  ;;  %1726 = vmax.xlane.f32.xlu1 %v1725_v45  ;;  %v5764_v36 = vpop.eup %5763 }
 0x776   : > { %v5766_v10 = vpop.eup %5765  ;;  %2164 = vmatmul.f32.gmra.mxu3 %v5756_v1 }
 0x777   : > { %5771 = vpow2.f32 %v1852_v48  ;;  %2277 = vmatmul.f32.gmra.mxu0 %v5758_v0  ;;  %v7774_v59 = vadd.f32 %v5766_v10, %v5764_v36  ;;  %v5768_v29 = vpop.eup %5767 }
 0x778   : > { %5773 = vpow2.f32 %v1854_v13  ;;  %1960 = vadd.xlane.f32.xlu2 %v1959_v25  ;;  %v7772_v35 = vpop.f32.mrf.mxu2  ;;  %v5770_v3 = vpop.eup %5769 }
 0x779   : > { %v1685_v12 = vpop.xlane.xlu1 %1684  ;;  %v1965_v48 = vadd.f32 %v5770_v3, %v5768_v29 }
 0x77a   : > { %v1766_v22 = vsub.f32 %v7632_v54, %v1685_v12  ;;  %v1767_v15 = vsub.f32 %v7630_v26, %v1685_v12  ;;  %v7778_v16 = vpop.f32.mrf.mxu1 }
 0x77b   : > { %v1728_v43 = vmax.f32 %v7778_v16, %v7772_v35 }
 0x77c   : > { %v1856_v1 = vmul.f32 1.442695, %v1766_v22  ;;  %v1858_v56 = vmul.f32 1.442695, %v1767_v15 }
 0x77d   : > { %v5772_v0 = vpop.eup %5771  ;;  %1729 = vmax.xlane.f32.xlu1 %v1728_v43 }
 0x77e   : > { %v5774_v45 = vpop.eup %5773  ;;  %5775 = vpow2.f32 %v1856_v1  ;;  %2167 = vmatmul.f32.gmra.mxu3 %v5760_v63  ;;  %v7796_v1 = vld [vmem:[#allocation2 + $0x88] sm:$0xff] }
 0x77f   : > { %5777 = vpow2.f32 %v1858_v56  ;;  %v7782_v13 = vadd.f32 %v5774_v45, %v5772_v0  ;;  %2280 = vmatmul.f32.gmra.mxu0 %v5762_v4  ;;  %v7805_v56 = vpop.permute.xlu2 %3218 }
 0x780   : > { %1966 = vadd.xlane.f32.xlu2 %v1965_v48  ;;  %v7784_v26 = vpop.f32.mrf.mxu2  ;;  %11010 = vst [vmem:[#allocation27_spill] sm:$0xff] %v7805_v56 }
 0x782   : > { %v7786_v54 = vpop.f32.mrf.mxu1 }
 0x783   : > { %v1731_v25 = vmax.f32 %v7786_v54, %v7784_v26 }
 0x784   : > { %v5776_v12 = vpop.eup %5775 }
 0x785   : > { %v5778_v22 = vpop.eup %5777  ;;  %1732 = vmax.xlane.f32.xlu1 %v1731_v25 }
 0x786   : > { %v1971_v15 = vadd.f32 %v5778_v22, %v5776_v12  ;;  %2170 = vmatmul.f32.gmra.mxu3 %v5764_v36  ;;  %v7800_v36 = vld [vmem:[#allocation2 + $0x70] sm:$0xff] }
 0x787   : > { %2283 = vmatmul.f32.gmra.mxu0 %v5766_v10  ;;  %v3053_v10 = vld [vmem:[#allocation2 + $0x8] sm:$0xff] }
 0x788   : > { %1972 = vadd.xlane.f32.xlu2 %v1971_v15  ;;  %v7790_v43 = vpop.f32.mrf.mxu2  ;;  %v7818_v15 = vld [vmem:[#allocation2 + $0x60] sm:$0xff] }
 0x78a   : > { %v7792_v63 = vpop.f32.mrf.mxu1 }
 0x78b   : > { %v1734_v4 = vmax.f32 %v7792_v63, %v7790_v43 }
 0x78d   : > { %1735 = vmax.xlane.f32.xlu1 %v1734_v4 }
 0x78e   : > { %2173 = vmatmul.f32.gmra.mxu3 %v5768_v29  ;;  %v7807_v29 = vld [vmem:[#allocation2 + $0x68] sm:$0xff] }
 0x78f   : > { %2286 = vmatmul.f32.gmra.mxu0 %v5770_v3  ;;  %v3052_v3 = vld [vmem:[#allocation2] sm:$0xff] }
 0x796   : > { %2176 = vmatmul.f32.gmra.mxu3 %v5772_v0 }
 0x797   : > { %2289 = vmatmul.f32.gmra.mxu0 %v5774_v45  ;;  %v7812_v45 = vld [vmem:[#allocation2 + $0xe8] sm:$0xff] }
 0x79e   : > { %2179 = vmatmul.f32.gmra.mxu3 %v5776_v12 }
 0x79f   : > { %2292 = vmatmul.f32.gmra.mxu0 %v5778_v22 }
 0x7a0   : > { %3216 = vrot.lane.b32.xlu2 %v7796_v1, %s6351_s22 }
 0x7a5   : > { %3210 = vrot.lane.b32.xlu0 %v7800_v36, %s6351_s22 }
 0x7a6   : > { %3184 = vrot.lane.b32.xlu1 %v3053_v10, %s6351_s22 }
 0x7ad   : > { %3208 = vrot.lane.b32.xlu0 %v7807_v29, %s6351_s22 }
 0x7ae   : > { %3182 = vrot.lane.b32.xlu1 %v3052_v3, %s6351_s22 }
 0x7b3   : > { %v1691_v0 = vpop.xlane.xlu2 %1690 }
 0x7b4   : > { %v1770_v48 = vsub.f32 %v7652_v30, %v1691_v0  ;;  %v1771_v25 = vsub.f32 %v7648_v21, %v1691_v0  ;;  %v7829_v21 = vld [vmem:[#allocation2 + $0x58] sm:$0xff]  ;;  %v7833_v0 = vpop.f32.mrf.mxu1 }
 0x7b5   : > { %3240 = vrot.lane.b32.xlu0 %v7812_v45, %s6351_s22  ;;  %11011 = vst [vmem:[#allocation28_spill] sm:$0xff] %v7829_v21 }
 0x7b6   : > { %v1864_v12 = vmul.f32 1.442695, %v1770_v48  ;;  %v1866_v22 = vmul.f32 1.442695, %v1771_v25  ;;  %v3078_v48 = vld [vmem:[#allocation2 + $0xd0] sm:$0xff]  ;;  %v7835_v25 = vpop.f32.mrf.mxu2 }
 0x7b8   : > { %5779 = vpow2.f32 %v1864_v12  ;;  %v1737_v12 = vmax.f32 %v7833_v0, %v7835_v25 }
 0x7b9   : > { %5781 = vpow2.f32 %v1866_v22  ;;  %v7840_v22 = vld [vmem:[#allocation2 + $0x80] sm:$0xff] }
 0x7bd   : > { %3206 = vrot.lane.b32.xlu0 %v7818_v15, %s6351_s22 }
 0x7be   : > { %v7822_v4 = vpop.eup %5779 }
 0x7bf   : > { %v7824_v56 = vpop.eup %5781 }
 0x7c0   : > { %v1977_v30 = vadd.f32 %v7824_v56, %v7822_v4 }
 0x7c5   : > { %3238 = vrot.lane.b32.xlu0 %v3080_v46, %s6351_s22 }
 0x7c9   : > { %1978 = vadd.xlane.f32.xlu2 %v1977_v30  ;;  %v7845_v30 = vpop.trf.xlu0 }
 0x7ca   : > { %11012 = vst [vmem:[#allocation29_spill] sm:$0xff] %v7845_v30  ;;  %v7858_v30 = vld [vmem:[#allocation2 + $0x20] sm:$0xff] }
 0x7cd   : > { %3204 = vrot.lane.b32.xlu0 %v7829_v21, %s6351_s22 }
 0x7d1   : > { %v7854_v33 = vpop.trf.xlu0 }
 0x7d2   : > { %11014 = vst [vmem:[#allocation31_spill] sm:$0xff] %v7854_v33  ;;  %v6111_v33 = vld [vmem:[#allocation2 + $0x50] sm:$0xff] }
 0x7d5   : > { %3234 = vrot.lane.b32.xlu0 %v3078_v48, %s6351_s22 }
 0x7d8   : > { %1738 = vmax.xlane.f32.xlu1 %v1737_v12  ;;  %v6109_v12 = vld [vmem:[#allocation2 + $0x10] sm:$0xff] }
 0x7e1   : > { %3214 = vrot.lane.b32.xlu2 %v7840_v22, %s6351_s22 }
 0x7e9   : > { %3120 = vrot.lane.b32.xlu2 %v3053_v10, %s6352_s29  ;;  %v1686_v10 = vmax.f32 %v7642_v28, %v7640_v57 }
 0x7f1   : > { %3124 = vrot.lane.b32.xlu2 %v7847_v41, %s6352_s29  ;;  %3118 = vrot.lane.b32.xlu1 %v3052_v3, %s6352_s29  ;;  %v7868_v3 = vld [vmem:[#allocation2 + $0x48] sm:$0xff]  ;;  %v5645_v41 = vpack.i.bf16 %v7812_v45, %v7807_v29  ;;  %v1704_v45 = vmax.f32 %v7700_v8, %v7696_v40 }
 0x7f2   : > { %11017 = vst [vmem:[#allocation34_spill] sm:$0xff] %v7868_v3 }
 0x7f9   : > { %3128 = vrot.lane.b32.xlu2 %v6108_v32, %s6352_s29  ;;  %3122 = vrot.lane.b32.xlu1 %v6109_v12, %s6352_s29  ;;  %v7866_v32 = vpop.trf.xlu0  ;;  %v7870_v12 = vld [vmem:[#allocation2 + $0x38] sm:$0xff] }
 0x7fa   : > { %11016 = vst [vmem:[#allocation33_spill] sm:$0xff] %v7866_v32 }
 0x7ff   : > { %1687 = vmax.xlane.f32.xlu0 %v1686_v10 }
 0x801   : > { %3134 = vrot.lane.b32.xlu2 %v7860_v39, %s6352_s29  ;;  %3126 = vrot.lane.b32.xlu1 %v7858_v30, %s6352_s29  ;;  %v7876_v10 = vpop.trf.xlu0 }
 0x802   : > { %11018 = vst [vmem:[#allocation35_spill] sm:$0xff] %v7876_v10  ;;  %v7889_v10 = vld [vmem:[#allocation2 + $0x78] sm:$0xff] }
 0x809   : > { %3136 = vrot.lane.b32.xlu2 %v7868_v3, %s6352_s29  ;;  %3132 = vrot.lane.b32.xlu1 %v7870_v12, %s6352_s29 }
 0x811   : > { %3140 = vrot.lane.b32.xlu2 %v7829_v21, %s6352_s29  ;;  %3138 = vrot.lane.b32.xlu1 %v6111_v33, %s6352_s29 }
 0x813   : > { %3200 = vrot.lane.b32.xlu0 %v7868_v3, %s6351_s22 }
 0x817   : > { %v3211_v32 = vpop.permute.xlu0 %3210 }
 0x818   : > { %5314 = vmatpush.xpose.msk.msrb.mxu2 %vm1289_vm6, %v3211_v32  ;;  %v5640_v32 = vpack.i.bf16 %v6113_v2, %v7800_v36  ;;  %v1695_v2 = vmax.f32 %v7676_v53, %v7672_v50 }
 0x819   : > { %3146 = vrot.lane.b32.xlu2 %v7800_v36, %s6352_s29  ;;  %3144 = vrot.lane.b32.xlu1 %v7807_v29, %s6352_s29 }
 0x81f   : > { %v3209_v62 = vpop.permute.xlu0 %3208 }
 0x820   : > { %5315 = vmatpush.xpose.msk.msrb.mxu2 %vm1289_vm6, %v3209_v62  ;;  %v5650_v62 = vpack.i.bf16 %v3080_v46, %v7818_v15  ;;  %v1694_v46 = vpop.xlane.xlu1 %1693 }
 0x821   : > { %3148 = vrot.lane.b32.xlu2 %v7889_v10, %s6352_s29  ;;  %3152 = vrot.lane.b32.xlu1 %v7796_v1, %s6352_s29  ;;  %v5660_v1 = vpack.i.bf16 %v3078_v48, %v6111_v33  ;;  %v1773_v33 = vsub.f32 %v7658_v44, %v1694_v46  ;;  %v1713_v44 = vmax.f32 %v7724_v6, %v7720_v47 }
 0x823   : > { %v1870_v48 = vmul.f32 1.442695, %v1773_v33 }
 0x827   : > { %v7898_v39 = vpop.permute.xlu0 %3240 }
 0x828   : > { %11019 = vst [vmem:[#allocation36_spill] sm:$0xff] %v7898_v39 }
 0x829   : > { %5641 = vrot.lane.b32.xlu2 %v5640_v32, %s6353_s24  ;;  %5646 = vrot.lane.b32.xlu1 %v5645_v41, %s6353_s24  ;;  %v1772_v41 = vsub.f32 %v7662_v17, %v1694_v46 }
 0x82b   : > { %v1868_v29 = vmul.f32 1.442695, %v1772_v41 }
 0x82d   : > { %5783 = vpow2.f32 %v1868_v29  ;;  %v7945_v29 = vpop.xlane.xlu2 %1933 }
 0x82e   : > { %5785 = vpow2.f32 %v1870_v48  ;;  %11026 = vst [vmem:[#allocation43_spill] sm:$0xff] %v7945_v29 }
 0x82f   : > { %v3207_v3 = vpop.permute.xlu0 %3206 }
 0x830   : > { %5316 = vmatpush.xpose.msk.msrb.mxu2 %vm1289_vm6, %v3207_v3 }
 0x831   : > { %5651 = vrot.lane.b32.xlu1 %v5650_v62, %s6353_s24 }
 0x833   : > { %v5784_v3 = vpop.eup %5783 }
 0x837   : > { %v7905_v21 = vpop.permute.xlu0 %3238 }
 0x838   : > { %11020 = vst [vmem:[#allocation37_spill] sm:$0xff] %v7905_v21 }
 0x839   : > { %5661 = vrot.lane.b32.xlu1 %v5660_v1, %s6353_s24 }
 0x83d   : > { %1696 = vmax.xlane.f32.xlu0 %v1695_v2 }
 0x83f   : > { %v3205_v36 = vpop.permute.xlu0 %3204 }
 0x840   : > { %5317 = vmatpush.xpose.msk.msrb.mxu2 %vm1289_vm6, %v3205_v36  ;;  %v7932_v36 = vpop.xlane.xlu1 %1702 }
 0x844   : > { %5318 = vmatpush.xpose.msk.msrb.mxu2 %vm1289_vm6, %v7451_v38  ;;  %v5786_v38 = vpop.eup %5785 }
 0x845   : > { %1936 = vadd.xlane.f32.xlu0 %v7678_v31  ;;  %v1980_v31 = vadd.f32 %v5786_v38, %v5784_v3 }
 0x84d   : > { %1939 = vadd.xlane.f32.xlu0 %v7686_v27  ;;  %v7921_v27 = vpop.permute.xlu0 %3234 }
 0x84e   : > { %11021 = vst [vmem:[#allocation38_spill] sm:$0xff] %v7921_v27 }
 0x855   : > { %1705 = vmax.xlane.f32.xlu0 %v1704_v45 }
 0x85d   : > { %1945 = vadd.xlane.f32.xlu0 %v7704_v61  ;;  %v7928_v61 = vpop.f32.mrf.mxu0 }
 0x85e   : > { %11022 = vst [vmem:[#allocation39_spill] sm:$0xff] %v7928_v61 }
 0x863   : > { %1981 = vadd.xlane.f32.xlu1 %v1980_v31 }
 0x865   : > { %1951 = vadd.xlane.f32.xlu0 %v7750_v23  ;;  %v7930_v23 = vpop.f32.mrf.mxu3 }
 0x866   : > { %11023 = vst [vmem:[#allocation40_spill] sm:$0xff] %v7930_v23 }
 0x86d   : > { %1714 = vmax.xlane.f32.xlu0 %v1713_v44  ;;  %v7939_v33 = vpop.f32.mrf.mxu3 }
 0x86e   : > { %11025 = vst [vmem:[#allocation42_spill] sm:$0xff] %v7939_v33 }
 0x872   : > { %v1688_v17 = vpop.xlane.xlu0 %1687 }
 0x873   : > { %v1768_v32 = vsub.f32 %v7642_v28, %v1688_v17  ;;  %v1769_v62 = vsub.f32 %v7640_v57, %v1688_v17  ;;  %v7935_v28 = vpop.f32.mrf.mxu0  ;;  %v7937_v57 = vpop.xlane.xlu1 %1711 }
 0x874   : > { %11024 = vst [vmem:[#allocation41_spill] sm:$0xff] %v7935_v28 }
 0x875   : > { %v1860_v1 = vmul.f32 1.442695, %v1768_v32  ;;  %v1862_v2 = vmul.f32 1.442695, %v1769_v62  ;;  %1957 = vadd.xlane.f32.xlu0 %v7760_v58  ;;  %v7953_v31 = vpop.f32.mrf.mxu3  ;;  %v7967_v62 = vld [vmem:[#allocation2 + $0xc8] sm:$0xff] }
 0x876   : > { %11028 = vst [vmem:[#allocation45_spill] sm:$0xff] %v7953_v31 }
 0x877   : > { %5787 = vpow2.f32 %v1860_v1 }
 0x878   : > { %5789 = vpow2.f32 %v1862_v2 }
 0x87b   : > { %v7951_v45 = vpop.f32.mrf.mxu0 }
 0x87c   : > { %11027 = vst [vmem:[#allocation44_spill] sm:$0xff] %v7951_v45 }
 0x87d   : > { %v5788_v46 = vpop.eup %5787  ;;  %1963 = vadd.xlane.f32.xlu0 %v7774_v59  ;;  %v7947_v59 = vpop.xlane.xlu1 %1717 }
 0x87e   : > { %v5790_v41 = vpop.eup %5789  ;;  %2182 = vmatmul.f32.gmra.mxu3 %v5788_v46 }
 0x87f   : > { %2295 = vmatmul.f32.gmra.mxu0 %v5790_v41  ;;  %v1974_v48 = vadd.f32 %v5790_v41, %v5788_v46 }
 0x883   : > { %v7957_v44 = vpop.f32.mrf.mxu0 }
 0x884   : > { %11029 = vst [vmem:[#allocation46_spill] sm:$0xff] %v7957_v44 }
 0x885   : > { %v3201_v58 = vpop.permute.xlu0 %3200  ;;  %1969 = vadd.xlane.f32.xlu0 %v7782_v13  ;;  %v1700_v13 = vpop.xlane.xlu2 %1699 }
 0x886   : > { %2185 = vmatmul.f32.gmra.mxu3 %v7822_v4  ;;  %5319 = vmatpush.xpose.msk.msrb.mxu2 %vm1289_vm6, %v3201_v58  ;;  %v7955_v4 = vpop.xlane.xlu1 %1720  ;;  %v7981_v58 = vld [vmem:[#allocation2 + $0xb0] sm:$0xff]  ;;  %v1776_v31 = vsub.f32 %v7684_v7, %v1700_v13 }
 0x887   : > { %2298 = vmatmul.f32.gmra.mxu0 %v7824_v56  ;;  %v7959_v56 = vpop.f32.mrf.mxu3 }
 0x888   : > { %11030 = vst [vmem:[#allocation47_spill] sm:$0xff] %v7959_v56  ;;  %v1876_v56 = vmul.f32 1.442695, %v1776_v31 }
 0x88a   : > { %5320 = vmatpush.xpose.msk.msrb.mxu2 %vm1289_vm6, %v7334_v42 }
 0x88b   : > { %v7965_v42 = vpop.f32.mrf.mxu0 }
 0x88c   : > { %11031 = vst [vmem:[#allocation48_spill] sm:$0xff] %v7965_v42 }
 0x88d   : > { %1975 = vadd.xlane.f32.xlu0 %v1974_v48  ;;  %v7961_v17 = vpop.xlane.xlu2 %1942 }
 0x88e   : > { %2188 = vmatmul.f32.gmra.mxu3 %v5784_v3  ;;  %v7963_v32 = vpop.xlane.xlu1 %1723 }
 0x88f   : > { %2301 = vmatmul.f32.gmra.mxu0 %v5786_v38  ;;  %v7969_v1 = vpop.f32.mrf.mxu3 }
 0x890   : > { %11032 = vst [vmem:[#allocation49_spill] sm:$0xff] %v7969_v1 }
 0x893   : > { %v7975_v2 = vpop.f32.mrf.mxu0 }
 0x894   : > { %11033 = vst [vmem:[#allocation50_spill] sm:$0xff] %v7975_v2 }
 0x895   : > { %v1709_v3 = vpop.xlane.xlu2 %1708 }
 0x896   : > { %v7973_v38 = vpop.xlane.xlu1 %1726  ;;  %v1783_v45 = vsub.f32 %v7706_v18, %v1709_v3 }
 0x897   : > { %v7979_v46 = vpop.f32.mrf.mxu3 }
 0x898   : > { %11034 = vst [vmem:[#allocation51_spill] sm:$0xff] %v7979_v46 }
 0x89b   : > { %v7983_v48 = vpop.f32.mrf.mxu0 }
 0x89c   : > { %11035 = vst [vmem:[#allocation52_spill] sm:$0xff] %v7983_v48 }
 0x89d   : > { %v7989_v39 = vpop.xlane.xlu2 %1948 }
 0x89e   : > { %v7991_v61 = vpop.xlane.xlu1 %1729 }
 0x89f   : > { %v7994_v23 = vpop.f32.mrf.mxu3 }
 0x8a0   : > { %11036 = vst [vmem:[#allocation53_spill] sm:$0xff] %v7994_v23  ;;  %v8262_v23 = vld [vmem:[#allocation2 + $0xa8] sm:$0xff] }
 0x8a1   : > { %3232 = vrot.lane.b32.xlu0 %v7967_v62, %s6351_s22 }
 0x8a3   : > { %v8005_v18 = vpop.f32.mrf.mxu0 }
 0x8a4   : > { %11037 = vst [vmem:[#allocation54_spill] sm:$0xff] %v8005_v18 }
 0x8a9   : > { %3196 = vrot.lane.b32.xlu0 %v7870_v12, %s6351_s22  ;;  %v1782_v12 = vsub.f32 %v7708_v20, %v1709_v3 }
 0x8b0   : > { %v1697_v41 = vpop.xlane.xlu0 %1696 }
 0x8b1   : > { %v1774_v27 = vsub.f32 %v7676_v53, %v1697_v41  ;;  %v1775_v21 = vsub.f32 %v7672_v50, %v1697_v41  ;;  %3226 = vrot.lane.b32.xlu0 %v7981_v58, %s6351_s22  ;;  %v1777_v50 = vsub.f32 %v7680_v5, %v1700_v13  ;;  %v1888_v53 = vmul.f32 1.442695, %v1782_v12  ;;  %v8021_v13 = vld [vmem:[#allocation2 + $0x98] sm:$0xff] }
 0x8b2   : > { %v1890_v41 = vmul.f32 1.442695, %v1783_v45  ;;  %v1785_v5 = vsub.f32 %v7712_v51, %v7937_v57  ;;  %v1779_v45 = vsub.f32 %v7688_v9, %v7932_v36  ;;  %v1790_v9 = vsub.f32 %v7740_v19, %v7955_v4 }
 0x8b3   : > { %v1872_v28 = vmul.f32 1.442695, %v1774_v27  ;;  %v1874_v33 = vmul.f32 1.442695, %v1775_v21  ;;  %v1878_v20 = vmul.f32 1.442695, %v1777_v50  ;;  %v1784_v21 = vsub.f32 %v7714_v24, %v7937_v57  ;;  %v8009_v27 = vpop.xlane.xlu2 %1954 }
 0x8b4   : > { %v1894_v51 = vmul.f32 1.442695, %v1785_v5  ;;  %v1791_v50 = vsub.f32 %v7738_v60, %v7955_v4 }
 0x8b5   : > { %5791 = vpow2.f32 %v1872_v28  ;;  %v8011_v28 = vpop.xlane.xlu1 %1732  ;;  %v1892_v31 = vmul.f32 1.442695, %v1784_v21  ;;  %v1904_v21 = vmul.f32 1.442695, %v1790_v9 }
 0x8b6   : > { %5793 = vpow2.f32 %v1874_v33  ;;  %v8015_v33 = vpop.f32.mrf.mxu3  ;;  %v1906_v60 = vmul.f32 1.442695, %v1791_v50 }
 0x8b7   : > { %5795 = vpow2.f32 %v1888_v53  ;;  %11038 = vst [vmem:[#allocation55_spill] sm:$0xff] %v8015_v33  ;;  %v8038_v53 = vpop.f32.mrf.mxu0 }
 0x8b8   : > { %v7999_v44 = vpop.xlane.xlu0 %1936  ;;  %5797 = vpow2.f32 %v1890_v41 }
 0x8b9   : > { %3190 = vrot.lane.b32.xlu0 %v7858_v30, %s6351_s22  ;;  %v1778_v30 = vsub.f32 %v7692_v49, %v7932_v36  ;;  %5799 = vpow2.f32 %v1876_v56  ;;  %v1882_v56 = vmul.f32 1.442695, %v1779_v45 }
 0x8ba   : > { %5801 = vpow2.f32 %v1878_v20 }
 0x8bb   : > { %v5792_v42 = vpop.eup %5791  ;;  %v1880_v12 = vmul.f32 1.442695, %v1778_v30  ;;  %5803 = vpow2.f32 %v1892_v31  ;;  %v8043_v20 = vpop.xlane.xlu2 %1960  ;;  %v1788_v30 = vsub.f32 %v7728_v55, %v7947_v59  ;;  %v8055_v31 = vld [vmem:[#allocation2 + $0x30] sm:$0xff]  ;;  %v1794_v55 = vsub.f32 %v7766_v14, %v7973_v38 }
 0x8bc   : > { %v5794_v7 = vpop.eup %5793  ;;  %2191 = vmatmul.f32.gmra.mxu3 %v5792_v42  ;;  %5805 = vpow2.f32 %v1894_v51 }
 0x8bd   : > { %2304 = vmatmul.f32.gmra.mxu0 %v5794_v7  ;;  %v1983_v24 = vadd.f32 %v5794_v7, %v5792_v42  ;;  %v8023_v3 = vpop.eup %5795  ;;  %5807 = vpow2.f32 %v1880_v12  ;;  %v8045_v19 = vpop.xlane.xlu1 %1735  ;;  %v1789_v12 = vsub.f32 %v7726_v34, %v7947_v59  ;;  %v1912_v14 = vmul.f32 1.442695, %v1794_v55 }
 0x8be   : > { %v8027_v49 = vpop.eup %5797  ;;  %5809 = vpow2.f32 %v1882_v56  ;;  %v8047_v7 = vpop.f32.mrf.mxu3  ;;  %v1793_v55 = vsub.f32 %v7748_v11, %v7963_v32 }
 0x8bf   : > { %1984 = vadd.xlane.f32.xlu2 %v1983_v24  ;;  %v8029_v42 = vpop.eup %5799  ;;  %v1995_v41 = vadd.f32 %v8027_v49, %v8023_v3  ;;  %5811 = vpow2.f32 %v1904_v21  ;;  %v1902_v59 = vmul.f32 1.442695, %v1789_v12 }
 0x8c0   : > { %v8019_v57 = vpop.xlane.xlu0 %1939  ;;  %11039 = vst [vmem:[#allocation56_spill] sm:$0xff] %v8029_v42  ;;  %v8033_v36 = vpop.eup %5801  ;;  %5813 = vpow2.f32 %v1906_v60 }
 0x8c1   : > { %3220 = vrot.lane.b32.xlu0 %v8021_v13, %s6351_s22  ;;  %11040 = vst [vmem:[#allocation57_spill] sm:$0xff] %v8033_v36  ;;  %v8049_v5 = vpop.eup %5803 }
 0x8c2   : > { %v8059_v51 = vpop.eup %5805 }
 0x8c3   : > { %v8063_v56 = vpop.eup %5807  ;;  %v1998_v34 = vadd.f32 %v8059_v51, %v8049_v5 }
 0x8c4   : > { %2194 = vmatmul.f32.gmra.mxu3 %v8029_v42  ;;  %11041 = vst [vmem:[#allocation58_spill] sm:$0xff] %v8063_v56  ;;  %v8067_v50 = vpop.eup %5809 }
 0x8c5   : > { %2307 = vmatmul.f32.gmra.mxu0 %v8033_v36  ;;  %11042 = vst [vmem:[#allocation59_spill] sm:$0xff] %v8067_v50  ;;  %v8075_v21 = vpop.permute.xlu1 %3184 }
 0x8c6   : > { %11043 = vst [vmem:[#allocation60_spill] sm:$0xff] %v8075_v21 }
 0x8c7   : > { %1996 = vadd.xlane.f32.xlu2 %v1995_v41  ;;  %v1900_v41 = vmul.f32 1.442695, %v1788_v30  ;;  %v1792_v30 = vsub.f32 %v7752_v37, %v7963_v32  ;;  %v1797_v37 = vsub.f32 %v7772_v35, %v7991_v61 }
 0x8c8   : > { %v1706_v4 = vpop.xlane.xlu0 %1705 }
 0x8c9   : > { %v1780_v24 = vsub.f32 %v7700_v8, %v1706_v4  ;;  %v1781_v45 = vsub.f32 %v7696_v40, %v1706_v4  ;;  %3130 = vrot.lane.b32.xlu0 %v8055_v31, %s6352_s29  ;;  %v1795_v40 = vsub.f32 %v7762_v52, %v7973_v38  ;;  %v8077_v4 = vpop.f32.mrf.mxu0  ;;  %v8083_v38 = vpop.eup %5811 }
 0x8ca   : > { %v8091_v12 = vpop.eup %5813 }
 0x8cb   : > { %v1884_v9 = vmul.f32 1.442695, %v1780_v24  ;;  %v1886_v8 = vmul.f32 1.442695, %v1781_v45  ;;  %v1914_v60 = vmul.f32 1.442695, %v1795_v40  ;;  %v8079_v24 = vpop.xlane.xlu2 %1966  ;;  %v8087_v45 = vpop.f32.mrf.mxu3 }
 0x8cc   : > { %2197 = vmatmul.f32.gmra.mxu3 %v8063_v56 }
 0x8cd   : > { %5815 = vpow2.f32 %v1884_v9  ;;  %2310 = vmatmul.f32.gmra.mxu0 %v8067_v50 }
 0x8ce   : > { %5817 = vpow2.f32 %v1886_v8  ;;  %v1796_v8 = vsub.f32 %v7778_v16, %v7991_v61  ;;  %v1918_v16 = vmul.f32 1.442695, %v1797_v37  ;;  %v1798_v61 = vsub.f32 %v7786_v54, %v8011_v28 }
 0x8cf   : > { %1999 = vadd.xlane.f32.xlu2 %v1998_v34  ;;  %5819 = vpow2.f32 %v1900_v41  ;;  %v1908_v41 = vmul.f32 1.442695, %v1792_v30  ;;  %v1801_v54 = vsub.f32 %v7790_v43, %v8045_v19 }
 0x8d0   : > { %v8081_v52 = vpop.xlane.xlu0 %1945  ;;  %5821 = vpow2.f32 %v1902_v59  ;;  %v1910_v59 = vmul.f32 1.442695, %v1793_v55  ;;  %v1916_v11 = vmul.f32 1.442695, %v1796_v8 }
 0x8d1   : > { %3142 = vrot.lane.b32.xlu0 %v7818_v15, %s6352_s29  ;;  %5823 = vpow2.f32 %v1912_v14  ;;  %v2007_v15 = vadd.f32 %v8091_v12, %v8083_v38  ;;  %v8105_v14 = vpop.permute.xlu1 %3182  ;;  %v8113_v30 = vpop.f32.mrf.mxu0  ;;  %v1926_v43 = vmul.f32 1.442695, %v1801_v54 }
 0x8d2   : > { %5825 = vpow2.f32 %v1914_v60  ;;  %11044 = vst [vmem:[#allocation61_spill] sm:$0xff] %v8105_v14 }
 0x8d3   : > { %v5816_v9 = vpop.eup %5815  ;;  %5827 = vpow2.f32 %v1908_v41  ;;  %v8121_v8 = vpop.xlane.xlu2 %1972 }
 0x8d4   : > { %v5818_v40 = vpop.eup %5817  ;;  %2200 = vmatmul.f32.gmra.mxu3 %v5816_v9  ;;  %5829 = vpow2.f32 %v1910_v59  ;;  %v8125_v37 = vpop.f32.mrf.mxu3  ;;  %vm2537_vm12 = vweird.f32 %v8121_v8 }
 0x8d5   : > { %2313 = vmatmul.f32.gmra.mxu0 %v5818_v40  ;;  %v1992_v34 = vadd.f32 %v5818_v40, %v5816_v9  ;;  %v8101_v50 = vpop.eup %5819  ;;  %v1799_v9 = vsub.f32 %v7784_v26, %v8011_v28  ;;  %5831 = vpow2.f32 %v1916_v11  ;;  %v1800_v40 = vsub.f32 %v7792_v63, %v8045_v19 }
 0x8d6   : > { %v8103_v32 = vpop.eup %5821  ;;  %5833 = vpow2.f32 %v1918_v16  ;;  %v8143_v16 = vld [vmem:[#allocation2 + $0x90] sm:$0xff] }
 0x8d7   : > { %2008 = vadd.xlane.f32.xlu2 %v2007_v15  ;;  %1993 = vadd.xlane.f32.xlu1 %v1992_v34  ;;  %v8109_v35 = vpop.eup %5823  ;;  %v2004_v28 = vadd.f32 %v8103_v32, %v8101_v50  ;;  %v1922_v41 = vmul.f32 1.442695, %v1799_v9  ;;  %v1924_v63 = vmul.f32 1.442695, %v1800_v40  ;;  %11045 = vst [vmem:[#allocation62_spill] sm:$0xff] %v8143_v16 }
 0x8d8   : > { %v8107_v60 = vpop.xlane.xlu0 %1951  ;;  %v8117_v55 = vpop.eup %5825 }
 0x8d9   : > { %3150 = vrot.lane.b32.xlu0 %v7840_v22, %s6352_s29  ;;  %v1920_v22 = vmul.f32 1.442695, %v1798_v61  ;;  %v2013_v26 = vadd.f32 %v8117_v55, %v8109_v35  ;;  %v8135_v15 = vpop.eup %5827  ;;  %v1739_v19 = vpop.xlane.xlu1 %1738 }
 0x8da   : > { %v8137_v34 = vpop.eup %5829  ;;  %v8149_v9 = vpop.f32.mrf.mxu0  ;;  %v1802_v40 = vsub.f32 %v7833_v0, %v1739_v19 }
 0x8db   : > { %v8139_v59 = vpop.eup %5831  ;;  %5835 = vpow2.f32 %v1920_v22  ;;  %v8152_v22 = vpop.permute.xlu2 %3216  ;;  %v2010_v0 = vadd.f32 %v8137_v34, %v8135_v15 }
 0x8dc   : > { %2203 = vmatmul.f32.gmra.mxu3 %v8023_v3  ;;  %v8147_v61 = vpop.eup %5833  ;;  %5837 = vpow2.f32 %v1922_v41  ;;  %11046 = vst [vmem:[#allocation63_spill] sm:$0xff] %v8152_v22 }
 0x8dd   : > { %2316 = vmatmul.f32.gmra.mxu0 %v8027_v49  ;;  %5839 = vpow2.f32 %v1924_v63  ;;  %v1928_v63 = vmul.f32 1.442695, %v1802_v40 }
 0x8de   : > { %5841 = vpow2.f32 %v1926_v43 }
 0x8df   : > { %2014 = vadd.xlane.f32.xlu2 %v2013_v26  ;;  %2005 = vadd.xlane.f32.xlu1 %v2004_v28  ;;  %v2016_v28 = vadd.f32 %v8147_v61, %v8139_v59 }
 0x8e0   : > { %v1715_v3 = vpop.xlane.xlu0 %1714 }
 0x8e1   : > { %v1786_v49 = vsub.f32 %v7724_v6, %v1715_v3  ;;  %v1787_v11 = vsub.f32 %v7720_v47, %v1715_v3  ;;  %3154 = vrot.lane.b32.xlu0 %v8143_v16, %s6352_s29  ;;  %v1803_v47 = vsub.f32 %v7835_v25, %v1739_v19  ;;  %v8156_v6 = vpop.f32.mrf.mxu3  ;;  %v8163_v41 = vpop.eup %5835 }
 0x8e2   : > { %v8165_v25 = vpop.eup %5837 }
 0x8e3   : > { %v1896_v54 = vmul.f32 1.442695, %v1786_v49  ;;  %v1898_v26 = vmul.f32 1.442695, %v1787_v11  ;;  %v8169_v19 = vpop.eup %5839  ;;  %v8177_v40 = vpop.xlane.xlu2 %1978 }
 0x8e4   : > { %2206 = vmatmul.f32.gmra.mxu3 %v8049_v5  ;;  %v1930_v5 = vmul.f32 1.442695, %v1803_v47  ;;  %v8175_v3 = vpop.eup %5841  ;;  %v2019_v47 = vadd.f32 %v8165_v25, %v8163_v41  ;;  %vm2565_vm8 = vweird.f32 %v8177_v40  ;;  %v2569_v1 = vand.u32 2147483647, %v8177_v40 }
 0x8e5   : > { %5843 = vpow2.f32 %v1896_v54  ;;  %2319 = vmatmul.f32.gmra.mxu0 %v8059_v51  ;;  %v8171_v51 = vpop.permute.xlu1 %3118  ;;  %v8179_v54 = vpop.f32.mrf.mxu0 }
 0x8e6   : > { %5845 = vpow2.f32 %v1898_v26  ;;  %11047 = vst [vmem:[#allocation64_spill] sm:$0xff] %v8171_v51  ;;  %v2022_v26 = vadd.f32 %v8175_v3, %v8169_v19  ;;  %vm2570_vm10 = vcmp.eq.f32.partialorder %v2569_v1, 8.507059e+37 }
 0x8e7   : > { %2017 = vadd.xlane.f32.xlu2 %v2016_v28  ;;  %2011 = vadd.xlane.f32.xlu1 %v2010_v0  ;;  %5847 = vpow2.f32 %v1928_v63  ;;  %v6116_v0 = vld [vmem:[#allocation2 + $0xf8] sm:$0xff] }
 0x8e8   : > { %v8167_v43 = vpop.xlane.xlu0 %1957  ;;  %5849 = vpow2.f32 %v1930_v5  ;;  %v5635_v22 = vpack.i.bf16 %v6116_v0, %v7889_v10 }
 0x8e9   : > { %3156 = vrot.lane.b32.xlu0 %v8021_v13, %s6352_s29  ;;  %v8188_v63 = vpop.f32.mrf.mxu3  ;;  %5851 = vrcp.f32 %v8177_v40 }
 0x8ea   : > { %5853 = vrcp.f32 %v8121_v8 }
 0x8eb   : > { %v5844_v49 = vpop.eup %5843 }
 0x8ec   : > { %v5846_v11 = vpop.eup %5845  ;;  %2209 = vmatmul.f32.gmra.mxu3 %v5844_v49 }
 0x8ed   : > { %2322 = vmatmul.f32.gmra.mxu0 %v5846_v11  ;;  %v8185_v28 = vadd.f32 %v5846_v11, %v5844_v49  ;;  %v8193_v16 = vpop.eup %5847  ;;  %v8198_v14 = vpop.permute.xlu1 %3122 }
 0x8ee   : > { %11049 = vst [vmem:[#allocation66_spill] sm:$0xff] %v8193_v16  ;;  %v8196_v51 = vpop.eup %5849  ;;  %v8206_v11 = vpop.f32.mrf.mxu0 }
 0x8ef   : > { %11048 = vst [vmem:[#allocation65_spill] sm:$0xff] %v8185_v28  ;;  %2023 = vadd.xlane.f32.xlu2 %v2022_v26  ;;  %2020 = vadd.xlane.f32.xlu1 %v2019_v47  ;;  %v8201_v49 = vpop.eup %5851  ;;  %v2025_v10 = vadd.f32 %v8196_v51, %v8193_v16 }
 0x8f0   : > { %v8191_v5 = vpop.xlane.xlu0 %1963  ;;  %11050 = vst [vmem:[#allocation67_spill] sm:$0xff] %v8196_v51  ;;  %v2561_v26 = vmul.f32 %v8201_v49, %v8177_v40  ;;  %v8229_v21 = vpop.eup %5853  ;;  %vm2566_vm7 = vweird.f32 %v8201_v49 }
 0x8f1   : > { %5636 = vrot.lane.b32.xlu0 %v5635_v22, %s6353_s24  ;;  %11051 = vst [vmem:[#allocation68_spill] sm:$0xff] %v8198_v14  ;;  %v8210_v22 = vpop.permute.xlu2 %3214  ;;  %v8214_v0 = vpop.f32.mrf.mxu3  ;;  %v11055_v14 = vld [vmem:[#allocation28_spill] sm:$0xff]  ;;  %vm8266_vm9 = vmor %vm2565_vm8, %vm2566_vm7  ;;  %vm2538_vm14 = vweird.f32 %v8229_v21 }
 0x8f2   : > { %11052 = vst [vmem:[#allocation69_spill] sm:$0xff] %v8210_v22  ;;  %v6118_v22 = vld [vmem:[#allocation2 + $0xd8] sm:$0xff]  ;;  %vm8327_vm2 = vmor %vm2537_vm12, %vm2538_vm14  ;;  %vm2495_vm12 = vweird.f32 %v8191_v5 }
 0x8f3   : > { %v5655_v28 = vpack.i.bf16 %v6118_v22, %v11055_v14  ;;  %v2533_v14 = vmul.f32 %v8229_v21, %v8121_v8 }
 0x8f4   : > { %2212 = vmatmul.f32.gmra.mxu3 %v8101_v50  ;;  %v8216_v50 = vld [vmem:[#allocation2 + $0xa0] sm:$0xff] }
 0x8f5   : > { %2325 = vmatmul.f32.gmra.mxu0 %v8103_v32  ;;  %11053 = vst [vmem:[#allocation70_spill] sm:$0xff] %v8216_v50  ;;  %v2562_v32 = vsub.f32 1.0, %v2561_v26  ;;  %v2534_v46 = vsub.f32 1.0, %v2533_v14 }
 0x8f7   : > { %2026 = vadd.xlane.f32.xlu1 %v2025_v10  ;;  %v8223_v10 = vpop.permute.xlu1 %3126  ;;  %v2563_v26 = vmul.f32 %v8201_v49, %v2562_v32  ;;  %v2571_v32 = vand.u32 2147483648, %v8177_v40  ;;  %v2535_v29 = vmul.f32 %v8229_v21, %v2534_v46 }
 0x8f8   : > { %v8212_v47 = vpop.xlane.xlu0 %1969  ;;  %11054 = vst [vmem:[#allocation71_spill] sm:$0xff] %v8223_v10 }
 0x8f9   : > { %3158 = vrot.lane.b32.xlu0 %v8216_v50, %s6352_s29  ;;  %5855 = vrcp.f32 %v8212_v47  ;;  %v8241_v10 = vpop.permute.xlu2 %3120  ;;  %v2564_v22 = vadd.f32 %v8201_v49, %v2563_v26  ;;  %v11058_v26 = vld [vmem:[#allocation34_spill] sm:$0xff]  ;;  %v2572_v18 = vor.u32 1.1754944e-38, %v2571_v32  ;;  %vm2523_vm3 = vweird.f32 %v8212_v47 }
 0x8fa   : > { %5857 = vrcp.f32 %v8079_v24  ;;  %11056 = vst [vmem:[#allocation28_spill] sm:$0xff] %v8241_v10  ;;  %v5665_v48 = vpack.i.bf16 %v7967_v62, %v11058_v26  ;;  %v11063_v62 = vld [vmem:[#allocation32_spill] sm:$0xff] }
 0x8fb   : > { %11059 = vst [vmem:[#allocation34_spill] sm:$0xff] %v8262_v23  ;;  %v2568_v40 = vsel %vm8266_vm9, %v8201_v49, %v2564_v22  ;;  %vm2509_vm9 = vweird.f32 %v8079_v24 }
 0x8fc   : > { %2215 = vmatmul.f32.gmra.mxu3 %v8083_v38  ;;  %v8227_v56 = vpop.f32.mrf.mxu0 }
 0x8fd   : > { %2328 = vmatmul.f32.gmra.mxu0 %v8091_v12 }
 0x8ff   : > { %v8239_v12 = vpop.eup %5855 }
 0x900   : > { %v8232_v50 = vpop.xlane.xlu0 %1975  ;;  %v8254_v10 = vpop.eup %5857  ;;  %vm2524_vm1 = vweird.f32 %v8239_v12 }
 0x901   : > { %5859 = vrcp.f32 %v8232_v50  ;;  %v8236_v38 = vpop.f32.mrf.mxu3  ;;  %5656 = vrot.lane.b32.xlu0 %v5655_v28, %s6353_s24  ;;  %v2519_v28 = vmul.f32 %v8239_v12, %v8212_v47  ;;  %v2505_v49 = vmul.f32 %v8254_v10, %v8079_v24  ;;  %vm2551_vm13 = vweird.f32 %v8232_v50  ;;  %vm8347_vm4 = vmor %vm2523_vm3, %vm2524_vm1 }
 0x902   : > { %5861 = vrcp.f32 %v8043_v20  ;;  %vm2510_vm7 = vweird.f32 %v8254_v10 }
 0x903   : > { %5863 = vrcp.f32 %v8191_v5  ;;  %v2520_v42 = vsub.f32 1.0, %v2519_v28  ;;  %v2573_v28 = vsel %vm2570_vm10, %v2572_v18, %v2568_v40  ;;  %vm8375_vm10 = vmor %vm2509_vm9, %vm2510_vm7 }
 0x904   : > { %2218 = vmatmul.f32.gmra.mxu3 %v8135_v15  ;;  %v8258_v15 = vpop.permute.xlu1 %3132  ;;  %v2299_v51 = vpop.f32.mrf.mxu0  ;;  %5865 = vrcp.f32 %v8167_v43 }
 0x905   : > { %2331 = vmatmul.f32.gmra.mxu0 %v8137_v34  ;;  %11057 = vst [vmem:[#allocation72_spill] sm:$0xff] %v8258_v15  ;;  %v8276_v15 = vld [vmem:[#allocation2 + $0xc0] sm:$0xff]  ;;  %5867 = vrcp.f32 %v8009_v27  ;;  %v2521_v18 = vmul.f32 %v8239_v12, %v2520_v42  ;;  %v2541_v42 = vand.u32 2147483647, %v8121_v8 }
 0x906   : > { %11062 = vst [vmem:[#allocation73_spill] sm:$0xff] %v8276_v15  ;;  %v5670_v26 = vpack.i.bf16 %v8276_v15, %v11063_v62  ;;  %v8290_v62 = vpop.permute.xlu2 %3124  ;;  %5869 = vrcp.f32 %v7989_v39 }
 0x907   : > { %v5860_v2 = vpop.eup %5859  ;;  %3160 = vrot.lane.b32.xlu2 %v8262_v23, %s6352_s29  ;;  %v5680_v23 = vpack.i.bf16 %v7981_v58, %v8055_v31  ;;  %v2557_v31 = vand.u32 2147483648, %v8232_v50  ;;  %5871 = vrcp.f32 %v8107_v60  ;;  %vm2542_vm5 = vcmp.eq.f32.partialorder %v2541_v42, 8.507059e+37 }
 0x908   : > { %v2547_v36 = vmul.f32 %v5860_v2, %v8232_v50  ;;  %v8274_v14 = vpop.eup %5861  ;;  %vm2552_vm11 = vweird.f32 %v5860_v2  ;;  %v2513_v42 = vand.u32 2147483647, %v8079_v24  ;;  %5873 = vrcp.f32 %v7961_v17 }
 0x909   : > { %v2186_v16 = vpop.f32.mrf.mxu3  ;;  %5666 = vrot.lane.b32.xlu0 %v5665_v48, %s6353_s24  ;;  %v8283_v33 = vpop.eup %5863  ;;  %v2555_v48 = vand.u32 2147483647, %v8232_v50  ;;  %v8297_v1 = vmul.f32 %v8274_v14, %v8043_v20  ;;  %v2558_v40 = vor.u32 1.1754944e-38, %v2557_v31  ;;  %vm2553_vm15 = vmor %vm2551_vm13, %vm2552_vm11  ;;  %v2294_v31 = vadd.f32 %v8206_v11, %v8214_v0 }
 0x90a   : > { %v2548_v22 = vsub.f32 1.0, %v2547_v36  ;;  %v2300_v34 = vadd.f32 %v2299_v51, %v2186_v16  ;;  %v2491_v46 = vmul.f32 %v8283_v33, %v8191_v5  ;;  %v2506_v36 = vsub.f32 1.0, %v2505_v49 }
 0x90b   : > { %v2536_v51 = vadd.f32 %v8229_v21, %v2535_v29  ;;  %vm2556_vm0 = vcmp.eq.f32.partialorder %v2555_v48, 8.507059e+37  ;;  %v2478_v48 = vsub.f32 1.0, %v8297_v1  ;;  %vm2496_vm11 = vweird.f32 %v8283_v33 }
 0x90c   : > { %v2549_v32 = vmul.f32 %v5860_v2, %v2548_v22  ;;  %v2813_v15 = vmul.f32 %v2573_v28, %v2300_v34  ;;  %2221 = vmatmul.f32.gmra.mxu3 %v8109_v35  ;;  %v2543_v35 = vand.u32 2147483648, %v8121_v8  ;;  %v8317_v49 = vpop.permute.xlu1 %3138  ;;  %v2492_v29 = vsub.f32 1.0, %v2491_v46  ;;  %vm8405_vm13 = vmor %vm2495_vm12, %vm2496_vm11 }
 0x90d   : > { %2334 = vmatmul.f32.gmra.mxu0 %v8117_v55  ;;  %v2297_v55 = vadd.f32 %v8227_v56, %v8236_v38  ;;  %11064 = vst [vmem:[#allocation32_spill] sm:$0xff] %v8317_v49  ;;  %v2522_v22 = vadd.f32 %v8239_v12, %v2521_v18  ;;  %v2529_v56 = vand.u32 2147483648, %v8212_v47  ;;  %v2540_v28 = vsel %vm8327_vm2, %v8229_v21, %v2536_v51  ;;  %v11069_v51 = vld [vmem:[#allocation30_spill] sm:$0xff] }
 0x90e   : > { %v2550_v16 = vadd.f32 %v5860_v2, %v2549_v32  ;;  %5273 = vmatpush.xpose.msk.msra.mxu3 %vm1289_vm6, %v2813_v15  ;;  %v8315_v15 = vpop.eup %5865  ;;  %v2527_v8 = vand.u32 2147483647, %v8212_v47  ;;  %v2544_v46 = vor.u32 1.1754944e-38, %v2543_v35  ;;  %v2493_v11 = vmul.f32 %v8283_v33, %v2492_v29 }
 0x90f   : > { %5681 = vrot.lane.b32.xlu2 %v5680_v23, %s6353_s24  ;;  %v2507_v23 = vmul.f32 %v8254_v10, %v2506_v36  ;;  %v2463_v21 = vmul.f32 %v8315_v15, %v8167_v43  ;;  %v2526_v47 = vsel %vm8347_vm4, %v8239_v12, %v2522_v22  ;;  %v2530_v36 = vor.u32 1.1754944e-38, %v2529_v56 }
 0x910   : > { %v2554_v50 = vsel %vm2553_vm15, %v5860_v2, %v2550_v16  ;;  %5671 = vrot.lane.b32.xlu1 %v5670_v26, %s6353_s24  ;;  %v8332_v26 = vpop.eup %5867  ;;  %v2545_v1 = vsel %vm2542_vm5, %v2544_v46, %v2540_v28  ;;  %vm2528_vm8 = vcmp.eq.f32.partialorder %v2527_v8, 8.507059e+37  ;;  %v2494_v22 = vadd.f32 %v8283_v33, %v2493_v11 }
 0x911   : > { %v2559_v34 = vsel %vm2556_vm0, %v2558_v40, %v2554_v50  ;;  %v2508_v0 = vadd.f32 %v8254_v10, %v2507_v23  ;;  %v2449_v16 = vmul.f32 %v8332_v26, %v8009_v27  ;;  %v2811_v35 = vmul.f32 %v2545_v1, %v2294_v31  ;;  %v8370_v12 = vpop.eup %5869 }
 0x912   : > { %v2812_v38 = vmul.f32 %v2559_v34, %v2297_v55  ;;  %v2515_v40 = vand.u32 2147483648, %v8079_v24  ;;  %v2531_v55 = vsel %vm2528_vm8, %v2530_v36, %v2526_v47  ;;  %v2464_v29 = vsub.f32 1.0, %v2463_v21 }
 0x913   : > { %v8341_v32 = vpop.permute.xlu0 %3232  ;;  %v2479_v24 = vmul.f32 %v8274_v14, %v2478_v48  ;;  %v2512_v34 = vsel %vm8375_vm10, %v8254_v10, %v2508_v0  ;;  %v2501_v23 = vand.u32 2147483648, %v8191_v5  ;;  %v2499_v2 = vand.u32 2147483647, %v8191_v5  ;;  %v11075_v0 = vld [vmem:[#allocation23_spill] sm:$0xff] }
 0x914   : > { %2224 = vmatmul.f32.gmra.mxu3 %v8139_v59  ;;  %v8362_v59 = vpop.permute.xlu2 %3128  ;;  %v8400_v31 = vmul.f32 %v8370_v12, %v7989_v39  ;;  %v2450_v28 = vsub.f32 1.0, %v2449_v16  ;;  %v2516_v8 = vor.u32 1.1754944e-38, %v2515_v40  ;;  %5875 = vrcp.f32 %v8081_v52 }
 0x915   : > { %2337 = vmatmul.f32.gmra.mxu0 %v8147_v61  ;;  %5274 = vmatpush.xpose.msk.msra.mxu3 %vm1289_vm6, %v2812_v38  ;;  %v5695_v61 = vpack.i.bf16 %v8021_v13, %v11069_v51  ;;  %v2291_v13 = vadd.f32 %v8179_v54, %v8188_v63  ;;  %v2288_v54 = vadd.f32 %v8149_v9, %v8156_v6  ;;  %v8394_v63 = vpop.permute.xlu1 %3144  ;;  %vm2514_vm14 = vcmp.eq.f32.partialorder %v2513_v42, 8.507059e+37 }
 0x916   : > { %11072 = vst [vmem:[#allocation30_spill] sm:$0xff] %v8394_v63  ;;  %v2465_v5 = vmul.f32 %v8315_v15, %v2464_v29  ;;  %v2498_v10 = vsel %vm8405_vm13, %v8283_v33, %v2494_v22  ;;  %v2480_v48 = vadd.f32 %v8274_v14, %v2479_v24  ;;  %vm2482_vm15 = vweird.f32 %v8274_v14 }
 0x917   : > { %3162 = vrot.lane.b32.xlu2 %v7981_v58, %s6352_s29  ;;  %v8384_v58 = vpop.eup %5871  ;;  %v2810_v38 = vmul.f32 %v2531_v55, %v2291_v13  ;;  %v2502_v46 = vor.u32 1.1754944e-38, %v2501_v23  ;;  %vm2481_vm0 = vweird.f32 %v8043_v20  ;;  %vm2500_vm1 = vcmp.eq.f32.partialorder %v2499_v2, 8.507059e+37 }
 0x918   : > { %v2435_v6 = vmul.f32 %v8384_v58, %v8107_v60  ;;  %v8423_v21 = vpop.eup %5873  ;;  %v2485_v11 = vand.u32 2147483647, %v8043_v20  ;;  %v2487_v33 = vand.u32 2147483648, %v8043_v20  ;;  %vm8432_vm2 = vmor %vm2481_vm0, %vm2482_vm15  ;;  %v2285_v16 = vadd.f32 %v8113_v30, %v8125_v37 }
 0x919   : > { %5275 = vmatpush.xpose.msk.msra.mxu3 %vm1289_vm6, %v2811_v35  ;;  %v2503_v1 = vsel %vm2500_vm1, %v2502_v46, %v2498_v10  ;;  %vm2468_vm3 = vweird.f32 %v8315_v15  ;;  %v2466_v20 = vadd.f32 %v8315_v15, %v2465_v5  ;;  %vm2453_vm4 = vweird.f32 %v8009_v27 }
 0x91a   : > { %v2436_v35 = vsub.f32 1.0, %v2435_v6  ;;  %v8441_v51 = vpop.eup %5875  ;;  %v2484_v40 = vsel %vm8432_vm2, %v8274_v14, %v2480_v48  ;;  %v2473_v42 = vand.u32 2147483648, %v8167_v43  ;;  %v2282_v30 = vadd.f32 %v8077_v4, %v8087_v45  ;;  %v11080_v4 = vld [vmem:[#allocation19_spill] sm:$0xff] }
 0x91b   : > { %v3197_v56 = vpop.permute.xlu0 %3196  ;;  %vm2467_vm5 = vweird.f32 %v8167_v43  ;;  %v2808_v55 = vmul.f32 %v2503_v1, %v2285_v16  ;;  %v2471_v50 = vand.u32 2147483647, %v8167_v43  ;;  %vm2454_vm7 = vweird.f32 %v8332_v26  ;;  %v11083_v6 = vld [vmem:[#allocation43_spill] sm:$0xff] }
 0x91c   : > { %2227 = vmatmul.f32.gmra.mxu3 %v8163_v41  ;;  %5321 = vmatpush.xpose.msk.msrb.mxu2 %vm1289_vm6, %v3197_v56  ;;  %v2517_v41 = vsel %vm2514_vm14, %v2516_v8, %v2512_v34  ;;  %v8428_v47 = vpop.permute.xlu2 %3134  ;;  %v2488_v29 = vor.u32 1.1754944e-38, %v2487_v33  ;;  %5877 = vrcp.f32 %v8019_v57  ;;  %vm8460_vm8 = vmor %vm2467_vm5, %vm2468_vm3  ;;  %vm2486_vm9 = vcmp.eq.f32.partialorder %v2485_v11, 8.507059e+37  ;;  %v11085_v48 = vld [vmem:[#allocation55_spill] sm:$0xff]  ;;  %v8587_v33 = vpop.f32.mrf.mxu3 }
 0x91d   : > { %2340 = vmatmul.f32.gmra.mxu0 %v8165_v25  ;;  %5276 = vmatpush.xpose.msk.msra.mxu3 %vm1289_vm6, %v2810_v38  ;;  %v2809_v18 = vmul.f32 %v2517_v41, %v2288_v54  ;;  %v2451_v25 = vmul.f32 %v8332_v26, %v2450_v28  ;;  %v8467_v45 = vpop.permute.xlu1 %3152  ;;  %v2407_v43 = vmul.f32 %v8441_v51, %v8081_v52  ;;  %v2459_v34 = vand.u32 2147483648, %v8009_v27  ;;  %vm8485_vm10 = vmor %vm2453_vm4, %vm2454_vm7  ;;  %v11086_v41 = vld [vmem:[#allocation54_spill] sm:$0xff]  ;;  %v11090_v16 = vld [vmem:[#allocation67_spill] sm:$0xff] }
 0x91e   : > { %v2437_v22 = vmul.f32 %v8384_v58, %v2436_v35  ;;  %v2470_v24 = vsel %vm8460_vm8, %v8315_v15, %v2466_v20  ;;  %v2489_v23 = vsel %vm2486_vm9, %v2488_v29, %v2484_v40  ;;  %v2474_v54 = vor.u32 1.1754944e-38, %v2473_v42  ;;  %11106 = vst [vmem:[#allocation54_spill] sm:$0xff] %v8587_v33  ;;  %v11113_v42 = vld [vmem:[#allocation59_spill] sm:$0xff] }
 0x91f   : > { %5696 = vrot.lane.b32.xlu2 %v5695_v61, %s6353_s24  ;;  %v2422_v61 = vsub.f32 1.0, %v8400_v31  ;;  %v2452_v13 = vadd.f32 %v8332_v26, %v2451_v25  ;;  %v2393_v2 = vmul.f32 %v8423_v21, %v7961_v17  ;;  %v2807_v56 = vmul.f32 %v2489_v23, %v2282_v30 }
 0x920   : > { %5322 = vmatpush.xpose.msk.msrb.mxu2 %vm1289_vm6, %v11075_v0  ;;  %vm2472_vm11 = vcmp.eq.f32.partialorder %v2471_v50, 8.507059e+37  ;;  %5879 = vrcp.f32 %v7999_v44  ;;  %v2279_v28 = vadd.f32 %v8038_v53, %v8047_v7  ;;  %v2408_v8 = vsub.f32 1.0, %v2407_v43  ;;  %v11089_v0 = vld [vmem:[#allocation66_spill] sm:$0xff]  ;;  %v11094_v50 = vld [vmem:[#allocation56_spill] sm:$0xff]  ;;  %v11096_v43 = vld [vmem:[#allocation53_spill] sm:$0xff] }
 0x921   : > { %5277 = vmatpush.xpose.msk.msra.mxu3 %vm1289_vm6, %v2809_v18  ;;  %v2423_v15 = vmul.f32 %v8370_v12, %v2422_v61  ;;  %v2456_v38 = vsel %vm8485_vm10, %v8332_v26, %v2452_v13  ;;  %v2475_v31 = vsel %vm2472_vm11, %v2474_v54, %v2470_v24  ;;  %vm2440_vm12 = vweird.f32 %v8384_v58  ;;  %v11095_v13 = vld [vmem:[#allocation57_spill] sm:$0xff] }
 0x922   : > { %v8499_v9 = vpop.eup %5877  ;;  %5881 = vrcp.f32 %v11083_v6  ;;  %v2460_v5 = vor.u32 1.1754944e-38, %v2459_v34  ;;  %v2445_v10 = vand.u32 2147483648, %v8107_v60  ;;  %v2276_v53 = vadd.f32 %v11086_v41, %v11085_v48  ;;  %v11105_v41 = vld [vmem:[#allocation26_spill] sm:$0xff] }
 0x923   : > { %v8452_v37 = vpop.permute.xlu0 %3226  ;;  %vm2439_vm14 = vweird.f32 %v8107_v60  ;;  %v2806_v46 = vmul.f32 %v2475_v31, %v2279_v28  ;;  %v2443_v18 = vand.u32 2147483647, %v8107_v60  ;;  %v2394_v25 = vsub.f32 1.0, %v2393_v2 }
 0x924   : > { %2230 = vmatmul.f32.gmra.mxu3 %v8169_v19  ;;  %5323 = vmatpush.xpose.msk.msrb.mxu2 %vm1289_vm6, %v11080_v4  ;;  %v2457_v19 = vand.u32 2147483647, %v8009_v27  ;;  %v2438_v27 = vadd.f32 %v8384_v58, %v2437_v22  ;;  %v8502_v26 = vpop.permute.xlu2 %3136  ;;  %vm2426_vm15 = vweird.f32 %v8370_v12  ;;  %vm8512_vm0 = vmor %vm2439_vm14, %vm2440_vm12  ;;  %v2424_v1 = vadd.f32 %v8370_v12, %v2423_v15  ;;  %v11097_v22 = vld [vmem:[#allocation52_spill] sm:$0xff]  ;;  %v8558_v15 = vpop.f32.mrf.mxu0 }
 0x925   : > { %2343 = vmatmul.f32.gmra.mxu0 %v8175_v3  ;;  %5278 = vmatpush.xpose.msk.msra.mxu3 %vm1289_vm6, %v2808_v55  ;;  %11084 = vst [vmem:[#allocation23_spill] sm:$0xff] %v8502_v26  ;;  %v2379_v36 = vmul.f32 %v8499_v9, %v8019_v57  ;;  %v2409_v60 = vmul.f32 %v8441_v51, %v2408_v8  ;;  %vm2425_vm1 = vweird.f32 %v7989_v39  ;;  %v2431_v61 = vand.u32 2147483648, %v7989_v39  ;;  %v8537_v55 = vpop.permute.xlu1 %5646  ;;  %v11100_v8 = vld [vmem:[#allocation51_spill] sm:$0xff] }
 0x926   : > { %vm2458_vm13 = vcmp.eq.f32.partialorder %v2457_v19, 8.507059e+37  ;;  %v2442_v35 = vsel %vm8512_vm0, %v8384_v58, %v2438_v27  ;;  %v8527_v20 = vpop.eup %5879  ;;  %v2446_v40 = vor.u32 1.1754944e-38, %v2445_v10  ;;  %vm8533_vm2 = vmor %vm2425_vm1, %vm2426_vm15  ;;  %11093 = vst [vmem:[#allocation19_spill] sm:$0xff] %v8537_v55  ;;  %v1986_v29 = vadd.f32 %v11095_v13, %v11094_v50  ;;  %v11098_v19 = vld [vmem:[#allocation25_spill] sm:$0xff]  ;;  %v11101_v27 = vld [vmem:[#allocation50_spill] sm:$0xff] }
 0x927   : > { %v2461_v11 = vsel %vm2458_vm13, %v2460_v5, %v2456_v38  ;;  %vm2444_vm3 = vcmp.eq.f32.partialorder %v2443_v18, 8.507059e+37  ;;  %v2429_v58 = vand.u32 2147483647, %v7989_v39  ;;  %v2395_v4 = vmul.f32 %v8423_v21, %v2394_v25  ;;  %11099 = vst [vmem:[#allocation43_spill] sm:$0xff] %v8558_v15 }
 0x928   : > { %v2805_v30 = vmul.f32 %v2461_v11, %v2276_v53  ;;  %v8542_v14 = vpop.eup %5881  ;;  %v2273_v24 = vadd.f32 %v11097_v22, %v11096_v43  ;;  %v2447_v34 = vsel %vm2444_vm3, %v2446_v40, %v2442_v35  ;;  %v2428_v23 = vsel %vm8533_vm2, %v8370_v12, %v2424_v1  ;;  %v11112_v40 = vld [vmem:[#allocation58_spill] sm:$0xff] }
 0x929   : > { %5279 = vmatpush.xpose.msk.msra.mxu3 %vm1289_vm6, %v2807_v56  ;;  %v2365_v54 = vmul.f32 %v8527_v20, %v7999_v44  ;;  %v2380_v2 = vsub.f32 1.0, %v2379_v36  ;;  %vm2412_vm4 = vweird.f32 %v8441_v51  ;;  %v2410_v39 = vadd.f32 %v8441_v51, %v2409_v60  ;;  %v11107_v60 = vld [vmem:[#allocation49_spill] sm:$0xff] }
 0x92a   : > { %v2432_v3 = vor.u32 1.1754944e-38, %v2431_v61  ;;  %v2417_v56 = vand.u32 2147483648, %v8081_v52  ;;  %vm2411_vm5 = vweird.f32 %v8081_v52  ;;  %v2804_v12 = vmul.f32 %v2447_v34, %v2273_v24  ;;  %v11111_v61 = vld [vmem:[#allocation60_spill] sm:$0xff] }
 0x92b   : > { %v3191_v7 = vpop.permute.xlu0 %3190  ;;  %vm2430_vm7 = vcmp.eq.f32.partialorder %v2429_v58, 8.507059e+37  ;;  %v2415_v31 = vand.u32 2147483647, %v8081_v52  ;;  %v2351_v28 = vmul.f32 %v8542_v14, %v11083_v6  ;;  %v2270_v5 = vadd.f32 %v11101_v27, %v11100_v8  ;;  %vm8573_vm9 = vmor %vm2411_vm5, %vm2412_vm4 }
 0x92c   : > { %2233 = vmatmul.f32.gmra.mxu3 %v11089_v0  ;;  %5324 = vmatpush.xpose.msk.msrb.mxu2 %vm1289_vm6, %v3191_v7  ;;  %vm2398_vm8 = vweird.f32 %v8423_v21  ;;  %v8569_v10 = vpop.permute.xlu2 %3140  ;;  %v2433_v52 = vsel %vm2430_vm7, %v2432_v3, %v2428_v23  ;;  %v2366_v53 = vsub.f32 1.0, %v2365_v54  ;;  %v2381_v7 = vmul.f32 %v8499_v9, %v2380_v2  ;;  %v11116_v23 = vld [vmem:[#allocation47_spill] sm:$0xff]  ;;  %v11117_v54 = vld [vmem:[#allocation46_spill] sm:$0xff] }
 0x92d   : > { %2346 = vmatmul.f32.gmra.mxu0 %v11090_v16  ;;  %5280 = vmatpush.xpose.msk.msra.mxu3 %vm1289_vm6, %v2806_v46  ;;  %11102 = vst [vmem:[#allocation55_spill] sm:$0xff] %v8569_v10  ;;  %v2414_v46 = vsel %vm8573_vm9, %v8441_v51, %v2410_v39  ;;  %v2396_v18 = vadd.f32 %v8423_v21, %v2395_v4  ;;  %v2403_v25 = vand.u32 2147483648, %v7961_v17  ;;  %v2418_v11 = vor.u32 1.1754944e-38, %v2417_v56  ;;  %v11108_v16 = vld [vmem:[#allocation48_spill] sm:$0xff]  ;;  %v8602_v13 = vpop.permute.xlu1 %5651  ;;  %v11120_v39 = vld [vmem:[#allocation61_spill] sm:$0xff]  ;;  %v11132_v51 = vld [vmem:[#allocation42_spill] sm:$0xff] }
 0x92e   : > { %vm2397_vm10 = vweird.f32 %v7961_v17  ;;  %v2803_v0 = vmul.f32 %v2433_v52, %v2270_v5  ;;  %vm2416_vm11 = vcmp.eq.f32.partialorder %v2415_v31, 8.507059e+37  ;;  %v2401_v1 = vand.u32 2147483647, %v7961_v17  ;;  %11114 = vst [vmem:[#allocation66_spill] sm:$0xff] %v8602_v13  ;;  %v11123_v5 = vld [vmem:[#allocation64_spill] sm:$0xff] }
 0x92f   : > { %v2352_v36 = vsub.f32 1.0, %v2351_v28  ;;  %v2267_v35 = vadd.f32 %v11108_v16, %v11107_v60  ;;  %vm8594_vm12 = vmor %vm2397_vm10, %vm2398_vm8  ;;  %v2419_v50 = vsel %vm2416_vm11, %v2418_v11, %v2414_v46  ;;  %v2367_v17 = vmul.f32 %v8527_v20, %v2366_v53  ;;  %v11126_v53 = vld [vmem:[#allocation45_spill] sm:$0xff] }
 0x930   : > { %5325 = vmatpush.xpose.msk.msrb.mxu2 %vm1289_vm6, %v11098_v19  ;;  %vm2384_vm13 = vweird.f32 %v8499_v9  ;;  %v2382_v58 = vadd.f32 %v8499_v9, %v2381_v7  ;;  %v2404_v4 = vor.u32 1.1754944e-38, %v2403_v25  ;;  %v2389_v43 = vand.u32 2147483648, %v8019_v57  ;;  %v11127_v7 = vld [vmem:[#allocation44_spill] sm:$0xff] }
 0x931   : > { %5281 = vmatpush.xpose.msk.msra.mxu3 %vm1289_vm6, %v2805_v30  ;;  %v1989_v30 = vadd.f32 %v11113_v42, %v11112_v40  ;;  %vm2383_vm14 = vweird.f32 %v8019_v57  ;;  %v2802_v19 = vmul.f32 %v2419_v50, %v2267_v35  ;;  %vm2402_vm15 = vcmp.eq.f32.partialorder %v2401_v1, 8.507059e+37 }
 0x932   : > { %v2387_v34 = vand.u32 2147483647, %v8019_v57  ;;  %v2264_v2 = vadd.f32 %v11117_v54, %v11116_v23  ;;  %vm8620_vm0 = vmor %vm2383_vm14, %vm2384_vm13  ;;  %v2353_v56 = vmul.f32 %v8542_v14, %v2352_v36  ;;  %vm2370_vm1 = vweird.f32 %v8527_v20  ;;  %v11130_v36 = vld [vmem:[#allocation65_spill] sm:$0xff] }
 0x933   : > { %1987 = vadd.xlane.f32.xlu0 %v1986_v29  ;;  %v8561_v38 = vpop.permute.xlu0 %3220  ;;  %v2400_v29 = vsel %vm8594_vm12, %v8423_v21, %v2396_v18  ;;  %v2386_v57 = vsel %vm8620_vm0, %v8499_v9, %v2382_v58  ;;  %v2375_v28 = vand.u32 2147483648, %v7999_v44  ;;  %v2390_v8 = vor.u32 1.1754944e-38, %v2389_v43  ;;  %v11137_v43 = vld [vmem:[#allocation39_spill] sm:$0xff] }
 0x934   : > { %5326 = vmatpush.xpose.msk.msrb.mxu2 %vm1289_vm6, %v11105_v41  ;;  %v2405_v3 = vsel %vm2402_vm15, %v2404_v4, %v2400_v29  ;;  %v8633_v31 = vpop.permute.xlu2 %3146  ;;  %vm2369_vm2 = vweird.f32 %v7999_v44  ;;  %vm2388_vm3 = vcmp.eq.f32.partialorder %v2387_v34, 8.507059e+37  ;;  %v2373_v41 = vand.u32 2147483647, %v7999_v44  ;;  %v11136_v4 = vld [vmem:[#allocation40_spill] sm:$0xff] }
 0x935   : > { %5282 = vmatpush.xpose.msk.msra.mxu3 %vm1289_vm6, %v2804_v12  ;;  %v2368_v12 = vadd.f32 %v8527_v20, %v2367_v17  ;;  %11121 = vst [vmem:[#allocation56_spill] sm:$0xff] %v8633_v31  ;;  %v2801_v48 = vmul.f32 %v2405_v3, %v2264_v2  ;;  %vm8642_vm4 = vmor %vm2369_vm2, %vm2370_vm1  ;;  %v2391_v52 = vsel %vm2388_vm3, %v2390_v8, %v2386_v57  ;;  %vm2356_vm5 = vweird.f32 %v8542_v14  ;;  %v8658_v1 = vpop.permute.xlu1 %5661  ;;  %v11135_v17 = vld [vmem:[#allocation28_spill] sm:$0xff]  ;;  %v11142_v3 = vld [vmem:[#allocation29_spill] sm:$0xff] }
 0x936   : > { %v2261_v46 = vadd.f32 %v11127_v7, %v11126_v53  ;;  %v2354_v25 = vadd.f32 %v8542_v14, %v2353_v56  ;;  %v2361_v44 = vand.u32 2147483648, %v11083_v6  ;;  %v2376_v11 = vor.u32 1.1754944e-38, %v2375_v28  ;;  %11129 = vst [vmem:[#allocation52_spill] sm:$0xff] %v8658_v1  ;;  %v11139_v2 = vld [vmem:[#allocation16_spill] sm:$0xff]  ;;  %v11148_v7 = vld [vmem:[#allocation31_spill] sm:$0xff] }
 0x937   : > { %v2372_v18 = vsel %vm8642_vm4, %v8527_v20, %v2368_v12  ;;  %vm2355_vm7 = vweird.f32 %v11083_v6  ;;  %vm2374_vm8 = vcmp.eq.f32.partialorder %v2373_v41, 8.507059e+37  ;;  %v2359_v35 = vand.u32 2147483647, %v11083_v6  ;;  %v11145_v12 = vld [vmem:[#allocation21_spill] sm:$0xff]  ;;  %v6122_v41 = vld [vmem:[#allocation2 + $0x38] sm:$0xff] }
 0x938   : > { %5327 = vmatpush.xpose.msk.msrb.mxu2 %vm1289_vm6, %v11111_v61  ;;  %v2800_v16 = vmul.f32 %v2391_v52, %v2261_v46  ;;  %vm2357_vm9 = vmor %vm2355_vm7, %vm2356_vm5  ;;  %v2377_v20 = vsel %vm2374_vm8, %v2376_v11, %v2372_v18  ;;  %v11133_v61 = vld [vmem:[#allocation41_spill] sm:$0xff]  ;;  %v11146_v52 = vld [vmem:[#allocation36_spill] sm:$0xff] }
 0x939   : > { %5283 = vmatpush.xpose.msk.msra.mxu3 %vm1289_vm6, %v2803_v0  ;;  %v2258_v40 = vadd.f32 %v11133_v61, %v11132_v51  ;;  %v2358_v42 = vsel %vm2357_vm9, %v8542_v14, %v2354_v25  ;;  %vm2360_vm10 = vcmp.eq.f32.partialorder %v2359_v35, 8.507059e+37  ;;  %v11151_v25 = vld [vmem:[#allocation37_spill] sm:$0xff]  ;;  %v11156_v61 = vld [vmem:[#allocation71_spill] sm:$0xff] }
 0x93a   : > { %v8612_v22 = vpop.f32.mrf.mxu0  ;;  %v6123_v11 = vld [vmem:[#allocation2 + $0x28] sm:$0xff] }
 0x93b   : > { %11115 = vst [vmem:[#allocation67_spill] sm:$0xff] %v8612_v22  ;;  %1990 = vadd.xlane.f32.xlu0 %v1989_v30  ;;  %v8615_v24 = vpop.permute.xlu0 %3130  ;;  %v2362_v30 = vor.u32 1.1754944e-38, %v2361_v44  ;;  %v2799_v29 = vmul.f32 %v2377_v20, %v2258_v40  ;;  %v11154_v20 = vld [vmem:[#allocation17_spill] sm:$0xff] }
 0x93c   : > { %5328 = vmatpush.xpose.msk.msrb.mxu2 %vm1289_vm6, %v11120_v39  ;;  %v8672_v58 = vpop.permute.xlu2 %3148  ;;  %v11141_v39 = vld [vmem:[#allocation68_spill] sm:$0xff]  ;;  %v11157_v40 = vld [vmem:[#allocation33_spill] sm:$0xff] }
 0x93d   : > { %5284 = vmatpush.xpose.msk.msra.mxu3 %vm1289_vm6, %v2802_v19  ;;  %v2363_v6 = vsel %vm2360_vm10, %v2362_v30, %v2358_v42  ;;  %v2255_v19 = vadd.f32 %v11137_v43, %v11136_v4  ;;  %v8679_v23 = vpop.xlane.xlu1 %1981  ;;  %v11158_v30 = vld [vmem:[#allocation38_spill] sm:$0xff]  ;;  %v6124_v4 = vld [vmem:[#allocation2 + $0x20] sm:$0xff] }
 0x93e   : > { %v11160_v43 = vld [vmem:[#allocation70_spill] sm:$0xff] }
 0x93f   : > { %v8637_v27 = vpop.f32.mrf.mxu3  ;;  %5329 = vmatmul.msk.f32.vlgmr.msrb.gmra.mxu2 %vm1289_vm6, %v11123_v5  ;;  %v2798_v54 = vmul.f32 %v2363_v6, %v2255_v19  ;;  %v5690_v19 = vpack.i.bf16 %v11160_v43, %v6124_v4  ;;  %v11165_v43 = vld [vmem:[#allocation18_spill] sm:$0xff] }
 0x940   : > { %11122 = vst [vmem:[#allocation57_spill] sm:$0xff] %v8637_v27 }
 0x941   : > { %5285 = vmatpush.xpose.msk.msra.mxu3 %vm1289_vm6, %v2801_v48  ;;  %v8702_v48 = vld [vmem:[#allocation2 + $0xb8] sm:$0xff] }
 0x942   : > { %v8655_v0 = vpop.f32.mrf.mxu0  ;;  %v5675_v9 = vpack.i.bf16 %v8702_v48, %v6122_v41 }
 0x943   : > { %11128 = vst [vmem:[#allocation53_spill] sm:$0xff] %v8655_v0  ;;  %2002 = vadd.xlane.f32.xlu0 %v11130_v36  ;;  %v8661_v60 = vpop.permute.xlu0 %3142  ;;  %v11153_v36 = vld [vmem:[#allocation34_spill] sm:$0xff] }
 0x944   : > { %11131 = vst [vmem:[#allocation25_spill] sm:$0xff] %v8661_v60  ;;  %v8692_v56 = vpop.permute.xlu2 %5641 }
 0x945   : > { %5286 = vmatpush.xpose.msk.msra.mxu3 %vm1289_vm6, %v2800_v16  ;;  %11143 = vst [vmem:[#allocation49_spill] sm:$0xff] %v8692_v56  ;;  %v5685_v16 = vpack.i.bf16 %v11153_v36, %v6123_v11  ;;  %v5654_v11 = vunpack.i.h.bf16 %v8602_v13 }
 0x947   : > { %v8668_v50 = vpop.f32.mrf.mxu3  ;;  %5330 = vmatmul.msk.f32.gmra.mxu2 %vm1289_vm6, %v11135_v17 }
 0x948   : > { %11134 = vst [vmem:[#allocation51_spill] sm:$0xff] %v8668_v50 }
 0x949   : > { %5287 = vmatpush.xpose.msk.msra.mxu3 %vm1289_vm6, %v2799_v29 }
 0x94a   : > { %v8677_v34 = vpop.f32.mrf.mxu0  ;;  %v8698_v28 = vpop.xlane.xlu1 %1993 }
 0x94b   : > { %11138 = vst [vmem:[#allocation50_spill] sm:$0xff] %v8677_v34  ;;  %v8681_v14 = vpop.permute.xlu0 %3150 }
 0x94c   : > { %v8714_v46 = vpop.xlane.xlu2 %1984 }
 0x94d   : > { %5288 = vmatpush.xpose.msk.msra.mxu3 %vm1289_vm6, %v2798_v54  ;;  %11149 = vst [vmem:[#allocation58_spill] sm:$0xff] %v8714_v46 }
 0x94f   : > { %v8686_v21 = vpop.f32.mrf.mxu3  ;;  %5331 = vmatmul.msk.f32.gmra.mxu2 %vm1289_vm6, %v11141_v39 }
 0x950   : > { %11140 = vst [vmem:[#allocation26_spill] sm:$0xff] %v8686_v21  ;;  %5289 = vmatmul.msk.f32.vlgmr.msra.gmra.mxu3 %vm1289_vm6, %v11142_v3 }
 0x951   : > { %5361 = vmatpush.xpose.msk.msrb.mxu3 %vm1289_vm6, %v11139_v2  ;;  %v5644_v2 = vunpack.i.h.bf16 %v8692_v56 }
 0x952   : > { %v8694_v57 = vpop.f32.mrf.mxu0  ;;  %v8723_v35 = vpop.xlane.xlu1 %2005 }
 0x953   : > { %11144 = vst [vmem:[#allocation48_spill] sm:$0xff] %v8694_v57  ;;  %v8700_v8 = vpop.permute.xlu0 %3154 }
 0x954   : > { %v8740_v6 = vpop.xlane.xlu2 %1996 }
 0x955   : > { %5362 = vmatpush.xpose.msk.msrb.mxu3 %vm1289_vm6, %v11145_v12 }
 0x957   : > { %v8707_v53 = vpop.f32.mrf.mxu3  ;;  %5676 = vrot.lane.b32.xlu0 %v5675_v9, %s6353_s24  ;;  %5332 = vmatmul.msk.f32.gmra.mxu2 %vm1289_vm6, %v8290_v62  ;;  %v11161_v9 = vld [vmem:[#allocation35_spill] sm:$0xff] }
 0x958   : > { %11147 = vst [vmem:[#allocation60_spill] sm:$0xff] %v8707_v53  ;;  %5290 = vmatmul.msk.f32.gmra.mxu3 %vm1289_vm6, %v11148_v7 }
 0x959   : > { %5363 = vmatpush.xpose.msk.msrb.mxu3 %vm1289_vm6, %v11146_v52  ;;  %v5649_v52 = vunpack.i.h.bf16 %v8537_v55 }
 0x95a   : > { %v8716_v18 = vpop.f32.mrf.mxu0  ;;  %v8747_v12 = vpop.xlane.xlu1 %2011 }
 0x95b   : > { %11150 = vst [vmem:[#allocation59_spill] sm:$0xff] %v8716_v18  ;;  %v8720_v44 = vpop.permute.xlu0 %3156 }
 0x95c   : > { %11152 = vst [vmem:[#allocation47_spill] sm:$0xff] %v8720_v44  ;;  %v8765_v4 = vpop.xlane.xlu2 %1999 }
 0x95d   : > { %5364 = vmatpush.xpose.msk.msrb.mxu3 %vm1289_vm6, %v11151_v25 }
 0x95f   : > { %v8727_v51 = vpop.f32.mrf.mxu3  ;;  %5686 = vrot.lane.b32.xlu0 %v5685_v16, %s6353_s24  ;;  %5333 = vmatmul.msk.f32.gmra.mxu2 %vm1289_vm6, %v11156_v61  ;;  %v6125_v16 = vld [vmem:[#allocation2 + $0x10] sm:$0xff] }
 0x960   : > { %11155 = vst [vmem:[#allocation46_spill] sm:$0xff] %v8727_v51  ;;  %5291 = vmatmul.msk.f32.gmra.mxu3 %vm1289_vm6, %v11157_v40 }
 0x961   : > { %5365 = vmatpush.xpose.msk.msrb.mxu3 %vm1289_vm6, %v11154_v20  ;;  %v11164_v20 = vld [vmem:[#allocation62_spill] sm:$0xff] }
 0x962   : > { %v8734_v42 = vpop.f32.mrf.mxu0 }
 0x963   : > { %v8738_v29 = vpop.permute.xlu0 %5636 }
 0x964   : > { %11159 = vst [vmem:[#allocation61_spill] sm:$0xff] %v8738_v29  ;;  %v5639_v54 = vunpack.i.h.bf16 %v8738_v29  ;;  %v8789_v40 = vpop.xlane.xlu2 %2008 }
 0x965   : > { %5366 = vmatpush.xpose.msk.msrb.mxu3 %vm1289_vm6, %v11158_v30  ;;  %v5700_v30 = vpack.i.bf16 %v11164_v20, %v6125_v16  ;;  %v6127_v16 = vld [vmem:[#allocation2 + $0x8] sm:$0xff] }
 0x966   : > { %4193 = vmatpush.msra.mxu0 %v5639_v54  ;;  %v8774_v54 = vpop.xlane.xlu1 %2020 }
 0x967   : > { %v8749_v41 = vpop.f32.mrf.mxu3  ;;  %5691 = vrot.lane.b32.xlu0 %v5690_v19, %s6353_s24  ;;  %5334 = vmatmul.msk.f32.gmra.mxu2 %vm1289_vm6, %v8362_v59  ;;  %vm2761_vm3 = vweird.f32 %v8774_v54 }
 0x968   : > { %5292 = vmatmul.msk.f32.gmra.mxu3 %vm1289_vm6, %v11161_v9  ;;  %4194 = vmatpush.msra.mxu0 %v5644_v2 }
 0x969   : > { %5367 = vmatpush.xpose.msk.msrb.mxu3 %vm1289_vm6, %v8341_v32  ;;  %v11162_v32 = vld [vmem:[#allocation22_spill] sm:$0xff] }
 0x96a   : > { %v8757_v25 = vpop.f32.mrf.mxu0  ;;  %4195 = vmatpush.msra.mxu0 %v5649_v52 }
 0x96b   : > { %v8762_v36 = vpop.permute.xlu0 %3158 }
 0x96c   : > { %11163 = vst [vmem:[#allocation64_spill] sm:$0xff] %v8762_v36  ;;  %4196 = vmatpush.msra.mxu0 %v5654_v11  ;;  %v6126_v11 = vld [vmem:[#allocation2 + $0x88] sm:$0xff] }
 0x96d   : > { %5368 = vmatpush.xpose.msk.msrb.mxu3 %vm1289_vm6, %v11162_v32  ;;  %v5705_v20 = vpack.i.bf16 %v6126_v11, %v6127_v16 }
 0x96e   : > { %v8797_v11 = vpop.xlane.xlu1 %2026 }
 0x96f   : > { %v8769_v19 = vpop.f32.mrf.mxu3  ;;  %5701 = vrot.lane.b32.xlu0 %v5700_v30, %s6353_s24  ;;  %5335 = vmatmul.msk.f32.gmra.mxu2 %vm1289_vm6, %v8615_v24  ;;  %v11167_v30 = vld [vmem:[#allocation24_spill] sm:$0xff]  ;;  %5883 = vrcp.f32 %v8797_v11  ;;  %v2795_v21 = vand.u32 2147483648, %v8797_v11  ;;  %vm2789_vm12 = vweird.f32 %v8797_v11 }
 0x971   : > { %5369 = vmatpush.xpose.msk.msrb.mxu3 %vm1289_vm6, %v11165_v43  ;;  %v5664_v43 = vunpack.i.h.bf16 %v8658_v1  ;;  %v6129_v1 = vld [vmem:[#allocation2 + $0x80] sm:$0xff]  ;;  %v2796_v44 = vor.u32 1.1754944e-38, %v2795_v21 }
 0x972   : > { %v8776_v2 = vpop.f32.mrf.mxu0 }
 0x973   : > { %v8780_v52 = vpop.permute.xlu0 %5656 }
 0x974   : > { %11166 = vst [vmem:[#allocation45_spill] sm:$0xff] %v8780_v52  ;;  %v5659_v32 = vunpack.i.h.bf16 %v8780_v52  ;;  %v11169_v52 = vld [vmem:[#allocation20_spill] sm:$0xff] }
 0x975   : > { %5370 = vmatpush.xpose.msk.msrb.mxu3 %vm1289_vm6, %v8452_v37  ;;  %v11168_v37 = vld [vmem:[#allocation72_spill] sm:$0xff] }
 0x976   : > { %4197 = vmatpush.msra.mxu0 %v5659_v32 }
 0x977   : > { %5706 = vrot.lane.b32.xlu0 %v5705_v20, %s6353_s24  ;;  %v8787_v9 = vpop.f32.mrf.mxu3  ;;  %5336 = vmatmul.msk.f32.gmra.mxu2 %vm1289_vm6, %v11168_v37 }
 0x978   : > { %4198 = vmatpush.msra.mxu0 %v5664_v43  ;;  %v8810_v43 = vpop.xlane.xlu2 %2014 }
 0x979   : > { %5371 = vmatpush.xpose.msk.msrb.mxu3 %vm1289_vm6, %v11167_v30  ;;  %v11171_v30 = vld [vmem:[#allocation27_spill] sm:$0xff] }
 0x97a   : > { %v8793_v7 = vpop.f32.mrf.mxu0 }
 0x97b   : > { %v8799_v16 = vpop.permute.xlu0 %5666 }
 0x97c   : > { %11170 = vst [vmem:[#allocation44_spill] sm:$0xff] %v8799_v16  ;;  %v5669_v32 = vunpack.i.h.bf16 %v8799_v16 }
 0x97d   : > { %5372 = vmatpush.xpose.msk.msrb.mxu3 %vm1289_vm6, %v11169_v52 }
 0x97e   : > { %4199 = vmatpush.msra.mxu0 %v5669_v32  ;;  %v6128_v32 = vld [vmem:[#allocation2] sm:$0xff] }
 0x97f   : > { %3164 = vrot.lane.b32.xlu0 %v8702_v48, %s6352_s29  ;;  %v8806_v20 = vpop.f32.mrf.mxu3  ;;  %5337 = vmatmul.msk.f32.gmra.mxu2 %vm1289_vm6, %v8428_v47  ;;  %v5710_v13 = vpack.i.bf16 %v6129_v1, %v6128_v32  ;;  %v11173_v48 = vld [vmem:[#allocation63_spill] sm:$0xff]  ;;  %v11175_v1 = vld [vmem:[#allocation73_spill] sm:$0xff] }
 0x981   : > { %5373 = vmatpush.xpose.msk.msrb.mxu3 %vm1289_vm6, %v8561_v38 }
 0x982   : > { %v8812_v52 = vpop.f32.mrf.mxu0  ;;  %v8816_v16 = vpop.permute.xlu1 %5671 }
 0x983   : > { %11172 = vst [vmem:[#allocation65_spill] sm:$0xff] %v8816_v16  ;;  %v5674_v38 = vunpack.i.h.bf16 %v8816_v16  ;;  %v8830_v16 = vpop.xlane.xlu2 %2017 }
 0x984   : > { %vm2747_vm8 = vweird.f32 %v8830_v16 }
 0x985   : > { %5374 = vmatpush.xpose.msk.msrb.mxu3 %vm1289_vm6, %v11171_v30  ;;  %4200 = vmatpush.msra.mxu0 %v5674_v38  ;;  %v11174_v30 = vld [vmem:[#allocation69_spill] sm:$0xff] }
 0x987   : > { %5711 = vrot.lane.b32.xlu0 %v5710_v13, %s6353_s24  ;;  %v8822_v55 = vpop.f32.mrf.mxu3  ;;  %5338 = vmatmul.msk.f32.gmra.mxu2 %vm1289_vm6, %v8502_v26  ;;  %s5020_s24 = scalar_lea.hbm %s10943_s9, %s5455_s5 }
 0x988   : > { %s5023_s28 = sshll.u32 %s5020_s24, 4  ;;  %s5024_s28 = int_to_ptr.hbm [resolvable:$true] %s5023_s28 }
 0x989   : > { %5375 = vmatpush.xpose.msk.msrb.mxu3 %vm1289_vm6, %v11173_v48  ;;  %v6130_v48 = vld [vmem:[#allocation2 + $0xc8] sm:$0xff]  ;;  %s6279_s14 = sshra.s32 %s5024_s28, 4  ;;  %s6280_s14 = int_to_ptr.hbm [resolvable:$true] %s6279_s14 }
 0x98a   : > { %v8826_v3 = vpop.f32.mrf.mxu0  ;;  %s6281_s25 = scalar_lea.hbm %s6280_s14, 64  ;;  %p6286_p11 = scmp.lt.s32.totalorder %s6280_s14, %s10943_s9 }
 0x98b   : > { %v8845_v32 = vpop.xlane.xlu2 %2023  ;;  %p6282_p1 = scmp.ne.s32.totalorder %s6280_s14, %s6281_s25  ;;  %p6287_p9 = scmp.lt.s32.totalorder %s6285_s2, %s6281_s25 }
 0x98c   : > { %5885 = vrcp.f32 %v8845_v32  ;;  %vm2775_vm15 = vweird.f32 %v8845_v32 }
 0x98d   : > { %5376 = vmatpush.xpose.msk.msrb.mxu3 %vm1289_vm6, %v11174_v30  ;;  %v8853_v30 = vpop.eup %5883  ;;  %5887 = vrcp.f32 %v8774_v54  ;;  %p6283_p4 = pnand %p6282_p1, %p6490_p7  ;;  %p6288_p2 = por %p6287_p9, %p6286_p11 }
 0x98e   : > { %5889 = vrcp.f32 %v8830_v16  ;;  %vm2790_vm11 = vweird.f32 %v8853_v30 }
 0x98f   : > { %3166 = vrot.lane.b32.xlu0 %v11175_v1, %s6352_s29  ;;  %v8836_v38 = vpop.f32.mrf.mxu3  ;;  %5339 = vmatmul.msk.f32.gmra.mxu2 %vm1289_vm6, %v8317_v49  ;;  %5891 = vrcp.f32 %v8810_v43  ;;  %vm8903_vm13 = vmor %vm2789_vm12, %vm2790_vm11  ;;  %vm2733_vm12 = vweird.f32 %v8810_v43  ;;  %p6284_p8 = pneg %p6283_p4 }
 0x990   : > { %5377 = vmatmul.msk.f32.vlgmr.msrb.gmra.mxu3 %vm1289_vm6, %v11123_v5  ;;  %5893 = vrcp.f32 %v8747_v12 }
 0x991   : > { %5895 = vrcp.f32 %v8789_v40  ;;  %p6289_p10 = pnand %p6288_p2, %p6284_p8 }
 0x992   : > { %v8840_v13 = vpop.f32.mrf.mxu0  ;;  %5897 = vrcp.f32 %v8714_v46  ;;  %v2767_v46 = vand.u32 2147483648, %v8774_v54 }
 0x993   : > { %5899 = vrcp.f32 %v8765_v4 }
 0x994   : > { %5901 = vrcp.f32 %v8723_v35  ;;  %v2768_v21 = vor.u32 1.1754944e-38, %v2767_v46 }
 0x995   : > { %5903 = vrcp.f32 %v8740_v6 }
 0x997   : > { %3168 = vrot.lane.b32.xlu0 %v6130_v48, %s6352_s29  ;;  %v8848_v5 = vpop.f32.mrf.mxu3  ;;  %5340 = vmatmul.msk.f32.gmra.mxu2 %vm1289_vm6, %v8569_v10  ;;  %v8862_v48 = vpop.eup %5885 }
 0x998   : > { %5378 = vmatmul.msk.f32.gmra.mxu3 %vm1289_vm6, %v11135_v17  ;;  %v2785_v17 = vmul.f32 %v8853_v30, %v8797_v11  ;;  %v2771_v29 = vmul.f32 %v8862_v48, %v8845_v32  ;;  %v8872_v33 = vpop.eup %5887  ;;  %vm2776_vm14 = vweird.f32 %v8862_v48 }
 0x999   : > { %v8876_v22 = vpop.eup %5889  ;;  %v2757_v10 = vmul.f32 %v8872_v33, %v8774_v54  ;;  %vm2762_vm1 = vweird.f32 %v8872_v33  ;;  %vm8931_vm2 = vmor %vm2775_vm15, %vm2776_vm14 }
 0x99a   : > { %v8855_v1 = vpop.f32.mrf.mxu0  ;;  %v2786_v15 = vsub.f32 1.0, %v2785_v17  ;;  %v2772_v27 = vsub.f32 1.0, %v2771_v29  ;;  %v8883_v36 = vpop.eup %5891  ;;  %vm2748_vm5 = vweird.f32 %v8876_v22  ;;  %vm8956_vm7 = vmor %vm2761_vm3, %vm2762_vm1 }
 0x99b   : > { %v2758_v17 = vsub.f32 1.0, %v2757_v10  ;;  %vm2734_vm10 = vweird.f32 %v8883_v36  ;;  %vm8985_vm11 = vmor %vm2747_vm8, %vm2748_vm5 }
 0x99c   : > { %v2773_v29 = vmul.f32 %v8862_v48, %v2772_v27 }
 0x99d   : > { %v2759_v49 = vmul.f32 %v8872_v33, %v2758_v17 }
 0x99e   : > { %v2774_v57 = vadd.f32 %v8862_v48, %v2773_v29  ;;  %v2779_v29 = vand.u32 2147483647, %v8845_v32 }
 0x99f   : > { %v8864_v56 = vpop.f32.mrf.mxu3  ;;  %5341 = vmatmul.msk.f32.gmra.mxu2 %vm1289_vm6, %v8661_v60  ;;  %v2787_v60 = vmul.f32 %v8853_v30, %v2786_v15  ;;  %v2729_v15 = vmul.f32 %v8883_v36, %v8810_v43 }
 0x9a0   : > { %5379 = vmatmul.msk.f32.gmra.mxu3 %vm1289_vm6, %v11141_v39  ;;  %vm2780_vm4 = vcmp.eq.f32.partialorder %v2779_v29, 8.507059e+37 }
 0x9a1   : > { %v2788_v34 = vadd.f32 %v8853_v30, %v2787_v60  ;;  %v8907_v60 = vpop.eup %5893 }
 0x9a2   : > { %v2344_v39 = vpop.f32.mrf.mxu0  ;;  %v8923_v26 = vpop.eup %5895  ;;  %vm2720_vm15 = vweird.f32 %v8907_v60 }
 0x9a6   : > { %v8881_v0 = vpop.xlane.xlu0 %1987 }
 0x9a7   : > { %v2231_v50 = vpop.f32.mrf.mxu3  ;;  %5342 = vmatmul.msk.f32.gmra.mxu2 %vm1289_vm6, %v8394_v63  ;;  %v2793_v63 = vand.u32 2147483647, %v8797_v11  ;;  %v2792_v11 = vsel %vm8903_vm13, %v8853_v30, %v2788_v34  ;;  %v2715_v30 = vmul.f32 %v8907_v60, %v8747_v12  ;;  %vm9003_vm13 = vmor %vm2733_vm12, %vm2734_vm10 }
 0x9a8   : > { %5380 = vmatmul.msk.f32.gmra.mxu3 %vm1289_vm6, %v8290_v62  ;;  %v2743_v62 = vmul.f32 %v8876_v22, %v8830_v16 }
 0x9a9   : > { %vm2794_vm0 = vcmp.eq.f32.partialorder %v2793_v63, 8.507059e+37  ;;  %v8935_v63 = vpop.eup %5897 }
 0x9aa   : > { %v2744_v10 = vsub.f32 1.0, %v2743_v62  ;;  %v2730_v62 = vsub.f32 1.0, %v2729_v15  ;;  %v2347_v18 = vpop.f32.mrf.mxu0  ;;  %v2778_v15 = vsel %vm8931_vm2, %v8862_v48, %v2774_v57  ;;  %v8941_v27 = vpop.eup %5899  ;;  %v2716_v48 = vsub.f32 1.0, %v2715_v30 }
 0x9ab   : > { %v2753_v30 = vand.u32 2147483648, %v8830_v16  ;;  %vm2706_vm2 = vweird.f32 %v8923_v26 }
 0x9ac   : > { %v2745_v34 = vmul.f32 %v8876_v22, %v2744_v10  ;;  %v2731_v57 = vmul.f32 %v8883_v36, %v2730_v62 }
 0x9ae   : > { %v8912_v53 = vpop.xlane.xlu0 %1990  ;;  %v2732_v46 = vadd.f32 %v8883_v36, %v2731_v57 }
 0x9af   : > { %v2234_v51 = vpop.f32.mrf.mxu3  ;;  %5343 = vmatmul.msk.f32.gmra.mxu2 %vm1289_vm6, %v8633_v31 }
 0x9b0   : > { %5381 = vmatmul.msk.f32.gmra.mxu3 %vm1289_vm6, %v11156_v61  ;;  %v2781_v61 = vand.u32 2147483648, %v8845_v32  ;;  %v2348_v17 = vadd.f32 %v2347_v18, %v2234_v51  ;;  %v2797_v18 = vsel %vm2794_vm0, %v2796_v44, %v2792_v11  ;;  %v2760_v51 = vadd.f32 %v8872_v33, %v2759_v49 }
 0x9b1   : > { %v2345_v32 = vadd.f32 %v2344_v39, %v2231_v50  ;;  %v2701_v44 = vmul.f32 %v8923_v26, %v8789_v40  ;;  %v2765_v49 = vand.u32 2147483647, %v8774_v54  ;;  %v8950_v50 = vpop.eup %5901  ;;  %v2746_v54 = vadd.f32 %v8876_v22, %v2745_v34 }
 0x9b2   : > { %v2829_v10 = vmul.f32 %v2797_v18, %v2348_v17  ;;  %v2782_v31 = vor.u32 1.1754944e-38, %v2781_v61  ;;  %v2342_v61 = vadd.f32 %v8855_v1, %v8864_v56  ;;  %v2764_v62 = vsel %vm8956_vm7, %v8872_v33, %v2760_v51  ;;  %v8977_v33 = vpop.eup %5903 }
 0x9b3   : > { %vm2766_vm9 = vcmp.eq.f32.partialorder %v2765_v49, 8.507059e+37  ;;  %v2687_v56 = vmul.f32 %v8950_v50, %v8723_v35  ;;  %v2717_v34 = vmul.f32 %v8907_v60, %v2716_v48  ;;  %v2339_v18 = vadd.f32 %v8840_v13, %v8848_v5  ;;  %v8999_v49 = vpop.permute.xlu2 %3160 }
 0x9b4   : > { %5293 = vmatpush.xpose.msk.msra.mxu1 %vm1289_vm6, %v2829_v10  ;;  %v2783_v11 = vsel %vm2780_vm4, %v2782_v31, %v2778_v15  ;;  %v2702_v31 = vsub.f32 1.0, %v2701_v44  ;;  %v2750_v51 = vsel %vm8985_vm11, %v8876_v22, %v2746_v54  ;;  %v2659_v15 = vmul.f32 %v8941_v27, %v8765_v4 }
 0x9b5   : > { %v2828_v29 = vmul.f32 %v2783_v11, %v2345_v32  ;;  %v2739_v10 = vand.u32 2147483648, %v8810_v43  ;;  %v2754_v44 = vor.u32 1.1754944e-38, %v2753_v30  ;;  %v2737_v22 = vand.u32 2147483647, %v8810_v43 }
 0x9b6   : > { %v8968_v17 = vpop.xlane.xlu0 %2002  ;;  %v2703_v57 = vmul.f32 %v8923_v26, %v2702_v31  ;;  %v2688_v48 = vsub.f32 1.0, %v2687_v56  ;;  %v2736_v39 = vsel %vm9003_vm13, %v8883_v36, %v2732_v46  ;;  %v2718_v54 = vadd.f32 %v8907_v60, %v2717_v34 }
 0x9b7   : > { %5905 = vrcp.f32 %v8968_v17  ;;  %5344 = vmatmul.msk.f32.gmra.mxu2 %vm1289_vm6, %v8672_v58  ;;  %v2336_v43 = vadd.f32 %v8826_v3, %v8836_v38  ;;  %v2711_v30 = vand.u32 2147483648, %v8789_v40  ;;  %v2725_v36 = vand.u32 2147483648, %v8747_v12 }
 0x9b8   : > { %5382 = vmatmul.msk.f32.gmra.mxu3 %vm1289_vm6, %v8362_v59  ;;  %v2751_v59 = vand.u32 2147483647, %v8830_v16  ;;  %5294 = vmatpush.xpose.msk.msra.mxu1 %vm1289_vm6, %v2828_v29  ;;  %v2769_v16 = vsel %vm2766_vm9, %v2768_v21, %v2764_v62  ;;  %5907 = vrcp.f32 %v8698_v28  ;;  %v2645_v29 = vmul.f32 %v8977_v33, %v8740_v6 }
 0x9b9   : > { %v2827_v32 = vmul.f32 %v2769_v16, %v2342_v61  ;;  %v2740_v21 = vor.u32 1.1754944e-38, %v2739_v10  ;;  %vm2719_vm0 = vweird.f32 %v8747_v12  ;;  %vm2738_vm1 = vcmp.eq.f32.partialorder %v2737_v22, 8.507059e+37 }
 0x9ba   : > { %vm2752_vm14 = vcmp.eq.f32.partialorder %v2751_v59, 8.507059e+37  ;;  %v2660_v3 = vsub.f32 1.0, %v2659_v15  ;;  %v2689_v38 = vmul.f32 %v8950_v50, %v2688_v48  ;;  %vm9035_vm3 = vmor %vm2719_vm0, %vm2720_vm15  ;;  %v2704_v46 = vadd.f32 %v8923_v26, %v2703_v57 }
 0x9bb   : > { %v2755_v11 = vsel %vm2752_vm14, %v2754_v44, %v2750_v51  ;;  %v2741_v56 = vsel %vm2738_vm1, %v2740_v21, %v2736_v39  ;;  %v2333_v1 = vadd.f32 %v8812_v52, %v8822_v55  ;;  %v2722_v16 = vsel %vm9035_vm3, %v8907_v60, %v2718_v54  ;;  %v9052_v55 = vpop.permute.xlu2 %5681 }
 0x9bc   : > { %5295 = vmatpush.xpose.msk.msra.mxu1 %vm1289_vm6, %v2827_v32  ;;  %v2826_v61 = vmul.f32 %v2755_v11, %v2339_v18  ;;  %v2825_v34 = vmul.f32 %v2741_v56, %v2336_v43  ;;  %v2646_v18 = vsub.f32 1.0, %v2645_v29  ;;  %v2726_v51 = vor.u32 1.1754944e-38, %v2725_v36 }
 0x9bd   : > { %v9009_v5 = vpop.eup %5905  ;;  %5909 = vrcp.f32 %v8912_v53  ;;  %vm2705_vm4 = vweird.f32 %v8789_v40  ;;  %v2709_v32 = vand.u32 2147483647, %v8789_v40  ;;  %v2712_v10 = vor.u32 1.1754944e-38, %v2711_v30 }
 0x9be   : > { %v2673_v62 = vmul.f32 %v9009_v5, %v8968_v17  ;;  %v2690_v52 = vadd.f32 %v8950_v50, %v2689_v38  ;;  %vm2692_vm7 = vweird.f32 %v8950_v50  ;;  %vm9058_vm8 = vmor %vm2705_vm4, %vm2706_vm2  ;;  %v2661_v40 = vmul.f32 %v8941_v27, %v2660_v3 }
 0x9bf   : > { %5345 = vmatmul.msk.f32.gmra.mxu2 %vm1289_vm6, %v8681_v14  ;;  %v2330_v57 = vadd.f32 %v8793_v7, %v8806_v20  ;;  %v2708_v13 = vsel %vm9058_vm8, %v8923_v26, %v2704_v46  ;;  %vm2691_vm9 = vweird.f32 %v8723_v35  ;;  %v2697_v39 = vand.u32 2147483648, %v8723_v35 }
 0x9c0   : > { %5383 = vmatmul.msk.f32.gmra.mxu3 %vm1289_vm6, %v8615_v24  ;;  %v2723_v24 = vand.u32 2147483647, %v8747_v12  ;;  %v2674_v31 = vsub.f32 1.0, %v2673_v62  ;;  %5296 = vmatpush.xpose.msk.msra.mxu1 %vm1289_vm6, %v2826_v61  ;;  %v9039_v12 = vpop.eup %5907  ;;  %5911 = vrcp.f32 %v8881_v0  ;;  %vm9075_vm10 = vmor %vm2691_vm9, %vm2692_vm7  ;;  %v2695_v7 = vand.u32 2147483647, %v8723_v35 }
 0x9c1   : > { %v2631_v48 = vmul.f32 %v9039_v12, %v8698_v28  ;;  %vm2710_vm11 = vcmp.eq.f32.partialorder %v2709_v32, 8.507059e+37  ;;  %vm2678_vm12 = vweird.f32 %v9009_v5  ;;  %v2327_v11 = vadd.f32 %v8776_v2, %v8787_v9 }
 0x9c2   : > { %vm2724_vm5 = vcmp.eq.f32.partialorder %v2723_v24, 8.507059e+37  ;;  %v2675_v15 = vmul.f32 %v9009_v5, %v2674_v31  ;;  %v2694_v54 = vsel %vm9075_vm10, %v8950_v50, %v2690_v52  ;;  %v2713_v35 = vsel %vm2710_vm11, %v2712_v10, %v2708_v13  ;;  %v11204_v50 = vld [vmem:[#allocation47_spill] sm:$0xff] }
 0x9c3   : > { %v2727_v44 = vsel %vm2724_vm5, %v2726_v51, %v2722_v16  ;;  %v9085_v26 = vpop.eup %5909  ;;  %v2683_v43 = vand.u32 2147483648, %v8968_v17  ;;  %v2823_v62 = vmul.f32 %v2713_v35, %v2330_v57  ;;  %vm2677_vm13 = vweird.f32 %v8968_v17  ;;  %v9124_v16 = vpop.permute.xlu2 %3162  ;;  %v11198_v57 = vld [vmem:[#allocation58_spill] sm:$0xff] }
 0x9c4   : > { %5297 = vmatpush.xpose.msk.msra.mxu1 %vm1289_vm6, %v2825_v34  ;;  %v2824_v22 = vmul.f32 %v2727_v44, %v2333_v1  ;;  %v2676_v20 = vadd.f32 %v9009_v5, %v2675_v15  ;;  %v2681_v29 = vand.u32 2147483647, %v8968_v17  ;;  %5913 = vrcp.f32 %v8679_v23  ;;  %vm9102_vm14 = vmor %vm2677_vm13, %vm2678_vm12 }
 0x9c5   : > { %v2647_v9 = vmul.f32 %v8977_v33, %v2646_v18  ;;  %v2632_v2 = vsub.f32 1.0, %v2631_v48  ;;  %v2698_v21 = vor.u32 1.1754944e-38, %v2697_v39  ;;  %v5684_v36 = vunpack.i.h.bf16 %v9052_v55 }
 0x9c6   : > { %vm2696_vm15 = vcmp.eq.f32.partialorder %v2695_v7, 8.507059e+37  ;;  %v2617_v17 = vmul.f32 %v9085_v26, %v8912_v53  ;;  %v2680_v24 = vsel %vm9102_vm14, %v9009_v5, %v2676_v20  ;;  %v9113_v31 = vpop.eup %5911  ;;  %vm2663_vm0 = vweird.f32 %v8765_v4 }
 0x9c7   : > { %5346 = vmatmul.msk.f32.gmra.mxu2 %vm1289_vm6, %v8467_v45  ;;  %vm2650_vm1 = vweird.f32 %v8977_v33  ;;  %v2699_v3 = vsel %vm2696_vm15, %v2698_v21, %v2694_v54  ;;  %v2684_v38 = vor.u32 1.1754944e-38, %v2683_v43  ;;  %v2662_v59 = vadd.f32 %v8941_v27, %v2661_v40  ;;  %v11201_v54 = vld [vmem:[#allocation59_spill] sm:$0xff] }
 0x9c8   : > { %5384 = vmatmul.msk.f32.gmra.mxu3 %vm1289_vm6, %v11168_v37  ;;  %5298 = vmatpush.xpose.msk.msra.mxu1 %vm1289_vm6, %v2824_v22  ;;  %vm2664_vm2 = vweird.f32 %v8941_v27  ;;  %v2822_v56 = vmul.f32 %v2699_v3, %v2327_v11  ;;  %vm2682_vm3 = vcmp.eq.f32.partialorder %v2681_v29, 8.507059e+37  ;;  %v2669_v5 = vand.u32 2147483648, %v8765_v4  ;;  %v11199_v11 = vld [vmem:[#allocation23_spill] sm:$0xff] }
 0x9c9   : > { %v9093_v61 = vpop.permute.xlu0 %5676  ;;  %v2648_v46 = vadd.f32 %v8977_v33, %v2647_v9  ;;  %v2667_v1 = vand.u32 2147483647, %v8765_v4  ;;  %v2685_v34 = vsel %vm2682_vm3, %v2684_v38, %v2680_v24  ;;  %v2633_v18 = vmul.f32 %v9039_v12, %v2632_v2  ;;  %vm9143_vm5 = vmor %vm2663_vm0, %vm2664_vm2  ;;  %v11206_v24 = vld [vmem:[#allocation48_spill] sm:$0xff] }
 0x9ca   : > { %v5679_v30 = vunpack.i.h.bf16 %v9093_v61  ;;  %v2603_v51 = vmul.f32 %v9113_v31, %v8881_v0  ;;  %v2618_v32 = vsub.f32 1.0, %v2617_v17  ;;  %v9134_v15 = vpop.eup %5913  ;;  %vm2649_vm4 = vweird.f32 %v8740_v6  ;;  %v11205_v17 = vld [vmem:[#allocation60_spill] sm:$0xff] }
 0x9cb   : > { %v2655_v10 = vand.u32 2147483648, %v8740_v6  ;;  %v2653_v52 = vand.u32 2147483647, %v8740_v6  ;;  %vm9151_vm7 = vmor %vm2649_vm4, %vm2650_vm1  ;;  %v2321_v44 = vadd.f32 %v8734_v42, %v8749_v41  ;;  %v2666_v6 = vsel %vm9143_vm5, %v8941_v27, %v2662_v59  ;;  %v9196_v38 = vpop.permute.xlu2 %5696 }
 0x9cc   : > { %5299 = vmatpush.xpose.msk.msra.mxu1 %vm1289_vm6, %v2823_v62  ;;  %4201 = vmatpush.msra.mxu0 %v5679_v30  ;;  %v2589_v13 = vmul.f32 %v8935_v63, %v11198_v57  ;;  %v2670_v22 = vor.u32 1.1754944e-38, %v2669_v5  ;;  %v2652_v48 = vsel %vm9151_vm7, %v8977_v33, %v2648_v46  ;;  %vm2668_vm8 = vcmp.eq.f32.partialorder %v2667_v1, 8.507059e+37  ;;  %v11200_v33 = vld [vmem:[#allocation46_spill] sm:$0xff]  ;;  %v11218_v30 = vld [vmem:[#allocation57_spill] sm:$0xff] }
 0x9cd   : > { %v2634_v39 = vadd.f32 %v9039_v12, %v2633_v18  ;;  %vm2636_vm9 = vweird.f32 %v9039_v12  ;;  %v2604_v42 = vsub.f32 1.0, %v2603_v51  ;;  %v2619_v41 = vmul.f32 %v9085_v26, %v2618_v32 }
 0x9ce   : > { %4202 = vmatpush.msra.mxu0 %v5684_v36  ;;  %v2656_v27 = vor.u32 1.1754944e-38, %v2655_v10  ;;  %v2641_v37 = vand.u32 2147483648, %v8698_v28  ;;  %v2639_v7 = vand.u32 2147483647, %v8698_v28  ;;  %v2671_v20 = vsel %vm2668_vm8, %v2670_v22, %v2666_v6 }
 0x9cf   : > { %5347 = vmatmul.msk.f32.gmra.mxu2 %vm1289_vm6, %v8700_v8  ;;  %vm2635_vm10 = vweird.f32 %v8698_v28  ;;  %v2318_v35 = vadd.f32 %v11201_v54, %v11200_v33  ;;  %vm2654_vm11 = vcmp.eq.f32.partialorder %v2653_v52, 8.507059e+37  ;;  %v2820_v43 = vmul.f32 %v2671_v20, %v2321_v44  ;;  %v11215_v54 = vld [vmem:[#allocation51_spill] sm:$0xff] }
 0x9d0   : > { %5385 = vmatmul.msk.f32.gmra.mxu3 %vm1289_vm6, %v8428_v47  ;;  %v2324_v47 = vadd.f32 %v8757_v25, %v8769_v19  ;;  %5300 = vmatpush.xpose.msk.msra.mxu1 %vm1289_vm6, %v2822_v56  ;;  %v2575_v62 = vmul.f32 %v9134_v15, %v8679_v23  ;;  %v2590_v29 = vsub.f32 1.0, %v2589_v13  ;;  %vm9181_vm12 = vmor %vm2635_vm10, %vm2636_vm9  ;;  %v2657_v9 = vsel %vm2654_vm11, %v2656_v27, %v2652_v48  ;;  %v11209_v25 = vld [vmem:[#allocation32_spill] sm:$0xff]  ;;  %v11213_v13 = vld [vmem:[#allocation50_spill] sm:$0xff]  ;;  %v9231_v48 = vpop.f32.mrf.mxu2 }
 0x9d1   : > { %v9147_v19 = vpop.permute.xlu0 %5686  ;;  %v2638_v28 = vsel %vm9181_vm12, %v9039_v12, %v2634_v39  ;;  %v2605_v2 = vmul.f32 %v9113_v31, %v2604_v42  ;;  %v2620_v21 = vadd.f32 %v9085_v26, %v2619_v41  ;;  %vm2622_vm13 = vweird.f32 %v9085_v26  ;;  %v11214_v39 = vld [vmem:[#allocation64_spill] sm:$0xff] }
 0x9d2   : > { %v5689_v4 = vunpack.i.h.bf16 %v9147_v19  ;;  %v2821_v40 = vmul.f32 %v2685_v34, %v2324_v47  ;;  %v2642_v36 = vor.u32 1.1754944e-38, %v2641_v37  ;;  %v2315_v3 = vadd.f32 %v11206_v24, %v11205_v17  ;;  %v11220_v24 = vld [vmem:[#allocation54_spill] sm:$0xff] }
 0x9d3   : > { %vm2640_vm14 = vcmp.eq.f32.partialorder %v2639_v7, 8.507059e+37  ;;  %v2627_v12 = vand.u32 2147483648, %v8912_v53  ;;  %v2819_v56 = vmul.f32 %v2657_v9, %v2318_v35  ;;  %vm2621_vm15 = vweird.f32 %v8912_v53  ;;  %v11216_v35 = vld [vmem:[#allocation53_spill] sm:$0xff]  ;;  %v11219_v9 = vld [vmem:[#allocation67_spill] sm:$0xff] }
 0x9d4   : > { %5301 = vmatpush.xpose.msk.msra.mxu1 %vm1289_vm6, %v2821_v40  ;;  %4203 = vmatpush.msra.mxu0 %v5689_v4  ;;  %v2625_v5 = vand.u32 2147483647, %v8912_v53  ;;  %v2591_v1 = vmul.f32 %v8935_v63, %v2590_v29  ;;  %v2643_v34 = vsel %vm2640_vm14, %v2642_v36, %v2638_v28  ;;  %vm9207_vm0 = vmor %vm2621_vm15, %vm2622_vm13  ;;  %v5699_v47 = vunpack.i.h.bf16 %v9196_v38  ;;  %v11212_v40 = vld [vmem:[#allocation26_spill] sm:$0xff] }
 0x9d5   : > { %v2606_v51 = vadd.f32 %v9113_v31, %v2605_v2  ;;  %vm2608_vm1 = vweird.f32 %v9113_v31  ;;  %v2624_v53 = vsel %vm9207_vm0, %v9085_v26, %v2620_v21  ;;  %v2576_v32 = vsub.f32 1.0, %v2575_v62 }
 0x9d6   : > { %v2613_v10 = vand.u32 2147483648, %v8881_v0  ;;  %v2628_v52 = vor.u32 1.1754944e-38, %v2627_v12  ;;  %v2818_v60 = vmul.f32 %v2643_v34, %v2315_v3  ;;  %vm2607_vm2 = vweird.f32 %v8881_v0  ;;  %v11221_v3 = vld [vmem:[#allocation43_spill] sm:$0xff] }
 0x9d7   : > { %5348 = vmatmul.msk.f32.gmra.mxu2 %vm1289_vm6, %v11204_v50  ;;  %v2611_v44 = vand.u32 2147483647, %v8881_v0  ;;  %vm2626_vm3 = vcmp.eq.f32.partialorder %v2625_v5, 8.507059e+37  ;;  %vm9223_vm4 = vmor %vm2607_vm2, %vm2608_vm1  ;;  %v2592_v26 = vadd.f32 %v8935_v63, %v2591_v1  ;;  %vm2594_vm5 = vweird.f32 %v8935_v63  ;;  %v9271_v1 = vpop.f32.mrf.mxu3 }
 0x9d8   : > { %5386 = vmatmul.msk.f32.gmra.mxu3 %vm1289_vm6, %v11199_v11  ;;  %5302 = vmatpush.xpose.msk.msra.mxu1 %vm1289_vm6, %v2820_v43  ;;  %v2629_v4 = vsel %vm2626_vm3, %v2628_v52, %v2624_v53  ;;  %v2312_v22 = vadd.f32 %v11213_v13, %v11212_v40  ;;  %v2610_v0 = vsel %vm9223_vm4, %v9113_v31, %v2606_v51  ;;  %vm2593_vm7 = vweird.f32 %v11198_v57  ;;  %v11224_v53 = vld [vmem:[#allocation61_spill] sm:$0xff]  ;;  %v11230_v40 = vld [vmem:[#allocation66_spill] sm:$0xff] }
 0x9d9   : > { %v9199_v59 = vpop.permute.xlu0 %5691  ;;  %v2577_v42 = vmul.f32 %v9134_v15, %v2576_v32  ;;  %v2599_v41 = vand.u32 2147483648, %v11198_v57  ;;  %v2614_v27 = vor.u32 1.1754944e-38, %v2613_v10  ;;  %v2597_v7 = vand.u32 2147483647, %v11198_v57  ;;  %vm2595_vm9 = vmor %vm2593_vm7, %vm2594_vm5  ;;  %v11217_v57 = vld [vmem:[#allocation55_spill] sm:$0xff]  ;;  %11222 = vst [vmem:[#allocation42_spill] sm:$0xff] %v9271_v1 }
 0x9da   : > { %v5694_v46 = vunpack.i.h.bf16 %v9199_v59  ;;  %vm2612_vm8 = vcmp.eq.f32.partialorder %v2611_v44, 8.507059e+37  ;;  %v2817_v11 = vmul.f32 %v2629_v4, %v2312_v22  ;;  %v2596_v31 = vsel %vm2595_vm9, %v8935_v63, %v2592_v26  ;;  %v11225_v10 = vld [vmem:[#allocation49_spill] sm:$0xff]  ;;  %v11229_v26 = vld [vmem:[#allocation30_spill] sm:$0xff] }
 0x9db   : > { %v2615_v33 = vsel %vm2612_vm8, %v2614_v27, %v2610_v0  ;;  %v2309_v43 = vadd.f32 %v11216_v35, %v11215_v54  ;;  %vm2580_vm10 = vweird.f32 %v9134_v15  ;;  %v2600_v62 = vor.u32 1.1754944e-38, %v2599_v41  ;;  %v11231_v22 = vld [vmem:[#allocation45_spill] sm:$0xff]  ;;  %v11232_v41 = vld [vmem:[#allocation52_spill] sm:$0xff] }
 0x9dc   : > { %5303 = vmatpush.xpose.msk.msra.mxu1 %vm1289_vm6, %v2819_v56  ;;  %4204 = vmatpush.msra.mxu0 %v5694_v46  ;;  %v2578_v29 = vadd.f32 %v9134_v15, %v2577_v42  ;;  %v2306_v28 = vadd.f32 %v11219_v9, %v11218_v30  ;;  %vm2598_vm11 = vcmp.eq.f32.partialorder %v2597_v7, 8.507059e+37  ;;  %v2585_v63 = vand.u32 2147483648, %v8679_v23  ;;  %v9269_v46 = vpop.f32.mrf.mxu2  ;;  %v11236_v54 = vld [vmem:[#allocation65_spill] sm:$0xff] }
 0x9dd   : > { %v2816_v2 = vmul.f32 %v2615_v33, %v2309_v43  ;;  %v2601_v21 = vsel %vm2598_vm11, %v2600_v62, %v2596_v31  ;;  %vm2579_vm12 = vweird.f32 %v8679_v23  ;;  %v2583_v36 = vand.u32 2147483647, %v8679_v23  ;;  %v11235_v31 = vld [vmem:[#allocation56_spill] sm:$0xff]  ;;  %v11238_v9 = vld [vmem:[#allocation33_spill] sm:$0xff] }
 0x9de   : > { %4205 = vmatpush.msra.mxu0 %v5699_v47  ;;  %vm2581_vm13 = vmor %vm2579_vm12, %vm2580_vm10  ;;  %v2303_v12 = vadd.f32 %v11221_v3, %v11220_v24  ;;  %v2815_v5 = vmul.f32 %v2601_v21, %v2306_v28  ;;  %v2586_v34 = vor.u32 1.1754944e-38, %v2585_v63  ;;  %v11223_v47 = vld [vmem:[#allocation25_spill] sm:$0xff]  ;;  %v5638_v32 = vunpack.i.l.bf16 %v11224_v53 }
 0x9df   : > { %5349 = vmatmul.msk.f32.gmra.mxu2 %vm1289_vm6, %v11214_v39  ;;  %v2582_v56 = vsel %vm2581_vm13, %v9134_v15, %v2578_v29  ;;  %vm2584_vm14 = vcmp.eq.f32.partialorder %v2583_v36, 8.507059e+37  ;;  %v5643_v52 = vunpack.i.l.bf16 %v11225_v10  ;;  %v9289_v4 = vpop.f32.mrf.mxu3  ;;  %v5653_v13 = vunpack.i.l.bf16 %v11230_v40 }
 0x9e0   : > { %5387 = vmatmul.msk.f32.gmra.mxu3 %vm1289_vm6, %v11209_v25  ;;  %5304 = vmatpush.xpose.msk.msra.mxu1 %vm1289_vm6, %v2818_v60  ;;  %v2587_v18 = vsel %vm2584_vm14, %v2586_v34, %v2582_v56  ;;  %v11226_v25 = vld [vmem:[#allocation29_spill] sm:$0xff]  ;;  %v11227_v60 = vld [vmem:[#allocation19_spill] sm:$0xff]  ;;  %11228 = vst [vmem:[#allocation41_spill] sm:$0xff] %v9289_v4  ;;  %v5658_v0 = vunpack.i.l.bf16 %v11231_v22  ;;  %v5663_v27 = vunpack.i.l.bf16 %v11232_v41  ;;  %v5673_v35 = vunpack.i.l.bf16 %v11236_v54 }
 0x9e1   : > { %v9242_v37 = vpop.permute.xlu0 %5701  ;;  %v2814_v51 = vmul.f32 %v2587_v18, %v2303_v12  ;;  %v5648_v44 = vunpack.i.l.bf16 %v11227_v60  ;;  %v5683_v30 = vunpack.i.l.bf16 %v9052_v55  ;;  %v5688_v28 = vunpack.i.l.bf16 %v9147_v19  ;;  %v11240_v19 = vld [vmem:[#allocation35_spill] sm:$0xff] }
 0x9e2   : > { %v5704_v20 = vunpack.i.h.bf16 %v9242_v37  ;;  %v5703_v36 = vunpack.i.l.bf16 %v9242_v37 }
 0x9e4   : > { %5305 = vmatpush.xpose.msk.msra.mxu1 %vm1289_vm6, %v2817_v11  ;;  %4206 = vmatpush.msra.mxu0 %v5704_v20  ;;  %v9287_v6 = vpop.f32.mrf.mxu2  ;;  %v11233_v20 = vld [vmem:[#allocation31_spill] sm:$0xff]  ;;  %v11234_v11 = vld [vmem:[#allocation44_spill] sm:$0xff] }
 0x9e5   : > { %v5668_v33 = vunpack.i.l.bf16 %v11234_v11 }
 0x9e7   : > { %5350 = vmatmul.msk.f32.gmra.mxu2 %vm1289_vm6, %v8999_v49  ;;  %v9306_v62 = vpop.f32.mrf.mxu3 }
 0x9e8   : > { %5388 = vmatmul.msk.f32.gmra.mxu3 %vm1289_vm6, %v11217_v57  ;;  %5306 = vmatpush.xpose.msk.msra.mxu1 %vm1289_vm6, %v2816_v2  ;;  %11237 = vst [vmem:[#allocation28_spill] sm:$0xff] %v9306_v62  ;;  %v5678_v57 = vunpack.i.l.bf16 %v9093_v61  ;;  %v5693_v2 = vunpack.i.l.bf16 %v9199_v59  ;;  %v5698_v61 = vunpack.i.l.bf16 %v9196_v38 }
 0x9e9   : > { %v9264_v17 = vpop.permute.xlu0 %5706 }
 0x9ea   : > { %v5709_v23 = vunpack.i.h.bf16 %v9264_v17 }
 0x9ec   : > { %5307 = vmatpush.xpose.msk.msra.mxu1 %vm1289_vm6, %v2815_v5  ;;  %4207 = vmatpush.msra.mxu0 %v5709_v23  ;;  %v9304_v43 = vpop.f32.mrf.mxu2 }
 0x9ef   : > { %5351 = vmatmul.msk.f32.gmra.mxu2 %vm1289_vm6, %v9124_v16  ;;  %v9320_v55 = vpop.f32.mrf.mxu3 }
 0x9f0   : > { %5389 = vmatmul.msk.f32.gmra.mxu3 %vm1289_vm6, %v11223_v47  ;;  %5308 = vmatpush.xpose.msk.msra.mxu1 %vm1289_vm6, %v2814_v51  ;;  %11239 = vst [vmem:[#allocation40_spill] sm:$0xff] %v9320_v55 }
 0x9f1   : > { %v9281_v15 = vpop.permute.xlu0 %3164 }
 0x9f3   : > { %5309 = vmatmul.msk.f32.vlgmr.msra.gmra.mxu1 %vm1289_vm6, %v11226_v25 }
 0x9f4   : > { %4080 = vmatpush.msrb.mxu1 %v5638_v32  ;;  %v9318_v63 = vpop.f32.mrf.mxu2  ;;  %v6133_v32 = vld [vmem:[#allocation2 + $0xe8] sm:$0xff] }
 0x9f6   : > { %4081 = vmatpush.msrb.mxu1 %v5643_v52  ;;  %v6134_v52 = vld [vmem:[#allocation2 + $0xf0] sm:$0xff] }
 0x9f7   : > { %5352 = vmatmul.msk.f32.gmra.mxu2 %vm1289_vm6, %v9281_v15 }
 0x9f8   : > { %5390 = vmatmul.msk.f32.gmra.mxu3 %vm1289_vm6, %v11229_v26  ;;  %4082 = vmatpush.msrb.mxu1 %v5648_v44  ;;  %v6135_v26 = vld [vmem:[#allocation2 + $0xf8] sm:$0xff] }
 0x9f9   : > { %v5712_v42 = vpop.permute.xlu0 %5711 }
 0x9fa   : > { %4083 = vmatpush.msrb.mxu1 %v5653_v13  ;;  %v5714_v7 = vunpack.i.h.bf16 %v5712_v42  ;;  %v5713_v38 = vunpack.i.l.bf16 %v5712_v42 }
 0x9fb   : > { %5310 = vmatmul.msk.f32.gmra.mxu1 %vm1289_vm6, %v11233_v20 }
 0x9fc   : > { %4084 = vmatpush.msrb.mxu1 %v5658_v0  ;;  %4208 = vmatpush.msra.mxu0 %v5714_v7  ;;  %v9333_v24 = vpop.f32.mrf.mxu2 }
 0x9fe   : > { %4085 = vmatpush.msrb.mxu1 %v5663_v27 }
 0xa00   : > { %5391 = vmatmul.msk.f32.gmra.mxu3 %vm1289_vm6, %v11235_v31  ;;  %4086 = vmatpush.msrb.mxu1 %v5668_v33  ;;  %v6136_v31 = vld [vmem:[#allocation2 + $0xe0] sm:$0xff] }
 0xa01   : > { %v3167_v29 = vpop.permute.xlu0 %3166 }
 0xa02   : > { %4087 = vmatpush.msrb.mxu1 %v5673_v35  ;;  %5353 = vmatmul.msk.f32.gmra.mxu2 %vm1289_vm6, %v3167_v29 }
 0xa03   : > { %5311 = vmatmul.msk.f32.gmra.mxu1 %vm1289_vm6, %v11238_v9 }
 0xa04   : > { %4088 = vmatpush.msrb.mxu1 %v5678_v57 }
 0xa06   : > { %4089 = vmatpush.msrb.mxu1 %v5683_v30 }
 0xa08   : > { %5392 = vmatmul.msk.f32.gmra.mxu3 %vm1289_vm6, %v8672_v58  ;;  %4090 = vmatpush.msrb.mxu1 %v5688_v28  ;;  %v5708_v58 = vunpack.i.l.bf16 %v9264_v17 }
 0xa09   : > { %v3169_v21 = vpop.permute.xlu0 %3168 }
 0xa0a   : > { %4091 = vmatpush.msrb.mxu1 %v5693_v2  ;;  %5354 = vmatmul.msk.f32.gmra.mxu2 %vm1289_vm6, %v3169_v21 }
 0xa0b   : > { %5312 = vmatmul.msk.f32.gmra.mxu1 %vm1289_vm6, %v11240_v19 }
 0xa0c   : > { %4092 = vmatpush.msrb.mxu1 %v5698_v61 }
 0xa0e   : > { %4093 = vmatpush.msrb.mxu1 %v5703_v36 }
 0xa10   : > { %5393 = vmatmul.msk.f32.gmra.mxu3 %vm1289_vm6, %v8681_v14  ;;  %4094 = vmatpush.msrb.mxu1 %v5708_v58  ;;  %v9341_v14 = vpop.f32.mrf.mxu2 }
 0xa12   : > { %4095 = vmatpush.msrb.mxu1 %v5713_v38 }
 0xa13   : > { %v9329_v59 = vpop.f32.mrf.mxu3 }
 0xa14   : > { %v3600_v37 = vmax.f32 %v9231_v48, %v9329_v59 }
 0xa16   : > { %3601 = vmax.xlane.f32.xlu1 %v3600_v37 }
 0xa18   : > { %5394 = vmatmul.msk.f32.gmra.mxu3 %vm1289_vm6, %v8467_v45  ;;  %v9349_v56 = vpop.f32.mrf.mxu2  ;;  %v6131_v45 = vld [vmem:[#allocation2 + $0xd8] sm:$0xff] }
 0xa1b   : > { %v9337_v3 = vpop.f32.mrf.mxu3 }
 0xa1c   : > { %v3603_v17 = vmax.f32 %v9269_v46, %v9337_v3 }
 0xa1e   : > { %3604 = vmax.xlane.f32.xlu2 %v3603_v17 }
 0xa20   : > { %5395 = vmatmul.msk.f32.gmra.mxu3 %vm1289_vm6, %v8700_v8  ;;  %v9356_v23 = vpop.f32.mrf.mxu2  ;;  %v6132_v8 = vld [vmem:[#allocation2 + $0xd0] sm:$0xff] }
 0xa23   : > { %v9345_v12 = vpop.f32.mrf.mxu3 }
 0xa28   : > { %5396 = vmatmul.msk.f32.gmra.mxu3 %vm1289_vm6, %v11204_v50  ;;  %v9367_v47 = vpop.f32.mrf.mxu2 }
 0xa2b   : > { %v9351_v5 = vpop.f32.mrf.mxu3 }
 0xa2c   : > { %v3609_v44 = vmax.f32 %v9304_v43, %v9351_v5 }
 0xa2f   : > { %3172 = vrot.lane.b32.xlu1 %v6131_v45, %s6352_s29 }
 0xa30   : > { %5397 = vmatmul.msk.f32.gmra.mxu3 %vm1289_vm6, %v11214_v39  ;;  %v9373_v51 = vpop.f32.mrf.mxu2 }
 0xa33   : > { %v9358_v34 = vpop.f32.mrf.mxu3 }
 0xa34   : > { %v3612_v0 = vmax.f32 %v9318_v63, %v9358_v34 }
 0xa36   : > { %3170 = vrot.lane.b32.xlu2 %v6132_v8, %s6352_s29 }
 0xa38   : > { %5398 = vmatmul.msk.f32.gmra.mxu3 %vm1289_vm6, %v8999_v49  ;;  %v9380_v49 = vpop.f32.mrf.mxu2 }
 0xa3b   : > { %v9363_v50 = vpop.f32.mrf.mxu3 }
 0xa3c   : > { %v3615_v18 = vmax.f32 %v9333_v24, %v9363_v50 }
 0xa3e   : > { %3616 = vmax.xlane.f32.xlu0 %v3615_v18 }
 0xa40   : > { %5399 = vmatmul.msk.f32.gmra.mxu3 %vm1289_vm6, %v9124_v16  ;;  %v3606_v16 = vmax.f32 %v9287_v6, %v9345_v12 }
 0xa43   : > { %v9371_v39 = vpop.f32.mrf.mxu3 }
 0xa44   : > { %v3618_v60 = vmax.f32 %v9341_v14, %v9371_v39 }
 0xa48   : > { %5400 = vmatmul.msk.f32.gmra.mxu3 %vm1289_vm6, %v9281_v15  ;;  %v9389_v15 = vpop.f32.mrf.mxu2 }
 0xa4b   : > { %v9377_v53 = vpop.f32.mrf.mxu3 }
 0xa50   : > { %5401 = vmatmul.msk.f32.gmra.mxu3 %vm1289_vm6, %v3167_v29  ;;  %v9400_v13 = vpop.f32.mrf.mxu2 }
 0xa52   : > { %3176 = vrot.lane.b32.xlu0 %v6133_v32, %s6352_s29 }
 0xa53   : > { %v9383_v10 = vpop.f32.mrf.mxu3 }
 0xa54   : > { %v3624_v22 = vmax.f32 %v9356_v23, %v9383_v10 }
 0xa58   : > { %5402 = vmatmul.msk.f32.gmra.mxu3 %vm1289_vm6, %v3169_v21  ;;  %v9410_v27 = vpop.f32.mrf.mxu2 }
 0xa59   : > { %3607 = vmax.xlane.f32.xlu1 %v3606_v16 }
 0xa5a   : > { %3178 = vrot.lane.b32.xlu0 %v6134_v52, %s6352_s29 }
 0xa5b   : > { %v9391_v25 = vpop.f32.mrf.mxu3 }
 0xa5c   : > { %v3627_v41 = vmax.f32 %v9367_v47, %v9391_v25 }
 0xa5f   : > { %3619 = vmax.xlane.f32.xlu2 %v3618_v60 }
 0xa60   : > { %v9416_v11 = vpop.f32.mrf.mxu2 }
 0xa61   : > { %3610 = vmax.xlane.f32.xlu1 %v3609_v44 }
 0xa62   : > { %3180 = vrot.lane.b32.xlu0 %v6135_v26, %s6352_s29 }
 0xa63   : > { %v9398_v40 = vpop.f32.mrf.mxu3 }
 0xa67   : > { %3625 = vmax.xlane.f32.xlu2 %v3624_v22 }
 0xa68   : > { %v9421_v54 = vpop.f32.mrf.mxu2 }
 0xa69   : > { %3613 = vmax.xlane.f32.xlu1 %v3612_v0 }
 0xa6b   : > { %v9406_v42 = vpop.f32.mrf.mxu3 }
 0xa6c   : > { %v3633_v20 = vmax.f32 %v9380_v49, %v9406_v42 }
 0xa6f   : > { %3628 = vmax.xlane.f32.xlu2 %v3627_v41  ;;  %v3621_v41 = vmax.f32 %v9349_v56, %v9377_v53 }
 0xa70   : > { %v9433_v36 = vpop.f32.mrf.mxu2 }
 0xa73   : > { %v9412_v7 = vpop.f32.mrf.mxu3 }
 0xa74   : > { %v3636_v30 = vmax.f32 %v9389_v15, %v9412_v7 }
 0xa77   : > { %3634 = vmax.xlane.f32.xlu2 %v3633_v20 }
 0xa78   : > { %v9443_v32 = vpop.f32.mrf.mxu2 }
 0xa7b   : > { %v9418_v33 = vpop.f32.mrf.mxu3 }
 0xa80   : > { %v9451_v44 = vpop.f32.mrf.mxu2 }
 0xa82   : > { %3174 = vrot.lane.b32.xlu1 %v6136_v31, %s6352_s29 }
 0xa83   : > { %v9423_v35 = vpop.f32.mrf.mxu3 }
 0xa84   : > { %v3642_v57 = vmax.f32 %v9410_v27, %v9423_v35 }
 0xa86   : > { %3643 = vmax.xlane.f32.xlu2 %v3642_v57 }
 0xa88   : > { %v9461_v20 = vpop.f32.mrf.mxu2 }
 0xa89   : > { %v3602_v29 = vpop.xlane.xlu1 %3601 }
 0xa8a   : > { %v3696_v9 = vsub.f32 %v9231_v48, %v3602_v29  ;;  %v3697_v28 = vsub.f32 %v9329_v59, %v3602_v29  ;;  %v3630_v29 = vmax.f32 %v9373_v51, %v9398_v40 }
 0xa8b   : > { %v9431_v2 = vpop.f32.mrf.mxu3 }
 0xa8c   : > { %v3760_v61 = vmul.f32 1.442695, %v3696_v9  ;;  %v3762_v21 = vmul.f32 1.442695, %v3697_v28  ;;  %3637 = vmax.xlane.f32.xlu0 %v3636_v30 }
 0xa8e   : > { %5915 = vpow2.f32 %v3760_v61 }
 0xa8f   : > { %5917 = vpow2.f32 %v3762_v21 }
 0xa91   : > { %v3605_v19 = vpop.xlane.xlu2 %3604 }
 0xa92   : > { %v3698_v58 = vsub.f32 %v9269_v46, %v3605_v19  ;;  %v3699_v38 = vsub.f32 %v9337_v3, %v3605_v19 }
 0xa93   : > { %v9437_v37 = vpop.f32.mrf.mxu3 }
 0xa94   : > { %v5916_v17 = vpop.eup %5915  ;;  %v3764_v48 = vmul.f32 1.442695, %v3698_v58  ;;  %v3766_v45 = vmul.f32 1.442695, %v3699_v38  ;;  %v3648_v59 = vmax.f32 %v9421_v54, %v9437_v37  ;;  %v9473_v58 = vpop.f32.mrf.mxu2  ;;  %v3639_v38 = vmax.f32 %v9400_v13, %v9418_v33 }
 0xa95   : > { %v5918_v8 = vpop.eup %5917  ;;  %4096 = vmatmul.f32.vlgmr.msrb.gmra.mxu1 %v5916_v17 }
 0xa96   : > { %5919 = vpow2.f32 %v3764_v48  ;;  %4209 = vmatmul.f32.vlgmr.msra.gmra.mxu0 %v5918_v8  ;;  %3649 = vmax.xlane.f32.xlu2 %v3648_v59  ;;  %v9441_v18 = vadd.f32 %v5918_v8, %v5916_v17  ;;  %v3645_v59 = vmax.f32 %v9416_v11, %v9431_v2 }
 0xa97   : > { %5921 = vpow2.f32 %v3766_v45 }
 0xa98   : > { %11241 = vst [vmem:[#allocation39_spill] sm:$0xff] %v9441_v18 }
 0xa99   : > { %v3171_v46 = vpop.permute.xlu2 %3170 }
 0xa9a   : > { %5355 = vmatmul.msk.f32.gmra.mxu2 %vm1289_vm6, %v3171_v46  ;;  %5403 = vmatmul.msk.f32.gmra.mxu3 %vm1289_vm6, %v3171_v46 }
 0xa9b   : > { %v9447_v3 = vpop.f32.mrf.mxu3 }
 0xa9c   : > { %v5920_v16 = vpop.eup %5919  ;;  %v9487_v45 = vpop.f32.mrf.mxu2 }
 0xa9d   : > { %v5922_v52 = vpop.eup %5921  ;;  %4099 = vmatmul.f32.gmra.mxu1 %v5920_v16 }
 0xa9e   : > { %4212 = vmatmul.f32.gmra.mxu0 %v5922_v52  ;;  %v9449_v60 = vadd.f32 %v5922_v52, %v5920_v16  ;;  %v3651_v52 = vmax.f32 %v9433_v36, %v9447_v3 }
 0xaa1   : > { %v3173_v26 = vpop.permute.xlu1 %3172 }
 0xaa2   : > { %5356 = vmatmul.msk.f32.gmra.mxu2 %vm1289_vm6, %v3173_v26  ;;  %5404 = vmatmul.msk.f32.gmra.mxu3 %vm1289_vm6, %v3173_v26 }
 0xaa3   : > { %v9455_v22 = vpop.f32.mrf.mxu3 }
 0xaa4   : > { %v3654_v0 = vmax.f32 %v9443_v32, %v9455_v22  ;;  %v9495_v16 = vpop.f32.mrf.mxu2 }
 0xaa6   : > { %3655 = vmax.xlane.f32.xlu2 %v3654_v0 }
 0xaab   : > { %v9463_v31 = vpop.f32.mrf.mxu3 }
 0xaac   : > { %3622 = vmax.xlane.f32.xlu1 %v3621_v41 }
 0xab1   : > { %v3617_v57 = vpop.xlane.xlu0 %3616 }
 0xab2   : > { %v3706_v30 = vsub.f32 %v9333_v24, %v3617_v57  ;;  %v3707_v9 = vsub.f32 %v9363_v50, %v3617_v57 }
 0xab3   : > { %v9469_v28 = vpop.f32.mrf.mxu3 }
 0xab4   : > { %v3780_v61 = vmul.f32 1.442695, %v3706_v30  ;;  %v3782_v21 = vmul.f32 1.442695, %v3707_v9  ;;  %v3660_v19 = vmax.f32 %v9461_v20, %v9469_v28  ;;  %3631 = vmax.xlane.f32.xlu1 %v3630_v29 }
 0xab6   : > { %5923 = vpow2.f32 %v3780_v61  ;;  %3661 = vmax.xlane.f32.xlu2 %v3660_v19  ;;  %v9505_v61 = vpop.f32.mrf.mxu2 }
 0xab7   : > { %5925 = vpow2.f32 %v3782_v21  ;;  %v3657_v21 = vmax.f32 %v9451_v44, %v9463_v31 }
 0xabb   : > { %v9477_v17 = vpop.f32.mrf.mxu3 }
 0xabc   : > { %v9479_v24 = vpop.eup %5923  ;;  %3640 = vmax.xlane.f32.xlu1 %v3639_v38 }
 0xabd   : > { %v9481_v50 = vpop.eup %5925 }
 0xabe   : > { %v9485_v48 = vadd.f32 %v9481_v50, %v9479_v24 }
 0xac3   : > { %v9491_v8 = vpop.f32.mrf.mxu3 }
 0xac4   : > { %v3666_v46 = vmax.f32 %v9487_v45, %v9491_v8  ;;  %3646 = vmax.xlane.f32.xlu1 %v3645_v59 }
 0xac6   : > { %3667 = vmax.xlane.f32.xlu2 %v3666_v46 }
 0xacb   : > { %v9499_v26 = vpop.f32.mrf.mxu3 }
 0xacc   : > { %v3669_v0 = vmax.f32 %v9495_v16, %v9499_v26  ;;  %3652 = vmax.xlane.f32.xlu1 %v3651_v52  ;;  %v3608_v41 = vpop.xlane.xlu1 %3607 }
 0xacd   : > { %v3700_v57 = vsub.f32 %v9287_v6, %v3608_v41  ;;  %v3701_v29 = vsub.f32 %v9345_v12, %v3608_v41 }
 0xace   : > { %3670 = vmax.xlane.f32.xlu0 %v3669_v0 }
 0xacf   : > { %v3768_v30 = vmul.f32 1.442695, %v3700_v57  ;;  %v3770_v9 = vmul.f32 1.442695, %v3701_v29 }
 0xad1   : > { %5927 = vpow2.f32 %v3768_v30 }
 0xad2   : > { %5929 = vpow2.f32 %v3770_v9  ;;  %v3620_v19 = vpop.xlane.xlu2 %3619 }
 0xad3   : > { %v3708_v38 = vsub.f32 %v9341_v14, %v3620_v19  ;;  %v3709_v59 = vsub.f32 %v9371_v39, %v3620_v19  ;;  %v9511_v46 = vpop.f32.mrf.mxu3  ;;  %v3663_v39 = vmax.f32 %v9473_v58, %v9477_v17 }
 0xad4   : > { %3658 = vmax.xlane.f32.xlu1 %v3657_v21  ;;  %v3611_v6 = vpop.xlane.xlu1 %3610  ;;  %v9519_v21 = vpop.f32.mrf.mxu2 }
 0xad5   : > { %v3784_v12 = vmul.f32 1.442695, %v3708_v38  ;;  %v3786_v52 = vmul.f32 1.442695, %v3709_v59  ;;  %v3702_v0 = vsub.f32 %v9304_v43, %v3611_v6  ;;  %v3703_v41 = vsub.f32 %v9351_v5, %v3611_v6 }
 0xad7   : > { %v5928_v57 = vpop.eup %5927  ;;  %5931 = vpow2.f32 %v3784_v12  ;;  %v3772_v29 = vmul.f32 1.442695, %v3702_v0  ;;  %v3774_v30 = vmul.f32 1.442695, %v3703_v41 }
 0xad8   : > { %v5930_v9 = vpop.eup %5929  ;;  %5933 = vpow2.f32 %v3786_v52  ;;  %4102 = vmatmul.f32.gmra.mxu1 %v5928_v57 }
 0xad9   : > { %5935 = vpow2.f32 %v3772_v29  ;;  %4215 = vmatmul.f32.gmra.mxu0 %v5930_v9  ;;  %v9515_v14 = vadd.f32 %v5930_v9, %v5928_v57  ;;  %v3672_v9 = vmax.f32 %v9505_v61, %v9511_v46 }
 0xada   : > { %5937 = vpow2.f32 %v3774_v30 }
 0xadb   : > { %v9521_v43 = vpop.f32.mrf.mxu3 }
 0xadc   : > { %v3675_v5 = vmax.f32 %v9519_v21, %v9521_v43  ;;  %3664 = vmax.xlane.f32.xlu1 %v3663_v39  ;;  %v3614_v19 = vpop.xlane.xlu1 %3613 }
 0xadd   : > { %v5932_v38 = vpop.eup %5931  ;;  %v3704_v59 = vsub.f32 %v9318_v63, %v3614_v19  ;;  %v3705_v6 = vsub.f32 %v9358_v34, %v3614_v19  ;;  %v3177_v19 = vpop.permute.xlu0 %3176 }
 0xade   : > { %v5934_v12 = vpop.eup %5933  ;;  %3676 = vmax.xlane.f32.xlu2 %v3675_v5 }
 0xadf   : > { %v5936_v52 = vpop.eup %5935  ;;  %v3776_v0 = vmul.f32 1.442695, %v3704_v59  ;;  %v3778_v41 = vmul.f32 1.442695, %v3705_v6  ;;  %v9527_v57 = vadd.f32 %v5934_v12, %v5932_v38 }
 0xae0   : > { %v5938_v29 = vpop.eup %5937  ;;  %4105 = vmatmul.f32.gmra.mxu1 %v5936_v52 }
 0xae1   : > { %5939 = vpow2.f32 %v3776_v0  ;;  %4218 = vmatmul.f32.gmra.mxu0 %v5938_v29  ;;  %v9529_v30 = vadd.f32 %v5938_v29, %v5936_v52 }
 0xae2   : > { %5941 = vpow2.f32 %v3778_v41 }
 0xae4   : > { %3673 = vmax.xlane.f32.xlu1 %v3672_v9 }
 0xae5   : > { %v3179_v59 = vpop.permute.xlu0 %3178 }
 0xae7   : > { %v5940_v63 = vpop.eup %5939 }
 0xae8   : > { %v5942_v34 = vpop.eup %5941  ;;  %4108 = vmatmul.f32.gmra.mxu1 %v5940_v63 }
 0xae9   : > { %4221 = vmatmul.f32.gmra.mxu0 %v5942_v34  ;;  %v9533_v39 = vadd.f32 %v5942_v34, %v5940_v63 }
 0xaf0   : > { %4111 = vmatmul.f32.gmra.mxu1 %v9479_v24  ;;  %v3181_v24 = vpop.permute.xlu0 %3180 }
 0xaf1   : > { %4224 = vmatmul.f32.gmra.mxu0 %v9481_v50 }
 0xaf4   : > { %v3175_v5 = vpop.permute.xlu1 %3174 }
 0xaf5   : > { %5357 = vmatmul.msk.f32.gmra.mxu2 %vm1289_vm6, %v3175_v5  ;;  %5405 = vmatmul.msk.f32.gmra.mxu3 %vm1289_vm6, %v3175_v5 }
 0xaf8   : > { %4114 = vmatmul.f32.gmra.mxu1 %v5932_v38 }
 0xaf9   : > { %4227 = vmatmul.f32.gmra.mxu0 %v5934_v12  ;;  %v3626_v12 = vpop.xlane.xlu2 %3625 }
 0xafa   : > { %v3712_v29 = vsub.f32 %v9356_v23, %v3626_v12  ;;  %v3713_v34 = vsub.f32 %v9383_v10, %v3626_v12 }
 0xafd   : > { %5358 = vmatmul.msk.f32.gmra.mxu2 %vm1289_vm6, %v3177_v19  ;;  %5406 = vmatmul.msk.f32.gmra.mxu3 %vm1289_vm6, %v3177_v19 }
 0xb05   : > { %5359 = vmatmul.msk.f32.gmra.mxu2 %vm1289_vm6, %v3179_v59  ;;  %5407 = vmatmul.msk.f32.gmra.mxu3 %vm1289_vm6, %v3179_v59  ;;  %v3792_v59 = vmul.f32 1.442695, %v3712_v29 }
 0xb0d   : > { %5360 = vmatmul.msk.f32.gmra.mxu2 %vm1289_vm6, %v3181_v24  ;;  %5408 = vmatmul.msk.f32.gmra.mxu3 %vm1289_vm6, %v3181_v24 }
 0xb1d   : > { %v9545_v50 = vpop.f32.mrf.mxu2  ;;  %v9547_v6 = vpop.f32.mrf.mxu3 }
 0xb1e   : > { %v3678_v38 = vmax.f32 %v9545_v50, %v9547_v6 }
 0xb1f   : > { %v3623_v52 = vpop.xlane.xlu1 %3622 }
 0xb20   : > { %v3710_v0 = vsub.f32 %v9349_v56, %v3623_v52  ;;  %v3711_v41 = vsub.f32 %v9377_v53, %v3623_v52  ;;  %3679 = vmax.xlane.f32.xlu0 %v3678_v38  ;;  %v3794_v56 = vmul.f32 1.442695, %v3713_v34  ;;  %v3629_v38 = vpop.xlane.xlu2 %3628 }
 0xb22   : > { %v3788_v9 = vmul.f32 1.442695, %v3710_v0  ;;  %v3790_v63 = vmul.f32 1.442695, %v3711_v41  ;;  %v3714_v41 = vsub.f32 %v9367_v47, %v3629_v38 }
 0xb24   : > { %5943 = vpow2.f32 %v3788_v9  ;;  %v3715_v9 = vsub.f32 %v9391_v25, %v3629_v38 }
 0xb25   : > { %5945 = vpow2.f32 %v3790_v63  ;;  %v9555_v5 = vpop.f32.mrf.mxu2  ;;  %v9557_v19 = vpop.f32.mrf.mxu3 }
 0xb26   : > { %v3681_v24 = vmax.f32 %v9555_v5, %v9557_v19  ;;  %5947 = vpow2.f32 %v3792_v59  ;;  %v3798_v34 = vmul.f32 1.442695, %v3715_v9 }
 0xb27   : > { %v3632_v55 = vpop.xlane.xlu1 %3631  ;;  %5949 = vpow2.f32 %v3794_v56 }
 0xb28   : > { %v3716_v53 = vsub.f32 %v9373_v51, %v3632_v55  ;;  %v3717_v23 = vsub.f32 %v9398_v40, %v3632_v55  ;;  %3682 = vmax.xlane.f32.xlu1 %v3681_v24  ;;  %v3796_v40 = vmul.f32 1.442695, %v3714_v41  ;;  %v3635_v56 = vpop.xlane.xlu2 %3634  ;;  %v3638_v41 = vpop.xlane.xlu0 %3637 }
 0xb2a   : > { %v5944_v52 = vpop.eup %5943  ;;  %v3800_v10 = vmul.f32 1.442695, %v3716_v53  ;;  %v3802_v12 = vmul.f32 1.442695, %v3717_v23  ;;  %v3718_v23 = vsub.f32 %v9380_v49, %v3635_v56  ;;  %v3720_v49 = vsub.f32 %v9389_v15, %v3638_v41 }
 0xb2b   : > { %v5946_v0 = vpop.eup %5945  ;;  %4117 = vmatmul.f32.gmra.mxu1 %v5944_v52 }
 0xb2c   : > { %5951 = vpow2.f32 %v3800_v10  ;;  %4230 = vmatmul.f32.gmra.mxu0 %v5946_v0  ;;  %v9564_v29 = vadd.f32 %v5946_v0, %v5944_v52  ;;  %v9567_v55 = vpop.eup %5947  ;;  %v3719_v52 = vsub.f32 %v9406_v42, %v3635_v56  ;;  %v9585_v10 = vpop.f32.mrf.mxu1  ;;  %v3721_v42 = vsub.f32 %v9412_v7, %v3638_v41 }
 0xb2d   : > { %5953 = vpow2.f32 %v3802_v12  ;;  %v9569_v63 = vpop.eup %5949  ;;  %11242 = vst [vmem:[#allocation16_spill] sm:$0xff] %v9585_v10  ;;  %v3804_v12 = vmul.f32 1.442695, %v3718_v23  ;;  %v3808_v56 = vmul.f32 1.442695, %v3720_v49 }
 0xb2e   : > { %5955 = vpow2.f32 %v3796_v40  ;;  %v3806_v0 = vmul.f32 1.442695, %v3719_v52  ;;  %v3810_v23 = vmul.f32 1.442695, %v3721_v42 }
 0xb2f   : > { %v3641_v51 = vpop.xlane.xlu1 %3640  ;;  %5957 = vpow2.f32 %v3798_v34 }
 0xb30   : > { %5959 = vpow2.f32 %v3804_v12 }
 0xb31   : > { %5961 = vpow2.f32 %v3806_v0 }
 0xb32   : > { %v5952_v59 = vpop.eup %5951 }
 0xb33   : > { %v5954_v24 = vpop.eup %5953  ;;  %4120 = vmatmul.f32.gmra.mxu1 %v9567_v55 }
 0xb34   : > { %4233 = vmatmul.f32.gmra.mxu0 %v9569_v63  ;;  %v9573_v47 = vadd.f32 %v5954_v24, %v5952_v59  ;;  %v9577_v53 = vpop.eup %5955  ;;  %v9597_v15 = vpop.f32.mrf.mxu1 }
 0xb35   : > { %v9580_v38 = vpop.eup %5957  ;;  %11243 = vst [vmem:[#allocation68_spill] sm:$0xff] %v9597_v15 }
 0xb36   : > { %v9591_v1 = vpop.eup %5959 }
 0xb37   : > { %v9575_v25 = vpop.xlane.xlu1 %3646  ;;  %v9595_v12 = vpop.eup %5961 }
 0xb3b   : > { %4123 = vmatmul.f32.gmra.mxu1 %v9577_v53 }
 0xb3c   : > { %4236 = vmatmul.f32.gmra.mxu0 %v9580_v38  ;;  %v9619_v42 = vpop.f32.mrf.mxu1 }
 0xb3d   : > { %11244 = vst [vmem:[#allocation21_spill] sm:$0xff] %v9619_v42 }
 0xb3f   : > { %v3653_v9 = vpop.xlane.xlu1 %3652 }
 0xb40   : > { %v3730_v40 = vsub.f32 %v9433_v36, %v3653_v9  ;;  %v3731_v34 = vsub.f32 %v9447_v3, %v3653_v9 }
 0xb42   : > { %v3828_v62 = vmul.f32 1.442695, %v3730_v40  ;;  %v3830_v4 = vmul.f32 1.442695, %v3731_v34  ;;  %v3644_v40 = vpop.xlane.xlu2 %3643 }
 0xb43   : > { %4126 = vmatmul.f32.gmra.mxu1 %v5952_v59 }
 0xb44   : > { %5963 = vpow2.f32 %v3828_v62  ;;  %4239 = vmatmul.f32.gmra.mxu0 %v5954_v24 }
 0xb45   : > { %5965 = vpow2.f32 %v3830_v4  ;;  %v3722_v4 = vsub.f32 %v9400_v13, %v3641_v51 }
 0xb46   : > { %5967 = vpow2.f32 %v3808_v56  ;;  %v3724_v56 = vsub.f32 %v9410_v27, %v3644_v40  ;;  %v3726_v27 = vsub.f32 %v9416_v11, %v9575_v25 }
 0xb47   : > { %v3659_v52 = vpop.xlane.xlu1 %3658  ;;  %5969 = vpow2.f32 %v3810_v23  ;;  %v3812_v41 = vmul.f32 1.442695, %v3722_v4 }
 0xb48   : > { %v3734_v36 = vsub.f32 %v9451_v44, %v3659_v52  ;;  %v3735_v3 = vsub.f32 %v9463_v31, %v3659_v52  ;;  %v3723_v31 = vsub.f32 %v9418_v33, %v3641_v51  ;;  %v3725_v51 = vsub.f32 %v9423_v35, %v3644_v40 }
 0xb49   : > { %v3816_v23 = vmul.f32 1.442695, %v3724_v56  ;;  %v3727_v35 = vsub.f32 %v9431_v2, %v9575_v25  ;;  %v9651_v2 = vpop.f32.mrf.mxu0 }
 0xb4a   : > { %v9599_v0 = vpop.eup %5963  ;;  %v3836_v7 = vmul.f32 1.442695, %v3734_v36  ;;  %v3838_v62 = vmul.f32 1.442695, %v3735_v3  ;;  %v3814_v34 = vmul.f32 1.442695, %v3723_v31  ;;  %v3650_v4 = vpop.xlane.xlu2 %3649 }
 0xb4b   : > { %v9601_v59 = vpop.eup %5965  ;;  %4129 = vmatmul.f32.gmra.mxu1 %v9591_v1  ;;  %v3818_v52 = vmul.f32 1.442695, %v3725_v51  ;;  %v3822_v31 = vmul.f32 1.442695, %v3727_v35  ;;  %v3729_v11 = vsub.f32 %v9437_v37, %v3650_v4  ;;  %11248 = vst [vmem:[#allocation17_spill] sm:$0xff] %v9651_v2 }
 0xb4c   : > { %5971 = vpow2.f32 %v3836_v7  ;;  %4242 = vmatmul.f32.gmra.mxu0 %v9595_v12  ;;  %v9608_v44 = vadd.f32 %v9601_v59, %v9599_v0  ;;  %v9611_v24 = vpop.eup %5967  ;;  %v9637_v7 = vpop.f32.mrf.mxu1 }
 0xb4d   : > { %5973 = vpow2.f32 %v3838_v62  ;;  %v9613_v9 = vpop.eup %5969  ;;  %11246 = vst [vmem:[#allocation37_spill] sm:$0xff] %v9637_v7  ;;  %v3820_v62 = vmul.f32 1.442695, %v3726_v27  ;;  %v3826_v51 = vmul.f32 1.442695, %v3729_v11 }
 0xb4e   : > { %5975 = vpow2.f32 %v3812_v41 }
 0xb4f   : > { %5977 = vpow2.f32 %v3814_v34  ;;  %v3728_v34 = vsub.f32 %v9421_v54, %v3650_v4 }
 0xb50   : > { %5979 = vpow2.f32 %v3816_v23 }
 0xb51   : > { %5981 = vpow2.f32 %v3818_v52  ;;  %v3824_v25 = vmul.f32 1.442695, %v3728_v34  ;;  %v9661_v27 = vpop.f32.mrf.mxu0 }
 0xb52   : > { %v9615_v49 = vpop.eup %5971  ;;  %5983 = vpow2.f32 %v3820_v62  ;;  %v3656_v37 = vpop.xlane.xlu2 %3655  ;;  %11250 = vst [vmem:[#allocation38_spill] sm:$0xff] %v9661_v27 }
 0xb53   : > { %v9617_v13 = vpop.eup %5973  ;;  %4132 = vmatmul.f32.gmra.mxu1 %v9611_v24  ;;  %5985 = vpow2.f32 %v3822_v31  ;;  %v3732_v4 = vsub.f32 %v9443_v32, %v3656_v37  ;;  %v3733_v31 = vsub.f32 %v9455_v22, %v3656_v37  ;;  %v3665_v27 = vpop.xlane.xlu1 %3664 }
 0xb54   : > { %4245 = vmatmul.f32.gmra.mxu0 %v9613_v9  ;;  %v9626_v33 = vadd.f32 %v9617_v13, %v9615_v49  ;;  %v9629_v36 = vpop.eup %5975  ;;  %v9649_v56 = vpop.f32.mrf.mxu1  ;;  %5987 = vpow2.f32 %v3824_v25 }
 0xb55   : > { %v9631_v3 = vpop.eup %5977  ;;  %11247 = vst [vmem:[#allocation34_spill] sm:$0xff] %v9649_v56  ;;  %5989 = vpow2.f32 %v3826_v51  ;;  %v3832_v11 = vmul.f32 1.442695, %v3732_v4  ;;  %v3834_v7 = vmul.f32 1.442695, %v3733_v31 }
 0xb56   : > { %11245 = vst [vmem:[#allocation36_spill] sm:$0xff] %v9626_v33  ;;  %v9641_v41 = vpop.eup %5979 }
 0xb57   : > { %v9643_v40 = vpop.eup %5981  ;;  %5991 = vpow2.f32 %v3832_v11 }
 0xb58   : > { %v9653_v23 = vpop.eup %5983  ;;  %5993 = vpow2.f32 %v3834_v7 }
 0xb59   : > { %v9655_v52 = vpop.eup %5985  ;;  %v9677_v42 = vpop.f32.mrf.mxu0 }
 0xb5a   : > { %v9663_v35 = vpop.eup %5987  ;;  %11253 = vst [vmem:[#allocation62_spill] sm:$0xff] %v9677_v42  ;;  %v3662_v31 = vpop.xlane.xlu2 %3661 }
 0xb5b   : > { %4135 = vmatmul.f32.gmra.mxu1 %v9629_v36  ;;  %v9665_v62 = vpop.eup %5989 }
 0xb5c   : > { %4248 = vmatmul.f32.gmra.mxu0 %v9631_v3  ;;  %v9659_v54 = vpop.f32.mrf.mxu1  ;;  %11251 = vst [vmem:[#allocation70_spill] sm:$0xff] %v9665_v62 }
 0xb5d   : > { %11249 = vst [vmem:[#allocation71_spill] sm:$0xff] %v9659_v54  ;;  %v9689_v4 = vpop.eup %5991  ;;  %v9709_v54 = vpop.xlane.xlu0 %3670 }
 0xb5e   : > { %v9693_v42 = vpop.eup %5993 }
 0xb63   : > { %4138 = vmatmul.f32.gmra.mxu1 %v9641_v41 }
 0xb64   : > { %4251 = vmatmul.f32.gmra.mxu0 %v9643_v40  ;;  %v9671_v34 = vpop.f32.mrf.mxu1 }
 0xb65   : > { %11252 = vst [vmem:[#allocation22_spill] sm:$0xff] %v9671_v34 }
 0xb6b   : > { %4141 = vmatmul.f32.gmra.mxu1 %v9653_v23 }
 0xb6c   : > { %4254 = vmatmul.f32.gmra.mxu0 %v9655_v52  ;;  %v9691_v10 = vpop.f32.mrf.mxu1 }
 0xb6d   : > { %11254 = vst [vmem:[#allocation18_spill] sm:$0xff] %v9691_v10 }
 0xb73   : > { %4144 = vmatmul.f32.gmra.mxu1 %v9663_v35 }
 0xb74   : > { %4257 = vmatmul.f32.gmra.mxu0 %v9665_v62 }
 0xb78   : > { %v9673_v25 = vpop.f32.mrf.mxu2  ;;  %v9675_v51 = vpop.f32.mrf.mxu3 }
 0xb79   : > { %v3684_v15 = vmax.f32 %v9673_v25, %v9675_v51 }
 0xb7b   : > { %3685 = vmax.xlane.f32.xlu2 %v3684_v15  ;;  %4147 = vmatmul.f32.gmra.mxu1 %v9599_v0  ;;  %v9695_v15 = vpop.f32.mrf.mxu0  ;;  %v3736_v0 = vsub.f32 %v9461_v20, %v3662_v31  ;;  %v9711_v20 = vpop.f32.mrf.mxu1 }
 0xb7c   : > { %4260 = vmatmul.f32.gmra.mxu0 %v9601_v59  ;;  %11255 = vst [vmem:[#allocation24_spill] sm:$0xff] %v9695_v15  ;;  %v3737_v59 = vsub.f32 %v9469_v28, %v3662_v31  ;;  %v3738_v28 = vsub.f32 %v9473_v58, %v3665_v27  ;;  %v9729_v58 = vpop.xlane.xlu1 %3673 }
 0xb7d   : > { %v3840_v34 = vmul.f32 1.442695, %v3736_v0  ;;  %11256 = vst [vmem:[#allocation72_spill] sm:$0xff] %v9711_v20  ;;  %v3739_v0 = vsub.f32 %v9477_v17, %v3665_v27 }
 0xb7e   : > { %v3842_v15 = vmul.f32 1.442695, %v3737_v59 }
 0xb7f   : > { %5995 = vpow2.f32 %v3840_v34  ;;  %v3846_v34 = vmul.f32 1.442695, %v3739_v0 }
 0xb80   : > { %v9683_v32 = vpop.f32.mrf.mxu2  ;;  %v9685_v22 = vpop.f32.mrf.mxu3  ;;  %5997 = vpow2.f32 %v3842_v15 }
 0xb81   : > { %v3687_v37 = vmax.f32 %v9683_v32, %v9685_v22 }
 0xb83   : > { %3688 = vmax.xlane.f32.xlu0 %v3687_v37  ;;  %4150 = vmatmul.f32.gmra.mxu1 %v9689_v4  ;;  %v3927_v37 = vadd.f32 %v9631_v3, %v9629_v36  ;;  %v9716_v31 = vpop.f32.mrf.mxu0  ;;  %v9740_v0 = vpop.f32.mrf.mxu1 }
 0xb84   : > { %4263 = vmatmul.f32.gmra.mxu0 %v9693_v42  ;;  %11257 = vst [vmem:[#allocation20_spill] sm:$0xff] %v9716_v31 }
 0xb85   : > { %11258 = vst [vmem:[#allocation27_spill] sm:$0xff] %v9740_v0 }
 0xb88   : > { %v9701_v7 = vpop.f32.mrf.mxu2  ;;  %v9703_v11 = vpop.f32.mrf.mxu3 }
 0xb89   : > { %v3690_v10 = vmax.f32 %v9701_v7, %v9703_v11 }
 0xb8b   : > { %3691 = vmax.xlane.f32.xlu1 %v3690_v10  ;;  %3928 = vadd.xlane.f32.xlu0 %v3927_v37  ;;  %v3844_v10 = vmul.f32 1.442695, %v3738_v28  ;;  %v9727_v37 = vpop.eup %5995  ;;  %v9742_v31 = vpop.f32.mrf.mxu0 }
 0xb8c   : > { %4153 = vmatmul.f32.gmra.mxu1 %v9615_v49  ;;  %4266 = vmatmul.f32.gmra.mxu0 %v9617_v13  ;;  %v3930_v49 = vadd.f32 %v9643_v40, %v9641_v41  ;;  %v3668_v13 = vpop.xlane.xlu2 %3667  ;;  %v9731_v17 = vpop.eup %5997  ;;  %11259 = vst [vmem:[#allocation63_spill] sm:$0xff] %v9742_v31 }
 0xb8d   : > { %v3740_v41 = vsub.f32 %v9487_v45, %v3668_v13  ;;  %5999 = vpow2.f32 %v3844_v10  ;;  %v3741_v40 = vsub.f32 %v9491_v8, %v3668_v13  ;;  %v3924_v45 = vadd.f32 %v9613_v9, %v9611_v24 }
 0xb8e   : > { %6001 = vpow2.f32 %v3846_v34  ;;  %v3933_v8 = vadd.f32 %v9655_v52, %v9653_v23  ;;  %v3743_v24 = vsub.f32 %v9499_v26, %v9709_v54  ;;  %v3744_v26 = vsub.f32 %v9505_v61, %v9729_v58 }
 0xb90   : > { %v9719_v36 = vpop.f32.mrf.mxu2  ;;  %v9721_v3 = vpop.f32.mrf.mxu3 }
 0xb91   : > { %v3693_v59 = vmax.f32 %v9719_v36, %v9721_v3 }
 0xb93   : > { %v3680_v15 = vpop.xlane.xlu0 %3679  ;;  %3931 = vadd.xlane.f32.xlu1 %v3930_v49  ;;  %3694 = vmax.xlane.f32.xlu2 %v3693_v59  ;;  %v9750_v10 = vpop.eup %5999 }
 0xb94   : > { %v3748_v27 = vsub.f32 %v9545_v50, %v3680_v15  ;;  %v3749_v28 = vsub.f32 %v9547_v6, %v3680_v15  ;;  %3919 = vadd.xlane.f32.xlu0 %v9573_v47  ;;  %4156 = vmatmul.f32.gmra.mxu1 %v9727_v37  ;;  %v3848_v50 = vmul.f32 1.442695, %v3740_v41  ;;  %v3921_v6 = vadd.f32 %v9595_v12, %v9591_v1  ;;  %v9752_v34 = vpop.eup %6001  ;;  %v9766_v41 = vpop.f32.mrf.mxu0 }
 0xb95   : > { %4269 = vmatmul.f32.gmra.mxu0 %v9731_v17  ;;  %v3850_v47 = vmul.f32 1.442695, %v3741_v40  ;;  %v3742_v1 = vsub.f32 %v9495_v16, %v9709_v54  ;;  %11261 = vst [vmem:[#allocation73_spill] sm:$0xff] %v9766_v41  ;;  %v3854_v16 = vmul.f32 1.442695, %v3743_v24 }
 0xb96   : > { %v3864_v59 = vmul.f32 1.442695, %v3748_v27  ;;  %v3866_v49 = vmul.f32 1.442695, %v3749_v28  ;;  %v9762_v28 = vpop.f32.mrf.mxu1 }
 0xb97   : > { %11260 = vst [vmem:[#allocation69_spill] sm:$0xff] %v9762_v28 }
 0xb98   : > { %6003 = vpow2.f32 %v3864_v59 }
 0xb99   : > { %6005 = vpow2.f32 %v3866_v49  ;;  %v3745_v49 = vsub.f32 %v9511_v46, %v9729_v58 }
 0xb9a   : > { %6007 = vpow2.f32 %v3848_v50 }
 0xb9b   : > { %3922 = vadd.xlane.f32.xlu1 %v3921_v6  ;;  %3925 = vadd.xlane.f32.xlu2 %v3924_v45  ;;  %v3683_v13 = vpop.xlane.xlu1 %3682  ;;  %6009 = vpow2.f32 %v3850_v47  ;;  %v3856_v47 = vmul.f32 1.442695, %v3744_v26 }
 0xb9c   : > { %3934 = vadd.xlane.f32.xlu0 %v3933_v8  ;;  %v3750_v15 = vsub.f32 %v9555_v5, %v3683_v13  ;;  %v3751_v27 = vsub.f32 %v9557_v19, %v3683_v13  ;;  %4159 = vmatmul.f32.gmra.mxu1 %v9750_v10  ;;  %v3852_v19 = vmul.f32 1.442695, %v3742_v1  ;;  %v3677_v13 = vpop.xlane.xlu2 %3676 }
 0xb9d   : > { %4272 = vmatmul.f32.gmra.mxu0 %v9752_v34  ;;  %v3746_v1 = vsub.f32 %v9519_v21, %v3677_v13  ;;  %v3747_v46 = vsub.f32 %v9521_v43, %v3677_v13 }
 0xb9e   : > { %v6004_v12 = vpop.eup %6003  ;;  %v3868_v9 = vmul.f32 1.442695, %v3750_v15  ;;  %v3870_v23 = vmul.f32 1.442695, %v3751_v27  ;;  %v3858_v15 = vmul.f32 1.442695, %v3745_v49 }
 0xb9f   : > { %v6006_v52 = vpop.eup %6005  ;;  %v3860_v24 = vmul.f32 1.442695, %v3746_v1 }
 0xba0   : > { %6011 = vpow2.f32 %v3868_v9  ;;  %v9764_v5 = vadd.f32 %v6006_v52, %v6004_v12  ;;  %v9768_v40 = vpop.eup %6007 }
 0xba1   : > { %6013 = vpow2.f32 %v3870_v23  ;;  %v9770_v59 = vpop.eup %6009  ;;  %v3862_v23 = vmul.f32 1.442695, %v3747_v46 }
 0xba2   : > { %6015 = vpow2.f32 %v3852_v19 }
 0xba3   : > { %6017 = vpow2.f32 %v3854_v16 }
 0xba4   : > { %4162 = vmatmul.f32.gmra.mxu1 %v9768_v40  ;;  %6019 = vpow2.f32 %v3856_v47 }
 0xba5   : > { %4275 = vmatmul.f32.gmra.mxu0 %v9770_v59  ;;  %6021 = vpow2.f32 %v3858_v15 }
 0xba6   : > { %v6012_v54 = vpop.eup %6011  ;;  %6023 = vpow2.f32 %v3860_v24 }
 0xba7   : > { %v6014_v50 = vpop.eup %6013  ;;  %6025 = vpow2.f32 %v3862_v23 }
 0xba8   : > { %v9778_v6 = vpop.f32.mrf.mxu1  ;;  %v3969_v45 = vadd.f32 %v6014_v50, %v6012_v54  ;;  %v9782_v27 = vpop.eup %6015 }
 0xba9   : > { %11262 = vst [vmem:[#allocation58_spill] sm:$0xff] %v9778_v6  ;;  %v9780_v8 = vpop.f32.mrf.mxu0  ;;  %v9784_v61 = vpop.eup %6017 }
 0xbaa   : > { %11263 = vst [vmem:[#allocation23_spill] sm:$0xff] %v9780_v8  ;;  %3970 = vadd.xlane.f32.xlu1 %v3969_v45  ;;  %v9794_v19 = vpop.eup %6019 }
 0xbab   : > { %v9796_v16 = vpop.eup %6021 }
 0xbac   : > { %4165 = vmatmul.f32.gmra.mxu1 %v9782_v27  ;;  %v9804_v26 = vpop.eup %6023 }
 0xbad   : > { %4278 = vmatmul.f32.gmra.mxu0 %v9784_v61  ;;  %v9806_v49 = vpop.eup %6025 }
 0xbb0   : > { %v9790_v58 = vpop.f32.mrf.mxu1 }
 0xbb1   : > { %11264 = vst [vmem:[#allocation46_spill] sm:$0xff] %v9790_v58  ;;  %v9792_v9 = vpop.f32.mrf.mxu0 }
 0xbb2   : > { %11265 = vst [vmem:[#allocation59_spill] sm:$0xff] %v9792_v9 }
 0xbb4   : > { %4168 = vmatmul.f32.gmra.mxu1 %v9794_v19 }
 0xbb5   : > { %4281 = vmatmul.f32.gmra.mxu0 %v9796_v16 }
 0xbb8   : > { %v9800_v21 = vpop.f32.mrf.mxu1 }
 0xbb9   : > { %11266 = vst [vmem:[#allocation47_spill] sm:$0xff] %v9800_v21  ;;  %v9802_v43 = vpop.f32.mrf.mxu0 }
 0xbba   : > { %11267 = vst [vmem:[#allocation60_spill] sm:$0xff] %v9802_v43 }
 0xbbc   : > { %4171 = vmatmul.f32.gmra.mxu1 %v9804_v26 }
 0xbbd   : > { %4284 = vmatmul.f32.gmra.mxu0 %v9806_v49 }
 0xbc0   : > { %v9810_v45 = vpop.f32.mrf.mxu1 }
 0xbc1   : > { %v9812_v47 = vpop.f32.mrf.mxu0 }
 0xbc4   : > { %4174 = vmatmul.f32.gmra.mxu1 %v6004_v12 }
 0xbc5   : > { %4287 = vmatmul.f32.gmra.mxu0 %v6006_v52 }
 0xbc8   : > { %v9814_v13 = vpop.f32.mrf.mxu1 }
 0xbc9   : > { %v9816_v15 = vpop.f32.mrf.mxu0 }
 0xbcc   : > { %4177 = vmatmul.f32.gmra.mxu1 %v6012_v54 }
 0xbcd   : > { %4290 = vmatmul.f32.gmra.mxu0 %v6014_v50 }
 0xbd0   : > { %v9818_v1 = vpop.f32.mrf.mxu1 }
 0xbd1   : > { %v9820_v46 = vpop.f32.mrf.mxu0 }
 0xbd8   : > { %v9822_v24 = vpop.f32.mrf.mxu1 }
 0xbd9   : > { %v9824_v23 = vpop.f32.mrf.mxu0 }
 0xbe0   : > { %v9826_v43 = vpop.f32.mrf.mxu1 }
 0xbe1   : > { %v9828_v21 = vpop.f32.mrf.mxu0 }
 0xbe8   : > { %v9830_v12 = vpop.f32.mrf.mxu1 }
 0xbe9   : > { %v9832_v52 = vpop.f32.mrf.mxu0 }
 0xbee   : > { %v3686_v9 = vpop.xlane.xlu2 %3685 }
 0xbef   : > { %v3752_v54 = vsub.f32 %v9673_v25, %v3686_v9  ;;  %v3753_v50 = vsub.f32 %v9675_v51, %v3686_v9 }
 0xbf0   : > { %v4145_v58 = vpop.f32.mrf.mxu1 }
 0xbf1   : > { %v3872_v8 = vmul.f32 1.442695, %v3752_v54  ;;  %v3874_v6 = vmul.f32 1.442695, %v3753_v50  ;;  %v4258_v41 = vpop.f32.mrf.mxu0 }
 0xbf2   : > { %v9836_v28 = vadd.f32 %v4258_v41, %v4145_v58 }
 0xbf3   : > { %6027 = vpow2.f32 %v3872_v8 }
 0xbf4   : > { %11268 = vst [vmem:[#allocation48_spill] sm:$0xff] %v9836_v28  ;;  %6029 = vpow2.f32 %v3874_v6 }
 0xbf6   : > { %v3689_v31 = vpop.xlane.xlu0 %3688 }
 0xbf7   : > { %v3754_v0 = vsub.f32 %v9683_v32, %v3689_v31  ;;  %v3755_v20 = vsub.f32 %v9685_v22, %v3689_v31 }
 0xbf8   : > { %v4148_v2 = vpop.f32.mrf.mxu1 }
 0xbf9   : > { %v6028_v56 = vpop.eup %6027  ;;  %v3876_v18 = vmul.f32 1.442695, %v3754_v0  ;;  %v3878_v33 = vmul.f32 1.442695, %v3755_v20  ;;  %v4261_v25 = vpop.f32.mrf.mxu0 }
 0xbfa   : > { %v6030_v62 = vpop.eup %6029  ;;  %v9840_v51 = vadd.f32 %v4261_v25, %v4148_v2  ;;  %4180 = vmatmul.f32.gmra.mxu1 %v6028_v56 }
 0xbfb   : > { %6031 = vpow2.f32 %v3876_v18  ;;  %4293 = vmatmul.f32.gmra.mxu0 %v6030_v62  ;;  %v3972_v41 = vadd.f32 %v6030_v62, %v6028_v56 }
 0xbfc   : > { %11269 = vst [vmem:[#allocation32_spill] sm:$0xff] %v9840_v51  ;;  %6033 = vpow2.f32 %v3878_v33 }
 0xbfd   : > { %3973 = vadd.xlane.f32.xlu2 %v3972_v41 }
 0xbfe   : > { %v9842_v6 = vpop.xlane.xlu0 %3928  ;;  %v3692_v8 = vpop.xlane.xlu1 %3691 }
 0xbff   : > { %v3756_v32 = vsub.f32 %v9701_v7, %v3692_v8  ;;  %v3757_v22 = vsub.f32 %v9703_v11, %v3692_v8  ;;  %vm4493_vm8 = vweird.f32 %v9842_v6 }
 0xc00   : > { %v4151_v31 = vpop.f32.mrf.mxu1 }
 0xc01   : > { %v6032_v0 = vpop.eup %6031  ;;  %v4264_v20 = vpop.f32.mrf.mxu0  ;;  %v3880_v9 = vmul.f32 1.442695, %v3756_v32  ;;  %v3882_v2 = vmul.f32 1.442695, %v3757_v22 }
 0xc02   : > { %v6034_v58 = vpop.eup %6033  ;;  %v9846_v54 = vadd.f32 %v4264_v20, %v4151_v31  ;;  %4183 = vmatmul.f32.gmra.mxu1 %v6032_v0 }
 0xc03   : > { %4296 = vmatmul.f32.gmra.mxu0 %v6034_v58  ;;  %v3975_v18 = vadd.f32 %v6034_v58, %v6032_v0  ;;  %6035 = vpow2.f32 %v3880_v9 }
 0xc04   : > { %11270 = vst [vmem:[#allocation26_spill] sm:$0xff] %v9846_v54  ;;  %6037 = vpow2.f32 %v3882_v2 }
 0xc05   : > { %3976 = vadd.xlane.f32.xlu0 %v3975_v18 }
 0xc06   : > { %v3695_v33 = vpop.xlane.xlu2 %3694  ;;  %v9848_v56 = vpop.xlane.xlu1 %3931 }
 0xc07   : > { %v3758_v62 = vsub.f32 %v9719_v36, %v3695_v33  ;;  %v3759_v7 = vsub.f32 %v9721_v3, %v3695_v33  ;;  %v9852_v11 = vpop.xlane.xlu0 %3919  ;;  %6039 = vrcp.f32 %v9848_v56  ;;  %vm4507_vm1 = vweird.f32 %v9848_v56 }
 0xc08   : > { %6041 = vrcp.f32 %v9842_v6 }
 0xc09   : > { %v3884_v50 = vmul.f32 1.442695, %v3758_v62  ;;  %v3886_v25 = vmul.f32 1.442695, %v3759_v7  ;;  %v4154_v41 = vpop.f32.mrf.mxu1  ;;  %v4267_v8 = vpop.f32.mrf.mxu0 }
 0xc0a   : > { %v6036_v32 = vpop.eup %6035  ;;  %v9856_v22 = vadd.f32 %v4267_v8, %v4154_v41  ;;  %v3912_v41 = vadd.f32 %v9569_v63, %v9567_v55  ;;  %v3915_v55 = vadd.f32 %v9580_v38, %v9577_v53 }
 0xc0b   : > { %v6038_v31 = vpop.eup %6037  ;;  %6043 = vpow2.f32 %v3884_v50  ;;  %4186 = vmatmul.f32.gmra.mxu1 %v6036_v32 }
 0xc0c   : > { %11271 = vst [vmem:[#allocation50_spill] sm:$0xff] %v9856_v22  ;;  %6045 = vpow2.f32 %v3886_v25  ;;  %4299 = vmatmul.f32.gmra.mxu0 %v6038_v31  ;;  %v3978_v36 = vadd.f32 %v6038_v31, %v6036_v32 }
 0xc0d   : > { %v9858_v3 = vpop.eup %6039  ;;  %3967 = vadd.xlane.f32.xlu0 %v9764_v5 }
 0xc0e   : > { %v9861_v0 = vpop.eup %6041  ;;  %v4503_v20 = vmul.f32 %v9858_v3, %v9848_v56  ;;  %3979 = vadd.xlane.f32.xlu1 %v3978_v36  ;;  %v9865_v58 = vpop.xlane.xlu2 %3925  ;;  %vm4508_vm15 = vweird.f32 %v9858_v3 }
 0xc0f   : > { %6047 = vrcp.f32 %v9865_v58  ;;  %v3935_v9 = vpop.xlane.xlu0 %3934  ;;  %v9868_v2 = vpop.xlane.xlu1 %3922  ;;  %v4489_v33 = vmul.f32 %v9861_v0, %v9842_v6  ;;  %vm4494_vm2 = vweird.f32 %v9861_v0  ;;  %vm9908_vm3 = vmor %vm4507_vm1, %vm4508_vm15  ;;  %vm4479_vm13 = vweird.f32 %v9865_v58 }
 0xc10   : > { %6049 = vrcp.f32 %v3935_v9  ;;  %v4504_v7 = vsub.f32 1.0, %v4503_v20  ;;  %vm4521_vm4 = vweird.f32 %v3935_v9  ;;  %vm9925_vm9 = vmor %vm4493_vm8, %vm4494_vm2  ;;  %vm4465_vm1 = vweird.f32 %v9868_v2 }
 0xc11   : > { %v6044_v18 = vpop.eup %6043  ;;  %v4157_v62 = vpop.f32.mrf.mxu1  ;;  %6051 = vrcp.f32 %v9868_v2  ;;  %v4490_v32 = vsub.f32 1.0, %v4489_v33  ;;  %v3957_v33 = vadd.f32 %v9784_v61, %v9782_v27  ;;  %v4513_v27 = vand.u32 2147483648, %v9848_v56 }
 0xc12   : > { %v6046_v5 = vpop.eup %6045  ;;  %v4270_v50 = vpop.f32.mrf.mxu0  ;;  %6053 = vrcp.f32 %v9852_v11  ;;  %v4505_v20 = vmul.f32 %v9858_v3, %v4504_v7  ;;  %v4525_v7 = vand.u32 2147483647, %v3935_v9  ;;  %v3960_v61 = vadd.f32 %v9796_v16, %v9794_v19 }
 0xc13   : > { %4189 = vmatmul.f32.gmra.mxu1 %v6044_v18  ;;  %v9873_v25 = vadd.f32 %v4270_v50, %v4157_v62  ;;  %v3981_v31 = vadd.f32 %v6046_v5, %v6044_v18  ;;  %v4491_v63 = vmul.f32 %v9861_v0, %v4490_v32  ;;  %v4256_v32 = vadd.f32 %v9832_v52, %v9830_v12 }
 0xc14   : > { %4302 = vmatmul.f32.gmra.mxu0 %v6046_v5  ;;  %v4506_v5 = vadd.f32 %v9858_v3, %v4505_v20  ;;  %vm4526_vm7 = vcmp.eq.f32.partialorder %v4525_v7, 8.507059e+37  ;;  %v4250_v20 = vadd.f32 %v9824_v23, %v9822_v24  ;;  %v4471_v23 = vand.u32 2147483648, %v9868_v2 }
 0xc15   : > { %11272 = vst [vmem:[#allocation64_spill] sm:$0xff] %v9873_v25  ;;  %v9877_v8 = vpop.eup %6047  ;;  %3910 = vadd.xlane.f32.xlu0 %v9564_v29  ;;  %3982 = vadd.xlane.f32.xlu2 %v3981_v31  ;;  %v4492_v12 = vadd.f32 %v9861_v0, %v4491_v63 }
 0xc16   : > { %v6050_v36 = vpop.eup %6049  ;;  %3913 = vadd.xlane.f32.xlu1 %v3912_v41  ;;  %v4475_v62 = vmul.f32 %v9877_v8, %v9865_v58  ;;  %v4527_v41 = vand.u32 2147483648, %v3935_v9  ;;  %vm4480_vm11 = vweird.f32 %v9877_v8 }
 0xc17   : > { %v4517_v50 = vmul.f32 %v6050_v36, %v3935_v9  ;;  %v9884_v28 = vpop.eup %6051  ;;  %vm4522_vm0 = vweird.f32 %v6050_v36  ;;  %v4514_v9 = vor.u32 1.1754944e-38, %v4513_v27  ;;  %vm9949_vm14 = vmor %vm4479_vm13, %vm4480_vm11 }
 0xc18   : > { %v9893_v51 = vpop.eup %6053  ;;  %v4476_v54 = vsub.f32 1.0, %v4475_v62  ;;  %v4461_v53 = vmul.f32 %v9884_v28, %v9868_v2  ;;  %v4511_v62 = vand.u32 2147483647, %v9848_v56  ;;  %vm4523_vm5 = vmor %vm4521_vm4, %vm4522_vm0  ;;  %v4528_v19 = vor.u32 1.1754944e-38, %v4527_v41 }
 0xc19   : > { %v4518_v18 = vsub.f32 1.0, %v4517_v50  ;;  %v4160_v29 = vpop.f32.mrf.mxu1  ;;  %v4447_v52 = vmul.f32 %v9893_v51, %v9852_v11  ;;  %v4510_v56 = vsel %vm9908_vm3, %v9858_v3, %v4506_v5  ;;  %v4253_v3 = vadd.f32 %v9828_v21, %v9826_v43 }
 0xc1a   : > { %v4273_v31 = vpop.f32.mrf.mxu0  ;;  %v4477_v16 = vmul.f32 %v9877_v8, %v4476_v54  ;;  %v4497_v54 = vand.u32 2147483647, %v9842_v6  ;;  %vm4512_vm10 = vcmp.eq.f32.partialorder %v4511_v62, 8.507059e+37  ;;  %v4485_v21 = vand.u32 2147483648, %v9865_v58 }
 0xc1b   : > { %v4519_v22 = vmul.f32 %v6050_v36, %v4518_v18  ;;  %v9897_v38 = vadd.f32 %v4273_v31, %v4160_v29  ;;  %v4462_v29 = vsub.f32 1.0, %v4461_v53  ;;  %v4448_v5 = vsub.f32 1.0, %v4447_v52 }
 0xc1c   : > { %v4515_v41 = vsel %vm4512_vm10, %v4514_v9, %v4510_v56  ;;  %v4496_v31 = vsel %vm9925_vm9, %v9861_v0, %v4492_v12  ;;  %v4478_v53 = vadd.f32 %v9877_v8, %v4477_v16  ;;  %v3963_v43 = vadd.f32 %v9806_v49, %v9804_v26 }
 0xc1d   : > { %11273 = vst [vmem:[#allocation51_spill] sm:$0xff] %v9897_v38  ;;  %v4520_v50 = vadd.f32 %v6050_v36, %v4519_v22  ;;  %3958 = vadd.xlane.f32.xlu0 %v3957_v33  ;;  %3916 = vadd.xlane.f32.xlu2 %v3915_v55  ;;  %v4499_v22 = vand.u32 2147483648, %v9842_v6  ;;  %v4463_v27 = vmul.f32 %v9884_v28, %v4462_v29  ;;  %vm4498_vm12 = vcmp.eq.f32.partialorder %v4497_v54, 8.507059e+37 }
 0xc1e   : > { %3961 = vadd.xlane.f32.xlu1 %v3960_v61  ;;  %v4483_v0 = vand.u32 2147483647, %v9865_v58  ;;  %v4768_v61 = vmul.f32 %v4515_v41, %v4253_v3  ;;  %v4449_v26 = vmul.f32 %v9893_v51, %v4448_v5  ;;  %vm4466_vm15 = vweird.f32 %v9884_v28  ;;  %v11287_v41 = vld [vmem:[#allocation36_spill] sm:$0xff] }
 0xc1f   : > { %v4524_v18 = vsel %vm4523_vm5, %v6050_v36, %v4520_v50  ;;  %v4464_v49 = vadd.f32 %v9884_v28, %v4463_v27  ;;  %v4486_v24 = vor.u32 1.1754944e-38, %v4485_v21  ;;  %v4247_v52 = vadd.f32 %v9820_v46, %v9818_v1  ;;  %vm9966_vm2 = vmor %vm4465_vm1, %vm4466_vm15  ;;  %v3084_v27 = vld [vmem:[#allocation9 + $0x10] sm:$0xff] }
 0xc20   : > { %v4529_v63 = vsel %vm4526_vm7, %v4528_v19, %v4524_v18  ;;  %vm4484_vm0 = vcmp.eq.f32.partialorder %v4483_v0, 8.507059e+37  ;;  %v4450_v29 = vadd.f32 %v9893_v51, %v4449_v26  ;;  %vm4452_vm3 = vweird.f32 %v9893_v51 }
 0xc21   : > { %v4163_v36 = vpop.f32.mrf.mxu1  ;;  %v4769_v55 = vmul.f32 %v4529_v63, %v4256_v32  ;;  %v4500_v32 = vor.u32 1.1754944e-38, %v4499_v22  ;;  %v4468_v1 = vsel %vm9966_vm2, %v9884_v28, %v4464_v49  ;;  %v4457_v46 = vand.u32 2147483648, %v9852_v11 }
 0xc22   : > { %v4276_v7 = vpop.f32.mrf.mxu0  ;;  %v3951_v22 = vadd.f32 %v9752_v34, %v9750_v10  ;;  %vm4451_vm4 = vweird.f32 %v9852_v11  ;;  %v4244_v28 = vadd.f32 %v9816_v15, %v9814_v13  ;;  %v4241_v13 = vadd.f32 %v9812_v47, %v9810_v45 }
 0xc23   : > { %v9938_v6 = vadd.f32 %v4276_v7, %v4163_v36  ;;  %5409 = vmatpush.xpose.msk.msra.mxu2 %vm1289_vm6, %v4769_v55  ;;  %v4501_v50 = vsel %vm4498_vm12, %v4500_v32, %v4496_v31  ;;  %vm9985_vm7 = vmor %vm4451_vm4, %vm4452_vm3  ;;  %v4458_v34 = vor.u32 1.1754944e-38, %v4457_v46  ;;  %v3942_v45 = vadd.f32 %v9693_v42, %v9689_v4  ;;  %v1119_v31 = vld [vmem:[%s10942_s8] sm:$0xff]  ;;  %v11288_v42 = vld [vmem:[#allocation39_spill] sm:$0xff]  ;;  %v10030_v32 = vpop.xlane.xlu1 %3970 }
 0xc24   : > { %v4767_v12 = vmul.f32 %v4501_v50, %v4250_v20  ;;  %v4454_v10 = vsel %vm9985_vm7, %v9893_v51, %v4450_v29  ;;  %6055 = vrcp.f32 %v10030_v32  ;;  %v11290_v46 = vld [vmem:[#allocation17_spill] sm:$0xff]  ;;  %vm4689_vm10 = vweird.f32 %v10030_v32 }
 0xc25   : > { %11278 = vst [vmem:[#allocation53_spill] sm:$0xff] %v9938_v6  ;;  %3901 = vadd.xlane.f32.xlu0 %v9533_v39  ;;  %3964 = vadd.xlane.f32.xlu2 %v3963_v43  ;;  %v4482_v39 = vsel %vm9949_vm14, %v9877_v8, %v4478_v53  ;;  %v3948_v8 = vadd.f32 %v9731_v17, %v9727_v37  ;;  %v4455_v37 = vand.u32 2147483647, %v9852_v11  ;;  %v6354_v11 = vmov 0  }
 0xc26   : > { %3904 = vadd.xlane.f32.xlu1 %v9485_v48  ;;  %v4469_v48 = vand.u32 2147483647, %v9868_v2  ;;  %v4487_v18 = vsel %vm4484_vm0, %v4486_v24, %v4482_v39  ;;  %v4472_v2 = vor.u32 1.1754944e-38, %v4471_v23  ;;  %5715 = vset.pattern.permute.xlu0 %v6354_v11 }
 0xc27   : > { %5410 = vmatpush.xpose.msk.msra.mxu2 %vm1289_vm6, %v4768_v61  ;;  %v4766_v17 = vmul.f32 %v4487_v18, %v4247_v52  ;;  %5716 = vset.pattern.permute.xlu1 %v6354_v11  ;;  %vm4456_vm8 = vcmp.eq.f32.partialorder %v4455_v37, 8.507059e+37  ;;  %v3085_v61 = vld [vmem:[#allocation9 + $0x18] sm:$0xff] }
 0xc28   : > { %vm4470_vm5 = vcmp.eq.f32.partialorder %v4469_v48, 8.507059e+37  ;;  %v4459_v55 = vsel %vm4456_vm8, %v4458_v34, %v4454_v10  ;;  %v11292_v10 = vld [vmem:[#allocation71_spill] sm:$0xff]  ;;  %v11293_v34 = vld [vmem:[#allocation38_spill] sm:$0xff] }
 0xc29   : > { %v4166_v58 = vpop.f32.mrf.mxu1  ;;  %v4473_v63 = vsel %vm4470_vm5, %v4472_v2, %v4468_v1  ;;  %v4764_v51 = vmul.f32 %v4459_v55, %v4241_v13  ;;  %v11289_v1 = vld [vmem:[#allocation34_spill] sm:$0xff]  ;;  %v10091_v11 = vadd.f32 %v11293_v34, %v11292_v10  ;;  %v11299_v13 = vld [vmem:[#allocation24_spill] sm:$0xff] }
 0xc2a   : > { %v4279_v16 = vpop.f32.mrf.mxu0  ;;  %v4765_v54 = vmul.f32 %v4473_v63, %v4244_v28  ;;  %v10041_v62 = vpop.eup %6055  ;;  %v10076_v2 = vadd.f32 %v11290_v46, %v11289_v1  ;;  %v11298_v55 = vld [vmem:[#allocation18_spill] sm:$0xff] }
 0xc2b   : > { %v9974_v56 = vadd.f32 %v4279_v16, %v4166_v58  ;;  %5411 = vmatpush.xpose.msk.msra.mxu2 %vm1289_vm6, %v4767_v12  ;;  %v4685_v49 = vmul.f32 %v10041_v62, %v10030_v32  ;;  %vm4690_vm9 = vweird.f32 %v10041_v62  ;;  %11294 = vst [vmem:[#allocation67_spill] sm:$0xff] %v10091_v11 }
 0xc2c   : > { %11291 = vst [vmem:[#allocation57_spill] sm:$0xff] %v10076_v2  ;;  %vm10123_vm11 = vmor %vm4689_vm10, %vm4690_vm9 }
 0xc2d   : > { %11283 = vst [vmem:[#allocation55_spill] sm:$0xff] %v9974_v56  ;;  %3949 = vadd.xlane.f32.xlu0 %v3948_v8  ;;  %3907 = vadd.xlane.f32.xlu2 %v9527_v57  ;;  %v3954_v57 = vadd.f32 %v9770_v59, %v9768_v40  ;;  %v4686_v23 = vsub.f32 1.0, %v4685_v49  ;;  %v4693_v49 = vand.u32 2147483647, %v10030_v32 }
 0xc2e   : > { %3952 = vadd.xlane.f32.xlu1 %v3951_v22 }
 0xc2f   : > { %5412 = vmatpush.xpose.msk.msra.mxu2 %vm1289_vm6, %v4766_v17  ;;  %v4687_v16 = vmul.f32 %v10041_v62, %v4686_v23  ;;  %v4695_v17 = vand.u32 2147483648, %v10030_v32  ;;  %vm10158_vm0 = vcmp.eq.f32.partialorder %v4693_v49, 8.507059e+37 }
 0xc31   : > { %v4169_v33 = vpop.f32.mrf.mxu1  ;;  %v10081_v37 = vadd.f32 %v10041_v62, %v4687_v16 }
 0xc32   : > { %v4282_v36 = vpop.f32.mrf.mxu0 }
 0xc33   : > { %v9998_v15 = vadd.f32 %v4282_v36, %v4169_v33  ;;  %5413 = vmatpush.xpose.msk.msra.mxu2 %vm1289_vm6, %v4765_v54  ;;  %v11295_v33 = vld [vmem:[#allocation22_spill] sm:$0xff] }
 0xc34   : > { %v11296_v54 = vld [vmem:[#allocation62_spill] sm:$0xff] }
 0xc35   : > { %3892 = vadd.xlane.f32.xlu0 %v9449_v60  ;;  %3955 = vadd.xlane.f32.xlu2 %v3954_v57  ;;  %v10095_v36 = vadd.f32 %v11296_v54, %v11295_v33  ;;  %v10099_v57 = vadd.f32 %v11299_v13, %v11298_v55 }
 0xc36   : > { %3895 = vadd.xlane.f32.xlu1 %v9515_v14  ;;  %v11286_v14 = vld [vmem:[#allocation70_spill] sm:$0xff] }
 0xc37   : > { %5414 = vmatpush.xpose.msk.msra.mxu2 %vm1289_vm6, %v4764_v51  ;;  %v3936_v47 = vadd.f32 %v11286_v14, %v9663_v35  ;;  %v1122_v35 = vld [vmem:[%s10942_s8 + $0x18] sm:$0xff]  ;;  %11297 = vst [vmem:[#allocation54_spill] sm:$0xff] %v10095_v36 }
 0xc38   : > { %11300 = vst [vmem:[#allocation43_spill] sm:$0xff] %v10099_v57 }
 0xc39   : > { %v4172_v3 = vpop.f32.mrf.mxu1 }
 0xc3a   : > { %v4285_v5 = vpop.f32.mrf.mxu0 }
 0xc3b   : > { %v10006_v7 = vadd.f32 %v4285_v5, %v4172_v3  ;;  %v11301_v3 = vld [vmem:[#allocation72_spill] sm:$0xff] }
 0xc3c   : > { %v11302_v5 = vld [vmem:[#allocation20_spill] sm:$0xff] }
 0xc3d   : > { %3940 = vadd.xlane.f32.xlu0 %v9608_v44  ;;  %3898 = vadd.xlane.f32.xlu2 %v9529_v30  ;;  %v1120_v30 = vld [vmem:[%s10942_s8 + $0x8] sm:$0xff]  ;;  %v1121_v44 = vld [vmem:[%s10942_s8 + $0x10] sm:$0xff] }
 0xc3e   : > { %3943 = vadd.xlane.f32.xlu1 %v3942_v45  ;;  %v10103_v45 = vadd.f32 %v11302_v5, %v11301_v3 }
 0xc40   : > { %11303 = vst [vmem:[#allocation25_spill] sm:$0xff] %v10103_v45 }
 0xc41   : > { %v4175_v40 = vpop.f32.mrf.mxu1 }
 0xc42   : > { %v4288_v60 = vpop.f32.mrf.mxu0 }
 0xc43   : > { %v10012_v59 = vadd.f32 %v4288_v60, %v4175_v40  ;;  %v11304_v40 = vld [vmem:[#allocation27_spill] sm:$0xff] }
 0xc44   : > { %v11305_v60 = vld [vmem:[#allocation63_spill] sm:$0xff] }
 0xc45   : > { %3946 = vadd.xlane.f32.xlu2 %v11287_v41  ;;  %v10107_v14 = vadd.f32 %v11305_v60, %v11304_v40 }
 0xc46   : > { %3937 = vadd.xlane.f32.xlu1 %v3936_v47 }
 0xc49   : > { %v4178_v4 = vpop.f32.mrf.mxu1 }
 0xc4a   : > { %v4291_v53 = vpop.f32.mrf.mxu0 }
 0xc4b   : > { %v10141_v34 = vadd.f32 %v4291_v53, %v4178_v4 }
 0xc4d   : > { %3889 = vadd.xlane.f32.xlu2 %v11288_v42  ;;  %v11307_v42 = vld [vmem:[#allocation73_spill] sm:$0xff] }
 0xc51   : > { %1125 = vperm.xlu0 %5715, %v1119_v31   ;;  %v11306_v31 = vld [vmem:[#allocation69_spill] sm:$0xff] }
 0xc5f   : > { %1130 = vperm.xlu1 %5716, %v1120_v30   ;;  %v10115_v30 = vadd.f32 %v11307_v42, %v11306_v31 }
 0xc67   : > { %1135 = vperm.xlu1 %5716, %v1121_v44   ;;  %v11308_v44 = vld [vmem:[#allocation58_spill] sm:$0xff] }
 0xc6f   : > { %1140 = vperm.xlu1 %5716, %v1122_v35   ;;  %v11309_v35 = vld [vmem:[#allocation23_spill] sm:$0xff] }
 0xc70   : > { %v10039_v20 = vpop.xlane.xlu2 %3973 }
 0xc71   : > { %6057 = vrcp.f32 %v10039_v20  ;;  %v4709_v47 = vand.u32 2147483648, %v10039_v20  ;;  %vm4703_vm12 = vweird.f32 %v10039_v20 }
 0xc73   : > { %v4710_v33 = vor.u32 1.1754944e-38, %v4709_v47 }
 0xc76   : > { %4786 = vxpose.xlu2.b32.start [1/2] (short) (narrow) %v3084_v27, 32  ;;  %v10119_v27 = vadd.f32 %v11309_v35, %v11308_v44 }
 0xc77   : > { %v10035_v43 = vpop.f32.mrf.mxu1  ;;  %v10056_v48 = vpop.eup %6057 }
 0xc78   : > { %v10032_v21 = vpop.xlane.xlu0 %3976  ;;  %v10037_v0 = vpop.f32.mrf.mxu0  ;;  %v4699_v29 = vmul.f32 %v10056_v48, %v10039_v20  ;;  %vm4704_vm14 = vweird.f32 %v10056_v48 }
 0xc79   : > { %vm4717_vm13 = vweird.f32 %v10032_v21  ;;  %v4721_v5 = vand.u32 2147483647, %v10032_v21  ;;  %v4723_v40 = vand.u32 2147483648, %v10032_v21  ;;  %vm10194_vm9 = vmor %vm4703_vm12, %vm4704_vm14 }
 0xc7a   : > { %v4700_v51 = vsub.f32 1.0, %v4699_v29  ;;  %v10134_v29 = vor.u32 1.1754944e-38, %v4695_v17  ;;  %v4707_v17 = vand.u32 2147483647, %v10039_v20 }
 0xc7b   : > { %vm4722_vm14 = vcmp.eq.f32.partialorder %v4721_v5, 8.507059e+37 }
 0xc7c   : > { %v4701_v32 = vmul.f32 %v10056_v48, %v4700_v51 }
 0xc7e   : > { %4787 = vxpose.xlu2.b32.end [2/2] (short) (narrow) %v3085_v61, 32  ;;  %v4702_v3 = vadd.f32 %v10056_v48, %v4701_v32  ;;  %v11321_v32 = vld [vmem:[#allocation59_spill] sm:$0xff] }
 0xc7f   : > { %v10052_v39 = vpop.f32.mrf.mxu1 }
 0xc80   : > { %v10043_v50 = vpop.xlane.xlu0 %3967  ;;  %v10054_v24 = vpop.f32.mrf.mxu0 }
 0xc81   : > { %v10046_v26 = vpop.xlane.xlu1 %3979  ;;  %v4681_v49 = vand.u32 2147483648, %v10043_v50  ;;  %v11332_v57 = vand.u32 2147483647, %v10043_v50 }
 0xc82   : > { %6059 = vrcp.f32 %v10046_v26  ;;  %vm4731_vm2 = vweird.f32 %v10046_v26  ;;  %v4735_v60 = vand.u32 2147483647, %v10046_v26  ;;  %v4737_v47 = vand.u32 2147483648, %v10046_v26 }
 0xc83   : > { %6061 = vrcp.f32 %v10032_v21 }
 0xc84   : > { %vm4736_vm12 = vcmp.eq.f32.partialorder %v4735_v60, 8.507059e+37 }
 0xc88   : > { %v10058_v58 = vpop.eup %6059  ;;  %v10060_v12 = vpop.xlane.xlu0 %3910 }
 0xc89   : > { %v10062_v52 = vpop.xlane.xlu1 %3913  ;;  %v10064_v19 = vpop.eup %6061  ;;  %v4727_v8 = vmul.f32 %v10058_v58, %v10046_v26  ;;  %vm4732_vm15 = vweird.f32 %v10058_v58  ;;  %v4415_v20 = vand.u32 2147483648, %v10060_v12 }
 0xc8a   : > { %v10069_v18 = vpop.xlane.xlu2 %3982  ;;  %v4713_v22 = vmul.f32 %v10064_v19, %v10032_v21  ;;  %v10085_v63 = vpop.f32.mrf.mxu1  ;;  %vm4718_vm1 = vweird.f32 %v10064_v19  ;;  %vm10176_vm4 = vmor %vm4731_vm2, %vm4732_vm15  ;;  %vm4409_vm15 = vweird.f32 %v10060_v12  ;;  %vm4423_vm2 = vweird.f32 %v10062_v52 }
 0xc8b   : > { %6063 = vrcp.f32 %v10069_v18  ;;  %v4728_v9 = vsub.f32 1.0, %v4727_v8  ;;  %v10087_v28 = vpop.f32.mrf.mxu0  ;;  %v4692_v8 = vsel %vm10123_vm11, %v10041_v62, %v10081_v37  ;;  %v4749_v55 = vand.u32 2147483647, %v10069_v18  ;;  %vm10211_vm10 = vmor %vm4717_vm13, %vm4718_vm1  ;;  %v11323_v62 = vld [vmem:[#allocation60_spill] sm:$0xff] }
 0xc8c   : > { %v4714_v23 = vsub.f32 1.0, %v4713_v22  ;;  %v4751_v13 = vand.u32 2147483648, %v10069_v18  ;;  %vm4745_vm3 = vweird.f32 %v10069_v18  ;;  %vm4708_vm13 = vcmp.eq.f32.partialorder %v4707_v17, 8.507059e+37 }
 0xc8d   : > { %v4729_v1 = vmul.f32 %v10058_v58, %v4728_v9  ;;  %vm4750_vm8 = vcmp.eq.f32.partialorder %v4749_v55, 8.507059e+37  ;;  %v4738_v55 = vor.u32 1.1754944e-38, %v4737_v47  ;;  %v4697_v17 = vsel %vm10158_vm0, %v10134_v29, %v4692_v8 }
 0xc8e   : > { %v4715_v54 = vmul.f32 %v10064_v19, %v4714_v23  ;;  %v10256_v8 = vmul.f32 %v4697_v17, %v10141_v34  ;;  %v4413_v34 = vand.u32 2147483647, %v10060_v12 }
 0xc8f   : > { %v4730_v53 = vadd.f32 %v10058_v58, %v4729_v1 }
 0xc90   : > { %v10128_v16 = vpop.xlane.xlu0 %3958  ;;  %v4716_v35 = vadd.f32 %v10064_v19, %v4715_v54 }
 0xc91   : > { %v10111_v41 = vpop.eup %6063  ;;  %v10146_v22 = vpop.xlane.xlu1 %3961  ;;  %v4734_v26 = vsel %vm10176_vm4, %v10058_v58, %v4730_v53  ;;  %v4706_v53 = vsel %vm10194_vm9, %v10056_v48, %v4702_v3  ;;  %v11355_v45 = vand.u32 2147483647, %v10128_v16 }
 0xc92   : > { %v4741_v46 = vmul.f32 %v10111_v41, %v10069_v18  ;;  %v10139_v10 = vpop.xlane.xlu2 %3916  ;;  %v4190_v31 = vpop.f32.mrf.mxu1  ;;  %vm4746_vm5 = vweird.f32 %v10111_v41  ;;  %v4752_v18 = vor.u32 1.1754944e-38, %v4751_v13  ;;  %v4739_v60 = vsel %vm4736_vm12, %v4738_v55, %v4734_v26 }
 0xc93   : > { %6065 = vrcp.f32 %v10139_v10  ;;  %v4303_v42 = vpop.f32.mrf.mxu0  ;;  %vm4747_vm7 = vmor %vm4745_vm3, %vm4746_vm5  ;;  %v4711_v47 = vsel %vm4708_vm13, %v4710_v33, %v4706_v53  ;;  %vm4437_vm0 = vweird.f32 %v10139_v10  ;;  %vm4675_vm12 = vweird.f32 %v10043_v50 }
 0xc94   : > { %6067 = vrcp.f32 %v10043_v50  ;;  %v4742_v9 = vsub.f32 1.0, %v4741_v46  ;;  %v4304_v54 = vadd.f32 %v4303_v42, %v4190_v31  ;;  %v4720_v31 = vsel %vm10211_vm10, %v10064_v19, %v4716_v35  ;;  %v11320_v35 = vld [vmem:[#allocation46_spill] sm:$0xff] }
 0xc95   : > { %6069 = vrcp.f32 %v10060_v12  ;;  %v4724_v42 = vor.u32 1.1754944e-38, %v4723_v40  ;;  %v4298_v40 = vadd.f32 %v10054_v24, %v10052_v39 }
 0xc96   : > { %v4743_v4 = vmul.f32 %v10111_v41, %v4742_v9  ;;  %6071 = vrcp.f32 %v10062_v52 }
 0xc97   : > { %6073 = vrcp.f32 %v10128_v16 }
 0xc98   : > { %v4744_v23 = vadd.f32 %v10111_v41, %v4743_v4  ;;  %v10202_v4 = vpop.xlane.xlu0 %3901  ;;  %6075 = vrcp.f32 %v10146_v22 }
 0xc99   : > { %v10170_v44 = vpop.eup %6065  ;;  %v10221_v3 = vpop.xlane.xlu1 %3904 }
 0xc9a   : > { %v10182_v1 = vpop.eup %6067  ;;  %v10188_v46 = vpop.xlane.xlu2 %3964  ;;  %v4433_v9 = vmul.f32 %v10170_v44, %v10139_v10  ;;  %v4748_v58 = vsel %vm4747_vm7, %v10111_v41, %v4744_v23  ;;  %v4301_v23 = vadd.f32 %v10087_v28, %v10085_v63  ;;  %v4295_v63 = vadd.f32 %v10037_v0, %v10035_v43 }
 0xc9b   : > { %v4753_v13 = vsel %vm4750_vm8, %v4752_v18, %v4748_v58  ;;  %v4671_v41 = vmul.f32 %v10182_v1, %v10043_v50  ;;  %v10223_v21 = vpop.eup %6069  ;;  %v4725_v28 = vsel %vm4722_vm14, %v4724_v42, %v4720_v31  ;;  %v10263_v58 = vor.u32 1.1754944e-38, %v4681_v49 }
 0xc9c   : > { %v4785_v48 = vmul.f32 %v4753_v13, %v4304_v54  ;;  %v4434_v18 = vsub.f32 1.0, %v4433_v9  ;;  %v10229_v19 = vpop.eup %6071  ;;  %v10233_v54 = vadd.f32 %v11321_v32, %v11320_v35  ;;  %v4405_v61 = vmul.f32 %v10223_v21, %v10060_v12  ;;  %v11322_v9 = vld [vmem:[#allocation47_spill] sm:$0xff] }
 0xc9d   : > { %v10245_v33 = vpop.eup %6073  ;;  %v4672_v5 = vsub.f32 1.0, %v4671_v41  ;;  %v4784_v26 = vmul.f32 %v4739_v60, %v4301_v23  ;;  %v10253_v37 = vadd.f32 %v11323_v62, %v11322_v9  ;;  %v4782_v29 = vmul.f32 %v4711_v47, %v4295_v63 }
 0xc9e   : > { %5429 = vmatpush.xpose.msk.msra.mxu1 %vm1289_vm6, %v4785_v48  ;;  %v10261_v51 = vpop.eup %6075  ;;  %v4783_v39 = vmul.f32 %v4725_v28, %v4298_v40  ;;  %v4419_v24 = vmul.f32 %v10229_v19, %v10062_v52  ;;  %v4435_v53 = vmul.f32 %v10170_v44, %v4434_v18  ;;  %v4629_v55 = vmul.f32 %v10245_v33, %v10128_v16 }
 0xc9f   : > { %6077 = vrcp.f32 %v10188_v46  ;;  %v4673_v13 = vmul.f32 %v10182_v1, %v4672_v5  ;;  %v4406_v41 = vsub.f32 1.0, %v4405_v61  ;;  %v4429_v31 = vand.u32 2147483648, %v10062_v52 }
 0xca0   : > { %v10277_v48 = vpop.xlane.xlu0 %3949  ;;  %v4441_v42 = vand.u32 2147483647, %v10139_v10  ;;  %v4443_v60 = vand.u32 2147483648, %v10139_v10  ;;  %v4643_v47 = vmul.f32 %v10261_v51, %v10146_v22  ;;  %v4420_v49 = vsub.f32 1.0, %v4419_v24 }
 0xca1   : > { %v4436_v23 = vadd.f32 %v10170_v44, %v4435_v53  ;;  %vm4438_vm11 = vweird.f32 %v10170_v44  ;;  %v10287_v18 = vpop.xlane.xlu1 %3952  ;;  %v10290_v35 = vor.u32 1.1754944e-38, %v4415_v20  ;;  %v4427_v32 = vand.u32 2147483647, %v10062_v52 }
 0xca2   : > { %v10259_v0 = vpop.xlane.xlu2 %3907  ;;  %5430 = vmatpush.xpose.msk.msra.mxu1 %vm1289_vm6, %v4784_v26  ;;  %v4630_v17 = vsub.f32 1.0, %v4629_v55  ;;  %v10295_v63 = vadd.f32 %v10182_v1, %v4673_v13  ;;  %v4407_v28 = vmul.f32 %v10223_v21, %v4406_v41  ;;  %v4639_v5 = vand.u32 2147483648, %v10128_v16  ;;  %vm10309_vm3 = vmor %vm4437_vm0, %vm4438_vm11 }
 0xca3   : > { %6079 = vrcp.f32 %v10259_v0  ;;  %vm4410_vm1 = vweird.f32 %v10223_v21  ;;  %v10305_v61 = vor.u32 1.1754944e-38, %v4429_v31  ;;  %v4444_v9 = vor.u32 1.1754944e-38, %v4443_v60 }
 0xca4   : > { %6081 = vrcp.f32 %v10202_v4  ;;  %v4644_v62 = vsub.f32 1.0, %v4643_v47  ;;  %v4421_v24 = vmul.f32 %v10229_v19, %v4420_v49  ;;  %vm4442_vm4 = vcmp.eq.f32.partialorder %v4441_v42, 8.507059e+37  ;;  %vm10382_vm10 = vmor %vm4409_vm15, %vm4410_vm1 }
 0xca5   : > { %6083 = vrcp.f32 %v10221_v3  ;;  %v10301_v40 = vpop.eup %6077  ;;  %v4440_v20 = vsel %vm10309_vm3, %v10170_v44, %v4436_v23  ;;  %vm4424_vm5 = vweird.f32 %v10229_v19  ;;  %vm10326_vm7 = vcmp.eq.f32.partialorder %v4427_v32, 8.507059e+37 }
 0xca6   : > { %5431 = vmatpush.xpose.msk.msra.mxu1 %vm1289_vm6, %v4783_v39  ;;  %6085 = vrcp.f32 %v10277_v48  ;;  %v4631_v41 = vmul.f32 %v10245_v33, %v4630_v17  ;;  %v4653_v31 = vand.u32 2147483648, %v10146_v22  ;;  %v4445_v42 = vsel %vm4442_vm4, %v4444_v9, %v4440_v20  ;;  %vm4425_vm13 = vmor %vm4423_vm2, %vm4424_vm5 }
 0xca7   : > { %v4408_v47 = vadd.f32 %v10223_v21, %v4407_v28  ;;  %v10335_v44 = vor.u32 1.1754944e-38, %v4639_v5  ;;  %v4373_v49 = vand.u32 2147483648, %v10202_v4  ;;  %vm10341_vm8 = vcmp.eq.f32.partialorder %v4413_v34, 8.507059e+37 }
 0xca8   : > { %v4645_v17 = vmul.f32 %v10261_v51, %v4644_v62  ;;  %6087 = vrcp.f32 %v10287_v18  ;;  %v4763_v28 = vmul.f32 %v4445_v42, %v10253_v37  ;;  %v4422_v5 = vadd.f32 %v10229_v19, %v4421_v24  ;;  %v10367_v42 = vpop.xlane.xlu0 %3892 }
 0xca9   : > { %v10315_v10 = vpop.eup %6079  ;;  %v4657_v20 = vmul.f32 %v10301_v40, %v10188_v46  ;;  %v10359_v62 = vadd.f32 %v10245_v33, %v4631_v41  ;;  %v10361_v53 = vor.u32 1.1754944e-38, %v4653_v31  ;;  %v4665_v37 = vand.u32 2147483647, %v10188_v46  ;;  %v10376_v43 = vpop.xlane.xlu1 %3895 }
 0xcaa   : > { %v10313_v39 = vpop.xlane.xlu2 %3955  ;;  %5432 = vmatpush.xpose.msk.msra.mxu1 %vm1289_vm6, %v4782_v29  ;;  %v10323_v55 = vpop.eup %6081  ;;  %v4667_v29 = vand.u32 2147483648, %v10188_v46  ;;  %v4391_v26 = vmul.f32 %v10315_v10, %v10259_v0  ;;  %5415 = vmatpush.xpose.msk.msra.mxu2 %vm1289_vm6, %v4763_v28  ;;  %vm4676_vm9 = vweird.f32 %v10182_v1  ;;  %v10389_v2 = vor.u32 1.1754944e-38, %v4373_v49 }
 0xcab   : > { %v10332_v60 = vpop.eup %6083  ;;  %v4363_v34 = vmul.f32 %v10323_v55, %v10202_v4  ;;  %v4658_v12 = vsub.f32 1.0, %v4657_v20  ;;  %v4399_v36 = vand.u32 2147483647, %v10259_v0  ;;  %6089 = vrcp.f32 %v10313_v39  ;;  %vm10475_vm5 = vmor %vm4675_vm12, %vm4676_vm9 }
 0xcac   : > { %v10339_v23 = vpop.eup %6085  ;;  %v4377_v24 = vmul.f32 %v10332_v60, %v10221_v3  ;;  %v10370_v9 = vor.u32 1.1754944e-38, %v4667_v29  ;;  %v10387_v29 = vadd.f32 %v10261_v51, %v4645_v17  ;;  %v4392_v41 = vsub.f32 1.0, %v4391_v26 }
 0xcad   : > { %v4587_v31 = vmul.f32 %v10339_v23, %v10277_v48  ;;  %v4364_v25 = vsub.f32 1.0, %v4363_v34  ;;  %vm4662_vm14 = vweird.f32 %v10301_v40  ;;  %6091 = vrcp.f32 %v10376_v43 }
 0xcae   : > { %5433 = vmatpush.xpose.msk.msra.mxu1 %vm1289_vm6, %v10256_v8  ;;  %v4387_v8 = vand.u32 2147483648, %v10221_v3  ;;  %v10401_v49 = vpop.eup %6087  ;;  %v4378_v17 = vsub.f32 1.0, %v4377_v24  ;;  %v4426_v26 = vsel %vm4425_vm13, %v10229_v19, %v4422_v5  ;;  %v4412_v52 = vsel %vm10382_vm10, %v10223_v21, %v4408_v47 }
 0xcaf   : > { %v4401_v20 = vand.u32 2147483648, %v10259_v0  ;;  %v4588_v34 = vsub.f32 1.0, %v4587_v31  ;;  %v4431_v38 = vsel %vm10326_vm7, %v10305_v61, %v4426_v26  ;;  %vm10416_vm11 = vcmp.eq.f32.partialorder %v11332_v57, 8.507059e+37 }
 0xcb0   : > { %vm4661_vm15 = vweird.f32 %v10188_v46  ;;  %v10421_v19 = vor.u32 1.1754944e-38, %v4387_v8  ;;  %v4393_v21 = vmul.f32 %v10315_v10, %v4392_v41  ;;  %vm4395_vm0 = vweird.f32 %v10259_v0 }
 0xcb1   : > { %v4762_v47 = vmul.f32 %v4431_v38, %v10233_v54  ;;  %v4659_v61 = vmul.f32 %v10301_v40, %v4658_v12  ;;  %v4597_v13 = vand.u32 2147483648, %v10277_v48  ;;  %v4601_v57 = vmul.f32 %v10401_v49, %v10287_v18  ;;  %v10443_v31 = vpop.eup %6089 }
 0xcb2   : > { %v10392_v11 = vpop.xlane.xlu2 %3898  ;;  %v4417_v5 = vsel %vm10341_vm8, %v10290_v35, %v4412_v52  ;;  %vm4634_vm1 = vweird.f32 %v10245_v33  ;;  %vm10434_vm2 = vcmp.eq.f32.partialorder %v4665_v37, 8.507059e+37  ;;  %v4365_v41 = vmul.f32 %v10323_v55, %v4364_v25 }
 0xcb3   : > { %6093 = vrcp.f32 %v10392_v11  ;;  %v4379_v38 = vmul.f32 %v10332_v60, %v4378_v17  ;;  %v4611_v54 = vand.u32 2147483648, %v10287_v18  ;;  %5416 = vmatpush.xpose.msk.msra.mxu2 %vm1289_vm6, %v4762_v47  ;;  %vm10445_vm3 = vcmp.eq.f32.partialorder %v4399_v36, 8.507059e+37  ;;  %v10451_v25 = vpop.eup %6091  ;;  %v10459_v17 = vpop.xlane.xlu0 %3940 }
 0xcb4   : > { %6095 = vrcp.f32 %v10367_v42  ;;  %v4402_v32 = vor.u32 1.1754944e-38, %v4401_v20  ;;  %v4589_v37 = vmul.f32 %v10339_v23, %v4588_v34  ;;  %vm4633_vm4 = vweird.f32 %v10128_v16  ;;  %v11408_v16 = vld [vmem:[#allocation64_spill] sm:$0xff] }
 0xcb5   : > { %v4394_v12 = vadd.f32 %v10315_v10, %v4393_v21  ;;  %vm4396_vm8 = vweird.f32 %v10315_v10  ;;  %v4761_v36 = vmul.f32 %v4417_v5, %v10119_v27  ;;  %v4660_v52 = vadd.f32 %v10301_v40, %v4659_v61  ;;  %v10469_v21 = vpop.xlane.xlu1 %3943 }
 0xcb6   : > { %vm4381_vm13 = vweird.f32 %v10221_v3  ;;  %v10466_v20 = vor.u32 1.1754944e-38, %v4597_v13  ;;  %v4602_v34 = vsub.f32 1.0, %v4601_v57  ;;  %vm4647_vm7 = vweird.f32 %v10146_v22  ;;  %vm10504_vm10 = vmor %vm4395_vm0, %vm4396_vm8 }
 0xcb7   : > { %v10481_v61 = vadd.f32 %v10323_v55, %v4365_v41  ;;  %v10484_v13 = vadd.f32 %v10332_v60, %v4379_v38  ;;  %v10486_v57 = vor.u32 1.1754944e-38, %v4611_v54  ;;  %v4615_v5 = vmul.f32 %v10443_v31, %v10313_v39  ;;  %5417 = vmatpush.xpose.msk.msra.mxu2 %vm1289_vm6, %v4761_v36  ;;  %vm4663_vm8 = vmor %vm4661_vm15, %vm4662_vm14 }
 0xcb8   : > { %11339 = vst [vmem:[#allocation61_spill] sm:$0xff] %v10466_v20  ;;  %vm4367_vm9 = vweird.f32 %v10202_v4  ;;  %v11343_v28 = vand.u32 2147483647, %v10221_v3  ;;  %v10509_v38 = vadd.f32 %v10339_v23, %v4589_v37  ;;  %v4623_v54 = vand.u32 2147483647, %v10313_v39 }
 0xcb9   : > { %v10461_v26 = vpop.eup %6093  ;;  %11342 = vst [vmem:[#allocation49_spill] sm:$0xff] %v10486_v57  ;;  %v4625_v36 = vand.u32 2147483648, %v10313_v39  ;;  %6097 = vrcp.f32 %v10459_v17  ;;  %v4335_v20 = vmul.f32 %v10451_v25, %v10376_v43  ;;  %v4678_v37 = vsel %vm10475_vm5, %v10182_v1, %v10295_v63 }
 0xcba   : > { %v10491_v50 = vpop.xlane.xlu2 %3946  ;;  %vm10496_vm12 = vcmp.eq.f32.partialorder %v11343_v28, 8.507059e+37  ;;  %11348 = vst [vmem:[#allocation29_spill] sm:$0xff] %v10509_v38  ;;  %v10514_v28 = vpop.eup %6095  ;;  %v4349_v0 = vmul.f32 %v10461_v26, %v10392_v11  ;;  %v4398_v38 = vsel %vm10504_vm10, %v10315_v10, %v4394_v12  ;;  %v11349_v57 = vand.u32 2147483647, %v10146_v22 }
 0xcbb   : > { %v4603_v56 = vmul.f32 %v10401_v49, %v4602_v34  ;;  %v4331_v27 = vand.u32 2147483648, %v10367_v42  ;;  %v4683_v1 = vsel %vm10416_vm11, %v10263_v58, %v4678_v37  ;;  %v4403_v63 = vsel %vm10445_vm3, %v4402_v32, %v4398_v38 }
 0xcbc   : > { %vm10529_vm0 = vcmp.eq.f32.partialorder %v11349_v57, 8.507059e+37  ;;  %v11352_v10 = vand.u32 2147483647, %v10202_v4  ;;  %v4616_v57 = vsub.f32 1.0, %v4615_v5  ;;  %v4780_v46 = vmul.f32 %v4683_v1, %v10012_v59 }
 0xcbd   : > { %v4760_v34 = vmul.f32 %v4403_v63, %v10115_v30  ;;  %v4664_v41 = vsel %vm4663_vm8, %v10301_v40, %v4660_v52  ;;  %vm10555_vm14 = vcmp.eq.f32.partialorder %v11355_v45, 8.507059e+37  ;;  %v4321_v24 = vmul.f32 %v10514_v28, %v10367_v42  ;;  %v10618_v1 = vpop.xlane.xlu1 %3937 }
 0xcbe   : > { %vm10546_vm5 = vcmp.eq.f32.partialorder %v11352_v10, 8.507059e+37  ;;  %v4329_v35 = vand.u32 2147483647, %v10367_v42  ;;  %v4669_v59 = vsel %vm10434_vm2, %v10370_v9, %v4664_v41  ;;  %6099 = vrcp.f32 %v10491_v50  ;;  %5434 = vmatpush.xpose.msk.msra.mxu1 %vm1289_vm6, %v4780_v46  ;;  %vm10579_vm2 = vmor %vm4633_vm4, %vm4634_vm1 }
 0xcbf   : > { %vm4619_vm15 = vweird.f32 %v10313_v39  ;;  %v10568_v30 = vor.u32 1.1754944e-38, %v4625_v36  ;;  %v4336_v45 = vsub.f32 1.0, %v4335_v20  ;;  %v4350_v40 = vsub.f32 1.0, %v4349_v0  ;;  %5418 = vmatpush.xpose.msk.msra.mxu2 %vm1289_vm6, %v4760_v34  ;;  %v10573_v32 = vpop.eup %6097 }
 0xcc0   : > { %6101 = vrcp.f32 %v10469_v21  ;;  %v10584_v8 = vadd.f32 %v10401_v49, %v4603_v56  ;;  %vm4620_vm10 = vweird.f32 %v10443_v31  ;;  %v4343_v52 = vand.u32 2147483647, %v10376_v43 }
 0xcc1   : > { %v4345_v20 = vand.u32 2147483648, %v10376_v43  ;;  %vm11360_vm8 = vweird.f32 %v10332_v60  ;;  %v4617_v5 = vmul.f32 %v10443_v31, %v4616_v57  ;;  %v10599_v56 = vor.u32 1.1754944e-38, %v4331_v27 }
 0xcc2   : > { %vm10594_vm11 = vmor %vm4381_vm13, %vm11360_vm8  ;;  %v4357_v38 = vand.u32 2147483647, %v10392_v11  ;;  %v4779_v36 = vmul.f32 %v4669_v59, %v10006_v7  ;;  %vm11363_vm4 = vweird.f32 %v10261_v51  ;;  %vm10612_vm13 = vcmp.eq.f32.partialorder %v4623_v54, 8.507059e+37  ;;  %v10641_v4 = vpop.xlane.xlu2 %3889 }
 0xcc3   : > { %vm10608_vm3 = vmor %vm4647_vm7, %vm11363_vm4  ;;  %v4322_v37 = vsub.f32 1.0, %v4321_v24  ;;  %vm4340_vm8 = vweird.f32 %v10451_v25  ;;  %v4359_v27 = vand.u32 2147483648, %v10392_v11  ;;  %v4384_v7 = vsel %vm10594_vm11, %v10332_v60, %v10484_v13 }
 0xcc4   : > { %vm11368_vm7 = vweird.f32 %v10323_v55  ;;  %vm4592_vm1 = vweird.f32 %v10339_v23  ;;  %v4337_v54 = vmul.f32 %v10451_v25, %v4336_v45  ;;  %v4351_v63 = vmul.f32 %v10461_v26, %v4350_v40  ;;  %5435 = vmatpush.xpose.msk.msra.mxu1 %vm1289_vm6, %v4779_v36  ;;  %v10643_v13 = vpop.eup %6099  ;;  %v11378_v40 = vld [vmem:[#allocation25_spill] sm:$0xff] }
 0xcc5   : > { %vm10628_vm4 = vmor %vm4367_vm9, %vm11368_vm7  ;;  %v4545_v10 = vmul.f32 %v10573_v32, %v10459_v17  ;;  %v4389_v60 = vsel %vm10496_vm12, %v10421_v19, %v4384_v7  ;;  %v4650_v46 = vsel %vm10608_vm3, %v10261_v51, %v10387_v29  ;;  %v4636_v19 = vsel %vm10579_vm2, %v10245_v33, %v10359_v62 }
 0xcc6   : > { %v4759_v57 = vmul.f32 %v4389_v60, %v10107_v14  ;;  %v4370_v34 = vsel %vm10628_vm4, %v10323_v55, %v10481_v61  ;;  %v10658_v47 = vpop.eup %6101  ;;  %vm4591_vm9 = vweird.f32 %v10277_v48  ;;  %v4618_v14 = vadd.f32 %v10443_v31, %v4617_v5  ;;  %vm10694_vm3 = vmor %vm4619_vm15, %vm4620_vm10 }
 0xcc7   : > { %v4573_v41 = vmul.f32 %v10643_v13, %v10491_v50  ;;  %6103 = vrcp.f32 %v10618_v1  ;;  %v4655_v51 = vsel %vm10529_vm0, %v10361_v53, %v4650_v46  ;;  %v11371_v55 = vand.u32 2147483647, %v10287_v18 }
 0xcc8   : > { %v4323_v33 = vmul.f32 %v10514_v28, %v4322_v37  ;;  %vm10676_vm2 = vcmp.eq.f32.partialorder %v4343_v52, 8.507059e+37  ;;  %5419 = vmatpush.xpose.msk.msra.mxu2 %vm1289_vm6, %v4759_v57  ;;  %v4778_v61 = vmul.f32 %v4655_v51, %v9998_v15  ;;  %v4375_v6 = vsel %vm10546_vm5, %v10389_v2, %v4370_v34  ;;  %v11397_v57 = vld [vmem:[#allocation43_spill] sm:$0xff] }
 0xcc9   : > { %vm10670_vm12 = vcmp.eq.f32.partialorder %v11371_v55, 8.507059e+37  ;;  %6105 = vrcp.f32 %v10641_v4  ;;  %vm4354_vm0 = vweird.f32 %v10461_v26  ;;  %v4546_v53 = vsub.f32 1.0, %v4545_v10 }
 0xcca   : > { %v4574_v24 = vsub.f32 1.0, %v4573_v41  ;;  %v4641_v59 = vsel %vm10555_vm14, %v10335_v44, %v4636_v19  ;;  %v4338_v2 = vadd.f32 %v10451_v25, %v4337_v54  ;;  %v4352_v12 = vadd.f32 %v10461_v26, %v4351_v63  ;;  %5436 = vmatpush.xpose.msk.msra.mxu1 %vm1289_vm6, %v4778_v61 }
 0xccb   : > { %v4559_v45 = vmul.f32 %v10658_v47, %v10469_v21  ;;  %v4758_v58 = vmul.f32 %v4375_v6, %v11378_v40  ;;  %vm11379_vm5 = vweird.f32 %v10401_v49  ;;  %vm11380_vm14 = vweird.f32 %v10287_v18  ;;  %v11409_v18 = vld [vmem:[#allocation67_spill] sm:$0xff] }
 0xccc   : > { %vm10708_vm7 = vmor %vm11380_vm14, %vm11379_vm5  ;;  %vm4326_vm15 = vweird.f32 %v10514_v28  ;;  %v4346_v44 = vor.u32 1.1754944e-38, %v4345_v20  ;;  %vm4353_vm10 = vweird.f32 %v10392_v11  ;;  %v4622_v9 = vsel %vm10694_vm3, %v10443_v31, %v4618_v14  ;;  %v11401_v14 = vld [vmem:[#allocation49_spill] sm:$0xff] }
 0xccd   : > { %v11383_v52 = vand.u32 2147483647, %v10277_v48  ;;  %vm10725_vm5 = vcmp.eq.f32.partialorder %v4329_v35, 8.507059e+37  ;;  %vm11388_vm14 = vweird.f32 %v10376_v43  ;;  %vm10737_vm3 = vcmp.eq.f32.partialorder %v4357_v38, 8.507059e+37  ;;  %5420 = vmatpush.xpose.msk.msra.mxu2 %vm1289_vm6, %v4758_v58  ;;  %v11393_v35 = vld [vmem:[#allocation55_spill] sm:$0xff]  ;;  %v10744_v3 = vpop.eup %6103 }
 0xcce   : > { %vm10733_vm11 = vmor %vm11388_vm14, %vm4340_vm8  ;;  %v4360_v20 = vor.u32 1.1754944e-38, %v4359_v27  ;;  %v4575_v5 = vmul.f32 %v10643_v13, %v4574_v24  ;;  %v4777_v36 = vmul.f32 %v4641_v59, %v11393_v35  ;;  %v4324_v37 = vadd.f32 %v10514_v28, %v4323_v33  ;;  %v11405_v59 = vld [vmem:[#allocation51_spill] sm:$0xff]  ;;  %v11410_v35 = vld [vmem:[#allocation50_spill] sm:$0xff] }
 0xccf   : > { %vm10719_vm4 = vcmp.eq.f32.partialorder %v11383_v52, 8.507059e+37  ;;  %vm4355_vm8 = vmor %vm4353_vm10, %vm4354_vm0  ;;  %v4547_v43 = vmul.f32 %v10573_v32, %v4546_v53  ;;  %vm4577_vm14 = vweird.f32 %v10491_v50  ;;  %v4627_v38 = vsel %vm10612_vm13, %v10568_v30, %v4622_v9  ;;  %v6106_v27 = vpop.eup %6105 }
 0xcd0   : > { %v4560_v7 = vsub.f32 1.0, %v4559_v45  ;;  %5437 = vmatpush.xpose.msk.msra.mxu1 %vm1289_vm6, %v4777_v36  ;;  %v4356_v22 = vsel %vm4355_vm8, %v10461_v26, %v4352_v12  ;;  %v4608_v54 = vsel %vm10708_vm7, %v10401_v49, %v10584_v8  ;;  %v4342_v63 = vsel %vm10733_vm11, %v10451_v25, %v4338_v2  ;;  %vm10772_vm13 = vmor %vm4591_vm9, %vm4592_vm1  ;;  %v11396_v25 = vld [vmem:[#allocation53_spill] sm:$0xff] }
 0xcd1   : > { %v4581_v10 = vand.u32 2147483647, %v10491_v50  ;;  %v4583_v0 = vand.u32 2147483648, %v10491_v50  ;;  %v4307_v30 = vmul.f32 %v6106_v27, %v10641_v4  ;;  %v4361_v60 = vsel %vm10737_vm3, %v4360_v20, %v4356_v22  ;;  %v11407_v45 = vld [vmem:[#allocation61_spill] sm:$0xff] }
 0xcd2   : > { %vm4563_vm0 = vweird.f32 %v10469_v21  ;;  %v4576_v49 = vadd.f32 %v10643_v13, %v4575_v5  ;;  %vm4578_vm11 = vweird.f32 %v10643_v13  ;;  %v4776_v8 = vmul.f32 %v4627_v38, %v11396_v25  ;;  %v11411_v38 = vld [vmem:[#allocation57_spill] sm:$0xff]  ;;  %v11413_v25 = vld [vmem:[#allocation32_spill] sm:$0xff] }
 0xcd3   : > { %v4757_v46 = vmul.f32 %v4361_v60, %v11397_v57  ;;  %vm11398_vm7 = vweird.f32 %v10367_v42  ;;  %v4531_v34 = vmul.f32 %v10744_v3, %v10618_v1  ;;  %v4308_v19 = vsub.f32 1.0, %v4307_v30  ;;  %v11402_v42 = vld [vmem:[#allocation29_spill] sm:$0xff]  ;;  %vm10809_vm1 = vmor %vm4577_vm14, %vm4578_vm11  ;;  %v11414_v57 = vld [vmem:[#allocation48_spill] sm:$0xff] }
 0xcd4   : > { %vm10785_vm10 = vmor %vm11398_vm7, %vm4326_vm15  ;;  %v4613_v41 = vsel %vm10670_vm12, %v11401_v14, %v4608_v54  ;;  %v4347_v51 = vsel %vm10676_vm2, %v4346_v44, %v4342_v63  ;;  %v4561_v55 = vmul.f32 %v10658_v47, %v4560_v7  ;;  %v4317_v33 = vand.u32 2147483648, %v10641_v4  ;;  %5438 = vmatpush.xpose.msk.msra.mxu1 %vm1289_vm6, %v4776_v8  ;;  %v6137_v14 = vld [vmem:[%s6524_s23 + $0x8] sm:$0xff] }
 0xcd5   : > { %5421 = vmatpush.xpose.msk.msra.mxu2 %vm1289_vm6, %v4757_v46  ;;  %v4594_v61 = vsel %vm10772_vm13, %v10339_v23, %v11402_v42  ;;  %v4328_v29 = vsel %vm10785_vm10, %v10514_v28, %v4324_v37  ;;  %v4584_v6 = vor.u32 1.1754944e-38, %v4583_v0  ;;  %v4309_v53 = vmul.f32 %v6106_v27, %v4308_v19  ;;  %v11406_v23 = vld [vmem:[#allocation54_spill] sm:$0xff]  ;;  %v1126_v19 = vpop.permute.xlu0 %1125 }
 0xcd6   : > { %vm4312_vm9 = vweird.f32 %v6106_v27  ;;  %v4315_v24 = vand.u32 2147483647, %v10641_v4  ;;  %vm4311_vm12 = vweird.f32 %v10641_v4  ;;  %v4775_v15 = vmul.f32 %v4613_v41, %v11405_v59  ;;  %v11412_v0 = vld [vmem:[#allocation26_spill] sm:$0xff] }
 0xcd7   : > { %v4756_v2 = vmul.f32 %v4347_v51, %v11406_v23  ;;  %v4580_v28 = vsel %vm10809_vm1, %v10643_v13, %v4576_v49  ;;  %v4532_v50 = vsub.f32 1.0, %v4531_v34  ;;  %v4310_v12 = vadd.f32 %v6106_v27, %v4309_v53  ;;  %vm4313_vm3 = vmor %vm4311_vm12, %vm4312_vm9  ;;  %v1131_v51 = vpop.permute.xlu1 %1130 }
 0xcd8   : > { %v4599_v40 = vsel %vm10719_vm4, %v11407_v45, %v4594_v61  ;;  %v4333_v58 = vsel %vm10725_vm5, %v10599_v56, %v4328_v29  ;;  %v4562_v4 = vadd.f32 %v10658_v47, %v4561_v55  ;;  %vm4564_vm2 = vweird.f32 %v10658_v47  ;;  %5439 = vmatpush.xpose.msk.msra.mxu1 %vm1289_vm6, %v4775_v15  ;;  %v11415_v55 = vld [vmem:[#allocation16_spill] sm:$0xff]  ;;  %v6140_v45 = vld [vmem:[%s6524_s23 + $0x10] sm:$0xff] }
 0xcd9   : > { %vm4582_vm15 = vcmp.eq.f32.partialorder %v4581_v10, 8.507059e+37  ;;  %v4318_v39 = vor.u32 1.1754944e-38, %v4317_v33  ;;  %5422 = vmatpush.xpose.msk.msra.mxu2 %vm1289_vm6, %v4756_v2  ;;  %v4569_v13 = vand.u32 2147483648, %v10469_v21  ;;  %vm4316_vm8 = vcmp.eq.f32.partialorder %v4315_v24, 8.507059e+37  ;;  %vm4565_vm4 = vmor %vm4563_vm0, %vm4564_vm2  ;;  %v6138_v61 = vld [vmem:[%s6524_s23] sm:$0xff]  ;;  %v11416_v24 = vld [vmem:[#allocation42_spill] sm:$0xff] }
 0xcda   : > { %v4585_v44 = vsel %vm4582_vm15, %v4584_v6, %v4580_v28  ;;  %v4314_v9 = vsel %vm4313_vm3, %v6106_v27, %v4310_v12  ;;  %v4567_v52 = vand.u32 2147483647, %v10469_v21  ;;  %v4774_v56 = vmul.f32 %v4599_v40, %v11408_v16  ;;  %v6139_v6 = vld [vmem:[%s6524_s23 + $0x18] sm:$0xff]  ;;  %v11417_v2 = vld [vmem:[#allocation68_spill] sm:$0xff] }
 0xcdb   : > { %v4755_v11 = vmul.f32 %v4333_v58, %v11409_v18  ;;  %v4319_v31 = vsel %vm4316_vm8, %v4318_v39, %v4314_v9  ;;  %v4548_v20 = vadd.f32 %v10573_v32, %v4547_v43  ;;  %v4533_v5 = vmul.f32 %v10744_v3, %v4532_v50 }
 0xcdc   : > { %vm4550_vm5 = vweird.f32 %v10573_v32  ;;  %5440 = vmatpush.xpose.msk.msra.mxu1 %vm1289_vm6, %v4774_v56  ;;  %v4773_v36 = vmul.f32 %v4585_v44, %v11410_v35  ;;  %v4566_v37 = vsel %vm4565_vm4, %v10658_v47, %v4562_v4  ;;  %v4754_v27 = vmul.f32 %v4319_v31, %v11411_v38  ;;  %v6141_v4 = vld [vmem:[%s6524_s23 + $0x28] sm:$0xff]  ;;  %v6142_v31 = vld [vmem:[%s6524_s23 + $0x20] sm:$0xff]  ;;  %v6143_v35 = vld [vmem:[%s6524_s23 + $0x38] sm:$0xff] }
 0xcdd   : > { %5423 = vmatpush.xpose.msk.msra.mxu2 %vm1289_vm6, %v4755_v11  ;;  %v4555_v43 = vand.u32 2147483648, %v10459_v17  ;;  %v4570_v7 = vor.u32 1.1754944e-38, %v4569_v13  ;;  %vm4549_vm14 = vweird.f32 %v10459_v17  ;;  %v4553_v21 = vand.u32 2147483647, %v10459_v17  ;;  %v11418_v13 = vld [vmem:[#allocation41_spill] sm:$0xff] }
 0xcde   : > { %vm4568_vm13 = vcmp.eq.f32.partialorder %v4567_v52, 8.507059e+37  ;;  %vm4551_vm0 = vmor %vm4549_vm14, %vm4550_vm5  ;;  %v4534_v54 = vadd.f32 %v10744_v3, %v4533_v5  ;;  %vm4536_vm11 = vweird.f32 %v10744_v3  ;;  %v4541_v10 = vand.u32 2147483648, %v10618_v1  ;;  %v11419_v52 = vld [vmem:[#allocation21_spill] sm:$0xff] }
 0xcdf   : > { %v4571_v22 = vsel %vm4568_vm13, %v4570_v7, %v4566_v37  ;;  %v4552_v47 = vsel %vm4551_vm0, %v10573_v32, %v4548_v20  ;;  %v4556_v63 = vor.u32 1.1754944e-38, %v4555_v43  ;;  %vm4554_vm7 = vcmp.eq.f32.partialorder %v4553_v21, 8.507059e+37  ;;  %v1136_v15 = vpop.permute.xlu1 %1135  ;;  %v11420_v37 = vld [vmem:[#allocation28_spill] sm:$0xff]  ;;  %v11421_v43 = vld [vmem:[#allocation37_spill] sm:$0xff] }
 0xce0   : > { %5441 = vmatpush.xpose.msk.msra.mxu1 %vm1289_vm6, %v4773_v36  ;;  %vm4535_vm10 = vweird.f32 %v10618_v1  ;;  %v4539_v17 = vand.u32 2147483647, %v10618_v1  ;;  %v4772_v30 = vmul.f32 %v4571_v22, %v11412_v0  ;;  %v4542_v49 = vor.u32 1.1754944e-38, %v4541_v10  ;;  %v11422_v10 = vld [vmem:[#allocation40_spill] sm:$0xff] }
 0xce1   : > { %5424 = vmatpush.xpose.msk.msra.mxu2 %vm1289_vm6, %v4754_v27  ;;  %vm4537_vm1 = vmor %vm4535_vm10, %vm4536_vm11  ;;  %v4557_v60 = vsel %vm4554_vm7, %v4556_v63, %v4552_v47  ;;  %v1144_v41 = vadd.f32 %v6137_v14, %v1126_v19  ;;  %v1143_v29 = vadd.f32 %v6138_v61, %v1126_v19  ;;  %v1146_v53 = vadd.f32 %v6139_v6, %v1131_v51 }
 0xce2   : > { %v4538_v26 = vsel %vm4537_vm1, %v10744_v3, %v4534_v54  ;;  %vm4540_vm9 = vcmp.eq.f32.partialorder %v4539_v17, 8.507059e+37  ;;  %v4771_v32 = vmul.f32 %v4557_v60, %v11413_v25  ;;  %v1145_v40 = vadd.f32 %v6140_v45, %v1131_v51  ;;  %v6144_v54 = vld [vmem:[%s6524_s23 + $0x30] sm:$0xff] }
 0xce3   : > { %v4543_v8 = vsel %vm4540_vm9, %v4542_v49, %v4538_v26  ;;  %v3037_v33 = vadd.f32 %v11415_v55, %v1144_v41  ;;  %v3036_v59 = vadd.f32 %v11416_v24, %v1143_v29  ;;  %v3039_v28 = vadd.f32 %v11417_v2, %v1146_v53 }
 0xce4   : > { %5442 = vmatpush.xpose.msk.msra.mxu1 %vm1289_vm6, %v4772_v30  ;;  %v4770_v46 = vmul.f32 %v4543_v8, %v11414_v57  ;;  %v1148_v39 = vadd.f32 %v6141_v4, %v1136_v15  ;;  %v3038_v44 = vadd.f32 %v11418_v13, %v1145_v40  ;;  %v1147_v20 = vadd.f32 %v6142_v31, %v1136_v15 }
 0xce6   : > { %v3041_v16 = vadd.f32 %v11419_v52, %v1148_v39  ;;  %v3040_v38 = vadd.f32 %v11420_v37, %v1147_v20 }
 0xce7   : > { %v1141_v18 = vpop.permute.xlu1 %1140 }
 0xce8   : > { %5443 = vmatpush.xpose.msk.msra.mxu1 %vm1289_vm6, %v4771_v32  ;;  %v1150_v36 = vadd.f32 %v6143_v35, %v1141_v18  ;;  %v1149_v47 = vadd.f32 %v6144_v54, %v1141_v18 }
 0xcea   : > { %v3043_v7 = vadd.f32 %v11421_v43, %v1150_v36  ;;  %v3042_v17 = vadd.f32 %v11422_v10, %v1149_v47 }
 0xcec   : > { %5444 = vmatpush.xpose.msk.msra.mxu1 %vm1289_vm6, %v4770_v46 }
 0xd0f   : > { %v4802_v1 = vpop.trf.xlu2 }
 0xd10   : > { %5425 = vmatmul.msk.f32.vlgmr.msra.gmra.mxu2 %vm1289_vm6, %v4802_v1  ;;  %5445 = vmatmul.msk.f32.vlgmr.msra.gmra.mxu1 %vm1289_vm6, %v4802_v1 }
 0xd17   : > { %v4803_v48 = vpop.trf.xlu2 }
 0xd18   : > { %5426 = vmatmul.msk.f32.gmra.mxu2 %vm1289_vm6, %v4803_v48  ;;  %5446 = vmatmul.msk.f32.gmra.mxu1 %vm1289_vm6, %v4803_v48 }
 0xd1f   : > { %v4804_v3 = vpop.trf.xlu2 }
 0xd20   : > { %5427 = vmatmul.msk.f32.gmra.mxu2 %vm1289_vm6, %v4804_v3  ;;  %5447 = vmatmul.msk.f32.gmra.mxu1 %vm1289_vm6, %v4804_v3 }
 0xd27   : > { %v4805_v34 = vpop.trf.xlu2 }
 0xd28   : > { %5428 = vmatmul.msk.f32.gmra.mxu2 %vm1289_vm6, %v4805_v34  ;;  %5448 = vmatmul.msk.f32.gmra.mxu1 %vm1289_vm6, %v4805_v34 }
 0xd8d   : > { %v4972_v42 = vpop.f32.mrf.mxu1 }
 0xd8e   : > { %v4993_v62 = vadd.f32 %v4972_v42, %v3037_v33 }
 0xd90   : > { %5001 = vst [vmem:[%s10878_s21 + $0x8] sm:$0xff] %v4993_v62 }
 0xd93   : > { %v4943_v23 = vpop.f32.mrf.mxu2 }
 0xd94   : > { %v4992_v50 = vadd.f32 %v4943_v23, %v3036_v59 }
 0xd95   : > { %v4975_v12 = vpop.f32.mrf.mxu1 }
 0xd96   : > { %5000 = vst [vmem:[%s10878_s21] sm:$0xff] %v4992_v50  ;;  %v4995_v58 = vadd.f32 %v4975_v12, %v3039_v28 }
 0xd98   : > { %5003 = vst [vmem:[%s10878_s21 + $0x18] sm:$0xff] %v4995_v58 }
 0xd9b   : > { %v4946_v9 = vpop.f32.mrf.mxu2 }
 0xd9c   : > { %v4994_v56 = vadd.f32 %v4946_v9, %v3038_v44 }
 0xd9d   : > { %v4978_v11 = vpop.f32.mrf.mxu1 }
 0xd9e   : > { %5002 = vst [vmem:[%s10878_s21 + $0x10] sm:$0xff] %v4994_v56  ;;  %v4997_v5 = vadd.f32 %v4978_v11, %v3041_v16 }
 0xda0   : > { %5005 = vst [vmem:[%s10878_s21 + $0x28] sm:$0xff] %v4997_v5 }
 0xda3   : > { %v4949_v27 = vpop.f32.mrf.mxu2 }
 0xda4   : > { %v4996_v21 = vadd.f32 %v4949_v27, %v3040_v38 }
 0xda5   : > { %v4981_v22 = vpop.f32.mrf.mxu1 }
 0xda6   : > { %5004 = vst [vmem:[%s10878_s21 + $0x20] sm:$0xff] %v4996_v21  ;;  %v4999_v63 = vadd.f32 %v4981_v22, %v3043_v7 }
 0xda8   : > { %5007 = vst [vmem:[%s10878_s21 + $0x38] sm:$0xff] %v4999_v63 }
 0xdab   : > { %v4952_v0 = vpop.f32.mrf.mxu2 }
 0xdac   : > { %v4998_v30 = vadd.f32 %v4952_v0, %v3042_v17 }
 0xdae   : > { %5006 = vst [vmem:[%s10878_s21 + $0x30] sm:$0xff] %v4998_v30 }
 0xdaf   : > { %6292 = shalt.err (!%p6289_p10)
}
 0xdb0   : > { %s6355_s18 = smov 256   ;;  %s6356_s21 = smov 16  }
 0xdb1   : > { %5478 = dma.vmem_to_hbm [thread:$0]  (%p6490_p7), %s5022_s27, 1024, %s5024_s28, %s5009_s13, %s6355_s18, %s6355_s18, %s6356_s21  }
 0xdb2 PF: > { %s5038_s5 = sand.u32 1, %s6327_s30   ;;  %p11423_p12 = scmp.ge.s32.totalorder %s6339_s12, 2 }
 0xdb3   : > { %s5039_s22 = scalar_lea.sflag [#allocation5], %s5038_s5 }
 0xdb4   : > { %p5495_p13 = pnand %p11423_p12, %p6442_p6 }
 0xdb6   : > { %p5496_p0 = pneg %p5495_p13 }
 0xdb8   : > { %6322 = dma.done.wait (%p5496_p0), %s5039_s22, 1024  }
 0xdb9   : > { %6324 = vsyncadd (%p5496_p0), %s5039_s22, 4294966272  ;;  %p24_p3 = scmp.ge.s32.totalorder %s6474_s19, 4   ;;  %s11424_s30 = smov %s6331_s10 }
 0xdba   : > { %s11425_s10 = smov %s6335_s11  ;;  %s11426_s11 = smov %s6486_s17 }
 0xdbb   : > { %s11427_s12 = smov %s6474_s19  ;;  %26 = sbr.rel (!%p24_p3) target bundleno = 11 (0xb), region = 113 }
 0xdc0   :  { %5045 = vsyncpa [#allocation4], 1 }
 0xdc1   :  { %5047 = vsyncpa [#allocation4 + $0x1], 1 }
 0xdc2   :  { %5048 = vsyncpa [#allocation7], 1 }
 0xdc3   :  { %5049 = vsyncpa [#allocation10], 1 }
 0xdc4   :  { %5050 = vsyncpa [#allocation5], 1 }
 0xdc5   :  { %5052 = vsyncpa [#allocation5 + $0x1], 1 }

</bundles_post_ra>
